<compile_context>
chip_gen: v5e
topology: v5e:2x2
jax: 0.10.0
libtpu: 0.0.40
codegen_flags: <defaults>
</compile_context>

<pallas_src>
import functools

import numpy as np
import jax
import jax.numpy as jnp
from jax.experimental import pallas as pl
from jax.experimental.pallas import tpu as pltpu


def _bilinear_matrix(in_size: int, out_size: int) -> np.ndarray:
    """1-D interpolation matrix matching nn.Upsample(mode='bilinear',
    align_corners=False): out = R @ in along one spatial axis."""
    R = np.zeros((out_size, in_size), dtype=np.float32)
    scale = in_size / out_size
    for i in range(out_size):
        src = max((i + 0.5) * scale - 0.5, 0.0)
        i0 = min(int(np.floor(src)), in_size - 1)
        i1 = min(i0 + 1, in_size - 1)
        lam = src - i0
        R[i, i0] += 1.0 - lam
        R[i, i1] += lam
    return R


def _kron_upsample_operator(H: int, W: int, scale: int) -> np.ndarray:
    """(H*W, Ho*Wo) operator: u_flat = y_flat @ M, equivalent to separable
    bilinear upsampling with align_corners=False."""
    Rh = _bilinear_matrix(H, H * scale)          # (Ho, H)
    Rw = _bilinear_matrix(W, W * scale)          # (Wo, W)
    return np.kron(Rh, Rw).T.astype(np.float32)  # (H*W, Ho*Wo)


def _decoder_kernel(dims,
                    patches_ref, wcat_ref, bias_ref,
                    kn_ref, ki_ref,
                    w1t_ref, b1_ref, w2_ref, b2_ref, ws_ref, bs_ref,
                    on_ref, ou_ref):
    N, Cn, HW, HWn = dims
    f32, bf16 = jnp.float32, jnp.bfloat16

    # fused conv_next + conv_input: one MXU matmul over precomputed im2col
    # patches (bf16 operands, f32 accumulation); BN scale folded into weights.
    y = jnp.dot(wcat_ref[...], patches_ref[...],
                preferred_element_type=f32)                      # (Cn+Ci, N*HW)
    y = jnp.maximum(y + bias_ref[...], 0.0)                      # BN bias + ReLU

    yn = y[:Cn].astype(bf16)                                     # (Cn, N*HW)
    yi = y[Cn:].astype(bf16)                                     # (Ci, N*HW)

    inv_hwn = 1.0 / HWn
    for n in range(N):  # N=2, static unroll; lane slices at 128-aligned offsets
        lo, hi = n * HW, (n + 1) * HW

        # ---- next branch: single kron-operator upsample matmul (lane-dense out)
        un = jnp.dot(yn[:, lo:hi], kn_ref[...],
                     preferred_element_type=f32)                 # (Cn, HWn)

        # channel-SE: GAP -> 2-layer MLP -> sigmoid, all VPU mul + tiny reduces
        z = jnp.sum(un, axis=1, keepdims=True) * inv_hwn         # (Cn, 1)
        hz = jnp.maximum(
            jnp.sum(w1t_ref[...] * z, axis=0, keepdims=True) + b1_ref[...],
            0.0)                                                 # (1, Cr)
        s = jax.nn.sigmoid(
            jnp.sum(w2_ref[...] * hz, axis=1, keepdims=True) + b2_ref[...])  # (Cn,1)

        # spatial-SE: 1x1 conv == channel (sublane) reduce
        q = jax.nn.sigmoid(
            jnp.sum(un * ws_ref[...], axis=0, keepdims=True) + bs_ref[...])  # (1,HWn)

        on_ref[n] = (un * (s + q)).astype(on_ref.dtype)

        # ---- input branch: upsample only
        ui = jnp.dot(yi[:, lo:hi], ki_ref[...],
                     preferred_element_type=f32)                 # (Ci, HWi)
        ou_ref[n] = ui.astype(ou_ref.dtype)


def prepare_params(p, H, W, up_scale_next, up_scale_input):
    """Hoisted, input-independent preprocessing (call once and cache)."""
    f32, bf16 = jnp.float32, jnp.bfloat16
    Cn = p["w_next"].shape[0]
    Cr = p["se_w1"].shape[0]

    def fold(w, b, gamma, beta, mean, var, eps=1e-5):
        scale = gamma / jnp.sqrt(var + eps)
        bias = beta + scale * (b - mean)
        wflat = jnp.transpose(w, (0, 2, 3, 1)).reshape(w.shape[0], -1)  # (O, 9*I)
        return wflat * scale[:, None], bias                              # scale folded

    wn, bn = fold(p["w_next"], p["b_next"], p["bn_next_gamma"],
                  p["bn_next_beta"], p["bn_next_mean"], p["bn_next_var"])
    wi, bi = fold(p["w_input"], p["b_input"], p["bn_input_gamma"],
                  p["bn_input_beta"], p["bn_input_mean"], p["bn_input_var"])

    return dict(
        wcat=jnp.concatenate([wn, wi], axis=0).astype(bf16),           # (Cn+Ci, 9*Cin)
        bias=jnp.concatenate([bn, bi]).reshape(-1, 1).astype(f32),     # (Cn+Ci, 1)
        kn=jnp.asarray(_kron_upsample_operator(H, W, up_scale_next)).astype(bf16),
        ki=jnp.asarray(_kron_upsample_operator(H, W, up_scale_input)).astype(bf16),
        w1t=p["se_w1"].T.astype(f32),                                  # (Cn, Cr)
        b1=p["se_b1"].reshape(1, Cr).astype(f32),
        w2=p["se_w2"].astype(f32),                                     # (Cn, Cr)
        b2=p["se_b2"].reshape(Cn, 1).astype(f32),
        ws=p["se_ws"].reshape(Cn, 1).astype(f32),
        bs=p["se_bs"].reshape(1, 1).astype(f32),
    )


@functools.partial(jax.jit, static_argnums=(2, 3))
def decoder_block_forward(x_nchw, cp, up_scale_next, up_scale_input):
    N, Cin, H, W = x_nchw.shape
    Ctot = cp["wcat"].shape[0]
    Cn = cp["w2"].shape[0]
    Ci = Ctot - Cn
    HW = H * W
    HWn, HWi = cp["kn"].shape[1], cp["ki"].shape[1]
    Hn, Wn = H * up_scale_next, W * up_scale_next
    Hi, Wi = H * up_scale_input, W * up_scale_input
    f32, bf16 = jnp.float32, jnp.bfloat16

    # wrapper-side im2col: lane-dense bf16 patches, contraction = (tap, cin),
    # lanes = (n, h, w).  At this size the HBM blowup is negligible and the
    # kernel avoids all misaligned slice/reshape relayouts.
    xpad = jnp.pad(x_nchw.astype(f32), ((0, 0), (0, 0), (1, 1), (1, 1)))
    taps = [xpad[:, :, di:di + H, dj:dj + W]
            for di in range(3) for dj in range(3)]                 # each (N,Cin,H,W)
    patches = jnp.stack(taps, axis=0).transpose(0, 2, 1, 3, 4)     # (9,Cin,N,H,W)
    patches = patches.reshape(9 * Cin, N * HW).astype(bf16)        # (9*Cin, N*HW)

    inputs = [patches, cp["wcat"], cp["bias"], cp["kn"], cp["ki"],
              cp["w1t"], cp["b1"], cp["w2"], cp["b2"], cp["ws"], cp["bs"]]
    in_specs = [pl.BlockSpec(a.shape, lambda i, nd=a.ndim: (0,) * nd)
                for a in inputs]
    out_specs = (pl.BlockSpec((N, Cn, HWn), lambda i: (0, 0, 0)),
                 pl.BlockSpec((N, Ci, HWi), lambda i: (0, 0, 0)))
    out_shape = (jax.ShapeDtypeStruct((N, Cn, HWn), f32),
                 jax.ShapeDtypeStruct((N, Ci, HWi), f32))

    kernel = functools.partial(_decoder_kernel, (N, Cn, HW, HWn))

    # Single grid step with N folded into the lane axis (best on 1-TC v5e/v6e).
    # For v7x with larger batch, split a batch grid axis with
    # dimension_semantics=("parallel",) to use both TensorCores.
    on, ou = pl.pallas_call(
        kernel,
        out_shape=out_shape,
        grid=(1,),
        in_specs=in_specs,
        out_specs=out_specs,
        compiler_params=pltpu.CompilerParams(
            dimension_semantics=("arbitrary",)),
    )(*inputs)

    # outputs are already channels-first; only free reshapes back to NCHW 4-D
    return on.reshape(N, Cn, Hn, Wn), ou.reshape(N, Ci, Hi, Wi)


def decoder_block_reference(x_nchw, p, up_scale_next, up_scale_input):
    """Independent pure-f32 JAX reference of DecoderBlock.forward (eval mode)."""
    f32 = jnp.float32
    hi = jax.lax.Precision.HIGHEST
    N, Cin, H, W = x_nchw.shape

    def conv_bn_relu(w, b, gamma, beta, mean, var, eps=1e-5):
        y = jax.lax.conv_general_dilated(
            x_nchw.astype(f32), w.astype(f32), (1, 1), ((1, 1), (1, 1)),
            dimension_numbers=("NCHW", "OIHW", "NCHW"), precision=hi)
        y = y + b[None, :, None, None]
        y = (y - mean[None, :, None, None]) / jnp.sqrt(var + eps)[None, :, None, None]
        y = gamma[None, :, None, None] * y + beta[None, :, None, None]
        return jnp.maximum(y, 0.0)

    def upsample(y, s):
        _, _, Hc, Wc = y.shape
        Rh = jnp.asarray(_bilinear_matrix(Hc, Hc * s))
        Rw = jnp.asarray(_bilinear_matrix(Wc, Wc * s))
        t = jnp.einsum("nchw,qw->nchq", y, Rw, precision=hi)
        return jnp.einsum("nchq,oh->ncoq", t, Rh, precision=hi)

    un = upsample(conv_bn_relu(p["w_next"], p["b_next"], p["bn_next_gamma"],
                               p["bn_next_beta"], p["bn_next_mean"],
                               p["bn_next_var"]), up_scale_next)
    z = un.mean(axis=(2, 3))
    hz = jnp.maximum(z @ p["se_w1"].T + p["se_b1"], 0.0)
    s = jax.nn.sigmoid(hz @ p["se_w2"].T + p["se_b2"])
    q = jax.nn.sigmoid(jnp.einsum("nchw,c->nhw", un, p["se_ws"]) + p["se_bs"])
    out_next = un * s[:, :, None, None] + un * q[:, None, :, :]

    out_up = upsample(conv_bn_relu(p["w_input"], p["b_input"], p["bn_input_gamma"],
                                   p["bn_input_beta"], p["bn_input_mean"],
                                   p["bn_input_var"]), up_scale_input)
    return out_next, out_up


if __name__ == "__main__":
    # DecoderBlock(in_channels=4, out_channels_next=8, up_scale_next=2,
    #              out_channels_input=8, up_scale_input=4) on a (2, 4, 16, 16) input.
    N, Cin, H, W = 2, 4, 16, 16
    Cn, up_next = 8, 2
    Ci, up_inp = 8, 4
    Cr = max(Cn // 2, 1)   # scSE channel reduction (assumed, see TODO)

    f32 = jnp.float32
    ks = jax.random.split(jax.random.PRNGKey(0), 20)
    params = dict(
        w_next=0.2 * jax.random.normal(ks[0], (Cn, Cin, 3, 3), f32),
        b_next=0.1 * jax.random.normal(ks[1], (Cn,), f32),
        bn_next_gamma=1.0 + 0.1 * jax.random.normal(ks[2], (Cn,), f32),
        bn_next_beta=0.1 * jax.random.normal(ks[3], (Cn,), f32),
        bn_next_mean=0.1 * jax.random.normal(ks[4], (Cn,), f32),
        bn_next_var=jnp.abs(jax.random.normal(ks[5], (Cn,), f32)) + 0.5,
        w_input=0.2 * jax.random.normal(ks[6], (Ci, Cin, 3, 3), f32),
        b_input=0.1 * jax.random.normal(ks[7], (Ci,), f32),
        bn_input_gamma=1.0 + 0.1 * jax.random.normal(ks[8], (Ci,), f32),
        bn_input_beta=0.1 * jax.random.normal(ks[9], (Ci,), f32),
        bn_input_mean=0.1 * jax.random.normal(ks[10], (Ci,), f32),
        bn_input_var=jnp.abs(jax.random.normal(ks[11], (Ci,), f32)) + 0.5,
        se_w1=0.3 * jax.random.normal(ks[12], (Cr, Cn), f32),
        se_b1=0.1 * jax.random.normal(ks[13], (Cr,), f32),
        se_w2=0.3 * jax.random.normal(ks[14], (Cn, Cr), f32),
        se_b2=0.1 * jax.random.normal(ks[15], (Cn,), f32),
        se_ws=0.3 * jax.random.normal(ks[16], (Cn,), f32),
        se_bs=0.1 * jax.random.normal(ks[17], (1,), f32),
    )
    x = jax.random.normal(ks[18], (N, Cin, H, W), f32)

    # constant preprocessing hoisted out of the per-call path and cached
    cached = prepare_params(params, H, W, up_next, up_inp)
    cached = jax.tree_util.tree_map(jax.block_until_ready, cached)

    out_next, out_up = decoder_block_forward(x, cached, up_next, up_inp)
    jax.block_until_ready((out_next, out_up))
    assert out_next.shape == (N, Cn, H * up_next, W * up_next), out_next.shape
    assert out_up.shape == (N, Ci, H * up_inp, W * up_inp), out_up.shape

    # pure-f32 reference check (kernel uses bf16 MXU operands -> loose tolerance)
    ref_next, ref_up = decoder_block_reference(x, params, up_next, up_inp)
    np.testing.assert_allclose(np.asarray(out_next), np.asarray(ref_next),
                               rtol=2e-2, atol=2e-2)
    np.testing.assert_allclose(np.asarray(out_up), np.asarray(ref_up),
                               rtol=2e-2, atol=2e-2)
    print("KERNEL_OK")
</pallas_src>

<mosaic_0001>
module attributes {stable_mosaic.version = 11 : i64} {
  func.func @_decoder_kernel(%arg0: i32, %arg1: memref<36x512xbf16, #tpu.memory_space<vmem>>, %arg2: memref<16x36xbf16, #tpu.memory_space<vmem>>, %arg3: memref<16x1xf32, #tpu.memory_space<vmem>>, %arg4: memref<256x1024xbf16, #tpu.memory_space<vmem>>, %arg5: memref<256x4096xbf16, #tpu.memory_space<vmem>>, %arg6: memref<8x4xf32, #tpu.memory_space<vmem>>, %arg7: memref<1x4xf32, #tpu.memory_space<vmem>>, %arg8: memref<8x4xf32, #tpu.memory_space<vmem>>, %arg9: memref<8x1xf32, #tpu.memory_space<vmem>>, %arg10: memref<8x1xf32, #tpu.memory_space<vmem>>, %arg11: memref<1x1xf32, #tpu.memory_space<vmem>>, %arg12: memref<2x8x1024xf32, #tpu.memory_space<vmem>>, %arg13: memref<2x8x4096xf32, #tpu.memory_space<vmem>>) attributes {dimension_semantics = [#tpu.dimension_semantics<arbitrary>], iteration_bounds = array<i64: 1>, scalar_prefetch = 0 : i64, scratch_operands = 0 : i64, tpu.core_type = #tpu.core_type<tc>, window_params = [{pipeline_mode = #tpu.pipeline_mode<synchronous>, transform_indices = @transform_0, window_bounds = array<i64: 36, 512>}, {pipeline_mode = #tpu.pipeline_mode<synchronous>, transform_indices = @transform_1, window_bounds = array<i64: 16, 36>}, {pipeline_mode = #tpu.pipeline_mode<synchronous>, transform_indices = @transform_2, window_bounds = array<i64: 16, 1>}, {pipeline_mode = #tpu.pipeline_mode<synchronous>, transform_indices = @transform_3, window_bounds = array<i64: 256, 1024>}, {pipeline_mode = #tpu.pipeline_mode<synchronous>, transform_indices = @transform_4, window_bounds = array<i64: 256, 4096>}, {pipeline_mode = #tpu.pipeline_mode<synchronous>, transform_indices = @transform_5, window_bounds = array<i64: 8, 4>}, {pipeline_mode = #tpu.pipeline_mode<synchronous>, transform_indices = @transform_6, window_bounds = array<i64: 1, 4>}, {pipeline_mode = #tpu.pipeline_mode<synchronous>, transform_indices = @transform_7, window_bounds = array<i64: 8, 4>}, {pipeline_mode = #tpu.pipeline_mode<synchronous>, transform_indices = @transform_8, window_bounds = array<i64: 8, 1>}, {pipeline_mode = #tpu.pipeline_mode<synchronous>, transform_indices = @transform_9, window_bounds = array<i64: 8, 1>}, {pipeline_mode = #tpu.pipeline_mode<synchronous>, transform_indices = @transform_10, window_bounds = array<i64: 1, 1>}, {pipeline_mode = #tpu.pipeline_mode<synchronous>, transform_indices = @transform_11, window_bounds = array<i64: 2, 8, 1024>}, {pipeline_mode = #tpu.pipeline_mode<synchronous>, transform_indices = @transform_12, window_bounds = array<i64: 2, 8, 4096>}]} {
    %c0 = arith.constant 0 : index
    %c0_0 = arith.constant 0 : index
    %0 = vector.load %arg2[%c0, %c0_0] : memref<16x36xbf16, #tpu.memory_space<vmem>>, vector<16x36xbf16>
    %c0_1 = arith.constant 0 : index
    %c0_2 = arith.constant 0 : index
    %1 = vector.load %arg1[%c0_1, %c0_2] : memref<36x512xbf16, #tpu.memory_space<vmem>>, vector<36x512xbf16>
    %cst = arith.constant dense<0.000000e+00> : vector<16x512xf32>
    %2 = tpu.matmul %0, %1, %cst {dimension_numbers = #tpu.dot_dimension_numbers<[1], [0], [0], [1], [0, 0, 1, 1], [], []>} : vector<16x36xbf16>, vector<36x512xbf16>, vector<16x512xf32> -> vector<16x512xf32>
    %c0_3 = arith.constant 0 : index
    %c0_4 = arith.constant 0 : index
    %3 = vector.load %arg3[%c0_3, %c0_4] : memref<16x1xf32, #tpu.memory_space<vmem>>, vector<16x1xf32>
    %4 = vector.broadcast %3 : vector<16x1xf32> to vector<16x512xf32>
    %5 = arith.addf %2, %4 : vector<16x512xf32>
    %cst_5 = arith.constant 0.000000e+00 : f32
    %6 = vector.broadcast %cst_5 : f32 to vector<16x512xf32>
    %7 = arith.maximumf %5, %6 : vector<16x512xf32>
    %8 = vector.extract_strided_slice %7 {offsets = [0, 0], sizes = [8, 512], strides = [1, 1]} : vector<16x512xf32> to vector<8x512xf32>
    %9 = arith.truncf %8 : vector<8x512xf32> to vector<8x512xbf16>
    %10 = vector.extract_strided_slice %7 {offsets = [8, 0], sizes = [8, 512], strides = [1, 1]} : vector<16x512xf32> to vector<8x512xf32>
    %11 = arith.truncf %10 : vector<8x512xf32> to vector<8x512xbf16>
    %12 = vector.extract_strided_slice %9 {offsets = [0, 0], sizes = [8, 256], strides = [1, 1]} : vector<8x512xbf16> to vector<8x256xbf16>
    %c0_6 = arith.constant 0 : index
    %c0_7 = arith.constant 0 : index
    %13 = vector.load %arg4[%c0_6, %c0_7] : memref<256x1024xbf16, #tpu.memory_space<vmem>>, vector<256x1024xbf16>
    %cst_8 = arith.constant dense<0.000000e+00> : vector<8x1024xf32>
    %14 = tpu.matmul %12, %13, %cst_8 {dimension_numbers = #tpu.dot_dimension_numbers<[1], [0], [0], [1], [0, 0, 1, 1], [], []>} : vector<8x256xbf16>, vector<256x1024xbf16>, vector<8x1024xf32> -> vector<8x1024xf32>
    %cst_9 = arith.constant dense<0.000000e+00> : vector<8xf32>
    %15 = vector.multi_reduction <add>, %14, %cst_9 [1] : vector<8x1024xf32> to vector<8xf32>
    %16 = vector.shape_cast %15 : vector<8xf32> to vector<8x1xf32>
    %cst_10 = arith.constant 9.765625E-4 : f32
    %17 = vector.broadcast %cst_10 : f32 to vector<8x1xf32>
    %18 = arith.mulf %16, %17 : vector<8x1xf32>
    %c0_11 = arith.constant 0 : index
    %c0_12 = arith.constant 0 : index
    %19 = vector.load %arg6[%c0_11, %c0_12] : memref<8x4xf32, #tpu.memory_space<vmem>>, vector<8x4xf32>
    %20 = vector.broadcast %18 : vector<8x1xf32> to vector<8x4xf32>
    %21 = arith.mulf %19, %20 : vector<8x4xf32>
    %cst_13 = arith.constant dense<0.000000e+00> : vector<4xf32>
    %22 = vector.multi_reduction <add>, %21, %cst_13 [0] : vector<8x4xf32> to vector<4xf32>
    %23 = vector.shape_cast %22 : vector<4xf32> to vector<1x4xf32>
    %c0_14 = arith.constant 0 : index
    %c0_15 = arith.constant 0 : index
    %24 = vector.load %arg7[%c0_14, %c0_15] : memref<1x4xf32, #tpu.memory_space<vmem>>, vector<1x4xf32>
    %25 = arith.addf %23, %24 : vector<1x4xf32>
    %cst_16 = arith.constant 0.000000e+00 : f32
    %26 = vector.broadcast %cst_16 : f32 to vector<1x4xf32>
    %27 = arith.maximumf %25, %26 : vector<1x4xf32>
    %c0_17 = arith.constant 0 : index
    %c0_18 = arith.constant 0 : index
    %28 = vector.load %arg8[%c0_17, %c0_18] : memref<8x4xf32, #tpu.memory_space<vmem>>, vector<8x4xf32>
    %29 = vector.broadcast %27 : vector<1x4xf32> to vector<8x4xf32>
    %30 = arith.mulf %28, %29 : vector<8x4xf32>
    %cst_19 = arith.constant dense<0.000000e+00> : vector<8xf32>
    %31 = vector.multi_reduction <add>, %30, %cst_19 [1] : vector<8x4xf32> to vector<8xf32>
    %32 = vector.shape_cast %31 : vector<8xf32> to vector<8x1xf32>
    %c0_20 = arith.constant 0 : index
    %c0_21 = arith.constant 0 : index
    %33 = vector.load %arg9[%c0_20, %c0_21] : memref<8x1xf32, #tpu.memory_space<vmem>>, vector<8x1xf32>
    %34 = arith.addf %32, %33 : vector<8x1xf32>
    %35 = arith.negf %34 : vector<8x1xf32>
    %36 = math.exp %35 : vector<8x1xf32>
    %cst_22 = arith.constant 1.000000e+00 : f32
    %37 = vector.broadcast %cst_22 : f32 to vector<8x1xf32>
    %38 = arith.addf %37, %36 : vector<8x1xf32>
    %39 = arith.divf %37, %38 : vector<8x1xf32>
    %c0_23 = arith.constant 0 : index
    %c0_24 = arith.constant 0 : index
    %40 = vector.load %arg10[%c0_23, %c0_24] : memref<8x1xf32, #tpu.memory_space<vmem>>, vector<8x1xf32>
    %41 = vector.broadcast %40 : vector<8x1xf32> to vector<8x1024xf32>
    %42 = arith.mulf %14, %41 : vector<8x1024xf32>
    %cst_25 = arith.constant dense<0.000000e+00> : vector<1024xf32>
    %43 = vector.multi_reduction <add>, %42, %cst_25 [0] : vector<8x1024xf32> to vector<1024xf32>
    %44 = vector.shape_cast %43 : vector<1024xf32> to vector<1x1024xf32>
    %c0_26 = arith.constant 0 : index
    %c0_27 = arith.constant 0 : index
    %45 = vector.load %arg11[%c0_26, %c0_27] : memref<1x1xf32, #tpu.memory_space<vmem>>, vector<1x1xf32>
    %46 = vector.broadcast %45 : vector<1x1xf32> to vector<1x1024xf32>
    %47 = arith.addf %44, %46 : vector<1x1024xf32>
    %48 = arith.negf %47 : vector<1x1024xf32>
    %49 = math.exp %48 : vector<1x1024xf32>
    %cst_28 = arith.constant 1.000000e+00 : f32
    %50 = vector.broadcast %cst_28 : f32 to vector<1x1024xf32>
    %51 = arith.addf %50, %49 : vector<1x1024xf32>
    %52 = arith.divf %50, %51 : vector<1x1024xf32>
    %53 = vector.broadcast %39 : vector<8x1xf32> to vector<8x1024xf32>
    %54 = vector.broadcast %52 : vector<1x1024xf32> to vector<8x1024xf32>
    %55 = arith.addf %53, %54 : vector<8x1024xf32>
    %56 = arith.mulf %14, %55 : vector<8x1024xf32>
    %c0_29 = arith.constant 0 : index
    %c0_30 = arith.constant 0 : index
    %c0_31 = arith.constant 0 : index
    %57 = vector.load %arg12[%c0_29, %c0_30, %c0_31] : memref<2x8x1024xf32, #tpu.memory_space<vmem>>, vector<1x8x1024xf32>
    %58 = vector.shape_cast %57 : vector<1x8x1024xf32> to vector<8x1024xf32>
    %59 = vector.shape_cast %56 : vector<8x1024xf32> to vector<1x8x1024xf32>
    tpu.vector_store %arg12[%c0_29, %c0_30, %c0_31], %59 {strides = array<i32>} : memref<2x8x1024xf32, #tpu.memory_space<vmem>>, vector<1x8x1024xf32>,
    %60 = vector.extract_strided_slice %11 {offsets = [0, 0], sizes = [8, 256], strides = [1, 1]} : vector<8x512xbf16> to vector<8x256xbf16>
    %c0_32 = arith.constant 0 : index
    %c0_33 = arith.constant 0 : index
    %61 = vector.load %arg5[%c0_32, %c0_33] : memref<256x4096xbf16, #tpu.memory_space<vmem>>, vector<256x4096xbf16>
    %cst_34 = arith.constant dense<0.000000e+00> : vector<8x4096xf32>
    %62 = tpu.matmul %60, %61, %cst_34 {dimension_numbers = #tpu.dot_dimension_numbers<[1], [0], [0], [1], [0, 0, 1, 1], [], []>} : vector<8x256xbf16>, vector<256x4096xbf16>, vector<8x4096xf32> -> vector<8x4096xf32>
    %c0_35 = arith.constant 0 : index
    %c0_36 = arith.constant 0 : index
    %c0_37 = arith.constant 0 : index
    %63 = vector.load %arg13[%c0_35, %c0_36, %c0_37] : memref<2x8x4096xf32, #tpu.memory_space<vmem>>, vector<1x8x4096xf32>
    %64 = vector.shape_cast %63 : vector<1x8x4096xf32> to vector<8x4096xf32>
    %65 = vector.shape_cast %62 : vector<8x4096xf32> to vector<1x8x4096xf32>
    tpu.vector_store %arg13[%c0_35, %c0_36, %c0_37], %65 {strides = array<i32>} : memref<2x8x4096xf32, #tpu.memory_space<vmem>>, vector<1x8x4096xf32>,
    %66 = vector.extract_strided_slice %9 {offsets = [0, 256], sizes = [8, 256], strides = [1, 1]} : vector<8x512xbf16> to vector<8x256xbf16>
    %c0_38 = arith.constant 0 : index
    %c0_39 = arith.constant 0 : index
    %67 = vector.load %arg4[%c0_38, %c0_39] : memref<256x1024xbf16, #tpu.memory_space<vmem>>, vector<256x1024xbf16>
    %cst_40 = arith.constant dense<0.000000e+00> : vector<8x1024xf32>
    %68 = tpu.matmul %66, %67, %cst_40 {dimension_numbers = #tpu.dot_dimension_numbers<[1], [0], [0], [1], [0, 0, 1, 1], [], []>} : vector<8x256xbf16>, vector<256x1024xbf16>, vector<8x1024xf32> -> vector<8x1024xf32>
    %cst_41 = arith.constant dense<0.000000e+00> : vector<8xf32>
    %69 = vector.multi_reduction <add>, %68, %cst_41 [1] : vector<8x1024xf32> to vector<8xf32>
    %70 = vector.shape_cast %69 : vector<8xf32> to vector<8x1xf32>
    %cst_42 = arith.constant 9.765625E-4 : f32
    %71 = vector.broadcast %cst_42 : f32 to vector<8x1xf32>
    %72 = arith.mulf %70, %71 : vector<8x1xf32>
    %c0_43 = arith.constant 0 : index
    %c0_44 = arith.constant 0 : index
    %73 = vector.load %arg6[%c0_43, %c0_44] : memref<8x4xf32, #tpu.memory_space<vmem>>, vector<8x4xf32>
    %74 = vector.broadcast %72 : vector<8x1xf32> to vector<8x4xf32>
    %75 = arith.mulf %73, %74 : vector<8x4xf32>
    %cst_45 = arith.constant dense<0.000000e+00> : vector<4xf32>
    %76 = vector.multi_reduction <add>, %75, %cst_45 [0] : vector<8x4xf32> to vector<4xf32>
    %77 = vector.shape_cast %76 : vector<4xf32> to vector<1x4xf32>
    %c0_46 = arith.constant 0 : index
    %c0_47 = arith.constant 0 : index
    %78 = vector.load %arg7[%c0_46, %c0_47] : memref<1x4xf32, #tpu.memory_space<vmem>>, vector<1x4xf32>
    %79 = arith.addf %77, %78 : vector<1x4xf32>
    %cst_48 = arith.constant 0.000000e+00 : f32
    %80 = vector.broadcast %cst_48 : f32 to vector<1x4xf32>
    %81 = arith.maximumf %79, %80 : vector<1x4xf32>
    %c0_49 = arith.constant 0 : index
    %c0_50 = arith.constant 0 : index
    %82 = vector.load %arg8[%c0_49, %c0_50] : memref<8x4xf32, #tpu.memory_space<vmem>>, vector<8x4xf32>
    %83 = vector.broadcast %81 : vector<1x4xf32> to vector<8x4xf32>
    %84 = arith.mulf %82, %83 : vector<8x4xf32>
    %cst_51 = arith.constant dense<0.000000e+00> : vector<8xf32>
    %85 = vector.multi_reduction <add>, %84, %cst_51 [1] : vector<8x4xf32> to vector<8xf32>
    %86 = vector.shape_cast %85 : vector<8xf32> to vector<8x1xf32>
    %c0_52 = arith.constant 0 : index
    %c0_53 = arith.constant 0 : index
    %87 = vector.load %arg9[%c0_52, %c0_53] : memref<8x1xf32, #tpu.memory_space<vmem>>, vector<8x1xf32>
    %88 = arith.addf %86, %87 : vector<8x1xf32>
    %89 = arith.negf %88 : vector<8x1xf32>
    %90 = math.exp %89 : vector<8x1xf32>
    %cst_54 = arith.constant 1.000000e+00 : f32
    %91 = vector.broadcast %cst_54 : f32 to vector<8x1xf32>
    %92 = arith.addf %91, %90 : vector<8x1xf32>
    %93 = arith.divf %91, %92 : vector<8x1xf32>
    %c0_55 = arith.constant 0 : index
    %c0_56 = arith.constant 0 : index
    %94 = vector.load %arg10[%c0_55, %c0_56] : memref<8x1xf32, #tpu.memory_space<vmem>>, vector<8x1xf32>
    %95 = vector.broadcast %94 : vector<8x1xf32> to vector<8x1024xf32>
    %96 = arith.mulf %68, %95 : vector<8x1024xf32>
    %cst_57 = arith.constant dense<0.000000e+00> : vector<1024xf32>
    %97 = vector.multi_reduction <add>, %96, %cst_57 [0] : vector<8x1024xf32> to vector<1024xf32>
    %98 = vector.shape_cast %97 : vector<1024xf32> to vector<1x1024xf32>
    %c0_58 = arith.constant 0 : index
    %c0_59 = arith.constant 0 : index
    %99 = vector.load %arg11[%c0_58, %c0_59] : memref<1x1xf32, #tpu.memory_space<vmem>>, vector<1x1xf32>
    %100 = vector.broadcast %99 : vector<1x1xf32> to vector<1x1024xf32>
    %101 = arith.addf %98, %100 : vector<1x1024xf32>
    %102 = arith.negf %101 : vector<1x1024xf32>
    %103 = math.exp %102 : vector<1x1024xf32>
    %cst_60 = arith.constant 1.000000e+00 : f32
    %104 = vector.broadcast %cst_60 : f32 to vector<1x1024xf32>
    %105 = arith.addf %104, %103 : vector<1x1024xf32>
    %106 = arith.divf %104, %105 : vector<1x1024xf32>
    %107 = vector.broadcast %93 : vector<8x1xf32> to vector<8x1024xf32>
    %108 = vector.broadcast %106 : vector<1x1024xf32> to vector<8x1024xf32>
    %109 = arith.addf %107, %108 : vector<8x1024xf32>
    %110 = arith.mulf %68, %109 : vector<8x1024xf32>
    %c1 = arith.constant 1 : index
    %c0_61 = arith.constant 0 : index
    %c0_62 = arith.constant 0 : index
    %111 = vector.load %arg12[%c1, %c0_61, %c0_62] : memref<2x8x1024xf32, #tpu.memory_space<vmem>>, vector<1x8x1024xf32>
    %112 = vector.shape_cast %111 : vector<1x8x1024xf32> to vector<8x1024xf32>
    %113 = vector.shape_cast %110 : vector<8x1024xf32> to vector<1x8x1024xf32>
    tpu.vector_store %arg12[%c1, %c0_61, %c0_62], %113 {strides = array<i32>} : memref<2x8x1024xf32, #tpu.memory_space<vmem>>, vector<1x8x1024xf32>,
    %114 = vector.extract_strided_slice %11 {offsets = [0, 256], sizes = [8, 256], strides = [1, 1]} : vector<8x512xbf16> to vector<8x256xbf16>
    %c0_63 = arith.constant 0 : index
    %c0_64 = arith.constant 0 : index
    %115 = vector.load %arg5[%c0_63, %c0_64] : memref<256x4096xbf16, #tpu.memory_space<vmem>>, vector<256x4096xbf16>
    %cst_65 = arith.constant dense<0.000000e+00> : vector<8x4096xf32>
    %116 = tpu.matmul %114, %115, %cst_65 {dimension_numbers = #tpu.dot_dimension_numbers<[1], [0], [0], [1], [0, 0, 1, 1], [], []>} : vector<8x256xbf16>, vector<256x4096xbf16>, vector<8x4096xf32> -> vector<8x4096xf32>
    %c1_66 = arith.constant 1 : index
    %c0_67 = arith.constant 0 : index
    %c0_68 = arith.constant 0 : index
    %117 = vector.load %arg13[%c1_66, %c0_67, %c0_68] : memref<2x8x4096xf32, #tpu.memory_space<vmem>>, vector<1x8x4096xf32>
    %118 = vector.shape_cast %117 : vector<1x8x4096xf32> to vector<8x4096xf32>
    %119 = vector.shape_cast %116 : vector<8x4096xf32> to vector<1x8x4096xf32>
    tpu.vector_store %arg13[%c1_66, %c0_67, %c0_68], %119 {strides = array<i32>} : memref<2x8x4096xf32, #tpu.memory_space<vmem>>, vector<1x8x4096xf32>,
    return
  }
  func.func @transform_0(%arg0: i32) -> (i32, i32) {
    %c0_i32 = arith.constant 0 : i32
    %c0_i32_0 = arith.constant 0 : i32
    %c0_i32_1 = arith.constant 0 : i32
    return %c0_i32, %c0_i32_0 : i32, i32
  }
  func.func @transform_1(%arg0: i32) -> (i32, i32) {
    %c0_i32 = arith.constant 0 : i32
    %c0_i32_0 = arith.constant 0 : i32
    %c0_i32_1 = arith.constant 0 : i32
    return %c0_i32, %c0_i32_0 : i32, i32
  }
  func.func @transform_2(%arg0: i32) -> (i32, i32) {
    %c0_i32 = arith.constant 0 : i32
    %c0_i32_0 = arith.constant 0 : i32
    %c0_i32_1 = arith.constant 0 : i32
    return %c0_i32, %c0_i32_0 : i32, i32
  }
  func.func @transform_3(%arg0: i32) -> (i32, i32) {
    %c0_i32 = arith.constant 0 : i32
    %c0_i32_0 = arith.constant 0 : i32
    %c0_i32_1 = arith.constant 0 : i32
    return %c0_i32, %c0_i32_0 : i32, i32
  }
  func.func @transform_4(%arg0: i32) -> (i32, i32) {
    %c0_i32 = arith.constant 0 : i32
    %c0_i32_0 = arith.constant 0 : i32
    %c0_i32_1 = arith.constant 0 : i32
    return %c0_i32, %c0_i32_0 : i32, i32
  }
  func.func @transform_5(%arg0: i32) -> (i32, i32) {
    %c0_i32 = arith.constant 0 : i32
    %c0_i32_0 = arith.constant 0 : i32
    %c0_i32_1 = arith.constant 0 : i32
    return %c0_i32, %c0_i32_0 : i32, i32
  }
  func.func @transform_6(%arg0: i32) -> (i32, i32) {
    %c0_i32 = arith.constant 0 : i32
    %c0_i32_0 = arith.constant 0 : i32
    %c0_i32_1 = arith.constant 0 : i32
    return %c0_i32, %c0_i32_0 : i32, i32
  }
  func.func @transform_7(%arg0: i32) -> (i32, i32) {
    %c0_i32 = arith.constant 0 : i32
    %c0_i32_0 = arith.constant 0 : i32
    %c0_i32_1 = arith.constant 0 : i32
    return %c0_i32, %c0_i32_0 : i32, i32
  }
  func.func @transform_8(%arg0: i32) -> (i32, i32) {
    %c0_i32 = arith.constant 0 : i32
    %c0_i32_0 = arith.constant 0 : i32
    %c0_i32_1 = arith.constant 0 : i32
    return %c0_i32, %c0_i32_0 : i32, i32
  }
  func.func @transform_9(%arg0: i32) -> (i32, i32) {
    %c0_i32 = arith.constant 0 : i32
    %c0_i32_0 = arith.constant 0 : i32
    %c0_i32_1 = arith.constant 0 : i32
    return %c0_i32, %c0_i32_0 : i32, i32
  }
  func.func @transform_10(%arg0: i32) -> (i32, i32) {
    %c0_i32 = arith.constant 0 : i32
    %c0_i32_0 = arith.constant 0 : i32
    %c0_i32_1 = arith.constant 0 : i32
    return %c0_i32, %c0_i32_0 : i32, i32
  }
  func.func @transform_11(%arg0: i32) -> (i32, i32, i32) {
    %c0_i32 = arith.constant 0 : i32
    %c0_i32_0 = arith.constant 0 : i32
    %c0_i32_1 = arith.constant 0 : i32
    %c0_i32_2 = arith.constant 0 : i32
    return %c0_i32, %c0_i32_0, %c0_i32_1 : i32, i32, i32
  }
  func.func @transform_12(%arg0: i32) -> (i32, i32, i32) {
    %c0_i32 = arith.constant 0 : i32
    %c0_i32_0 = arith.constant 0 : i32
    %c0_i32_1 = arith.constant 0 : i32
    %c0_i32_2 = arith.constant 0 : i32
    return %c0_i32, %c0_i32_0, %c0_i32_1 : i32, i32, i32
  }
}

</mosaic_0001>

<bundles_post_ra>
// kernel: decoder_block_forward.1
= control target key start
LH: loop header
LB: loop body
LE: loop exit
PB: predicated region body
PF: predicated region fallthrough
CT: control target
= control target key end

     0   :  { %s18795_s0 = inlined_call_operand.vmem [shape: bf16[36,512], index: 0, kind: input, shape index: {}]   ;;  %s18796_s1 = inlined_call_operand.hbm [shape: bf16[16,36], index: 1, kind: input, shape index: {}]   ;;  %s18797_s2 = inlined_call_operand.vmem [shape: f32[16,1], index: 2, kind: input, shape index: {}]   ;;  %s18798_s3 = inlined_call_operand.hbm [shape: bf16[256,1024], index: 3, kind: input, shape index: {}]   ;;  %s18799_s4 = inlined_call_operand.hbm [shape: bf16[256,4096], index: 4, kind: input, shape index: {}]   ;;  %s18800_s5 = inlined_call_operand.vmem [shape: f32[8,4], index: 5, kind: input, shape index: {}]   ;;  %s18801_s6 = inlined_call_operand.hbm [shape: f32[1,4], index: 6, kind: input, shape index: {}]   ;;  %s18802_s7 = inlined_call_operand.vmem [shape: f32[8,4], index: 7, kind: input, shape index: {}]   ;;  %s18803_s8 = inlined_call_operand.vmem [shape: f32[8,1], index: 8, kind: input, shape index: {}]   ;;  %s18804_s9 = inlined_call_operand.vmem [shape: f32[8,1], index: 9, kind: input, shape index: {}]   ;;  %s18805_s10 = inlined_call_operand.<no memory space> [shape: f32[1,1], index: 10, kind: input, shape index: {}]   ;;  %s18806_s11 = inlined_call_operand.vmem [shape: f32[2,8,1024], index: 11, kind: output, shape index: {0}]   ;;  %s18807_s12 = inlined_call_operand.vmem [shape: f32[2,8,4096], index: 12, kind: output, shape index: {1}]  }
   0x1   :  { %v18_v0 = vstv %s18805_s10 }
   0x2   :  { %19 = vst [vmem:[#allocation2] sm:$0x1] %v18_v0 }
   0x3   :  { %20 = vsyncpa [#allocation4], 0 }
   0x4   :  { %21 = vsyncpa [#allocation6], 0  ;;  %s44_s25 = sshll.u32 %s18798_s3, 4  ;;  %s45_s25 = int_to_ptr.hbm [resolvable:$true] %s44_s25 }
   0x5   :  { %22 = vsyncpa [#allocation9], 0  ;;  %s17443_s26 = smov [#allocation5]   ;;  %s29_s30 = sshll.u32 %s18796_s1, 4  ;;  %s30_s30 = int_to_ptr.hbm [resolvable:$true] %s29_s30 }
   0x6   :  { %s46_s27 = sshll.u32 %s17443_s26, 4  ;;  %s17444_s13 = smov 512   ;;  %s47_s27 = int_to_ptr.vmem [resolvable:$true] %s46_s27 }
   0x7   :  { %s17445_s14 = smov 32   ;;  %s17446_s10 = smov [#allocation3]  }
   0x8   :  { %52 = dma.hbm_to_vmem [thread:$0]  %s45_s25, 16384, %s47_s27, [#allocation6], %s17444_s13, %s17444_s13, %s17445_s14  }
   0x9   :  { %s31_s15 = sshll.u32 %s17446_s10, 4  ;;  %s17447_s16 = smov 64   ;;  %s32_s15 = int_to_ptr.vmem [resolvable:$true] %s31_s15 }
   0xa   :  { %s17448_s17 = smov 4   ;;  %s57_s19 = sshll.u32 %s18799_s4, 4  ;;  %s58_s19 = int_to_ptr.hbm [resolvable:$true] %s57_s19 }
   0xb   :  { %37 = dma.hbm_to_vmem [thread:$0]  %s30_s30, 128, %s32_s15, [#allocation4], %s17447_s16, %s17447_s16, %s17448_s17  }
   0xc   :  { %s17449_s20 = smov [#allocation7]   ;;  %s73_s23 = sshll.u32 %s18801_s6, 4  ;;  %s74_s23 = int_to_ptr.hbm [resolvable:$true] %s73_s23 }
   0xd   :  { %s59_s21 = sshll.u32 %s17449_s20, 4  ;;  %s17450_s24 = smov 2048   ;;  %s60_s21 = int_to_ptr.vmem [resolvable:$true] %s59_s21 }
   0xe   :  { %s17451_s25 = smov 128   ;;  %s17452_s26 = smov [#allocation8]  }
   0xf   :  { %65 = dma.hbm_to_vmem [thread:$0]  %s58_s19, 65536, %s60_s21, [#allocation6], %s17450_s24, %s17450_s24, %s17451_s25  }
  0x10   :  { %s75_s27 = sshll.u32 %s17452_s26, 4  ;;  %s76_s27 = int_to_ptr.vmem [resolvable:$true] %s75_s27 }
  0x11   :  { %78 = dma.hbm_to_vmem [thread:$0]  %s74_s23, 16, %s76_s27, [#allocation9]  }
  0x12   :  { %17437 = dma.done.wait [#allocation4], 128  }
  0x13   :  { %17438 = vsyncadd [#allocation4], 4294967168 }
  0x14   :  { %17439 = dma.done.wait [#allocation6], 81920  }
  0x15   :  { %17440 = vsyncadd [#allocation6], 4294885376 }
  0x16   :  { %17441 = dma.done.wait [#allocation9], 16  }
  0x17   :  { %17442 = vsyncadd [#allocation9], 4294967280  ;;  %v17453_v1 = vmov 0   ;;  %v116_v2 = vld [vmem:[%s18797_s2] sm:$0xff]  ;;  %v115_v4 = vld [vmem:[%s18795_s0 + $0x48] sm:$0x33] }
  0x18   :  { %17266 = vset.pattern.permute.xlu0 %v17453_v1  ;;  %17267 = vset.pattern.permute.xlu1 %v17453_v1  ;;  %v114_v3 = vld [vmem:[%s18795_s0 + $0x40] sm:$0x33]  ;;  %v161_v7 = vunpack.c.l.b16 %v115_v4  ;;  %v162_v8 = vunpack.c.h.b16 %v115_v4  ;;  %vm187_vm0 = vcmask 1041408   ;;  %v15973_v10 = vld [vmem:[%s18795_s0 + $0x2c] sm:$0xf0]  ;;  %v117_v25 = vld [vmem:[%s18797_s2 + $0x8] sm:$0xff] }
  0x19   :  { %17268 = vset.pattern.permute.xlu2 %v17453_v1  ;;  %120 = vperm.xlu0 %17266, %v116_v2   ;;  %v159_v5 = vunpack.c.l.b16 %v114_v3  ;;  %v160_v6 = vunpack.c.h.b16 %v114_v3  ;;  %v10770_v9 = vld [vmem:[%s18795_s0 + $0x20] sm:$0xf]  ;;  %v15971_v15 = vld [vmem:[%s18795_s0 + $0x24] sm:$0xf]  ;;  %v10772_v16 = vld [vmem:[%s18795_s0 + $0x30] sm:$0xf0] }
  0x1a   :  { %v173_v13 = vpack.c.b16 %v161_v7, %v161_v7  ;;  %v174_v14 = vpack.c.b16 %v162_v8, %v162_v8  ;;  %v10778_v17 = vld [vmem:[%s18795_s0 + $0x28] sm:$0xf]  ;;  %v15974_v18 = vld [vmem:[%s18795_s0 + $0x34] sm:$0xf0]  ;;  %v15972_v19 = vld [vmem:[%s18795_s0 + $0x2c] sm:$0xf]  ;;  %v10771_v26 = vor.u32 %v15973_v10, %v10770_v9  ;;  %v10775_v27 = vor.u32 %v15971_v15, %v10772_v16 }
  0x1b   :  { %v171_v11 = vpack.c.b16 %v159_v5, %v159_v5  ;;  %v172_v12 = vpack.c.b16 %v160_v6, %v160_v6  ;;  %v10780_v20 = vld [vmem:[%s18795_s0 + $0x38] sm:$0xf0]  ;;  %v10754_v28 = vld [vmem:[%s18795_s0] sm:$0xf]  ;;  %v15969_v29 = vld [vmem:[%s18795_s0 + $0xc] sm:$0xf0]  ;;  %v10779_v31 = vor.u32 %v15974_v18, %v10778_v17 }
  0x1c   :  { %v195_v23 = vsel %vm187_vm0, %v173_v13, 0  ;;  %v198_v24 = vsel %vm187_vm0, %v174_v14, 0  ;;  %v15967_v30 = vld [vmem:[%s18795_s0 + $0x4] sm:$0xf]  ;;  %v10783_v32 = vor.u32 %v15972_v19, %v10780_v20  ;;  %v10756_v33 = vld [vmem:[%s18795_s0 + $0x10] sm:$0xf0]  ;;  %v10755_v42 = vor.u32 %v15969_v29, %v10754_v28 }
  0x1d   :  { %v189_v21 = vsel %vm187_vm0, %v171_v11, 0  ;;  %v192_v22 = vsel %vm187_vm0, %v172_v12, 0  ;;  %233 = vmatpush.bf16.msra.mxu2 %v195_v23  ;;  %247 = vmatpush.bf16.msra.mxu3 %v198_v24  ;;  %v10762_v34 = vld [vmem:[%s18795_s0 + $0x8] sm:$0xf]  ;;  %v15970_v35 = vld [vmem:[%s18795_s0 + $0x14] sm:$0xf0]  ;;  %v10759_v43 = vor.u32 %v15967_v30, %v10756_v33 }
  0x1e   :  { %205 = vmatpush.bf16.msra.mxu0 %v189_v21  ;;  %219 = vmatpush.bf16.msra.mxu1 %v192_v22  ;;  %v15968_v36 = vld [vmem:[%s18795_s0 + $0xc] sm:$0xf]  ;;  %v10764_v37 = vld [vmem:[%s18795_s0 + $0x18] sm:$0xf0]  ;;  %v10763_v44 = vor.u32 %v15970_v35, %v10762_v34  ;;  %v15966_v46 = vld [vmem:[#allocation3] sm:$0xff]  ;;  %vm183_vm1 = vcmask 293888  }
  0x1f   :  { %v11014_v38 = vld [vmem:[#allocation5 + $0x1c0] sm:$0xf]  ;;  %v10767_v45 = vor.u32 %v15968_v36, %v10764_v37  ;;  %v16031_v49 = vld [vmem:[#allocation5 + $0x1c4] sm:$0xf]  ;;  %v1301_v57 = vld [vmem:[%s18804_s9] sm:$0xff]  ;;  %vm1263_vm2 = vcmask 31744  }
  0x20   :  { %v16035_v39 = vld [vmem:[#allocation5 + $0x1dc] sm:$0xf0]  ;;  %v11016_v50 = vld [vmem:[#allocation5 + $0x1e0] sm:$0xf0]  ;;  %v6596_v18 = vld [vmem:[#allocation2] sm:$0x1] }
  0x21   :  { %125 = vperm.xlu0 %17266, %v117_v25   ;;  %v11270_v40 = vld [vmem:[#allocation5 + $0x3c0] sm:$0xf]  ;;  %234 = vmatpush.bf16.msra.mxu2 %v10779_v31  ;;  %v11015_v47 = vor.u32 %v16035_v39, %v11014_v38  ;;  %v16095_v51 = vld [vmem:[#allocation5 + $0x3c4] sm:$0xf]  ;;  %v11019_v58 = vor.u32 %v16031_v49, %v11016_v50 }
  0x22   :  { %v16099_v41 = vld [vmem:[#allocation5 + $0x3dc] sm:$0xf0]  ;;  %206 = vmatpush.bf16.msra.mxu0 %v10771_v26  ;;  %220 = vmatpush.bf16.msra.mxu1 %v10775_v27  ;;  %v11272_v52 = vld [vmem:[#allocation5 + $0x3e0] sm:$0xf0] }
  0x23   :  { %248 = vmatpush.bf16.msra.mxu3 %v10783_v32  ;;  %v11271_v48 = vor.u32 %v16099_v41, %v11270_v40  ;;  %v10982_v53 = vld [vmem:[#allocation5 + $0x180] sm:$0xf]  ;;  %v11275_v59 = vor.u32 %v16095_v51, %v11272_v52  ;;  %v16023_v61 = vld [vmem:[#allocation5 + $0x184] sm:$0xf] }
  0x24   :  { %v16027_v54 = vld [vmem:[#allocation5 + $0x19c] sm:$0xf0]  ;;  %v10984_v62 = vld [vmem:[#allocation5 + $0x1a0] sm:$0xf0] }
  0x25   :  { %v11238_v55 = vld [vmem:[#allocation5 + $0x380] sm:$0xf]  ;;  %235 = vmatpush.bf16.msra.mxu2 %v10763_v44  ;;  %v10983_v60 = vor.u32 %v16027_v54, %v10982_v53  ;;  %v16087_v63 = vld [vmem:[#allocation5 + $0x384] sm:$0xf]  ;;  %v10987_v6 = vor.u32 %v16023_v61, %v10984_v62 }
  0x26   :  { %207 = vmatpush.bf16.msra.mxu0 %v10755_v42  ;;  %221 = vmatpush.bf16.msra.mxu1 %v10759_v43  ;;  %v16091_v56 = vld [vmem:[#allocation5 + $0x39c] sm:$0xf0]  ;;  %v11240_v1 = vld [vmem:[#allocation5 + $0x3a0] sm:$0xf0] }
  0x27   :  { %249 = vmatpush.bf16.msra.mxu3 %v10767_v45  ;;  %v11239_v0 = vor.u32 %v16091_v56, %v11238_v55  ;;  %v10950_v2 = vld [vmem:[#allocation5 + $0x140] sm:$0xf]  ;;  %v11243_v7 = vor.u32 %v16087_v63, %v11240_v1  ;;  %v16015_v9 = vld [vmem:[#allocation5 + $0x144] sm:$0xf] }
  0x28   :  { %v16019_v3 = vld [vmem:[#allocation5 + $0x15c] sm:$0xf0]  ;;  %10786 = vmatmul.msk.bf16.vlgmr.msra.gmra.mxu2 %vm183_vm1, %v15966_v46  ;;  %v10952_v10 = vld [vmem:[#allocation5 + $0x160] sm:$0xf0] }
  0x29   :  { %10784 = vmatmul.msk.bf16.vlgmr.msra.gmra.mxu0 %vm183_vm1, %v15966_v46  ;;  %10785 = vmatmul.msk.bf16.vlgmr.msra.gmra.mxu1 %vm183_vm1, %v15966_v46  ;;  %v11206_v4 = vld [vmem:[#allocation5 + $0x340] sm:$0xf]  ;;  %v10951_v8 = vor.u32 %v16019_v3, %v10950_v2  ;;  %v16079_v11 = vld [vmem:[#allocation5 + $0x344] sm:$0xf]  ;;  %v10955_v19 = vor.u32 %v16015_v9, %v10952_v10 }
  0x2a   :  { %1043 = vmatpush.bf16.msrb.mxu0 %v11015_v47  ;;  %1056 = vmatpush.bf16.msrb.mxu1 %v11271_v48  ;;  %v16083_v5 = vld [vmem:[#allocation5 + $0x35c] sm:$0xf0]  ;;  %v11208_v13 = vld [vmem:[#allocation5 + $0x360] sm:$0xf0] }
  0x2b   :  { %10787 = vmatmul.msk.bf16.vlgmr.msra.gmra.mxu3 %vm183_vm1, %v15966_v46  ;;  %1304 = vperm.xlu0 %17266, %v1301_v57   ;;  %v11207_v12 = vor.u32 %v16083_v5, %v11206_v4  ;;  %v10918_v14 = vld [vmem:[#allocation5 + $0x100] sm:$0xf]  ;;  %v11211_v20 = vor.u32 %v16079_v11, %v11208_v13  ;;  %v16007_v22 = vld [vmem:[#allocation5 + $0x104] sm:$0xf]  ;;  %v16036_v13 = vld [vmem:[#allocation5 + $0x1e4] sm:$0xf0] }
  0x2c   :  { %1069 = vmatpush.bf16.msrb.mxu2 %v11019_v58  ;;  %1082 = vmatpush.bf16.msrb.mxu3 %v11275_v59  ;;  %v16011_v15 = vld [vmem:[#allocation5 + $0x11c] sm:$0xf0]  ;;  %v10920_v23 = vld [vmem:[#allocation5 + $0x120] sm:$0xf0] }
  0x2d   :  { %v11174_v16 = vld [vmem:[#allocation5 + $0x300] sm:$0xf]  ;;  %v10919_v21 = vor.u32 %v16011_v15, %v10918_v14  ;;  %v16071_v24 = vld [vmem:[#allocation5 + $0x304] sm:$0xf]  ;;  %v10923_v31 = vor.u32 %v16007_v22, %v10920_v23  ;;  %v11280_v22 = vld [vmem:[#allocation5 + $0x3e8] sm:$0xf0] }
  0x2e   :  { %1044 = vmatpush.bf16.msrb.mxu0 %v10983_v60  ;;  %1057 = vmatpush.bf16.msrb.mxu1 %v11239_v0  ;;  %v16075_v17 = vld [vmem:[#allocation5 + $0x31c] sm:$0xf0]  ;;  %v11176_v26 = vld [vmem:[#allocation5 + $0x320] sm:$0xf0] }
  0x2f   :  { %v11175_v25 = vor.u32 %v16075_v17, %v11174_v16  ;;  %v10886_v27 = vld [vmem:[#allocation5 + $0xc0] sm:$0xf]  ;;  %v11179_v32 = vor.u32 %v16071_v24, %v11176_v26  ;;  %v15999_v34 = vld [vmem:[#allocation5 + $0xc4] sm:$0xf]  ;;  %v11278_v16 = vld [vmem:[#allocation5 + $0x3c8] sm:$0xf] }
  0x30   :  { %1070 = vmatpush.bf16.msrb.mxu2 %v10987_v6  ;;  %1083 = vmatpush.bf16.msrb.mxu3 %v11243_v7  ;;  %v16003_v28 = vld [vmem:[#allocation5 + $0xdc] sm:$0xf0]  ;;  %v10888_v35 = vld [vmem:[#allocation5 + $0xe0] sm:$0xf0]  ;;  %v16100_v17 = vld [vmem:[#allocation5 + $0x3e4] sm:$0xf0] }
  0x31   :  { %v11142_v29 = vld [vmem:[#allocation5 + $0x2c0] sm:$0xf]  ;;  %v10887_v33 = vor.u32 %v16003_v28, %v10886_v27  ;;  %v16063_v36 = vld [vmem:[#allocation5 + $0x2c4] sm:$0xf]  ;;  %v10891_v43 = vor.u32 %v15999_v34, %v10888_v35  ;;  %v16028_v26 = vld [vmem:[#allocation5 + $0x1a4] sm:$0xf0] }
  0x32   :  { %1045 = vmatpush.bf16.msrb.mxu0 %v10951_v8  ;;  %1058 = vmatpush.bf16.msrb.mxu1 %v11207_v12  ;;  %v16067_v30 = vld [vmem:[#allocation5 + $0x2dc] sm:$0xf0]  ;;  %v11144_v38 = vld [vmem:[#allocation5 + $0x2e0] sm:$0xf0]  ;;  %v11022_v12 = vld [vmem:[#allocation5 + $0x1c8] sm:$0xf] }
  0x33   :  { %6599 = vperm.xlu0 %17266, %v6596_v18   ;;  %v11143_v37 = vor.u32 %v16067_v30, %v11142_v29  ;;  %v10854_v39 = vld [vmem:[#allocation5 + $0x80] sm:$0xf]  ;;  %v11147_v44 = vor.u32 %v16063_v36, %v11144_v38  ;;  %v15991_v46 = vld [vmem:[#allocation5 + $0x84] sm:$0xf]  ;;  %v11023_v15 = vor.u32 %v16036_v13, %v11022_v12  ;;  %v16032_v18 = vld [vmem:[#allocation5 + $0x1cc] sm:$0xf] }
  0x34   :  { %1071 = vmatpush.bf16.msrb.mxu2 %v10955_v19  ;;  %1084 = vmatpush.bf16.msrb.mxu3 %v11211_v20  ;;  %v15995_v40 = vld [vmem:[#allocation5 + $0x9c] sm:$0xf0]  ;;  %v10856_v47 = vld [vmem:[#allocation5 + $0xa0] sm:$0xf0]  ;;  %v11279_v19 = vor.u32 %v16100_v17, %v11278_v16  ;;  %v11024_v20 = vld [vmem:[#allocation5 + $0x1e8] sm:$0xf0] }
  0x35   :  { %v11110_v41 = vld [vmem:[#allocation5 + $0x280] sm:$0xf]  ;;  %v10855_v45 = vor.u32 %v15995_v40, %v10854_v39  ;;  %v16055_v49 = vld [vmem:[#allocation5 + $0x284] sm:$0xf]  ;;  %v10859_v51 = vor.u32 %v15991_v46, %v10856_v47  ;;  %v11027_v23 = vor.u32 %v16032_v18, %v11024_v20  ;;  %v11246_v27 = vld [vmem:[#allocation5 + $0x388] sm:$0xf] }
  0x36   :  { %1046 = vmatpush.bf16.msrb.mxu0 %v10919_v21  ;;  %1059 = vmatpush.bf16.msrb.mxu1 %v11175_v25  ;;  %v16059_v42 = vld [vmem:[#allocation5 + $0x29c] sm:$0xf0]  ;;  %v11112_v50 = vld [vmem:[#allocation5 + $0x2a0] sm:$0xf0]  ;;  %v16096_v21 = vld [vmem:[#allocation5 + $0x3cc] sm:$0xf] }
  0x37   :  { %v11111_v48 = vor.u32 %v16059_v42, %v11110_v41  ;;  %v11115_v52 = vor.u32 %v16055_v49, %v11112_v50  ;;  %v10822_v53 = vld [vmem:[#allocation5 + $0x40] sm:$0xf]  ;;  %v15983_v58 = vld [vmem:[#allocation5 + $0x44] sm:$0xf]  ;;  %v11283_v24 = vor.u32 %v16096_v21, %v11280_v22  ;;  %v10990_v25 = vld [vmem:[#allocation5 + $0x188] sm:$0xf] }
  0x38   :  { %1072 = vmatpush.bf16.msrb.mxu2 %v10923_v31  ;;  %1085 = vmatpush.bf16.msrb.mxu3 %v11179_v32  ;;  %v15987_v54 = vld [vmem:[#allocation5 + $0x5c] sm:$0xf0]  ;;  %v10824_v59 = vld [vmem:[#allocation5 + $0x60] sm:$0xf0]  ;;  %v10991_v28 = vor.u32 %v16028_v26, %v10990_v25  ;;  %v16092_v29 = vld [vmem:[#allocation5 + $0x3a4] sm:$0xf0] }
  0x39   :  { %v11078_v55 = vld [vmem:[#allocation5 + $0x240] sm:$0xf]  ;;  %v10823_v56 = vor.u32 %v15987_v54, %v10822_v53  ;;  %v10827_v61 = vor.u32 %v15983_v58, %v10824_v59  ;;  %v16047_v62 = vld [vmem:[#allocation5 + $0x244] sm:$0xf]  ;;  %v16024_v30 = vld [vmem:[#allocation5 + $0x18c] sm:$0xf]  ;;  %v11247_v32 = vor.u32 %v16092_v29, %v11246_v27 }
  0x3a   :  { %1047 = vmatpush.bf16.msrb.mxu0 %v10887_v33  ;;  %1060 = vmatpush.bf16.msrb.mxu1 %v11143_v37  ;;  %v16051_v57 = vld [vmem:[#allocation5 + $0x25c] sm:$0xf0]  ;;  %v11080_v63 = vld [vmem:[#allocation5 + $0x260] sm:$0xf0]  ;;  %v10992_v31 = vld [vmem:[#allocation5 + $0x1a8] sm:$0xf0] }
  0x3b   :  { %v11079_v60 = vor.u32 %v16051_v57, %v11078_v55  ;;  %v10790_v0 = vld [vmem:[#allocation5] sm:$0xf]  ;;  %v11083_v1 = vor.u32 %v16047_v62, %v11080_v63  ;;  %v15975_v7 = vld [vmem:[#allocation5 + $0x4] sm:$0xf]  ;;  %v10995_v33 = vor.u32 %v16024_v30, %v10992_v31  ;;  %v16088_v34 = vld [vmem:[#allocation5 + $0x38c] sm:$0xf] }
  0x3c   :  { %1073 = vmatpush.bf16.msrb.mxu2 %v10891_v43  ;;  %1086 = vmatpush.bf16.msrb.mxu3 %v11147_v44  ;;  %v15979_v2 = vld [vmem:[#allocation5 + $0x1c] sm:$0xf0]  ;;  %v10792_v8 = vld [vmem:[#allocation5 + $0x20] sm:$0xf0]  ;;  %v11248_v35 = vld [vmem:[#allocation5 + $0x3a8] sm:$0xf0] }
  0x3d   :  { %v11046_v3 = vld [vmem:[#allocation5 + $0x200] sm:$0xf]  ;;  %v10791_v5 = vor.u32 %v15979_v2, %v10790_v0  ;;  %v16039_v9 = vld [vmem:[#allocation5 + $0x204] sm:$0xf]  ;;  %v10795_v10 = vor.u32 %v15975_v7, %v10792_v8  ;;  %v10958_v36 = vld [vmem:[#allocation5 + $0x148] sm:$0xf]  ;;  %v11251_v37 = vor.u32 %v16088_v34, %v11248_v35 }
  0x3e   :  { %1048 = vmatpush.bf16.msrb.mxu0 %v10855_v45  ;;  %1061 = vmatpush.bf16.msrb.mxu1 %v11111_v48  ;;  %v16043_v4 = vld [vmem:[#allocation5 + $0x21c] sm:$0xf0]  ;;  %v11048_v11 = vld [vmem:[#allocation5 + $0x220] sm:$0xf0]  ;;  %v16020_v38 = vld [vmem:[#allocation5 + $0x164] sm:$0xf0] }
  0x3f   :  { %v11047_v6 = vor.u32 %v16043_v4, %v11046_v3  ;;  %v11051_v14 = vor.u32 %v16039_v9, %v11048_v11  ;;  %v11214_v39 = vld [vmem:[#allocation5 + $0x348] sm:$0xf]  ;;  %v16016_v41 = vld [vmem:[#allocation5 + $0x14c] sm:$0xf]  ;;  %v10959_v44 = vor.u32 %v16020_v38, %v10958_v36 }
  0x40   :  { %1074 = vmatpush.bf16.msrb.mxu2 %v10859_v51  ;;  %1087 = vmatpush.bf16.msrb.mxu3 %v11115_v52  ;;  %v16084_v40 = vld [vmem:[#allocation5 + $0x364] sm:$0xf0]  ;;  %v10960_v42 = vld [vmem:[#allocation5 + $0x168] sm:$0xf0] }
  0x41   :  { %v16080_v43 = vld [vmem:[#allocation5 + $0x34c] sm:$0xf]  ;;  %v11215_v46 = vor.u32 %v16084_v40, %v11214_v39  ;;  %v10963_v47 = vor.u32 %v16016_v41, %v10960_v42  ;;  %v10926_v49 = vld [vmem:[#allocation5 + $0x108] sm:$0xf] }
  0x42   :  { %1049 = vmatpush.bf16.msrb.mxu0 %v10823_v56  ;;  %1062 = vmatpush.bf16.msrb.mxu1 %v11079_v60  ;;  %v11216_v45 = vld [vmem:[#allocation5 + $0x368] sm:$0xf0]  ;;  %v16012_v50 = vld [vmem:[#allocation5 + $0x124] sm:$0xf0] }
  0x43   :  { %v11219_v48 = vor.u32 %v16080_v43, %v11216_v45  ;;  %v11182_v51 = vld [vmem:[#allocation5 + $0x308] sm:$0xf]  ;;  %v10927_v52 = vor.u32 %v16012_v50, %v10926_v49  ;;  %v16008_v54 = vld [vmem:[#allocation5 + $0x10c] sm:$0xf] }
  0x44   :  { %1075 = vmatpush.bf16.msrb.mxu2 %v10827_v61  ;;  %1088 = vmatpush.bf16.msrb.mxu3 %v11083_v1  ;;  %v16076_v53 = vld [vmem:[#allocation5 + $0x324] sm:$0xf0]  ;;  %v10928_v55 = vld [vmem:[#allocation5 + $0x128] sm:$0xf0] }
  0x45   :  { %v11183_v56 = vor.u32 %v16076_v53, %v11182_v51  ;;  %v10931_v57 = vor.u32 %v16008_v54, %v10928_v55  ;;  %v16072_v58 = vld [vmem:[#allocation5 + $0x30c] sm:$0xf]  ;;  %v10894_v60 = vld [vmem:[#allocation5 + $0xc8] sm:$0xf]  ;;  %v11030_v53 = vld [vmem:[#allocation5 + $0x1d0] sm:$0xf] }
  0x46   :  { %1050 = vmatpush.bf16.msrb.mxu0 %v10791_v5  ;;  %1063 = vmatpush.bf16.msrb.mxu1 %v11047_v6  ;;  %v11184_v59 = vld [vmem:[#allocation5 + $0x328] sm:$0xf0]  ;;  %v16004_v62 = vld [vmem:[#allocation5 + $0xe4] sm:$0xf0]  ;;  %v16037_v54 = vld [vmem:[#allocation5 + $0x1ec] sm:$0xf0] }
  0x47   :  { %v11187_v61 = vor.u32 %v16072_v58, %v11184_v59  ;;  %v11150_v63 = vld [vmem:[#allocation5 + $0x2c8] sm:$0xf]  ;;  %v10895_v1 = vor.u32 %v16004_v62, %v10894_v60  ;;  %v16000_v3 = vld [vmem:[#allocation5 + $0xcc] sm:$0xf]  ;;  %v11286_v55 = vld [vmem:[#allocation5 + $0x3d0] sm:$0xf] }
  0x48   :  { %1076 = vmatpush.bf16.msrb.mxu2 %v10795_v10  ;;  %1089 = vmatpush.bf16.msrb.mxu3 %v11051_v14  ;;  %v16068_v0 = vld [vmem:[#allocation5 + $0x2e4] sm:$0xf0]  ;;  %v10896_v4 = vld [vmem:[#allocation5 + $0xe8] sm:$0xf0]  ;;  %v11032_v62 = vld [vmem:[#allocation5 + $0x1f0] sm:$0xf0] }
  0x49   :  { %v11151_v2 = vor.u32 %v16068_v0, %v11150_v63  ;;  %v16064_v5 = vld [vmem:[#allocation5 + $0x2cc] sm:$0xf]  ;;  %v10899_v6 = vor.u32 %v16000_v3, %v10896_v4  ;;  %v10862_v9 = vld [vmem:[#allocation5 + $0x88] sm:$0xf]  ;;  %v16097_v63 = vld [vmem:[#allocation5 + $0x3d4] sm:$0xf] }
  0x4a   :  { %1095 = vmatpush.bf16.msra.mxu0 %v11023_v15  ;;  %1108 = vmatpush.bf16.msra.mxu1 %v11279_v19  ;;  %v11152_v7 = vld [vmem:[#allocation5 + $0x2e8] sm:$0xf0]  ;;  %v15996_v10 = vld [vmem:[#allocation5 + $0xa4] sm:$0xf0]  ;;  %v11288_v0 = vld [vmem:[#allocation5 + $0x3f0] sm:$0xf0] }
  0x4b   :  { %v11155_v8 = vor.u32 %v16064_v5, %v11152_v7  ;;  %v11118_v11 = vld [vmem:[#allocation5 + $0x288] sm:$0xf]  ;;  %v10863_v12 = vor.u32 %v15996_v10, %v10862_v9  ;;  %v15992_v14 = vld [vmem:[#allocation5 + $0x8c] sm:$0xf]  ;;  %v11031_v5 = vor.u32 %v16037_v54, %v11030_v53  ;;  %v10998_v7 = vld [vmem:[#allocation5 + $0x190] sm:$0xf] }
  0x4c   :  { %1121 = vmatpush.bf16.msra.mxu2 %v11027_v23  ;;  %1134 = vmatpush.bf16.msra.mxu3 %v11283_v24  ;;  %v16060_v13 = vld [vmem:[#allocation5 + $0x2a4] sm:$0xf0]  ;;  %v10864_v15 = vld [vmem:[#allocation5 + $0xa8] sm:$0xf0]  ;;  %v11254_v9 = vld [vmem:[#allocation5 + $0x390] sm:$0xf] }
  0x4d   :  { %v11119_v16 = vor.u32 %v16060_v13, %v11118_v11  ;;  %v10867_v17 = vor.u32 %v15992_v14, %v10864_v15  ;;  %v16056_v18 = vld [vmem:[#allocation5 + $0x28c] sm:$0xf]  ;;  %v10830_v21 = vld [vmem:[#allocation5 + $0x48] sm:$0xf]  ;;  %v11291_v13 = vor.u32 %v16097_v63, %v11288_v0  ;;  %v16093_v14 = vld [vmem:[#allocation5 + $0x3ac] sm:$0xf0] }
  0x4e   :  { %1096 = vmatpush.bf16.msra.mxu0 %v10991_v28  ;;  %1109 = vmatpush.bf16.msra.mxu1 %v11247_v32  ;;  %v11120_v19 = vld [vmem:[#allocation5 + $0x2a8] sm:$0xf0]  ;;  %v15988_v22 = vld [vmem:[#allocation5 + $0x64] sm:$0xf0]  ;;  %v16025_v15 = vld [vmem:[#allocation5 + $0x194] sm:$0xf] }
  0x4f   :  { %v11123_v20 = vor.u32 %v16056_v18, %v11120_v19  ;;  %v11086_v23 = vld [vmem:[#allocation5 + $0x248] sm:$0xf]  ;;  %v10831_v24 = vor.u32 %v15988_v22, %v10830_v21  ;;  %v15984_v26 = vld [vmem:[#allocation5 + $0x4c] sm:$0xf]  ;;  %v11256_v18 = vld [vmem:[#allocation5 + $0x3b0] sm:$0xf0]  ;;  %v11255_v21 = vor.u32 %v16093_v14, %v11254_v9 }
  0x50   :  { %1122 = vmatpush.bf16.msra.mxu2 %v10995_v33  ;;  %1135 = vmatpush.bf16.msra.mxu3 %v11251_v37  ;;  %v16052_v25 = vld [vmem:[#allocation5 + $0x264] sm:$0xf0]  ;;  %v10832_v27 = vld [vmem:[#allocation5 + $0x68] sm:$0xf0]  ;;  %v10966_v22 = vld [vmem:[#allocation5 + $0x150] sm:$0xf] }
  0x51   :  { %v11087_v28 = vor.u32 %v16052_v25, %v11086_v23  ;;  %v10835_v29 = vor.u32 %v15984_v26, %v10832_v27  ;;  %v16048_v30 = vld [vmem:[#allocation5 + $0x24c] sm:$0xf]  ;;  %v10798_v33 = vld [vmem:[#allocation5 + $0x8] sm:$0xf]  ;;  %v16021_v23 = vld [vmem:[#allocation5 + $0x16c] sm:$0xf0] }
  0x52   :  { %1097 = vmatpush.bf16.msra.mxu0 %v10959_v44  ;;  %1110 = vmatpush.bf16.msra.mxu1 %v11215_v46  ;;  %v11088_v31 = vld [vmem:[#allocation5 + $0x268] sm:$0xf0]  ;;  %v15980_v34 = vld [vmem:[#allocation5 + $0x24] sm:$0xf0]  ;;  %v11222_v26 = vld [vmem:[#allocation5 + $0x350] sm:$0xf] }
  0x53   :  { %v11091_v32 = vor.u32 %v16048_v30, %v11088_v31  ;;  %v11054_v35 = vld [vmem:[#allocation5 + $0x208] sm:$0xf]  ;;  %v10799_v36 = vor.u32 %v15980_v34, %v10798_v33  ;;  %v15976_v38 = vld [vmem:[#allocation5 + $0xc] sm:$0xf]  ;;  %v16085_v27 = vld [vmem:[#allocation5 + $0x36c] sm:$0xf0] }
  0x54   :  { %1123 = vmatpush.bf16.msra.mxu2 %v10963_v47  ;;  %1136 = vmatpush.bf16.msra.mxu3 %v11219_v48  ;;  %v16044_v37 = vld [vmem:[#allocation5 + $0x224] sm:$0xf0]  ;;  %v10800_v39 = vld [vmem:[#allocation5 + $0x28] sm:$0xf0]  ;;  %v16081_v30 = vld [vmem:[#allocation5 + $0x354] sm:$0xf]  ;;  %v11223_v33 = vor.u32 %v16085_v27, %v11222_v26 }
  0x55   :  { %v11055_v40 = vor.u32 %v16044_v37, %v11054_v35  ;;  %v10803_v41 = vor.u32 %v15976_v38, %v10800_v39  ;;  %v16040_v42 = vld [vmem:[#allocation5 + $0x20c] sm:$0xf]  ;;  %v11224_v31 = vld [vmem:[#allocation5 + $0x370] sm:$0xf0]  ;;  %v10934_v34 = vld [vmem:[#allocation5 + $0x110] sm:$0xf] }
  0x56   :  { %1098 = vmatpush.bf16.msra.mxu0 %v10927_v52  ;;  %1111 = vmatpush.bf16.msra.mxu1 %v11183_v56  ;;  %v11056_v43 = vld [vmem:[#allocation5 + $0x228] sm:$0xf0]  ;;  %v16101_v56 = vld [vmem:[#allocation5 + $0x3ec] sm:$0xf0]  ;;  %v11227_v37 = vor.u32 %v16081_v30, %v11224_v31  ;;  %v10904_v53 = vld [vmem:[#allocation5 + $0xf0] sm:$0xf0] }
  0x57   :  { %v11059_v44 = vor.u32 %v16040_v42, %v11056_v43  ;;  %v16013_v35 = vld [vmem:[#allocation5 + $0x12c] sm:$0xf0]  ;;  %v16073_v42 = vld [vmem:[#allocation5 + $0x314] sm:$0xf]  ;;  %v11038_v31 = vld [vmem:[#allocation5 + $0x1d8] sm:$0xf] }
  0x58   :  { %1124 = vmatpush.bf16.msra.mxu2 %v10931_v57  ;;  %1137 = vmatpush.bf16.msra.mxu3 %v11187_v61  ;;  %v16033_v57 = vld [vmem:[#allocation5 + $0x1d4] sm:$0xf]  ;;  %v11190_v38 = vld [vmem:[#allocation5 + $0x310] sm:$0xf] }
  0x59   :  { %v16077_v39 = vld [vmem:[#allocation5 + $0x32c] sm:$0xf0]  ;;  %v11192_v43 = vld [vmem:[#allocation5 + $0x330] sm:$0xf0] }
  0x5a   :  { %1099 = vmatpush.bf16.msra.mxu0 %v10895_v1  ;;  %1112 = vmatpush.bf16.msra.mxu1 %v11151_v2  ;;  %v16065_v54 = vld [vmem:[#allocation5 + $0x2d4] sm:$0xf]  ;;  %v16061_v63 = vld [vmem:[#allocation5 + $0x2ac] sm:$0xf0] }
  0x5b   :  { %v15993_v0 = vld [vmem:[#allocation5 + $0x94] sm:$0xf]  ;;  %v15989_v9 = vld [vmem:[#allocation5 + $0x6c] sm:$0xf0] }
  0x5c   :  { %1125 = vmatpush.bf16.msra.mxu2 %v10899_v6  ;;  %1138 = vmatpush.bf16.msra.mxu3 %v11155_v8  ;;  %v11287_v6 = vor.u32 %v16101_v56, %v11286_v55  ;;  %v16029_v8 = vld [vmem:[#allocation5 + $0x1ac] sm:$0xf0]  ;;  %v11160_v55 = vld [vmem:[#allocation5 + $0x2f0] sm:$0xf0] }
  0x5d   :  { %v15985_v14 = vld [vmem:[#allocation5 + $0x54] sm:$0xf] }
  0x5e   :  { %1100 = vmatpush.bf16.msra.mxu0 %v10863_v12  ;;  %1113 = vmatpush.bf16.msra.mxu1 %v11119_v16  ;;  %v11035_v12 = vor.u32 %v16033_v57, %v11032_v62  ;;  %v11000_v16 = vld [vmem:[#allocation5 + $0x1b0] sm:$0xf0]  ;;  %v11126_v62 = vld [vmem:[#allocation5 + $0x290] sm:$0xf] }
  0x5f   :  { %v15977_v27 = vld [vmem:[#allocation5 + $0x14] sm:$0xf] }
  0x60   :  { %1126 = vmatpush.bf16.msra.mxu2 %v10867_v17  ;;  %1139 = vmatpush.bf16.msra.mxu3 %v11123_v20  ;;  %v16089_v17 = vld [vmem:[#allocation5 + $0x394] sm:$0xf]  ;;  %v10999_v20 = vor.u32 %v16029_v8, %v10998_v7  ;;  %v11127_v7 = vor.u32 %v16061_v63, %v11126_v62  ;;  %v10838_v8 = vld [vmem:[#allocation5 + $0x50] sm:$0xf]  ;;  %v16086_v62 = vld [vmem:[#allocation5 + $0x374] sm:$0xf0] }
  0x61   :  { %v11259_v25 = vor.u32 %v16089_v17, %v11256_v18  ;;  %v11096_v17 = vld [vmem:[#allocation5 + $0x270] sm:$0xf0]  ;;  %v10806_v18 = vld [vmem:[#allocation5 + $0x10] sm:$0xf]  ;;  %v16018_v63 = vld [vmem:[#allocation5 + $0x15c] sm:$0xf] }
  0x62   :  { %1101 = vmatpush.bf16.msra.mxu0 %v10831_v24  ;;  %1114 = vmatpush.bf16.msra.mxu1 %v11087_v28  ;;  %v11003_v24 = vor.u32 %v16025_v15, %v11000_v16  ;;  %v16017_v28 = vld [vmem:[#allocation5 + $0x154] sm:$0xf] }
  0x63   :  { %v10840_v15 = vld [vmem:[#allocation5 + $0x70] sm:$0xf0] }
  0x64   :  { %1127 = vmatpush.bf16.msra.mxu2 %v10835_v29  ;;  %1140 = vmatpush.bf16.msra.mxu3 %v11091_v32  ;;  %v10968_v29 = vld [vmem:[#allocation5 + $0x170] sm:$0xf0]  ;;  %v10967_v32 = vor.u32 %v16021_v23, %v10966_v22  ;;  %v15981_v22 = vld [vmem:[#allocation5 + $0x2c] sm:$0xf0] }
  0x65   :  { %v16049_v16 = vld [vmem:[#allocation5 + $0x254] sm:$0xf]  ;;  %v11062_v23 = vld [vmem:[#allocation5 + $0x210] sm:$0xf] }
  0x66   :  { %1102 = vmatpush.bf16.msra.mxu0 %v10799_v36  ;;  %1115 = vmatpush.bf16.msra.mxu1 %v11055_v40  ;;  %v10971_v36 = vor.u32 %v16017_v28, %v10968_v29  ;;  %v16009_v40 = vld [vmem:[#allocation5 + $0x114] sm:$0xf]  ;;  %v11099_v26 = vor.u32 %v16049_v16, %v11096_v17  ;;  %v11200_v16 = vld [vmem:[#allocation5 + $0x338] sm:$0xf0] }
  0x67   :  { %v10808_v28 = vld [vmem:[#allocation5 + $0x30] sm:$0xf0] }
  0x68   :  { %1128 = vmatpush.bf16.msra.mxu2 %v10803_v41  ;;  %1141 = vmatpush.bf16.msra.mxu3 %v11059_v44  ;;  %v10936_v41 = vld [vmem:[#allocation5 + $0x130] sm:$0xf0]  ;;  %v10935_v44 = vor.u32 %v16013_v35, %v10934_v34  ;;  %v16102_v34 = vld [vmem:[#allocation5 + $0x3f4] sm:$0xf0]  ;;  %v16034_v35 = vld [vmem:[#allocation5 + $0x1dc] sm:$0xf] }
  0x69   :  { %v16041_v29 = vld [vmem:[#allocation5 + $0x214] sm:$0xf] }
  0x6a   :  { %v11064_v30 = vld [vmem:[#allocation5 + $0x230] sm:$0xf0] }
  0x8b   :  { %v121_v45 = vpop.permute.xlu0 %120 }
  0xa6   :  { %v209_v46 = vpop.f32.mrf.mxu0  ;;  %v223_v47 = vpop.f32.mrf.mxu1 }
  0xa7   :  { %v210_v48 = vadd.f32 %v209_v46, %v121_v45  ;;  %v224_v49 = vadd.f32 %v223_v47, %v121_v45  ;;  %v10902_v46 = vld [vmem:[#allocation5 + $0xd0] sm:$0xf] }
  0xa8   :  { %v16005_v47 = vld [vmem:[#allocation5 + $0xec] sm:$0xf0] }
  0xa9   :  { %v256_v50 = vmax.f32 %v210_v48, 0.0  ;;  %v257_v51 = vmax.f32 %v224_v49, 0.0  ;;  %v10939_v48 = vor.u32 %v16009_v40, %v10936_v41  ;;  %v11195_v49 = vor.u32 %v16073_v42, %v11192_v43  ;;  %v11296_v40 = vld [vmem:[#allocation5 + $0x3f8] sm:$0xf0] }
  0xaa   :  { %v10903_v56 = vor.u32 %v16005_v47, %v10902_v46  ;;  %v10811_v41 = vor.u32 %v15977_v27, %v10808_v28  ;;  %v11067_v42 = vor.u32 %v16041_v29, %v11064_v30  ;;  %v16030_v46 = vld [vmem:[#allocation5 + $0x1b4] sm:$0xf0]  ;;  %v10912_v27 = vld [vmem:[#allocation5 + $0xf8] sm:$0xf0] }
  0xab   :  { %v264_v52 = vpack.c.bf16 %v257_v51, %v256_v50  ;;  %v237_v60 = vpop.f32.mrf.mxu2  ;;  %v11158_v50 = vld [vmem:[#allocation5 + $0x2d0] sm:$0xf]  ;;  %v16066_v28 = vld [vmem:[#allocation5 + $0x2dc] sm:$0xf] }
  0xac   :  { %v238_v1 = vadd.f32 %v237_v60, %v121_v45  ;;  %v16069_v51 = vld [vmem:[#allocation5 + $0x2ec] sm:$0xf0]  ;;  %v11168_v29 = vld [vmem:[#allocation5 + $0x2f8] sm:$0xf0] }
  0xad   :  { %v397_v58 = vunpack.c.l.b16 %v264_v52  ;;  %v398_v59 = vunpack.c.h.b16 %v264_v52  ;;  %v16001_v52 = vld [vmem:[#allocation5 + $0xd4] sm:$0xf]  ;;  %v11159_v57 = vor.u32 %v16069_v51, %v11158_v50  ;;  %v16094_v50 = vld [vmem:[#allocation5 + $0x3b4] sm:$0xf0]  ;;  %v16026_v51 = vld [vmem:[#allocation5 + $0x19c] sm:$0xf] }
  0xae   :  { %v251_v61 = vpop.f32.mrf.mxu3  ;;  %v258_v10 = vmax.f32 %v238_v1, 0.0  ;;  %v10907_v60 = vor.u32 %v16001_v52, %v10904_v53  ;;  %v10872_v1 = vld [vmem:[#allocation5 + $0xb0] sm:$0xf0]  ;;  %v11008_v52 = vld [vmem:[#allocation5 + $0x1b8] sm:$0xf0] }
  0xaf   :  { %v252_v2 = vadd.f32 %v251_v61, %v121_v45  ;;  %v17605_v3 = vpack.c.b16 %v397_v58, %v397_v58  ;;  %v17607_v4 = vpack.c.b16 %v398_v59, %v398_v59  ;;  %v11191_v45 = vor.u32 %v16077_v39, %v11190_v38  ;;  %v10870_v58 = vld [vmem:[#allocation5 + $0x90] sm:$0xf]  ;;  %v11040_v38 = vld [vmem:[#allocation5 + $0x1f8] sm:$0xf0] }
  0xb0   :  { %v15997_v59 = vld [vmem:[#allocation5 + $0xac] sm:$0xf0]  ;;  %v11163_v61 = vor.u32 %v16065_v54, %v11160_v55  ;;  %v16098_v39 = vld [vmem:[#allocation5 + $0x3dc] sm:$0xf]  ;;  %v11043_v47 = vor.u32 %v16034_v35, %v11040_v38  ;;  %v11171_v35 = vor.u32 %v16066_v28, %v11168_v29  ;;  %v13105_v28 = vld [vmem:[#allocation7 + $0xe80] sm:$0xf0] }
  0xb1   :  { %v259_v11 = vmax.f32 %v252_v2, 0.0  ;;  %1051 = vmatmul.bf16.vlgmr.msrb.gmra.mxu0 %v17605_v3  ;;  %1064 = vmatmul.bf16.vlgmr.msrb.gmra.mxu1 %v17607_v4  ;;  %v16057_v2 = vld [vmem:[#allocation5 + $0x294] sm:$0xf]  ;;  %v16090_v53 = vld [vmem:[#allocation5 + $0x39c] sm:$0xf] }
  0xb2   :  { %1077 = vmatmul.bf16.vlgmr.msrb.gmra.mxu2 %v17605_v3  ;;  %1090 = vmatmul.bf16.vlgmr.msrb.gmra.mxu3 %v17607_v4  ;;  %v11264_v54 = vld [vmem:[#allocation5 + $0x3b8] sm:$0xf0] }
  0xb3   :  { %v17611_v19 = vpack.c.bf16 %v259_v11, %v258_v10  ;;  %1147 = vmatpush.bf16.msrb.mxu0 %v11031_v5  ;;  %1160 = vmatpush.bf16.msrb.mxu1 %v11287_v6  ;;  %v11128_v5 = vld [vmem:[#allocation5 + $0x2b0] sm:$0xf0]  ;;  %v10871_v6 = vor.u32 %v15997_v59, %v10870_v58  ;;  %v10875_v10 = vor.u32 %v15993_v0, %v10872_v1  ;;  %v16022_v58 = vld [vmem:[#allocation5 + $0x174] sm:$0xf0]  ;;  %v10976_v0 = vld [vmem:[#allocation5 + $0x178] sm:$0xf0] }
  0xb4   :  { %1173 = vmatpush.bf16.msrb.mxu2 %v11035_v12  ;;  %1186 = vmatpush.bf16.msrb.mxu3 %v11291_v13  ;;  %v11131_v11 = vor.u32 %v16057_v2, %v11128_v5  ;;  %v11094_v12 = vld [vmem:[#allocation5 + $0x250] sm:$0xf]  ;;  %v11011_v59 = vor.u32 %v16026_v51, %v11008_v52  ;;  %v16082_v1 = vld [vmem:[#allocation5 + $0x35c] sm:$0xf] }
  0xb5   :  { %v16053_v13 = vld [vmem:[#allocation5 + $0x26c] sm:$0xf0]  ;;  %v11232_v2 = vld [vmem:[#allocation5 + $0x378] sm:$0xf0] }
  0xb6   :  { %v15994_v38 = vld [vmem:[#allocation5 + $0x9c] sm:$0xf] }
  0xb7   :  { %1148 = vmatpush.bf16.msrb.mxu0 %v10999_v20  ;;  %1161 = vmatpush.bf16.msrb.mxu1 %v11255_v21  ;;  %v10839_v20 = vor.u32 %v15989_v9, %v10838_v8  ;;  %v11095_v21 = vor.u32 %v16053_v13, %v11094_v12  ;;  %v16014_v8 = vld [vmem:[#allocation5 + $0x134] sm:$0xf0]  ;;  %v10979_v9 = vor.u32 %v16018_v63, %v10976_v0  ;;  %v16010_v13 = vld [vmem:[#allocation5 + $0x11c] sm:$0xf] }
  0xb8   :  { %1174 = vmatpush.bf16.msrb.mxu2 %v11003_v24  ;;  %1187 = vmatpush.bf16.msrb.mxu3 %v11259_v25  ;;  %v16045_v24 = vld [vmem:[#allocation5 + $0x22c] sm:$0xf0]  ;;  %v10843_v25 = vor.u32 %v15985_v14, %v10840_v15  ;;  %v16078_v12 = vld [vmem:[#allocation5 + $0x334] sm:$0xf0]  ;;  %v10944_v14 = vld [vmem:[#allocation5 + $0x138] sm:$0xf0] }
  0xb9   :  { %v16074_v15 = vld [vmem:[#allocation5 + $0x31c] sm:$0xf] }
  0xba   :  { %v10848_v51 = vld [vmem:[#allocation5 + $0x78] sm:$0xf0] }
  0xbb   :  { %1149 = vmatpush.bf16.msrb.mxu0 %v10967_v32  ;;  %1162 = vmatpush.bf16.msrb.mxu1 %v11223_v33  ;;  %v16038_v32 = vld [vmem:[#allocation5 + $0x1f4] sm:$0xf0]  ;;  %v16050_v52 = vld [vmem:[#allocation5 + $0x25c] sm:$0xf] }
  0xbc   :  { %1175 = vmatpush.bf16.msrb.mxu2 %v10971_v36  ;;  %1188 = vmatpush.bf16.msrb.mxu3 %v11227_v37  ;;  %v11294_v33 = vld [vmem:[#allocation5 + $0x3d8] sm:$0xf]  ;;  %v10807_v36 = vor.u32 %v15981_v22, %v10806_v18  ;;  %v11063_v37 = vor.u32 %v16045_v24, %v11062_v23  ;;  %v11039_v43 = vor.u32 %v16038_v32, %v11038_v31  ;;  %v10816_v63 = vld [vmem:[#allocation5 + $0x38] sm:$0xf0] }
  0xbd   :  { %v10947_v22 = vor.u32 %v16010_v13, %v10944_v14  ;;  %v11203_v23 = vor.u32 %v16074_v15, %v11200_v16  ;;  %v11166_v24 = vld [vmem:[#allocation5 + $0x2d8] sm:$0xf]  ;;  %v16042_v0 = vld [vmem:[#allocation5 + $0x21c] sm:$0xf]  ;;  %v13233_v13 = vld [vmem:[#allocation7 + $0xf80] sm:$0xf0] }
  0xbe   :  { %v10878_v32 = vld [vmem:[#allocation5 + $0x98] sm:$0xf] }
  0xbf   :  { %1150 = vmatpush.bf16.msrb.mxu0 %v10935_v44  ;;  %1163 = vmatpush.bf16.msrb.mxu1 %v11191_v45  ;;  %v11295_v44 = vor.u32 %v16102_v34, %v11294_v33  ;;  %v11006_v45 = vld [vmem:[#allocation5 + $0x198] sm:$0xf] }
  0xc0   :  { %1176 = vmatpush.bf16.msrb.mxu2 %v10939_v48  ;;  %1189 = vmatpush.bf16.msrb.mxu3 %v11195_v49  ;;  %v11299_v48 = vor.u32 %v16098_v39, %v11296_v40  ;;  %v11262_v49 = vld [vmem:[#allocation5 + $0x398] sm:$0xf]  ;;  %v11007_v55 = vor.u32 %v16030_v46, %v11006_v45  ;;  %v10880_v39 = vld [vmem:[#allocation5 + $0xb8] sm:$0xf0] }
  0xc1   :  { %1103 = vmatmul.bf16.vlgmr.msra.gmra.mxu0 %v17605_v3  ;;  %1116 = vmatmul.bf16.vlgmr.msra.gmra.mxu1 %v17607_v4  ;;  %v15998_v33 = vld [vmem:[#allocation5 + $0xb4] sm:$0xf0]  ;;  %v16058_v40 = vld [vmem:[#allocation5 + $0x29c] sm:$0xf]  ;;  %v10883_v46 = vor.u32 %v15994_v38, %v10880_v39  ;;  %v11953_v38 = vld [vmem:[#allocation7 + $0x580] sm:$0xf0] }
  0xc2   :  { %1129 = vmatmul.bf16.vlgmr.msra.gmra.mxu2 %v17605_v3  ;;  %1142 = vmatmul.bf16.vlgmr.msra.gmra.mxu3 %v17607_v4  ;;  %v15990_v45 = vld [vmem:[#allocation5 + $0x74] sm:$0xf0]  ;;  %v16519_v39 = vld [vmem:[#allocation7 + $0xd04] sm:$0xf] }
  0xc3   :  { %1151 = vmatpush.bf16.msrb.mxu0 %v10903_v56  ;;  %1164 = vmatpush.bf16.msrb.mxu1 %v11159_v57  ;;  %v11263_v56 = vor.u32 %v16094_v50, %v11262_v49  ;;  %v10974_v57 = vld [vmem:[#allocation5 + $0x158] sm:$0xf]  ;;  %v15986_v50 = vld [vmem:[#allocation5 + $0x5c] sm:$0xf] }
  0xc4   :  { %1177 = vmatpush.bf16.msrb.mxu2 %v10907_v60  ;;  %1190 = vmatpush.bf16.msrb.mxu3 %v11163_v61  ;;  %v11267_v60 = vor.u32 %v16090_v53, %v11264_v54  ;;  %v11230_v61 = vld [vmem:[#allocation5 + $0x358] sm:$0xf]  ;;  %v10975_v5 = vor.u32 %v16022_v58, %v10974_v57  ;;  %v11104_v53 = vld [vmem:[#allocation5 + $0x278] sm:$0xf0] }
  0xc5   :  { %v16054_v49 = vld [vmem:[#allocation5 + $0x274] sm:$0xf0] }
  0xc6   :  { %v10814_v54 = vld [vmem:[#allocation5 + $0x18] sm:$0xf] }
  0xc7   :  { %1152 = vmatpush.bf16.msrb.mxu0 %v10871_v6  ;;  %1165 = vmatpush.bf16.msrb.mxu1 %v11127_v7  ;;  %v11231_v6 = vor.u32 %v16086_v62, %v11230_v61  ;;  %v10942_v7 = vld [vmem:[#allocation5 + $0x118] sm:$0xf]  ;;  %v11107_v61 = vor.u32 %v16050_v52, %v11104_v53  ;;  %v15978_v62 = vld [vmem:[#allocation5 + $0x1c] sm:$0xf]  ;;  %v12849_v52 = vld [vmem:[#allocation7 + $0xc80] sm:$0xf0]  ;;  %v211_v53 = vpop.f32.mrf.mxu0 }
  0xc8   :  { %1178 = vmatpush.bf16.msrb.mxu2 %v10875_v10  ;;  %1191 = vmatpush.bf16.msrb.mxu3 %v11131_v11  ;;  %v11235_v10 = vor.u32 %v16082_v1, %v11232_v2  ;;  %v11198_v11 = vld [vmem:[#allocation5 + $0x318] sm:$0xf]  ;;  %v10943_v17 = vor.u32 %v16014_v8, %v10942_v7  ;;  %v11072_v1 = vld [vmem:[#allocation5 + $0x238] sm:$0xf0]  ;;  %v12207_v2 = vld [vmem:[#allocation7 + $0x700] sm:$0xf]  ;;  %v10819_v14 = vor.u32 %v15978_v62, %v10816_v63  ;;  %v17627_v62 = vpop.permute.xlu0 %125 }
  0xc9   :  { %v11199_v18 = vor.u32 %v16078_v12, %v11198_v11  ;;  %v15982_v57 = vld [vmem:[#allocation5 + $0x34] sm:$0xf0]  ;;  %v16599_v7 = vld [vmem:[#allocation7 + $0xf7c] sm:$0xf0]  ;;  %v16327_v8 = vld [vmem:[#allocation7 + $0x704] sm:$0xf]  ;;  %v11075_v15 = vor.u32 %v16042_v0, %v11072_v1 }
  0xca   :  { %v11070_v58 = vld [vmem:[#allocation5 + $0x218] sm:$0xf]  ;;  %v12209_v11 = vld [vmem:[#allocation7 + $0x780] sm:$0xf0] }
  0xcb   :  { %1153 = vmatpush.bf16.msrb.mxu0 %v10839_v20  ;;  %1166 = vmatpush.bf16.msrb.mxu1 %v11095_v21  ;;  %v10910_v20 = vld [vmem:[#allocation5 + $0xd8] sm:$0xf]  ;;  %v16583_v12 = vld [vmem:[#allocation7 + $0xf04] sm:$0xf] }
  0xcc   :  { %1179 = vmatpush.bf16.msrb.mxu2 %v10843_v25  ;;  %1192 = vmatpush.bf16.msrb.mxu3 %v11099_v26  ;;  %v16006_v21 = vld [vmem:[#allocation5 + $0xf4] sm:$0xf0]  ;;  %v16002_v26 = vld [vmem:[#allocation5 + $0xdc] sm:$0xf]  ;;  %v11697_v63 = vld [vmem:[#allocation7 + $0x380] sm:$0xf0] }
  0xcd   :  { %v16070_v25 = vld [vmem:[#allocation5 + $0x2f4] sm:$0xf0]  ;;  %v10911_v30 = vor.u32 %v16006_v21, %v10910_v20  ;;  %v10915_v34 = vor.u32 %v16002_v26, %v10912_v27  ;;  %v16311_v20 = vld [vmem:[#allocation7 + $0x67c] sm:$0xf0]  ;;  %v12212_v21 = vor.u32 %v16327_v8, %v12209_v11  ;;  %v12081_v26 = vld [vmem:[#allocation7 + $0x680] sm:$0xf0] }
  0xce   :  { %v11167_v31 = vor.u32 %v16070_v25, %v11166_v24  ;;  %v16567_v24 = vld [vmem:[#allocation7 + $0xe7c] sm:$0xf0]  ;;  %v16295_v25 = vld [vmem:[#allocation7 + $0x604] sm:$0xf] }
  0xcf   :  { %1154 = vmatpush.bf16.msrb.mxu0 %v10807_v36  ;;  %1167 = vmatpush.bf16.msrb.mxu1 %v11063_v37  ;;  %v11134_v36 = vld [vmem:[#allocation5 + $0x298] sm:$0xf]  ;;  %v16551_v27 = vld [vmem:[#allocation7 + $0xe04] sm:$0xf]  ;;  %v11567_v8 = vld [vmem:[#allocation7 + $0x200] sm:$0xf] }
  0xd0   :  { %1180 = vmatpush.bf16.msrb.mxu2 %v10811_v41  ;;  %1193 = vmatpush.bf16.msrb.mxu3 %v11067_v42  ;;  %v16062_v37 = vld [vmem:[#allocation5 + $0x2b4] sm:$0xf0]  ;;  %v11136_v41 = vld [vmem:[#allocation5 + $0x2b8] sm:$0xf0]  ;;  %v10879_v42 = vor.u32 %v15998_v33, %v10878_v32  ;;  %v16279_v32 = vld [vmem:[#allocation7 + $0x57c] sm:$0xf0]  ;;  %v12084_v33 = vor.u32 %v16295_v25, %v12081_v26 }
  0xd1   :  { %v16455_v0 = vld [vmem:[#allocation7 + $0xb04] sm:$0xf] }
  0xd2   :  { %1155 = vmatmul.bf16.vlgmr.msrb.gmra.mxu0 %v17605_v3  ;;  %1168 = vmatmul.bf16.vlgmr.msrb.gmra.mxu1 %v17607_v4  ;;  %v12721_v1 = vld [vmem:[#allocation7 + $0xb80] sm:$0xf0] }
  0xd3   :  { %1199 = vmatpush.bf16.msra.mxu0 %v11039_v43  ;;  %1212 = vmatpush.bf16.msra.mxu1 %v11295_v44  ;;  %v11135_v43 = vor.u32 %v16062_v37, %v11134_v36  ;;  %v10846_v44 = vld [vmem:[#allocation5 + $0x58] sm:$0xf]  ;;  %v16535_v36 = vld [vmem:[#allocation7 + $0xd7c] sm:$0xf0]  ;;  %v16263_v37 = vld [vmem:[#allocation7 + $0x504] sm:$0xf]  ;;  %v12724_v11 = vor.u32 %v16455_v0, %v12721_v1 }
  0xd4   :  { %1225 = vmatpush.bf16.msra.mxu2 %v11043_v47  ;;  %1238 = vmatpush.bf16.msra.mxu3 %v11299_v48  ;;  %v11139_v47 = vor.u32 %v16058_v40, %v11136_v41  ;;  %v11102_v48 = vld [vmem:[#allocation5 + $0x258] sm:$0xf]  ;;  %v12977_v40 = vld [vmem:[#allocation7 + $0xd80] sm:$0xf0]  ;;  %v13111_v1 = vld [vmem:[#allocation7 + $0xe08] sm:$0xf] }
  0xd5   :  { %1181 = vmatmul.bf16.vlgmr.msrb.gmra.mxu2 %v17605_v3  ;;  %1194 = vmatmul.bf16.vlgmr.msrb.gmra.mxu3 %v17607_v4 }
  0xd7   :  { %1200 = vmatpush.bf16.msra.mxu0 %v11007_v55  ;;  %1213 = vmatpush.bf16.msra.mxu1 %v11263_v56  ;;  %v10847_v55 = vor.u32 %v15990_v45, %v10846_v44  ;;  %v11103_v56 = vor.u32 %v16054_v49, %v11102_v48  ;;  %v16247_v44 = vld [vmem:[#allocation7 + $0x47c] sm:$0xf0]  ;;  %v11956_v45 = vor.u32 %v16263_v37, %v11953_v38  ;;  %v16231_v49 = vld [vmem:[#allocation7 + $0x404] sm:$0xf] }
  0xd8   :  { %1226 = vmatpush.bf16.msra.mxu2 %v11011_v59  ;;  %1239 = vmatpush.bf16.msra.mxu3 %v11267_v60  ;;  %v16046_v59 = vld [vmem:[#allocation5 + $0x234] sm:$0xf0]  ;;  %v10851_v60 = vor.u32 %v15986_v50, %v10848_v51  ;;  %v16503_v48 = vld [vmem:[#allocation7 + $0xc7c] sm:$0xf0]  ;;  %v11825_v50 = vld [vmem:[#allocation7 + $0x480] sm:$0xf0] }
  0xd9   :  { %v16487_v51 = vld [vmem:[#allocation7 + $0xc04] sm:$0xf]  ;;  %v12335_v37 = vld [vmem:[#allocation7 + $0x800] sm:$0xf] }
  0xda   :  { %v16375_v38 = vld [vmem:[#allocation7 + $0x87c] sm:$0xf0] }
  0xdb   :  { %1201 = vmatpush.bf16.msra.mxu0 %v10975_v5  ;;  %1214 = vmatpush.bf16.msra.mxu1 %v11231_v6  ;;  %v16343_v5 = vld [vmem:[#allocation7 + $0x77c] sm:$0xf0] }
  0xdc   :  { %1227 = vmatpush.bf16.msra.mxu2 %v10979_v9  ;;  %1240 = vmatpush.bf16.msra.mxu3 %v11235_v10  ;;  %v13231_v6 = vld [vmem:[#allocation7 + $0xf00] sm:$0xf]  ;;  %v10815_v9 = vor.u32 %v15982_v57, %v10814_v54  ;;  %v11071_v10 = vor.u32 %v16046_v59, %v11070_v58  ;;  %v12208_v16 = vor.u32 %v16343_v5, %v12207_v2 }
  0xdd   :  { %v11695_v54 = vld [vmem:[#allocation7 + $0x300] sm:$0xf]  ;;  %v11828_v57 = vor.u32 %v16231_v49, %v11825_v50  ;;  %v12852_v58 = vor.u32 %v16487_v51, %v12849_v52  ;;  %v212_v2 = vadd.f32 %v211_v53, %v17627_v62  ;;  %v16600_v49 = vld [vmem:[#allocation7 + $0xf84] sm:$0xf0]  ;;  %v16328_v50 = vld [vmem:[#allocation7 + $0x70c] sm:$0xf]  ;;  %v12336_v52 = vor.u32 %v16375_v38, %v12335_v37 }
  0xde   :  { %v12719_v59 = vld [vmem:[#allocation7 + $0xb00] sm:$0xf]  ;;  %v12217_v53 = vld [vmem:[#allocation7 + $0x788] sm:$0xf0]  ;;  %v11703_v38 = vld [vmem:[#allocation7 + $0x308] sm:$0xf] }
  0xdf   :  { %1202 = vmatpush.bf16.msra.mxu0 %v10943_v17  ;;  %1215 = vmatpush.bf16.msra.mxu1 %v11199_v18  ;;  %v13232_v17 = vor.u32 %v16599_v7, %v13231_v6  ;;  %v12079_v18 = vld [vmem:[#allocation7 + $0x600] sm:$0xf] }
  0xe0   :  { %1228 = vmatpush.bf16.msra.mxu2 %v10947_v22  ;;  %1241 = vmatpush.bf16.msra.mxu3 %v11203_v23  ;;  %v13236_v22 = vor.u32 %v16583_v12, %v13233_v13  ;;  %v13103_v23 = vld [vmem:[#allocation7 + $0xe00] sm:$0xf]  ;;  %v12080_v29 = vor.u32 %v16311_v20, %v12079_v18  ;;  %v260_v18 = vmax.f32 %v212_v2, 0.0  ;;  %v16568_v2 = vld [vmem:[#allocation7 + $0xe84] sm:$0xf0] }
  0xe1   :  { %v12591_v12 = vld [vmem:[#allocation7 + $0xa00] sm:$0xf] }
  0xe2   :  { %v16439_v13 = vld [vmem:[#allocation7 + $0xa7c] sm:$0xf0] }
  0xe3   :  { %1203 = vmatpush.bf16.msra.mxu0 %v10911_v30  ;;  %1216 = vmatpush.bf16.msra.mxu1 %v11167_v31  ;;  %v13104_v30 = vor.u32 %v16567_v24, %v13103_v23  ;;  %v11951_v31 = vld [vmem:[#allocation7 + $0x500] sm:$0xf] }
  0xe4   :  { %1229 = vmatpush.bf16.msra.mxu2 %v10915_v34  ;;  %1242 = vmatpush.bf16.msra.mxu3 %v11171_v35  ;;  %v13108_v34 = vor.u32 %v16551_v27, %v13105_v28  ;;  %v12975_v35 = vld [vmem:[#allocation7 + $0xd00] sm:$0xf]  ;;  %v11952_v41 = vor.u32 %v16279_v32, %v11951_v31  ;;  %v16391_v31 = vld [vmem:[#allocation7 + $0x904] sm:$0xf] }
  0xe5   :  { %v11439_v23 = vld [vmem:[#allocation7 + $0x100] sm:$0xf]  ;;  %v12465_v32 = vld [vmem:[#allocation7 + $0x980] sm:$0xf0] }
  0xe6   :  { %v16151_v24 = vld [vmem:[#allocation7 + $0x17c] sm:$0xf0] }
  0xe7   :  { %1204 = vmatpush.bf16.msra.mxu0 %v10879_v42  ;;  %1217 = vmatpush.bf16.msra.mxu1 %v11135_v43  ;;  %v12976_v42 = vor.u32 %v16535_v36, %v12975_v35  ;;  %v11823_v43 = vld [vmem:[#allocation7 + $0x400] sm:$0xf] }
  0xe8   :  { %1230 = vmatpush.bf16.msra.mxu2 %v10883_v46  ;;  %1243 = vmatpush.bf16.msra.mxu3 %v11139_v47  ;;  %v12980_v46 = vor.u32 %v16519_v39, %v12977_v40  ;;  %v12847_v47 = vld [vmem:[#allocation7 + $0xc00] sm:$0xf] }
  0xe9   :  { %v12463_v27 = vld [vmem:[#allocation7 + $0x900] sm:$0xf] }
  0xea   :  { %v16407_v28 = vld [vmem:[#allocation7 + $0x97c] sm:$0xf0] }
  0xeb   :  { %1205 = vmatpush.bf16.msra.mxu0 %v10847_v55  ;;  %1218 = vmatpush.bf16.msra.mxu1 %v11103_v56  ;;  %v16215_v55 = vld [vmem:[#allocation7 + $0x37c] sm:$0xf0]  ;;  %v225_v56 = vpop.f32.mrf.mxu1  ;;  %v12464_v35 = vor.u32 %v16407_v28, %v12463_v27  ;;  %v16248_v27 = vld [vmem:[#allocation7 + $0x484] sm:$0xf0] }
  0xec   :  { %1231 = vmatpush.bf16.msra.mxu2 %v10851_v60  ;;  %1244 = vmatpush.bf16.msra.mxu3 %v11107_v61  ;;  %v16471_v60 = vld [vmem:[#allocation7 + $0xb7c] sm:$0xf0]  ;;  %v16199_v61 = vld [vmem:[#allocation7 + $0x304] sm:$0xf]  ;;  %v226_v5 = vadd.f32 %v225_v56, %v17627_v62  ;;  %v11696_v6 = vor.u32 %v16215_v55, %v11695_v54 }
  0xed   :  { %v12720_v7 = vor.u32 %v16471_v60, %v12719_v59  ;;  %v16119_v36 = vld [vmem:[#allocation7 + $0x7c] sm:$0xf0]  ;;  %v12087_v60 = vld [vmem:[#allocation7 + $0x608] sm:$0xf] }
  0xee   :  { %v261_v20 = vmax.f32 %v226_v5, 0.0  ;;  %v16296_v5 = vld [vmem:[#allocation7 + $0x60c] sm:$0xf] }
  0xef   :  { %1206 = vmatpush.bf16.msra.mxu0 %v10815_v9  ;;  %1219 = vmatpush.bf16.msra.mxu1 %v11071_v10  ;;  %v16183_v9 = vld [vmem:[#allocation7 + $0x27c] sm:$0xf0]  ;;  %v11700_v10 = vor.u32 %v16199_v61, %v11697_v63  ;;  %v16312_v61 = vld [vmem:[#allocation7 + $0x684] sm:$0xf0]  ;;  %v12220_v63 = vor.u32 %v16328_v50, %v12217_v53 }
  0xf0   :  { %1232 = vmatpush.bf16.msra.mxu2 %v10819_v14  ;;  %1245 = vmatpush.bf16.msra.mxu3 %v11075_v15  ;;  %v16167_v14 = vld [vmem:[#allocation7 + $0x204] sm:$0xf]  ;;  %v266_v39 = vpack.c.bf16 %v261_v20, %v260_v18  ;;  %v16536_v18 = vld [vmem:[#allocation7 + $0xd84] sm:$0xf0]  ;;  %v16264_v20 = vld [vmem:[#allocation7 + $0x50c] sm:$0xf] }
  0xf1   :  { %v11569_v15 = vld [vmem:[#allocation7 + $0x280] sm:$0xf0]  ;;  %v11575_v50 = vld [vmem:[#allocation7 + $0x208] sm:$0xf] }
  0xf2   :  { %1207 = vmatmul.bf16.vlgmr.msra.gmra.mxu0 %v17605_v3  ;;  %1220 = vmatmul.bf16.vlgmr.msra.gmra.mxu1 %v17607_v4  ;;  %v11572_v25 = vor.u32 %v16167_v14, %v11569_v15  ;;  %v2072_v54 = vunpack.c.l.b16 %v266_v39  ;;  %v16280_v14 = vld [vmem:[#allocation7 + $0x584] sm:$0xf0] }
  0xf3   :  { %4638 = vmatpush.bf16.msrb.mxu0 %v12208_v16  ;;  %4651 = vmatpush.bf16.msrb.mxu1 %v13232_v17  ;;  %v16423_v16 = vld [vmem:[#allocation7 + $0xa04] sm:$0xf] }
  0xf4   :  { %4664 = vmatpush.bf16.msrb.mxu2 %v12212_v21  ;;  %4677 = vmatpush.bf16.msrb.mxu3 %v13236_v22  ;;  %v12593_v17 = vld [vmem:[#allocation7 + $0xa80] sm:$0xf0]  ;;  %v11568_v21 = vor.u32 %v16183_v9, %v11567_v8  ;;  %v12592_v22 = vor.u32 %v16439_v13, %v12591_v12  ;;  %v13113_v8 = vld [vmem:[#allocation7 + $0xe88] sm:$0xf0]  ;;  %v17631_v9 = vpack.c.b16 %v2072_v54, %v2072_v54  ;;  %v11959_v13 = vld [vmem:[#allocation7 + $0x508] sm:$0xf] }
  0xf5   :  { %1233 = vmatmul.bf16.vlgmr.msra.gmra.mxu2 %v17605_v3  ;;  %1246 = vmatmul.bf16.vlgmr.msra.gmra.mxu3 %v17607_v4  ;;  %v11824_v3 = vor.u32 %v16247_v44, %v11823_v43  ;;  %v12848_v4 = vor.u32 %v16503_v48, %v12847_v47  ;;  %v12596_v26 = vor.u32 %v16423_v16, %v12593_v17  ;;  %v11313_v43 = vld [vmem:[#allocation7 + $0x80] sm:$0xf0]  ;;  %v16344_v47 = vld [vmem:[#allocation7 + $0x784] sm:$0xf0]  ;;  %v16168_v54 = vld [vmem:[#allocation7 + $0x20c] sm:$0xf] }
  0xf6   :  { %v16359_v44 = vld [vmem:[#allocation7 + $0x804] sm:$0xf]  ;;  %v13239_v48 = vld [vmem:[#allocation7 + $0xf08] sm:$0xf]  ;;  %v13112_v12 = vor.u32 %v16568_v2, %v13111_v1 }
  0xf7   :  { %4639 = vmatpush.bf16.msrb.mxu0 %v12080_v29  ;;  %4652 = vmatpush.bf16.msrb.mxu1 %v13104_v30  ;;  %v16135_v29 = vld [vmem:[#allocation7 + $0x104] sm:$0xf]  ;;  %v13240_v59 = vor.u32 %v16600_v49, %v13239_v48  ;;  %v12983_v17 = vld [vmem:[#allocation7 + $0xd08] sm:$0xf] }
  0xf8   :  { %4665 = vmatpush.bf16.msrb.mxu2 %v12084_v33  ;;  %4678 = vmatpush.bf16.msrb.mxu3 %v13108_v34  ;;  %v11441_v30 = vld [vmem:[#allocation7 + $0x180] sm:$0xf0]  ;;  %v11311_v33 = vld [vmem:[#allocation7] sm:$0xf]  ;;  %v11440_v34 = vor.u32 %v16151_v24, %v11439_v23  ;;  %v12985_v23 = vld [vmem:[#allocation7 + $0xd88] sm:$0xf0]  ;;  %v11960_v24 = vor.u32 %v16280_v14, %v11959_v13 }
  0xf9   :  { %v11444_v40 = vor.u32 %v16135_v29, %v11441_v30  ;;  %v11312_v51 = vor.u32 %v16119_v36, %v11311_v33  ;;  %v12855_v30 = vld [vmem:[#allocation7 + $0xc08] sm:$0xf]  ;;  %v11833_v33 = vld [vmem:[#allocation7 + $0x488] sm:$0xf0] }
  0xfa   :  { %v12471_v1 = vld [vmem:[#allocation7 + $0x908] sm:$0xf] }
  0xfb   :  { %4640 = vmatpush.bf16.msrb.mxu0 %v11952_v41  ;;  %4653 = vmatpush.bf16.msrb.mxu1 %v12976_v42  ;;  %v12468_v41 = vor.u32 %v16391_v31, %v12465_v32  ;;  %v16103_v42 = vld [vmem:[#allocation7 + $0x4] sm:$0xf]  ;;  %v16504_v31 = vld [vmem:[#allocation7 + $0xc84] sm:$0xf0]  ;;  %v16232_v32 = vld [vmem:[#allocation7 + $0x40c] sm:$0xf] }
  0xfc   :  { %4666 = vmatpush.bf16.msrb.mxu2 %v11956_v45  ;;  %4679 = vmatpush.bf16.msrb.mxu3 %v12980_v46  ;;  %v12337_v45 = vld [vmem:[#allocation7 + $0x880] sm:$0xf0]  ;;  %v12215_v46 = vld [vmem:[#allocation7 + $0x708] sm:$0xf]  ;;  %v11316_v55 = vor.u32 %v16103_v42, %v11313_v43  ;;  %v12856_v37 = vor.u32 %v16504_v31, %v12855_v30  ;;  %v12225_v31 = vld [vmem:[#allocation7 + $0x790] sm:$0xf0] }
  0xfd   :  { %v12340_v56 = vor.u32 %v16359_v44, %v12337_v45  ;;  %v12727_v42 = vld [vmem:[#allocation7 + $0xb08] sm:$0xf]  ;;  %v16200_v44 = vld [vmem:[#allocation7 + $0x30c] sm:$0xf] }
  0xfe   :  { %v16472_v43 = vld [vmem:[#allocation7 + $0xb84] sm:$0xf0]  ;;  %v11705_v45 = vld [vmem:[#allocation7 + $0x388] sm:$0xf0] }
  0xff   :  { %4641 = vmatpush.bf16.msrb.mxu0 %v11824_v3  ;;  %4654 = vmatpush.bf16.msrb.mxu1 %v12848_v4  ;;  %v16584_v3 = vld [vmem:[#allocation7 + $0xf0c] sm:$0xf]  ;;  %v12728_v49 = vor.u32 %v16472_v43, %v12727_v42  ;;  %v16408_v2 = vld [vmem:[#allocation7 + $0x984] sm:$0xf0]  ;;  %v13119_v42 = vld [vmem:[#allocation7 + $0xe10] sm:$0xf] }
 0x100   :  { %4667 = vmatpush.bf16.msrb.mxu2 %v11828_v57  ;;  %4680 = vmatpush.bf16.msrb.mxu3 %v12852_v58  ;;  %v13241_v4 = vld [vmem:[#allocation7 + $0xf88] sm:$0xf0]  ;;  %v2073_v57 = vunpack.c.h.b16 %v266_v39  ;;  %v12216_v58 = vor.u32 %v16344_v47, %v12215_v46  ;;  %v16216_v39 = vld [vmem:[#allocation7 + $0x384] sm:$0xf0]  ;;  %v12472_v13 = vor.u32 %v16408_v2, %v12471_v1  ;;  %v16569_v43 = vld [vmem:[#allocation7 + $0xe8c] sm:$0xf0] }
 0x101   :  { %v13244_v0 = vor.u32 %v16584_v3, %v13241_v4  ;;  %v16456_v46 = vld [vmem:[#allocation7 + $0xb0c] sm:$0xf]  ;;  %v11704_v48 = vor.u32 %v16216_v39, %v11703_v38  ;;  %v12599_v3 = vld [vmem:[#allocation7 + $0xa08] sm:$0xf]  ;;  %v12095_v38 = vld [vmem:[#allocation7 + $0x610] sm:$0xf] }
 0x102   :  { %v12729_v47 = vld [vmem:[#allocation7 + $0xb88] sm:$0xf0]  ;;  %v16440_v4 = vld [vmem:[#allocation7 + $0xa84] sm:$0xf0]  ;;  %v16313_v39 = vld [vmem:[#allocation7 + $0x68c] sm:$0xf0] }
 0x103   :  { %4642 = vmatpush.bf16.msrb.mxu0 %v11696_v6  ;;  %4655 = vmatpush.bf16.msrb.mxu1 %v12720_v7  ;;  %v12089_v6 = vld [vmem:[#allocation7 + $0x688] sm:$0xf0]  ;;  %v12732_v53 = vor.u32 %v16456_v46, %v12729_v47  ;;  %v16120_v14 = vld [vmem:[#allocation7 + $0x84] sm:$0xf0]  ;;  %v16553_v46 = vld [vmem:[#allocation7 + $0xe14] sm:$0xf] }
 0x104   :  { %4668 = vmatpush.bf16.msrb.mxu2 %v11700_v10  ;;  %4681 = vmatpush.bf16.msrb.mxu3 %v12724_v11  ;;  %v16552_v7 = vld [vmem:[#allocation7 + $0xe0c] sm:$0xf]  ;;  %v17633_v10 = vpack.c.b16 %v2073_v57, %v2073_v57  ;;  %v12088_v11 = vor.u32 %v16312_v61, %v12087_v60  ;;  %v12092_v15 = vor.u32 %v16296_v5, %v12089_v6  ;;  %v11447_v60 = vld [vmem:[#allocation7 + $0x108] sm:$0xf]  ;;  %v13121_v47 = vld [vmem:[#allocation7 + $0xe90] sm:$0xf0] }
 0x105   :  { %v13116_v16 = vor.u32 %v16552_v7, %v13113_v8  ;;  %v12601_v57 = vld [vmem:[#allocation7 + $0xa88] sm:$0xf0]  ;;  %v16152_v61 = vld [vmem:[#allocation7 + $0x184] sm:$0xf0]  ;;  %v11839_v1 = vld [vmem:[#allocation7 + $0x410] sm:$0xf] }
 0x106   :  { %v16136_v5 = vld [vmem:[#allocation7 + $0x10c] sm:$0xf]  ;;  %v16249_v2 = vld [vmem:[#allocation7 + $0x48c] sm:$0xf0] }
 0x107   :  { %4643 = vmatpush.bf16.msrb.mxu0 %v11568_v21  ;;  %4656 = vmatpush.bf16.msrb.mxu1 %v12592_v22  ;;  %v11961_v21 = vld [vmem:[#allocation7 + $0x588] sm:$0xf0] }
 0x108   :  { %4669 = vmatpush.bf16.msrb.mxu2 %v11572_v25  ;;  %4682 = vmatpush.bf16.msrb.mxu3 %v12596_v26  ;;  %v16520_v22 = vld [vmem:[#allocation7 + $0xd0c] sm:$0xf]  ;;  %v12984_v25 = vor.u32 %v16536_v18, %v12983_v17  ;;  %v11831_v26 = vld [vmem:[#allocation7 + $0x408] sm:$0xf]  ;;  %v11964_v28 = vor.u32 %v16264_v20, %v11961_v21 }
 0x109   :  { %v12988_v29 = vor.u32 %v16520_v22, %v12985_v23  ;;  %v11832_v36 = vor.u32 %v16248_v27, %v11831_v26  ;;  %v11449_v6 = vld [vmem:[#allocation7 + $0x188] sm:$0xf0]  ;;  %v13247_v26 = vld [vmem:[#allocation7 + $0xf10] sm:$0xf] }
 0x10a   :  { %v16392_v7 = vld [vmem:[#allocation7 + $0x90c] sm:$0xf]  ;;  %v11452_v17 = vor.u32 %v16136_v5, %v11449_v6  ;;  %v16601_v27 = vld [vmem:[#allocation7 + $0xf8c] sm:$0xf0] }
 0x10b   :  { %4644 = vmatpush.bf16.msrb.mxu0 %v11440_v34  ;;  %4657 = vmatpush.bf16.msrb.mxu1 %v12464_v35  ;;  %v16488_v34 = vld [vmem:[#allocation7 + $0xc0c] sm:$0xf] }
 0x10c   :  { %4670 = vmatpush.bf16.msrb.mxu2 %v11444_v40  ;;  %4683 = vmatpush.bf16.msrb.mxu3 %v12468_v41  ;;  %v12857_v35 = vld [vmem:[#allocation7 + $0xc88] sm:$0xf0]  ;;  %v11836_v40 = vor.u32 %v16232_v32, %v11833_v33  ;;  %v16585_v32 = vld [vmem:[#allocation7 + $0xf14] sm:$0xf] }
 0x10d   :  { %v12860_v41 = vor.u32 %v16488_v34, %v12857_v35  ;;  %v12473_v8 = vld [vmem:[#allocation7 + $0x988] sm:$0xf0]  ;;  %v13249_v33 = vld [vmem:[#allocation7 + $0xf90] sm:$0xf0] }
 0x10e   :  { %v12476_v18 = vor.u32 %v16392_v7, %v12473_v8  ;;  %v16104_v20 = vld [vmem:[#allocation7 + $0xc] sm:$0xf]  ;;  %v12863_v7 = vld [vmem:[#allocation7 + $0xc10] sm:$0xf] }
 0x10f   :  { %4645 = vmatpush.bf16.msrb.mxu0 %v11312_v51  ;;  %4658 = vmatpush.bf16.msrb.mxu1 %v12336_v52  ;;  %v16184_v51 = vld [vmem:[#allocation7 + $0x284] sm:$0xf0]  ;;  %v11708_v52 = vor.u32 %v16200_v44, %v11705_v45  ;;  %v11321_v21 = vld [vmem:[#allocation7 + $0x88] sm:$0xf0]  ;;  %v16297_v44 = vld [vmem:[#allocation7 + $0x614] sm:$0xf] }
 0x110   :  { %4671 = vmatpush.bf16.msrb.mxu2 %v11316_v55  ;;  %4684 = vmatpush.bf16.msrb.mxu3 %v12340_v56  ;;  %v11577_v55 = vld [vmem:[#allocation7 + $0x288] sm:$0xf0]  ;;  %v11324_v34 = vor.u32 %v16104_v20, %v11321_v21  ;;  %v12097_v45 = vld [vmem:[#allocation7 + $0x690] sm:$0xf0]  ;;  %v16505_v8 = vld [vmem:[#allocation7 + $0xc8c] sm:$0xf0] }
 0x111   :  { %v16424_v56 = vld [vmem:[#allocation7 + $0xa0c] sm:$0xf] }
 0x112   :  { %4646 = vmatmul.bf16.vlgmr.msrb.gmra.mxu0 %v17631_v9  ;;  %4659 = vmatmul.bf16.vlgmr.msrb.gmra.mxu1 %v17633_v10  ;;  %v16360_v22 = vld [vmem:[#allocation7 + $0x80c] sm:$0xf] }
 0x113   :  { %4690 = vmatpush.bf16.msra.mxu0 %v12216_v58  ;;  %4703 = vmatpush.bf16.msra.mxu1 %v13240_v59  ;;  %v11576_v58 = vor.u32 %v16184_v51, %v11575_v50  ;;  %v12600_v59 = vor.u32 %v16440_v4, %v12599_v3  ;;  %v12345_v23 = vld [vmem:[#allocation7 + $0x888] sm:$0xf0]  ;;  %v11967_v50 = vld [vmem:[#allocation7 + $0x510] sm:$0xf] }
 0x114   :  { %4716 = vmatpush.bf16.msra.mxu2 %v12220_v63  ;;  %4729 = vmatpush.bf16.msra.mxu3 %v13244_v0  ;;  %v11580_v63 = vor.u32 %v16168_v54, %v11577_v55  ;;  %v12604_v0 = vor.u32 %v16424_v56, %v12601_v57  ;;  %v12348_v35 = vor.u32 %v16360_v22, %v12345_v23  ;;  %v16281_v51 = vld [vmem:[#allocation7 + $0x58c] sm:$0xf0]  ;;  %v16265_v54 = vld [vmem:[#allocation7 + $0x514] sm:$0xf]  ;;  %v17639_v55 = vpop.f32.mrf.mxu2  ;;  %v17641_v56 = vpop.f32.mrf.mxu3 }
 0x115   :  { %4672 = vmatmul.bf16.vlgmr.msrb.gmra.mxu2 %v17631_v9  ;;  %4685 = vmatmul.bf16.vlgmr.msrb.gmra.mxu3 %v17633_v10  ;;  %v12991_v3 = vld [vmem:[#allocation7 + $0xd10] sm:$0xf]  ;;  %v11969_v57 = vld [vmem:[#allocation7 + $0x590] sm:$0xf0] }
 0x116   :  { %v16537_v4 = vld [vmem:[#allocation7 + $0xd8c] sm:$0xf0]  ;;  %v11972_v5 = vor.u32 %v16265_v54, %v11969_v57  ;;  %v16393_v54 = vld [vmem:[#allocation7 + $0x914] sm:$0xf] }
 0x117   :  { %4691 = vmatpush.bf16.msra.mxu0 %v12088_v11  ;;  %4704 = vmatpush.bf16.msra.mxu1 %v13112_v12  ;;  %v11319_v11 = vld [vmem:[#allocation7 + $0x8] sm:$0xf]  ;;  %v11448_v12 = vor.u32 %v16152_v61, %v11447_v60  ;;  %v12735_v22 = vld [vmem:[#allocation7 + $0xb10] sm:$0xf]  ;;  %v12481_v57 = vld [vmem:[#allocation7 + $0x990] sm:$0xf0] }
 0x118   :  { %4717 = vmatpush.bf16.msra.mxu2 %v12092_v15  ;;  %4730 = vmatpush.bf16.msra.mxu3 %v13116_v16  ;;  %v12343_v15 = vld [vmem:[#allocation7 + $0x808] sm:$0xf]  ;;  %v16473_v23 = vld [vmem:[#allocation7 + $0xb8c] sm:$0xf0] }
 0x119   :  { %v16376_v16 = vld [vmem:[#allocation7 + $0x884] sm:$0xf0] }
 0x11a   :  { %v12344_v30 = vor.u32 %v16376_v16, %v12343_v15  ;;  %v11840_v15 = vor.u32 %v16249_v2, %v11839_v1  ;;  %v12864_v16 = vor.u32 %v16505_v8, %v12863_v7  ;;  %v16121_v2 = vld [vmem:[#allocation7 + $0x8c] sm:$0xf0]  ;;  %v12484_v8 = vor.u32 %v16393_v54, %v12481_v57  ;;  %v16522_v54 = vld [vmem:[#allocation7 + $0xd1c] sm:$0xf] }
 0x11b   :  { %4692 = vmatpush.bf16.msra.mxu0 %v11960_v24  ;;  %4705 = vmatpush.bf16.msra.mxu1 %v12984_v25  ;;  %v12223_v24 = vld [vmem:[#allocation7 + $0x710] sm:$0xf]  ;;  %v13001_v57 = vld [vmem:[#allocation7 + $0xd98] sm:$0xf0] }
 0x11c   :  { %4718 = vmatpush.bf16.msra.mxu2 %v11964_v28  ;;  %4731 = vmatpush.bf16.msra.mxu3 %v12988_v29  ;;  %v16345_v25 = vld [vmem:[#allocation7 + $0x78c] sm:$0xf0]  ;;  %v16329_v28 = vld [vmem:[#allocation7 + $0x714] sm:$0xf]  ;;  %v11320_v29 = vor.u32 %v16120_v14, %v11319_v11 }
 0x11d   :  { %v16233_v11 = vld [vmem:[#allocation7 + $0x414] sm:$0xf] }
 0x11e   :  { %v12865_v14 = vld [vmem:[#allocation7 + $0xc90] sm:$0xf0] }
 0x11f   :  { %4693 = vmatpush.bf16.msra.mxu0 %v11832_v36  ;;  %4706 = vmatpush.bf16.msra.mxu1 %v12856_v37  ;;  %v12224_v36 = vor.u32 %v16345_v25, %v12223_v24  ;;  %v13248_v37 = vor.u32 %v16601_v27, %v13247_v26  ;;  %v16201_v24 = vld [vmem:[#allocation7 + $0x314] sm:$0xf] }
 0x120   :  { %4719 = vmatpush.bf16.msra.mxu2 %v11836_v40  ;;  %4732 = vmatpush.bf16.msra.mxu3 %v12860_v41  ;;  %v12228_v40 = vor.u32 %v16329_v28, %v12225_v31  ;;  %v13252_v41 = vor.u32 %v16585_v32, %v13249_v33  ;;  %v11713_v27 = vld [vmem:[#allocation7 + $0x390] sm:$0xf0]  ;;  %v12736_v33 = vor.u32 %v16473_v23, %v12735_v22  ;;  %v12233_v23 = vld [vmem:[#allocation7 + $0x798] sm:$0xf0] }
 0x121   :  { %v16457_v28 = vld [vmem:[#allocation7 + $0xb14] sm:$0xf] }
 0x123   :  { %4694 = vmatpush.bf16.msra.mxu0 %v11704_v48  ;;  %4707 = vmatpush.bf16.msra.mxu1 %v12728_v49  ;;  %v12096_v48 = vor.u32 %v16313_v39, %v12095_v38  ;;  %v13120_v49 = vor.u32 %v16569_v43, %v13119_v42  ;;  %v12607_v38 = vld [vmem:[#allocation7 + $0xa10] sm:$0xf]  ;;  %v16425_v42 = vld [vmem:[#allocation7 + $0xa14] sm:$0xf] }
 0x124   :  { %4720 = vmatpush.bf16.msra.mxu2 %v11708_v52  ;;  %4733 = vmatpush.bf16.msra.mxu3 %v12732_v53  ;;  %v12100_v52 = vor.u32 %v16297_v44, %v12097_v45  ;;  %v13124_v53 = vor.u32 %v16553_v46, %v13121_v47  ;;  %v16441_v39 = vld [vmem:[#allocation7 + $0xa8c] sm:$0xf0]  ;;  %v12609_v43 = vld [vmem:[#allocation7 + $0xa90] sm:$0xf0] }
 0x125   :  { %v12608_v45 = vor.u32 %v16441_v39, %v12607_v38  ;;  %v11455_v46 = vld [vmem:[#allocation7 + $0x110] sm:$0xf] }
 0x126   :  { %v16153_v47 = vld [vmem:[#allocation7 + $0x18c] sm:$0xf0] }
 0x127   :  { %4695 = vmatpush.bf16.msra.mxu0 %v11576_v58  ;;  %4708 = vmatpush.bf16.msra.mxu1 %v12600_v59  ;;  %v16521_v58 = vld [vmem:[#allocation7 + $0xd14] sm:$0xf] }
 0x128   :  { %4721 = vmatpush.bf16.msra.mxu2 %v11580_v63  ;;  %4734 = vmatpush.bf16.msra.mxu3 %v12604_v0  ;;  %v12993_v59 = vld [vmem:[#allocation7 + $0xd90] sm:$0xf0]  ;;  %v11968_v63 = vor.u32 %v16281_v51, %v11967_v50  ;;  %v12992_v0 = vor.u32 %v16537_v4, %v12991_v3  ;;  %v12479_v50 = vld [vmem:[#allocation7 + $0x910] sm:$0xf] }
 0x129   :  { %v12996_v6 = vor.u32 %v16521_v58, %v12993_v59  ;;  %v16409_v51 = vld [vmem:[#allocation7 + $0x98c] sm:$0xf0]  ;;  %v11457_v4 = vld [vmem:[#allocation7 + $0x190] sm:$0xf0] }
 0x12a   :  { %v12480_v1 = vor.u32 %v16409_v51, %v12479_v50 }
 0x12b   :  { %4696 = vmatpush.bf16.msra.mxu0 %v11448_v12  ;;  %4709 = vmatpush.bf16.msra.mxu1 %v12472_v13  ;;  %v11841_v12 = vld [vmem:[#allocation7 + $0x490] sm:$0xf0] }
 0x12c   :  { %4722 = vmatpush.bf16.msra.mxu2 %v11452_v17  ;;  %4735 = vmatpush.bf16.msra.mxu3 %v12476_v18  ;;  %v16489_v13 = vld [vmem:[#allocation7 + $0xc14] sm:$0xf]  ;;  %v11711_v17 = vld [vmem:[#allocation7 + $0x310] sm:$0xf]  ;;  %v11844_v20 = vor.u32 %v16233_v11, %v11841_v12 }
 0x12d   :  { %v16217_v18 = vld [vmem:[#allocation7 + $0x38c] sm:$0xf0]  ;;  %v12868_v21 = vor.u32 %v16489_v13, %v12865_v14  ;;  %v16105_v11 = vld [vmem:[#allocation7 + $0x14] sm:$0xf] }
 0x12e   :  { %v17647_v60 = vpop.f32.mrf.mxu0  ;;  %v17649_v61 = vpop.f32.mrf.mxu1  ;;  %v11712_v32 = vor.u32 %v16217_v18, %v11711_v17  ;;  %v11329_v12 = vld [vmem:[#allocation7 + $0x90] sm:$0xf0]  ;;  %v13255_v17 = vld [vmem:[#allocation7 + $0xf18] sm:$0xf] }
 0x12f   :  { %4697 = vmatpush.bf16.msra.mxu0 %v11320_v29  ;;  %4710 = vmatpush.bf16.msra.mxu1 %v12344_v30  ;;  %v12737_v29 = vld [vmem:[#allocation7 + $0xb90] sm:$0xf0]  ;;  %v16602_v18 = vld [vmem:[#allocation7 + $0xf94] sm:$0xf0] }
 0x130   :  { %4723 = vmatpush.bf16.msra.mxu2 %v11324_v34  ;;  %4736 = vmatpush.bf16.msra.mxu3 %v12348_v35  ;;  %v11583_v34 = vld [vmem:[#allocation7 + $0x210] sm:$0xf]  ;;  %v16361_v13 = vld [vmem:[#allocation7 + $0x814] sm:$0xf] }
 0x131   :  { %v16185_v35 = vld [vmem:[#allocation7 + $0x28c] sm:$0xf0]  ;;  %v12353_v14 = vld [vmem:[#allocation7 + $0x890] sm:$0xf0] }
 0x132   :  { %4698 = vmatmul.bf16.vlgmr.msra.gmra.mxu0 %v17631_v9  ;;  %4711 = vmatmul.bf16.vlgmr.msra.gmra.mxu1 %v17633_v10  ;;  %v11584_v44 = vor.u32 %v16185_v35, %v11583_v34  ;;  %v12103_v34 = vld [vmem:[#allocation7 + $0x618] sm:$0xf] }
 0x133   :  { %4742 = vmatpush.bf16.msrb.mxu0 %v12224_v36  ;;  %4755 = vmatpush.bf16.msrb.mxu1 %v13248_v37  ;;  %v11716_v36 = vor.u32 %v16201_v24, %v11713_v27  ;;  %v12740_v37 = vor.u32 %v16457_v28, %v12737_v29  ;;  %v16586_v24 = vld [vmem:[#allocation7 + $0xf1c] sm:$0xf]  ;;  %v11332_v28 = vor.u32 %v16105_v11, %v11329_v12  ;;  %v16314_v35 = vld [vmem:[#allocation7 + $0x694] sm:$0xf0] }
 0x134   :  { %4768 = vmatpush.bf16.msrb.mxu2 %v12228_v40  ;;  %4781 = vmatpush.bf16.msrb.mxu3 %v13252_v41  ;;  %v16169_v40 = vld [vmem:[#allocation7 + $0x214] sm:$0xf]  ;;  %v13257_v27 = vld [vmem:[#allocation7 + $0xf98] sm:$0xf0]  ;;  %v12356_v29 = vor.u32 %v16361_v13, %v12353_v14  ;;  %v12871_v11 = vld [vmem:[#allocation7 + $0xc18] sm:$0xf] }
 0x135   :  { %4724 = vmatmul.bf16.vlgmr.msra.gmra.mxu2 %v17631_v9  ;;  %4737 = vmatmul.bf16.vlgmr.msra.gmra.mxu3 %v17633_v10  ;;  %v17651_v25 = vpop.f32.mrf.mxu2  ;;  %v17653_v26 = vpop.f32.mrf.mxu3  ;;  %v11585_v41 = vld [vmem:[#allocation7 + $0x290] sm:$0xf0]  ;;  %v16506_v12 = vld [vmem:[#allocation7 + $0xc94] sm:$0xf0]  ;;  %v16234_v13 = vld [vmem:[#allocation7 + $0x41c] sm:$0xf] }
 0x136   :  { %v1054_v30 = vpop.f32.mrf.mxu0  ;;  %v1067_v31 = vpop.f32.mrf.mxu1  ;;  %v11849_v14 = vld [vmem:[#allocation7 + $0x498] sm:$0xf0] }
 0x137   :  { %4743 = vmatpush.bf16.msrb.mxu0 %v12096_v48  ;;  %4756 = vmatpush.bf16.msrb.mxu1 %v13120_v49  ;;  %v11588_v48 = vor.u32 %v16169_v40, %v11585_v41  ;;  %v12612_v49 = vor.u32 %v16425_v42, %v12609_v43  ;;  %v13256_v31 = vor.u32 %v16602_v18, %v13255_v17  ;;  %v13127_v40 = vld [vmem:[#allocation7 + $0xe18] sm:$0xf]  ;;  %v16298_v42 = vld [vmem:[#allocation7 + $0x61c] sm:$0xf] }
 0x138   :  { %4769 = vmatpush.bf16.msrb.mxu2 %v12100_v52  ;;  %4782 = vmatpush.bf16.msrb.mxu3 %v13124_v53  ;;  %v16137_v52 = vld [vmem:[#allocation7 + $0x114] sm:$0xf]  ;;  %v16570_v41 = vld [vmem:[#allocation7 + $0xe94] sm:$0xf0]  ;;  %v12105_v43 = vld [vmem:[#allocation7 + $0x698] sm:$0xf0] }
 0x139   :  { %v11460_v7 = vor.u32 %v16137_v52, %v11457_v4  ;;  %v12108_v50 = vor.u32 %v16298_v42, %v12105_v43  ;;  %v12999_v52 = vld [vmem:[#allocation7 + $0xd18] sm:$0xf]  ;;  %v11977_v4 = vld [vmem:[#allocation7 + $0x598] sm:$0xf0] }
 0x13a   :  { %v12615_v42 = vld [vmem:[#allocation7 + $0xa18] sm:$0xf] }
 0x13b   :  { %4744 = vmatpush.bf16.msrb.mxu0 %v11968_v63  ;;  %4757 = vmatpush.bf16.msrb.mxu1 %v12992_v0  ;;  %v11327_v63 = vld [vmem:[#allocation7 + $0x10] sm:$0xf]  ;;  %v11456_v0 = vor.u32 %v16153_v47, %v11455_v46  ;;  %v12104_v46 = vor.u32 %v16314_v35, %v12103_v34  ;;  %v13128_v47 = vor.u32 %v16570_v41, %v13127_v40  ;;  %v16458_v34 = vld [vmem:[#allocation7 + $0xb1c] sm:$0xf]  ;;  %v16442_v43 = vld [vmem:[#allocation7 + $0xa94] sm:$0xf0] }
 0x13c   :  { %4770 = vmatpush.bf16.msrb.mxu2 %v11972_v5  ;;  %4783 = vmatpush.bf16.msrb.mxu3 %v12996_v6  ;;  %v12351_v5 = vld [vmem:[#allocation7 + $0x810] sm:$0xf]  ;;  %v12745_v35 = vld [vmem:[#allocation7 + $0xb98] sm:$0xf0] }
 0x13d   :  { %v1080_v53 = vpop.f32.mrf.mxu2  ;;  %v1093_v3 = vpop.f32.mrf.mxu3  ;;  %v16377_v6 = vld [vmem:[#allocation7 + $0x88c] sm:$0xf0]  ;;  %v12748_v41 = vor.u32 %v16458_v34, %v12745_v35  ;;  %v16331_v34 = vld [vmem:[#allocation7 + $0x724] sm:$0xf] }
 0x13e   :  { %v17655_v58 = vpop.f32.mrf.mxu0  ;;  %v17657_v59 = vpop.f32.mrf.mxu1  ;;  %v12352_v22 = vor.u32 %v16377_v6, %v12351_v5  ;;  %v16538_v53 = vld [vmem:[#allocation7 + $0xd94] sm:$0xf0]  ;;  %v16266_v3 = vld [vmem:[#allocation7 + $0x51c] sm:$0xf] }
 0x13f   :  { %4745 = vmatpush.bf16.msrb.mxu0 %v11840_v15  ;;  %4758 = vmatpush.bf16.msrb.mxu1 %v12864_v16  ;;  %v12231_v15 = vld [vmem:[#allocation7 + $0x718] sm:$0xf] }
 0x140   :  { %4771 = vmatpush.bf16.msrb.mxu2 %v11844_v20  ;;  %4784 = vmatpush.bf16.msrb.mxu3 %v12868_v21  ;;  %v16346_v16 = vld [vmem:[#allocation7 + $0x794] sm:$0xf0]  ;;  %v16330_v20 = vld [vmem:[#allocation7 + $0x71c] sm:$0xf]  ;;  %v11328_v21 = vor.u32 %v16121_v2, %v11327_v63 }
 0x141   :  { %v12232_v30 = vor.u32 %v16346_v16, %v12231_v15  ;;  %v11847_v5 = vld [vmem:[#allocation7 + $0x418] sm:$0xf]  ;;  %v16490_v15 = vld [vmem:[#allocation7 + $0xc1c] sm:$0xf] }
 0x142   :  { %v16250_v6 = vld [vmem:[#allocation7 + $0x494] sm:$0xf0]  ;;  %v12873_v16 = vld [vmem:[#allocation7 + $0xc98] sm:$0xf0] }
 0x143   :  { %4746 = vmatpush.bf16.msrb.mxu0 %v11712_v32  ;;  %4759 = vmatpush.bf16.msrb.mxu1 %v12736_v33 }
 0x144   :  { %4772 = vmatpush.bf16.msrb.mxu2 %v11716_v36  ;;  %4785 = vmatpush.bf16.msrb.mxu3 %v12740_v37  ;;  %v12236_v36 = vor.u32 %v16330_v20, %v12233_v23  ;;  %v13260_v37 = vor.u32 %v16586_v24, %v13257_v27  ;;  %v11848_v20 = vor.u32 %v16250_v6, %v11847_v5  ;;  %v16218_v23 = vld [vmem:[#allocation7 + $0x394] sm:$0xf0]  ;;  %v16394_v5 = vld [vmem:[#allocation7 + $0x91c] sm:$0xf] }
 0x145   :  { %v17659_v32 = vpop.f32.mrf.mxu2  ;;  %v17661_v33 = vpop.f32.mrf.mxu3  ;;  %v11852_v24 = vor.u32 %v16234_v13, %v11849_v14  ;;  %v12876_v27 = vor.u32 %v16490_v15, %v12873_v16  ;;  %v12489_v6 = vld [vmem:[#allocation7 + $0x998] sm:$0xf0]  ;;  %v12359_v13 = vld [vmem:[#allocation7 + $0x818] sm:$0xf] }
 0x146   :  { %v1106_v38 = vpop.f32.mrf.mxu0  ;;  %v1119_v39 = vpop.f32.mrf.mxu1  ;;  %v16378_v14 = vld [vmem:[#allocation7 + $0x894] sm:$0xf0]  ;;  %v12492_v16 = vor.u32 %v16394_v5, %v12489_v6 }
 0x147   :  { %4747 = vmatpush.bf16.msrb.mxu0 %v11584_v44  ;;  %4760 = vmatpush.bf16.msrb.mxu1 %v12608_v45  ;;  %v16554_v44 = vld [vmem:[#allocation7 + $0xe1c] sm:$0xf]  ;;  %v11591_v38 = vld [vmem:[#allocation7 + $0x218] sm:$0xf] }
 0x148   :  { %4773 = vmatpush.bf16.msrb.mxu2 %v11588_v48  ;;  %4786 = vmatpush.bf16.msrb.mxu3 %v12612_v49  ;;  %v13129_v45 = vld [vmem:[#allocation7 + $0xe98] sm:$0xf0]  ;;  %v11975_v48 = vld [vmem:[#allocation7 + $0x518] sm:$0xf] }
 0x149   :  { %v16282_v49 = vld [vmem:[#allocation7 + $0x594] sm:$0xf0]  ;;  %v13132_v51 = vor.u32 %v16554_v44, %v13129_v45  ;;  %v16170_v44 = vld [vmem:[#allocation7 + $0x21c] sm:$0xf] }
 0x14a   :  { %v11976_v63 = vor.u32 %v16282_v49, %v11975_v48  ;;  %v16186_v39 = vld [vmem:[#allocation7 + $0x294] sm:$0xf0]  ;;  %v16426_v48 = vld [vmem:[#allocation7 + $0xa1c] sm:$0xf] }
 0x14b   :  { %4748 = vmatpush.bf16.msrb.mxu0 %v11456_v0  ;;  %4761 = vmatpush.bf16.msrb.mxu1 %v12480_v1  ;;  %v13000_v0 = vor.u32 %v16538_v53, %v12999_v52  ;;  %v12617_v49 = vld [vmem:[#allocation7 + $0xa98] sm:$0xf0]  ;;  %v11592_v52 = vor.u32 %v16186_v39, %v11591_v38  ;;  %v12616_v53 = vor.u32 %v16442_v43, %v12615_v42  ;;  %v16587_v38 = vld [vmem:[#allocation7 + $0xf24] sm:$0xf] }
 0x14c   :  { %4774 = vmatpush.bf16.msrb.mxu2 %v11460_v7  ;;  %4787 = vmatpush.bf16.msrb.mxu3 %v12484_v8  ;;  %v11980_v7 = vor.u32 %v16266_v3, %v11977_v4  ;;  %v13004_v8 = vor.u32 %v16522_v54, %v13001_v57  ;;  %v11463_v3 = vld [vmem:[#allocation7 + $0x118] sm:$0xf]  ;;  %v12620_v57 = vor.u32 %v16426_v48, %v12617_v49  ;;  %v13265_v39 = vld [vmem:[#allocation7 + $0xfa0] sm:$0xf0] }
 0x14d   :  { %v1132_v1 = vpop.f32.mrf.mxu2  ;;  %v1145_v2 = vpop.f32.mrf.mxu3  ;;  %v16154_v4 = vld [vmem:[#allocation7 + $0x194] sm:$0xf0]  ;;  %v13268_v49 = vor.u32 %v16587_v38, %v13265_v39 }
 0x14e   :  { %v16138_v1 = vld [vmem:[#allocation7 + $0x11c] sm:$0xf] }
 0x14f   :  { %4749 = vmatpush.bf16.msrb.mxu0 %v11328_v21  ;;  %4762 = vmatpush.bf16.msrb.mxu1 %v12352_v22  ;;  %v17667_v17 = vpop.f32.mrf.mxu0  ;;  %v17669_v18 = vpop.f32.mrf.mxu1  ;;  %v12872_v21 = vor.u32 %v16506_v12, %v12871_v11  ;;  %v11719_v22 = vld [vmem:[#allocation7 + $0x318] sm:$0xf]  ;;  %v11465_v2 = vld [vmem:[#allocation7 + $0x198] sm:$0xf0] }
 0x150   :  { %4775 = vmatpush.bf16.msrb.mxu2 %v11332_v28  ;;  %4788 = vmatpush.bf16.msrb.mxu3 %v12356_v29  ;;  %v12743_v28 = vld [vmem:[#allocation7 + $0xb18] sm:$0xf]  ;;  %v11468_v15 = vor.u32 %v16138_v1, %v11465_v2  ;;  %v16283_v1 = vld [vmem:[#allocation7 + $0x59c] sm:$0xf0]  ;;  %v17681_v2 = vadd.f32 %v17649_v61, %v17647_v60  ;;  %v17695_v61 = vadd.f32 %v17661_v33, %v17659_v32 }
 0x151   :  { %v16474_v29 = vld [vmem:[#allocation7 + $0xb94] sm:$0xf0]  ;;  %v17700_v32 = vadd.f32 %v17669_v18, %v17667_v17  ;;  %v12751_v17 = vld [vmem:[#allocation7 + $0xb20] sm:$0xf] }
 0x152   :  { %4750 = vmatmul.bf16.vlgmr.msrb.gmra.mxu0 %v17631_v9  ;;  %4763 = vmatmul.bf16.vlgmr.msrb.gmra.mxu1 %v17633_v10  ;;  %v16122_v12 = vld [vmem:[#allocation7 + $0x94] sm:$0xf0]  ;;  %v16475_v18 = vld [vmem:[#allocation7 + $0xb9c] sm:$0xf0] }
 0x153   :  { %4794 = vmatpush.bf16.msra.mxu0 %v12232_v30  ;;  %4807 = vmatpush.bf16.msra.mxu1 %v13256_v31  ;;  %v16202_v30 = vld [vmem:[#allocation7 + $0x31c] sm:$0xf] }
 0x154   :  { %4820 = vmatpush.bf16.msra.mxu2 %v12236_v36  ;;  %4833 = vmatpush.bf16.msra.mxu3 %v13260_v37  ;;  %v11721_v31 = vld [vmem:[#allocation7 + $0x398] sm:$0xf0]  ;;  %v11720_v36 = vor.u32 %v16218_v23, %v11719_v22  ;;  %v12744_v37 = vor.u32 %v16474_v29, %v12743_v28  ;;  %v12239_v28 = vld [vmem:[#allocation7 + $0x720] sm:$0xf] }
 0x155   :  { %4776 = vmatmul.bf16.vlgmr.msrb.gmra.mxu2 %v17631_v9  ;;  %4789 = vmatmul.bf16.vlgmr.msrb.gmra.mxu3 %v17633_v10  ;;  %v11724_v40 = vor.u32 %v16202_v30, %v11721_v31  ;;  %v16362_v22 = vld [vmem:[#allocation7 + $0x81c] sm:$0xf]  ;;  %v16347_v29 = vld [vmem:[#allocation7 + $0x79c] sm:$0xf0] }
 0x156   :  { %v13263_v30 = vld [vmem:[#allocation7 + $0xf20] sm:$0xf]  ;;  %v12240_v42 = vor.u32 %v16347_v29, %v12239_v28  ;;  %v16491_v28 = vld [vmem:[#allocation7 + $0xc24] sm:$0xf] }
 0x157   :  { %4795 = vmatpush.bf16.msra.mxu0 %v12104_v46  ;;  %4808 = vmatpush.bf16.msra.mxu1 %v13128_v47  ;;  %v11593_v47 = vld [vmem:[#allocation7 + $0x298] sm:$0xf0]  ;;  %v16603_v31 = vld [vmem:[#allocation7 + $0xf9c] sm:$0xf0]  ;;  %v12881_v29 = vld [vmem:[#allocation7 + $0xca0] sm:$0xf0] }
 0x158   :  { %4821 = vmatpush.bf16.msra.mxu2 %v12108_v50  ;;  %4834 = vmatpush.bf16.msra.mxu3 %v13132_v51  ;;  %v17671_v45 = vpop.f32.mrf.mxu2  ;;  %v17673_v46 = vpop.f32.mrf.mxu3  ;;  %v11596_v54 = vor.u32 %v16170_v44, %v11593_v47  ;;  %v13264_v43 = vor.u32 %v16603_v31, %v13263_v30  ;;  %v12111_v44 = vld [vmem:[#allocation7 + $0x620] sm:$0xf] }
 0x159   :  { %v1158_v50 = vpop.f32.mrf.mxu0  ;;  %v1171_v51 = vpop.f32.mrf.mxu1  ;;  %v16315_v47 = vld [vmem:[#allocation7 + $0x69c] sm:$0xf0]  ;;  %v17705_v38 = vadd.f32 %v17673_v46, %v17671_v45 }
 0x15a   :  { %v13135_v50 = vld [vmem:[#allocation7 + $0xe20] sm:$0xf] }
 0x15b   :  { %4796 = vmatpush.bf16.msra.mxu0 %v11976_v63  ;;  %4809 = vmatpush.bf16.msra.mxu1 %v13000_v0  ;;  %v12487_v63 = vld [vmem:[#allocation7 + $0x918] sm:$0xf]  ;;  %v16571_v51 = vld [vmem:[#allocation7 + $0xe9c] sm:$0xf0] }
 0x15c   :  { %4822 = vmatpush.bf16.msra.mxu2 %v11980_v7  ;;  %4835 = vmatpush.bf16.msra.mxu3 %v13004_v8  ;;  %v16410_v0 = vld [vmem:[#allocation7 + $0x994] sm:$0xf0]  ;;  %v11464_v8 = vor.u32 %v16154_v4, %v11463_v3  ;;  %v16555_v3 = vld [vmem:[#allocation7 + $0xe24] sm:$0xf]  ;;  %v11599_v45 = vld [vmem:[#allocation7 + $0x220] sm:$0xf] }
 0x15d   :  { %v11335_v7 = vld [vmem:[#allocation7 + $0x18] sm:$0xf]  ;;  %v12488_v11 = vor.u32 %v16410_v0, %v12487_v63  ;;  %v13137_v4 = vld [vmem:[#allocation7 + $0xea0] sm:$0xf0]  ;;  %v13136_v63 = vor.u32 %v16571_v51, %v13135_v50  ;;  %v11983_v0 = vld [vmem:[#allocation7 + $0x520] sm:$0xf]  ;;  %v12752_v50 = vor.u32 %v16475_v18, %v12751_v17 }
 0x15e   :  { %v11336_v35 = vor.u32 %v16122_v12, %v11335_v7  ;;  %v13140_v6 = vor.u32 %v16555_v3, %v13137_v4  ;;  %v13007_v7 = vld [vmem:[#allocation7 + $0xd20] sm:$0xf]  ;;  %v16523_v12 = vld [vmem:[#allocation7 + $0xd24] sm:$0xf] }
 0x15f   :  { %4797 = vmatpush.bf16.msra.mxu0 %v11848_v20  ;;  %4810 = vmatpush.bf16.msra.mxu1 %v12872_v21  ;;  %v16106_v20 = vld [vmem:[#allocation7 + $0x1c] sm:$0xf]  ;;  %v16187_v46 = vld [vmem:[#allocation7 + $0x29c] sm:$0xf0]  ;;  %v16171_v4 = vld [vmem:[#allocation7 + $0x224] sm:$0xf] }
 0x160   :  { %4823 = vmatpush.bf16.msra.mxu2 %v11852_v24  ;;  %4836 = vmatpush.bf16.msra.mxu3 %v12876_v27  ;;  %v11337_v21 = vld [vmem:[#allocation7 + $0x98] sm:$0xf0]  ;;  %v1184_v23 = vpop.f32.mrf.mxu2  ;;  %v1197_v24 = vpop.f32.mrf.mxu3  ;;  %v16443_v3 = vld [vmem:[#allocation7 + $0xa9c] sm:$0xf0]  ;;  %v12369_v18 = vld [vmem:[#allocation7 + $0x8a0] sm:$0xf0] }
 0x161   :  { %v12361_v27 = vld [vmem:[#allocation7 + $0x898] sm:$0xf0]  ;;  %v16235_v23 = vld [vmem:[#allocation7 + $0x424] sm:$0xf] }
 0x163   :  { %4798 = vmatpush.bf16.msra.mxu0 %v11720_v36  ;;  %4811 = vmatpush.bf16.msra.mxu1 %v12744_v37  ;;  %v12360_v36 = vor.u32 %v16378_v14, %v12359_v13  ;;  %v12241_v37 = vld [vmem:[#allocation7 + $0x7a0] sm:$0xf0]  ;;  %v11855_v14 = vld [vmem:[#allocation7 + $0x420] sm:$0xf] }
 0x164   :  { %4824 = vmatpush.bf16.msra.mxu2 %v11724_v40  ;;  %4837 = vmatpush.bf16.msra.mxu3 %v12748_v41  ;;  %v11340_v40 = vor.u32 %v16106_v20, %v11337_v21  ;;  %v12364_v41 = vor.u32 %v16362_v22, %v12361_v27  ;;  %v12244_v48 = vor.u32 %v16331_v34, %v12241_v37  ;;  %v13009_v13 = vld [vmem:[#allocation7 + $0xda0] sm:$0xf0]  ;;  %v12879_v21 = vld [vmem:[#allocation7 + $0xc20] sm:$0xf] }
 0x165   :  { %v13012_v20 = vor.u32 %v16523_v12, %v13009_v13  ;;  %v16507_v22 = vld [vmem:[#allocation7 + $0xc9c] sm:$0xf0]  ;;  %v11857_v27 = vld [vmem:[#allocation7 + $0x4a0] sm:$0xf0]  ;;  %v11600_v12 = vor.u32 %v16187_v46, %v11599_v45  ;;  %v12249_v45 = vld [vmem:[#allocation7 + $0x7a8] sm:$0xf0] }
 0x166   :  { %v16219_v37 = vld [vmem:[#allocation7 + $0x39c] sm:$0xf0]  ;;  %v11860_v39 = vor.u32 %v16235_v23, %v11857_v27  ;;  %v16395_v23 = vld [vmem:[#allocation7 + $0x924] sm:$0xf]  ;;  %v16588_v46 = vld [vmem:[#allocation7 + $0xf2c] sm:$0xf] }
 0x167   :  { %4799 = vmatpush.bf16.msra.mxu0 %v11592_v52  ;;  %4812 = vmatpush.bf16.msra.mxu1 %v12616_v53  ;;  %v16299_v52 = vld [vmem:[#allocation7 + $0x624] sm:$0xf]  ;;  %v11343_v27 = vld [vmem:[#allocation7 + $0x20] sm:$0xf] }
 0x168   :  { %4825 = vmatpush.bf16.msra.mxu2 %v11596_v54  ;;  %4838 = vmatpush.bf16.msra.mxu3 %v12620_v57  ;;  %v12113_v53 = vld [vmem:[#allocation7 + $0x6a0] sm:$0xf0]  ;;  %v17677_v54 = vadd.f32 %v17653_v26, %v17651_v25  ;;  %v12112_v57 = vor.u32 %v16315_v47, %v12111_v44  ;;  %v17685_v26 = vadd.f32 %v17657_v59, %v17655_v58 }
 0x169   :  { %v12116_v5 = vor.u32 %v16299_v52, %v12113_v53  ;;  %v16267_v25 = vld [vmem:[#allocation7 + $0x524] sm:$0xf]  ;;  %v11984_v58 = vor.u32 %v16283_v1, %v11983_v0  ;;  %v12623_v53 = vld [vmem:[#allocation7 + $0xa20] sm:$0xf] }
 0x16a   :  { %v1251_v60 = vadd.f32 %v17677_v54, %v17681_v2  ;;  %v12753_v44 = vld [vmem:[#allocation7 + $0xba0] sm:$0xf0]  ;;  %v12624_v13 = vor.u32 %v16443_v3, %v12623_v53 }
 0x16b   :  { %4800 = vmatpush.bf16.msra.mxu0 %v11464_v8  ;;  %4813 = vmatpush.bf16.msra.mxu1 %v12488_v11  ;;  %v16539_v8 = vld [vmem:[#allocation7 + $0xd9c] sm:$0xf0]  ;;  %v11985_v11 = vld [vmem:[#allocation7 + $0x5a0] sm:$0xf0] }
 0x16c   :  { %4826 = vmatpush.bf16.msra.mxu2 %v11468_v15  ;;  %4839 = vmatpush.bf16.msra.mxu3 %v12492_v16  ;;  %v13008_v59 = vor.u32 %v16539_v8, %v13007_v7  ;;  %v16251_v15 = vld [vmem:[#allocation7 + $0x49c] sm:$0xf0]  ;;  %v11988_v16 = vor.u32 %v16267_v25, %v11985_v11  ;;  %v1252_v24 = vadd.f32 %v1251_v60, %v17685_v26  ;;  %v11601_v1 = vld [vmem:[#allocation7 + $0x2a0] sm:$0xf0] }
 0x16d   :  { %v11856_v34 = vor.u32 %v16251_v15, %v11855_v14  ;;  %v11471_v60 = vld [vmem:[#allocation7 + $0x120] sm:$0xf] }
 0x16e   :  { %v1253_v31 = vadd.f32 %v1252_v24, %v17695_v61  ;;  %v12497_v24 = vld [vmem:[#allocation7 + $0x9a0] sm:$0xf0] }
 0x16f   :  { %4801 = vmatpush.bf16.msra.mxu0 %v11336_v35  ;;  %4814 = vmatpush.bf16.msra.mxu1 %v12360_v36  ;;  %v1208_v33 = vpop.f32.mrf.mxu0  ;;  %v1221_v30 = vpop.f32.mrf.mxu1  ;;  %v12880_v35 = vor.u32 %v16507_v22, %v12879_v21  ;;  %v11727_v36 = vld [vmem:[#allocation7 + $0x320] sm:$0xf]  ;;  %v16139_v21 = vld [vmem:[#allocation7 + $0x124] sm:$0xf] }
 0x170   :  { %4827 = vmatpush.bf16.msra.mxu2 %v11340_v40  ;;  %4840 = vmatpush.bf16.msra.mxu3 %v12364_v41  ;;  %v12884_v40 = vor.u32 %v16491_v28, %v12881_v29  ;;  %v16203_v41 = vld [vmem:[#allocation7 + $0x324] sm:$0xf]  ;;  %v1254_v47 = vadd.f32 %v1253_v31, %v17700_v32  ;;  %v16379_v31 = vld [vmem:[#allocation7 + $0x89c] sm:$0xf0] }
 0x171   :  { %v11473_v22 = vld [vmem:[#allocation7 + $0x1a0] sm:$0xf0] }
 0x172   :  { %4802 = vmatmul.bf16.vlgmr.msra.gmra.mxu0 %v17631_v9  ;;  %4815 = vmatmul.bf16.vlgmr.msra.gmra.mxu1 %v17633_v10 }
 0x173   :  { %4846 = vmatpush.bf16.msrb.mxu0 %v12240_v42  ;;  %4859 = vmatpush.bf16.msrb.mxu1 %v13264_v43  ;;  %v11729_v42 = vld [vmem:[#allocation7 + $0x3a0] sm:$0xf0] }
 0x174   :  { %4872 = vmatpush.bf16.msrb.mxu2 %v12244_v48  ;;  %4885 = vmatpush.bf16.msrb.mxu3 %v13268_v49  ;;  %v16459_v43 = vld [vmem:[#allocation7 + $0xb24] sm:$0xf]  ;;  %v17708_v48 = vadd.f32 %v1221_v30, %v1208_v33  ;;  %v11728_v49 = vor.u32 %v16219_v37, %v11727_v36  ;;  %v11732_v51 = vor.u32 %v16203_v41, %v11729_v42  ;;  %v16123_v33 = vld [vmem:[#allocation7 + $0x9c] sm:$0xf0]  ;;  %v12247_v41 = vld [vmem:[#allocation7 + $0x728] sm:$0xf] }
 0x175   :  { %4828 = vmatmul.bf16.vlgmr.msra.gmra.mxu2 %v17631_v9  ;;  %4841 = vmatmul.bf16.vlgmr.msra.gmra.mxu3 %v17633_v10  ;;  %v12756_v52 = vor.u32 %v16459_v43, %v12753_v44  ;;  %v12367_v30 = vld [vmem:[#allocation7 + $0x820] sm:$0xf]  ;;  %v16107_v36 = vld [vmem:[#allocation7 + $0x24] sm:$0xf]  ;;  %v16348_v42 = vld [vmem:[#allocation7 + $0x7a4] sm:$0xf0] }
 0x176   :  { %v11345_v37 = vld [vmem:[#allocation7 + $0xa0] sm:$0xf0]  ;;  %v13271_v43 = vld [vmem:[#allocation7 + $0xf28] sm:$0xf]  ;;  %v12248_v3 = vor.u32 %v16348_v42, %v12247_v41 }
 0x177   :  { %4847 = vmatpush.bf16.msrb.mxu0 %v12112_v57  ;;  %4860 = vmatpush.bf16.msrb.mxu1 %v13136_v63  ;;  %v1255_v57 = vadd.f32 %v1254_v47, %v17705_v38  ;;  %v1210_v8 = vpop.f32.mrf.mxu0  ;;  %v1223_v25 = vpop.f32.mrf.mxu1  ;;  %v16604_v44 = vld [vmem:[#allocation7 + $0xfa4] sm:$0xf0]  ;;  %v16332_v47 = vld [vmem:[#allocation7 + $0x72c] sm:$0xf] }
 0x178   :  { %4873 = vmatpush.bf16.msrb.mxu2 %v12116_v5  ;;  %4886 = vmatpush.bf16.msrb.mxu3 %v13140_v6  ;;  %v1234_v63 = vpop.f32.mrf.mxu2  ;;  %v1247_v0 = vpop.f32.mrf.mxu3  ;;  %v16427_v5 = vld [vmem:[#allocation7 + $0xa24] sm:$0xf]  ;;  %v16300_v8 = vld [vmem:[#allocation7 + $0x62c] sm:$0xf] }
 0x179   :  { %v12625_v6 = vld [vmem:[#allocation7 + $0xaa0] sm:$0xf0]  ;;  %v17711_v7 = vadd.f32 %v1247_v0, %v1234_v63  ;;  %v1256_v11 = vadd.f32 %v1255_v57, %v17708_v48  ;;  %v12119_v57 = vld [vmem:[#allocation7 + $0x628] sm:$0xf]  ;;  %v12252_v0 = vor.u32 %v16332_v47, %v12249_v45  ;;  %v12121_v25 = vld [vmem:[#allocation7 + $0x6a8] sm:$0xf0] }
 0x17a   :  { %v12628_v14 = vor.u32 %v16427_v5, %v12625_v6  ;;  %v16316_v63 = vld [vmem:[#allocation7 + $0x6a4] sm:$0xf0] }
 0x17b   :  { %4848 = vmatpush.bf16.msrb.mxu0 %v11984_v58  ;;  %4861 = vmatpush.bf16.msrb.mxu1 %v13008_v59  ;;  %v16155_v58 = vld [vmem:[#allocation7 + $0x19c] sm:$0xf0]  ;;  %v11604_v59 = vor.u32 %v16171_v4, %v11601_v1  ;;  %v1257_v15 = vadd.f32 %v1256_v11, %v17711_v7  ;;  %v13272_v4 = vor.u32 %v16604_v44, %v13271_v43  ;;  %v13143_v5 = vld [vmem:[#allocation7 + $0xe28] sm:$0xf]  ;;  %v16556_v11 = vld [vmem:[#allocation7 + $0xe2c] sm:$0xf] }
 0x17c   :  { %4874 = vmatpush.bf16.msrb.mxu2 %v11988_v16  ;;  %4887 = vmatpush.bf16.msrb.mxu3 %v13012_v20  ;;  %v12495_v16 = vld [vmem:[#allocation7 + $0x920] sm:$0xf]  ;;  %v11472_v28 = vor.u32 %v16155_v58, %v11471_v60  ;;  %v16572_v6 = vld [vmem:[#allocation7 + $0xea4] sm:$0xf0] }
 0x17d   :  { %v16411_v20 = vld [vmem:[#allocation7 + $0x99c] sm:$0xf0]  ;;  %1258 = vadd.xlane.f32.xlu1 %v1257_v15  ;;  %v13144_v60 = vor.u32 %v16572_v6, %v13143_v5  ;;  %v11991_v58 = vld [vmem:[#allocation7 + $0x528] sm:$0xf] }
 0x17e   :  { %v12496_v29 = vor.u32 %v16411_v20, %v12495_v16  ;;  %v13015_v16 = vld [vmem:[#allocation7 + $0xd28] sm:$0xf] }
 0x17f   :  { %4849 = vmatpush.bf16.msrb.mxu0 %v11856_v34  ;;  %4862 = vmatpush.bf16.msrb.mxu1 %v12880_v35  ;;  %v11476_v34 = vor.u32 %v16139_v21, %v11473_v22  ;;  %v12500_v35 = vor.u32 %v16395_v23, %v12497_v24  ;;  %v16540_v20 = vld [vmem:[#allocation7 + $0xda4] sm:$0xf0]  ;;  %v16268_v21 = vld [vmem:[#allocation7 + $0x52c] sm:$0xf] }
 0x180   :  { %4875 = vmatpush.bf16.msrb.mxu2 %v11860_v39  ;;  %4888 = vmatpush.bf16.msrb.mxu3 %v12884_v40  ;;  %v16363_v39 = vld [vmem:[#allocation7 + $0x824] sm:$0xf]  ;;  %v1236_v40 = vpop.f32.mrf.mxu2  ;;  %v1249_v17 = vpop.f32.mrf.mxu3  ;;  %v11993_v22 = vld [vmem:[#allocation7 + $0x5a8] sm:$0xf0]  ;;  %v11735_v44 = vld [vmem:[#allocation7 + $0x328] sm:$0xf] }
 0x181   :  { %v12372_v53 = vor.u32 %v16363_v39, %v12369_v18  ;;  %v16524_v23 = vld [vmem:[#allocation7 + $0xd2c] sm:$0xf]  ;;  %v16220_v47 = vld [vmem:[#allocation7 + $0x3a4] sm:$0xf0] }
 0x182   :  { %v13017_v24 = vld [vmem:[#allocation7 + $0xda8] sm:$0xf0]  ;;  %v12759_v45 = vld [vmem:[#allocation7 + $0xb28] sm:$0xf] }
 0x183   :  { %4850 = vmatpush.bf16.msrb.mxu0 %v11728_v49  ;;  %4863 = vmatpush.bf16.msrb.mxu1 %v12752_v50  ;;  %v11344_v49 = vor.u32 %v16123_v33, %v11343_v27  ;;  %v12368_v50 = vor.u32 %v16379_v31, %v12367_v30  ;;  %v16252_v33 = vld [vmem:[#allocation7 + $0x4a4] sm:$0xf0]  ;;  %v11996_v30 = vor.u32 %v16268_v21, %v11993_v22  ;;  %v16492_v39 = vld [vmem:[#allocation7 + $0xc2c] sm:$0xf] }
 0x184   :  { %4876 = vmatpush.bf16.msrb.mxu2 %v11732_v51  ;;  %4889 = vmatpush.bf16.msrb.mxu3 %v12756_v52  ;;  %v13273_v51 = vld [vmem:[#allocation7 + $0xfa8] sm:$0xf0]  ;;  %v11348_v52 = vor.u32 %v16107_v36, %v11345_v37  ;;  %v13020_v31 = vor.u32 %v16524_v23, %v13017_v24  ;;  %v12631_v6 = vld [vmem:[#allocation7 + $0xa28] sm:$0xf] }
 0x185   :  { %v13276_v1 = vor.u32 %v16588_v46, %v13273_v51  ;;  %v16236_v36 = vld [vmem:[#allocation7 + $0x42c] sm:$0xf]  ;;  %v16476_v46 = vld [vmem:[#allocation7 + $0xba4] sm:$0xf0] }
 0x186   :  { %v11865_v37 = vld [vmem:[#allocation7 + $0x4a8] sm:$0xf0]  ;;  %v11479_v21 = vld [vmem:[#allocation7 + $0x128] sm:$0xf] }
 0x187   :  { %4851 = vmatpush.bf16.msrb.mxu0 %v11600_v12  ;;  %4864 = vmatpush.bf16.msrb.mxu1 %v12624_v13  ;;  %v13145_v12 = vld [vmem:[#allocation7 + $0xea8] sm:$0xf0]  ;;  %v12120_v13 = vor.u32 %v16316_v63, %v12119_v57  ;;  %v12760_v57 = vor.u32 %v16476_v46, %v12759_v45  ;;  %v11607_v63 = vld [vmem:[#allocation7 + $0x228] sm:$0xf]  ;;  %v16349_v45 = vld [vmem:[#allocation7 + $0x7ac] sm:$0xf0] }
 0x188   :  { %4877 = vmatpush.bf16.msrb.mxu2 %v11604_v59  ;;  %4890 = vmatpush.bf16.msrb.mxu3 %v12628_v14  ;;  %v16284_v59 = vld [vmem:[#allocation7 + $0x5a4] sm:$0xf0]  ;;  %v12124_v14 = vor.u32 %v16300_v8, %v12121_v25  ;;  %v13148_v15 = vor.u32 %v16556_v11, %v13145_v12  ;;  %v12889_v40 = vld [vmem:[#allocation7 + $0xca8] sm:$0xf0]  ;;  %v13279_v46 = vld [vmem:[#allocation7 + $0xf30] sm:$0xf] }
 0x189   :  { %v11992_v27 = vor.u32 %v16284_v59, %v11991_v58  ;;  %v16204_v51 = vld [vmem:[#allocation7 + $0x32c] sm:$0xf]  ;;  %v16444_v8 = vld [vmem:[#allocation7 + $0xaa4] sm:$0xf0] }
 0x18a   :  { %v16172_v25 = vld [vmem:[#allocation7 + $0x22c] sm:$0xf]  ;;  %v16156_v22 = vld [vmem:[#allocation7 + $0x1a4] sm:$0xf0] }
 0x18b   :  { %4852 = vmatpush.bf16.msrb.mxu0 %v11472_v28  ;;  %4865 = vmatpush.bf16.msrb.mxu1 %v12496_v29  ;;  %v13016_v28 = vor.u32 %v16540_v20, %v13015_v16  ;;  %v11863_v29 = vld [vmem:[#allocation7 + $0x428] sm:$0xf]  ;;  %v12633_v58 = vld [vmem:[#allocation7 + $0xaa8] sm:$0xf0]  ;;  %v12632_v20 = vor.u32 %v16444_v8, %v12631_v6  ;;  %v12127_v8 = vld [vmem:[#allocation7 + $0x630] sm:$0xf] }
 0x18c   :  { %4878 = vmatpush.bf16.msrb.mxu2 %v11476_v34  ;;  %4891 = vmatpush.bf16.msrb.mxu3 %v12500_v35  ;;  %v12887_v34 = vld [vmem:[#allocation7 + $0xc28] sm:$0xf]  ;;  %v11864_v42 = vor.u32 %v16252_v33, %v11863_v29  ;;  %v16140_v29 = vld [vmem:[#allocation7 + $0x12c] sm:$0xf] }
 0x18d   :  { %v16508_v35 = vld [vmem:[#allocation7 + $0xca4] sm:$0xf0]  ;;  %v11481_v33 = vld [vmem:[#allocation7 + $0x1a8] sm:$0xf0] }
 0x18e   :  { %v12888_v43 = vor.u32 %v16508_v35, %v12887_v34  ;;  %v12503_v23 = vld [vmem:[#allocation7 + $0x928] sm:$0xf]  ;;  %v11480_v35 = vor.u32 %v16156_v22, %v11479_v21  ;;  %v11999_v21 = vld [vmem:[#allocation7 + $0x530] sm:$0xf] }
 0x18f   :  { %4853 = vmatpush.bf16.msrb.mxu0 %v11344_v49  ;;  %4866 = vmatpush.bf16.msrb.mxu1 %v12368_v50  ;;  %v4647_v17 = vpop.f32.mrf.mxu0  ;;  %v4660_v18 = vpop.f32.mrf.mxu1  ;;  %v11868_v49 = vor.u32 %v16236_v36, %v11865_v37  ;;  %v12892_v50 = vor.u32 %v16492_v39, %v12889_v40  ;;  %v11351_v34 = vld [vmem:[#allocation7 + $0x28] sm:$0xf]  ;;  %v16285_v22 = vld [vmem:[#allocation7 + $0x5ac] sm:$0xf0] }
 0x190   :  { %4879 = vmatpush.bf16.msrb.mxu2 %v11348_v52  ;;  %4892 = vmatpush.bf16.msrb.mxu3 %v12372_v53  ;;  %v4661_v41 = vadd.f32 %v4660_v18, %v4647_v17  ;;  %v11737_v52 = vld [vmem:[#allocation7 + $0x3a8] sm:$0xf0]  ;;  %v16124_v37 = vld [vmem:[#allocation7 + $0xa4] sm:$0xf0]  ;;  %v11484_v17 = vor.u32 %v16140_v29, %v11481_v33  ;;  %v16269_v29 = vld [vmem:[#allocation7 + $0x534] sm:$0xf] }
 0x191   :  { %v16460_v53 = vld [vmem:[#allocation7 + $0xb2c] sm:$0xf]  ;;  %v12375_v39 = vld [vmem:[#allocation7 + $0x828] sm:$0xf]  ;;  %v12001_v33 = vld [vmem:[#allocation7 + $0x5b0] sm:$0xf0] }
 0x192   :  { %4854 = vmatmul.bf16.vlgmr.msrb.gmra.mxu0 %v17631_v9  ;;  %4867 = vmatmul.bf16.vlgmr.msrb.gmra.mxu1 %v17633_v10  ;;  %5470 = vst [vmem:[%s18807_s12] sm:$0xff] %v4661_v41  ;;  %v16380_v40 = vld [vmem:[#allocation7 + $0x8a4] sm:$0xf0]  ;;  %v16108_v41 = vld [vmem:[#allocation7 + $0x2c] sm:$0xf] }
 0x193   :  { %4898 = vmatpush.bf16.msra.mxu0 %v12248_v3  ;;  %4911 = vmatpush.bf16.msra.mxu1 %v13272_v4  ;;  %v12761_v3 = vld [vmem:[#allocation7 + $0xba8] sm:$0xf0]  ;;  %v11736_v4 = vor.u32 %v16220_v47, %v11735_v44 }
 0x194   :  { %4924 = vmatpush.bf16.msra.mxu2 %v12252_v0  ;;  %4937 = vmatpush.bf16.msra.mxu3 %v13276_v1  ;;  %v16188_v0 = vld [vmem:[#allocation7 + $0x2a4] sm:$0xf0]  ;;  %v11740_v1 = vor.u32 %v16204_v51, %v11737_v52  ;;  %v12764_v5 = vor.u32 %v16460_v53, %v12761_v3  ;;  %v16605_v51 = vld [vmem:[#allocation7 + $0xfac] sm:$0xf0]  ;;  %v16333_v52 = vld [vmem:[#allocation7 + $0x734] sm:$0xf]  ;;  %v11352_v53 = vor.u32 %v16124_v37, %v11351_v34 }
 0x195   :  { %4880 = vmatmul.bf16.vlgmr.msrb.gmra.mxu2 %v17631_v9  ;;  %4893 = vmatmul.bf16.vlgmr.msrb.gmra.mxu3 %v17633_v10  ;;  %v11608_v16 = vor.u32 %v16188_v0, %v11607_v63  ;;  %v12376_v3 = vor.u32 %v16380_v40, %v12375_v39  ;;  %v13281_v63 = vld [vmem:[#allocation7 + $0xfb0] sm:$0xf0]  ;;  %v13280_v6 = vor.u32 %v16605_v51, %v13279_v46  ;;  %v16253_v37 = vld [vmem:[#allocation7 + $0x4ac] sm:$0xf0] }
 0x196   :  { %v12000_v34 = vor.u32 %v16285_v22, %v11999_v21  ;;  %v12004_v39 = vor.u32 %v16269_v29, %v12001_v33  ;;  %v11743_v51 = vld [vmem:[#allocation7 + $0x330] sm:$0xf]  ;;  %v12641_v21 = vld [vmem:[#allocation7 + $0xab0] sm:$0xf0] }
 0x197   :  { %4899 = vmatpush.bf16.msra.mxu0 %v12120_v13  ;;  %4912 = vmatpush.bf16.msra.mxu1 %v13144_v60  ;;  %v11609_v13 = vld [vmem:[#allocation7 + $0x2a8] sm:$0xf0]  ;;  %v11487_v29 = vld [vmem:[#allocation7 + $0x130] sm:$0xf] }
 0x198   :  { %4925 = vmatpush.bf16.msra.mxu2 %v12124_v14  ;;  %4938 = vmatpush.bf16.msra.mxu3 %v13148_v15  ;;  %v4673_v11 = vpop.f32.mrf.mxu2  ;;  %v4686_v12 = vpop.f32.mrf.mxu3  ;;  %v16428_v60 = vld [vmem:[#allocation7 + $0xa2c] sm:$0xf]  ;;  %v11612_v24 = vor.u32 %v16172_v25, %v11609_v13  ;;  %v16317_v25 = vld [vmem:[#allocation7 + $0x6ac] sm:$0xf0] }
 0x199   :  { %v4687_v59 = vadd.f32 %v4686_v12, %v4673_v11  ;;  %v4649_v14 = vpop.f32.mrf.mxu0  ;;  %v4662_v15 = vpop.f32.mrf.mxu1  ;;  %v13151_v13 = vld [vmem:[#allocation7 + $0xe30] sm:$0xf] }
 0x19a   :  { %v16557_v14 = vld [vmem:[#allocation7 + $0xe34] sm:$0xf]  ;;  %v16157_v33 = vld [vmem:[#allocation7 + $0x1ac] sm:$0xf0] }
 0x19b   :  { %4900 = vmatpush.bf16.msra.mxu0 %v11992_v27  ;;  %4913 = vmatpush.bf16.msra.mxu1 %v13016_v28  ;;  %5471 = vst [vmem:[%s18807_s12 + $0x8] sm:$0xff] %v4687_v59  ;;  %v12636_v27 = vor.u32 %v16428_v60, %v12633_v58  ;;  %v16412_v28 = vld [vmem:[#allocation7 + $0x9a4] sm:$0xf0]  ;;  %v16573_v60 = vld [vmem:[#allocation7 + $0xeac] sm:$0xf0] }
 0x19c   :  { %4926 = vmatpush.bf16.msra.mxu2 %v11996_v30  ;;  %4939 = vmatpush.bf16.msra.mxu3 %v13020_v31  ;;  %v16396_v30 = vld [vmem:[#allocation7 + $0x92c] sm:$0xf]  ;;  %v12504_v36 = vor.u32 %v16412_v28, %v12503_v23  ;;  %v16301_v58 = vld [vmem:[#allocation7 + $0x634] sm:$0xf]  ;;  %v16541_v28 = vld [vmem:[#allocation7 + $0xdac] sm:$0xf0] }
 0x19d   :  { %v12505_v31 = vld [vmem:[#allocation7 + $0x9a8] sm:$0xf0]  ;;  %v12129_v59 = vld [vmem:[#allocation7 + $0x6b0] sm:$0xf0] }
 0x19e   :  { %v12508_v18 = vor.u32 %v16396_v30, %v12505_v31  ;;  %v13153_v15 = vld [vmem:[#allocation7 + $0xeb0] sm:$0xf0]  ;;  %v12132_v23 = vor.u32 %v16301_v58, %v12129_v59  ;;  %v16445_v58 = vld [vmem:[#allocation7 + $0xaac] sm:$0xf0] }
 0x19f   :  { %4901 = vmatpush.bf16.msra.mxu0 %v11864_v42  ;;  %4914 = vmatpush.bf16.msra.mxu1 %v12888_v43  ;;  %v11353_v42 = vld [vmem:[#allocation7 + $0xa8] sm:$0xf0]  ;;  %v16525_v30 = vld [vmem:[#allocation7 + $0xd34] sm:$0xf] }
 0x1a0   :  { %4927 = vmatpush.bf16.msra.mxu2 %v11868_v49  ;;  %4940 = vmatpush.bf16.msra.mxu3 %v12892_v50  ;;  %v16364_v43 = vld [vmem:[#allocation7 + $0x82c] sm:$0xf]  ;;  %v4675_v44 = vpop.f32.mrf.mxu2  ;;  %v4688_v47 = vpop.f32.mrf.mxu3  ;;  %v12255_v50 = vld [vmem:[#allocation7 + $0x730] sm:$0xf]  ;;  %v11356_v0 = vor.u32 %v16108_v41, %v11353_v42  ;;  %v13025_v31 = vld [vmem:[#allocation7 + $0xdb0] sm:$0xf0] }
 0x1a1   :  { %v12377_v49 = vld [vmem:[#allocation7 + $0x8a8] sm:$0xf0]  ;;  %v13028_v40 = vor.u32 %v16525_v30, %v13025_v31  ;;  %v16237_v41 = vld [vmem:[#allocation7 + $0x434] sm:$0xf]  ;;  %v12511_v30 = vld [vmem:[#allocation7 + $0x930] sm:$0xf] }
 0x1a2   :  { %v11873_v42 = vld [vmem:[#allocation7 + $0x4b0] sm:$0xf0] }
 0x1a3   :  { %4902 = vmatpush.bf16.msra.mxu0 %v11736_v4  ;;  %4915 = vmatpush.bf16.msra.mxu1 %v12760_v57  ;;  %v12257_v4 = vld [vmem:[#allocation7 + $0x7b0] sm:$0xf0] }
 0x1a4   :  { %4928 = vmatpush.bf16.msra.mxu2 %v11740_v1  ;;  %4941 = vmatpush.bf16.msra.mxu3 %v12764_v5  ;;  %v16589_v57 = vld [vmem:[#allocation7 + $0xf34] sm:$0xf]  ;;  %v12380_v1 = vor.u32 %v16364_v43, %v12377_v49  ;;  %v12256_v5 = vor.u32 %v16349_v45, %v12255_v50  ;;  %v12260_v11 = vor.u32 %v16333_v52, %v12257_v4  ;;  %v16221_v52 = vld [vmem:[#allocation7 + $0x3ac] sm:$0xf0] }
 0x1a5   :  { %v13284_v12 = vor.u32 %v16589_v57, %v13281_v63  ;;  %v16493_v43 = vld [vmem:[#allocation7 + $0xc34] sm:$0xf]  ;;  %v16477_v57 = vld [vmem:[#allocation7 + $0xbac] sm:$0xf0] }
 0x1a6   :  { %v12897_v44 = vld [vmem:[#allocation7 + $0xcb0] sm:$0xf0] }
 0x1a7   :  { %4903 = vmatpush.bf16.msra.mxu0 %v11608_v16  ;;  %4916 = vmatpush.bf16.msra.mxu1 %v12632_v20  ;;  %v12128_v16 = vor.u32 %v16317_v25, %v12127_v8  ;;  %v13152_v20 = vor.u32 %v16573_v60, %v13151_v13  ;;  %v12900_v4 = vor.u32 %v16493_v43, %v12897_v44  ;;  %v16205_v63 = vld [vmem:[#allocation7 + $0x334] sm:$0xf]  ;;  %v11615_v25 = vld [vmem:[#allocation7 + $0x230] sm:$0xf] }
 0x1a8   :  { %4929 = vmatpush.bf16.msra.mxu2 %v11612_v24  ;;  %4942 = vmatpush.bf16.msra.mxu3 %v12636_v27  ;;  %v13156_v24 = vor.u32 %v16557_v14, %v13153_v15  ;;  %v13023_v27 = vld [vmem:[#allocation7 + $0xd30] sm:$0xf]  ;;  %v16173_v59 = vld [vmem:[#allocation7 + $0x234] sm:$0xf] }
 0x1a9   :  { %v12639_v60 = vld [vmem:[#allocation7 + $0xa30] sm:$0xf] }
 0x1aa   :  { %v12383_v43 = vld [vmem:[#allocation7 + $0x830] sm:$0xf] }
 0x1ab   :  { %4904 = vmatpush.bf16.msra.mxu0 %v11480_v35  ;;  %4917 = vmatpush.bf16.msra.mxu1 %v12504_v36  ;;  %v13024_v35 = vor.u32 %v16541_v28, %v13023_v27  ;;  %v11871_v36 = vld [vmem:[#allocation7 + $0x430] sm:$0xf]  ;;  %v12640_v28 = vor.u32 %v16445_v58, %v12639_v60  ;;  %v12135_v58 = vld [vmem:[#allocation7 + $0x638] sm:$0xf] }
 0x1ac   :  { %4930 = vmatpush.bf16.msra.mxu2 %v11484_v17  ;;  %4943 = vmatpush.bf16.msra.mxu3 %v12508_v18  ;;  %v12895_v17 = vld [vmem:[#allocation7 + $0xc30] sm:$0xf]  ;;  %v11872_v45 = vor.u32 %v16253_v37, %v11871_v36  ;;  %v16141_v36 = vld [vmem:[#allocation7 + $0x134] sm:$0xf] }
 0x1ad   :  { %v16509_v18 = vld [vmem:[#allocation7 + $0xcac] sm:$0xf0]  ;;  %v11489_v37 = vld [vmem:[#allocation7 + $0x1b0] sm:$0xf0] }
 0x1ae   :  { %v12896_v46 = vor.u32 %v16509_v18, %v12895_v17  ;;  %v11359_v17 = vld [vmem:[#allocation7 + $0x30] sm:$0xf]  ;;  %v11488_v18 = vor.u32 %v16157_v33, %v11487_v29  ;;  %v12007_v29 = vld [vmem:[#allocation7 + $0x538] sm:$0xf] }
 0x1af   :  { %4905 = vmatpush.bf16.msra.mxu0 %v11352_v53  ;;  %4918 = vmatpush.bf16.msra.mxu1 %v12376_v3  ;;  %v4699_v47 = vpop.f32.mrf.mxu0  ;;  %v4712_v49 = vpop.f32.mrf.mxu1  ;;  %v12767_v53 = vld [vmem:[#allocation7 + $0xb30] sm:$0xf]  ;;  %v11876_v3 = vor.u32 %v16237_v41, %v11873_v42  ;;  %v16286_v33 = vld [vmem:[#allocation7 + $0x5b4] sm:$0xf0] }
 0x1b0   :  { %4931 = vmatpush.bf16.msra.mxu2 %v11356_v0  ;;  %4944 = vmatpush.bf16.msra.mxu3 %v12380_v1  ;;  %v4713_v50 = vadd.f32 %v4712_v49, %v4699_v47  ;;  %v11745_v0 = vld [vmem:[#allocation7 + $0x3b0] sm:$0xf0]  ;;  %v12768_v8 = vor.u32 %v16477_v57, %v12767_v53  ;;  %v16125_v42 = vld [vmem:[#allocation7 + $0xac] sm:$0xf0]  ;;  %v11492_v47 = vor.u32 %v16141_v36, %v11489_v37  ;;  %v13287_v57 = vld [vmem:[#allocation7 + $0xf38] sm:$0xf] }
 0x1b1   :  { %v16461_v1 = vld [vmem:[#allocation7 + $0xb34] sm:$0xf]  ;;  %v16381_v44 = vld [vmem:[#allocation7 + $0x8ac] sm:$0xf0]  ;;  %v16270_v36 = vld [vmem:[#allocation7 + $0x53c] sm:$0xf] }
 0x1b2   :  { %4906 = vmatmul.bf16.vlgmr.msra.gmra.mxu0 %v17631_v9  ;;  %4919 = vmatmul.bf16.vlgmr.msra.gmra.mxu1 %v17633_v10  ;;  %5472 = vst [vmem:[%s18807_s12 + $0x10] sm:$0xff] %v4713_v50  ;;  %v16109_v50 = vld [vmem:[#allocation7 + $0x34] sm:$0xf]  ;;  %v12009_v37 = vld [vmem:[#allocation7 + $0x5b8] sm:$0xf0] }
 0x1b3   :  { %4950 = vmatpush.bf16.msrb.mxu0 %v12256_v5  ;;  %4963 = vmatpush.bf16.msrb.mxu1 %v13280_v6  ;;  %v12769_v5 = vld [vmem:[#allocation7 + $0xbb0] sm:$0xf0]  ;;  %v11744_v6 = vor.u32 %v16221_v52, %v11743_v51 }
 0x1b4   :  { %4976 = vmatpush.bf16.msrb.mxu2 %v12260_v11  ;;  %4989 = vmatpush.bf16.msrb.mxu3 %v13284_v12  ;;  %v16189_v11 = vld [vmem:[#allocation7 + $0x2ac] sm:$0xf0]  ;;  %v11748_v12 = vor.u32 %v16205_v63, %v11745_v0  ;;  %v12772_v13 = vor.u32 %v16461_v1, %v12769_v5  ;;  %v12385_v53 = vld [vmem:[#allocation7 + $0x8b0] sm:$0xf0]  ;;  %v16606_v63 = vld [vmem:[#allocation7 + $0xfb4] sm:$0xf0]  ;;  %v11360_v1 = vor.u32 %v16125_v42, %v11359_v17 }
 0x1b5   :  { %4932 = vmatmul.bf16.vlgmr.msra.gmra.mxu2 %v17631_v9  ;;  %4945 = vmatmul.bf16.vlgmr.msra.gmra.mxu3 %v17633_v10  ;;  %v11616_v27 = vor.u32 %v16189_v11, %v11615_v25  ;;  %v16334_v0 = vld [vmem:[#allocation7 + $0x73c] sm:$0xf]  ;;  %v12384_v5 = vor.u32 %v16381_v44, %v12383_v43  ;;  %v13288_v60 = vor.u32 %v16606_v63, %v13287_v57  ;;  %v16254_v42 = vld [vmem:[#allocation7 + $0x4b4] sm:$0xf0] }
 0x1b6   :  { %v13289_v25 = vld [vmem:[#allocation7 + $0xfb8] sm:$0xf0]  ;;  %v12008_v17 = vor.u32 %v16286_v33, %v12007_v29  ;;  %v12012_v43 = vor.u32 %v16270_v36, %v12009_v37  ;;  %v11751_v63 = vld [vmem:[#allocation7 + $0x338] sm:$0xf] }
 0x1b7   :  { %4951 = vmatpush.bf16.msrb.mxu0 %v12128_v16  ;;  %4964 = vmatpush.bf16.msrb.mxu1 %v13152_v20  ;;  %v11617_v16 = vld [vmem:[#allocation7 + $0x2b0] sm:$0xf0]  ;;  %v12649_v29 = vld [vmem:[#allocation7 + $0xab8] sm:$0xf0]  ;;  %v11495_v36 = vld [vmem:[#allocation7 + $0x138] sm:$0xf] }
 0x1b8   :  { %4977 = vmatpush.bf16.msrb.mxu2 %v12132_v23  ;;  %4990 = vmatpush.bf16.msrb.mxu3 %v13156_v24  ;;  %v4725_v14 = vpop.f32.mrf.mxu2  ;;  %v4738_v15 = vpop.f32.mrf.mxu3  ;;  %v16429_v20 = vld [vmem:[#allocation7 + $0xa34] sm:$0xf]  ;;  %v11620_v31 = vor.u32 %v16173_v59, %v11617_v16  ;;  %v16318_v59 = vld [vmem:[#allocation7 + $0x6b4] sm:$0xf0] }
 0x1b9   :  { %v4739_v22 = vadd.f32 %v4738_v15, %v4725_v14  ;;  %v4701_v23 = vpop.f32.mrf.mxu0  ;;  %v4714_v24 = vpop.f32.mrf.mxu1  ;;  %v13159_v16 = vld [vmem:[#allocation7 + $0xe38] sm:$0xf] }
 0x1ba   :  { %v16558_v23 = vld [vmem:[#allocation7 + $0xe3c] sm:$0xf]  ;;  %v16158_v37 = vld [vmem:[#allocation7 + $0x1b4] sm:$0xf0] }
 0x1bb   :  { %4952 = vmatpush.bf16.msrb.mxu0 %v12000_v34  ;;  %4965 = vmatpush.bf16.msrb.mxu1 %v13024_v35  ;;  %5473 = vst [vmem:[%s18807_s12 + $0x18] sm:$0xff] %v4739_v22  ;;  %v12644_v34 = vor.u32 %v16429_v20, %v12641_v21  ;;  %v16413_v35 = vld [vmem:[#allocation7 + $0x9ac] sm:$0xf0]  ;;  %v16574_v20 = vld [vmem:[#allocation7 + $0xeb4] sm:$0xf0] }
 0x1bc   :  { %4978 = vmatpush.bf16.msrb.mxu2 %v12004_v39  ;;  %4991 = vmatpush.bf16.msrb.mxu3 %v13028_v40  ;;  %v16397_v39 = vld [vmem:[#allocation7 + $0x934] sm:$0xf]  ;;  %v12512_v41 = vor.u32 %v16413_v35, %v12511_v30  ;;  %v16302_v21 = vld [vmem:[#allocation7 + $0x63c] sm:$0xf]  ;;  %v16542_v35 = vld [vmem:[#allocation7 + $0xdb4] sm:$0xf0] }
 0x1bd   :  { %v12513_v40 = vld [vmem:[#allocation7 + $0x9b0] sm:$0xf0]  ;;  %v12137_v22 = vld [vmem:[#allocation7 + $0x6b8] sm:$0xf0] }
 0x1be   :  { %v12516_v49 = vor.u32 %v16397_v39, %v12513_v40  ;;  %v13161_v24 = vld [vmem:[#allocation7 + $0xeb8] sm:$0xf0]  ;;  %v12140_v30 = vor.u32 %v16302_v21, %v12137_v22  ;;  %v16446_v21 = vld [vmem:[#allocation7 + $0xab4] sm:$0xf0] }
 0x1bf   :  { %4953 = vmatpush.bf16.msrb.mxu0 %v11872_v45  ;;  %4966 = vmatpush.bf16.msrb.mxu1 %v12896_v46  ;;  %v11361_v45 = vld [vmem:[#allocation7 + $0xb0] sm:$0xf0]  ;;  %v16526_v39 = vld [vmem:[#allocation7 + $0xd3c] sm:$0xf] }
 0x1c0   :  { %4979 = vmatpush.bf16.msrb.mxu2 %v11876_v3  ;;  %4992 = vmatpush.bf16.msrb.mxu3 %v12900_v4  ;;  %v16365_v46 = vld [vmem:[#allocation7 + $0x834] sm:$0xf]  ;;  %v4727_v51 = vpop.f32.mrf.mxu2  ;;  %v4740_v52 = vpop.f32.mrf.mxu3  ;;  %v12263_v3 = vld [vmem:[#allocation7 + $0x738] sm:$0xf]  ;;  %v11364_v11 = vor.u32 %v16109_v50, %v11361_v45  ;;  %v13033_v40 = vld [vmem:[#allocation7 + $0xdb8] sm:$0xf0] }
 0x1c1   :  { %v16350_v4 = vld [vmem:[#allocation7 + $0x7b4] sm:$0xf0]  ;;  %v13036_v44 = vor.u32 %v16526_v39, %v13033_v40  ;;  %v16238_v50 = vld [vmem:[#allocation7 + $0x43c] sm:$0xf] }
 0x1c2   :  { %v11881_v45 = vld [vmem:[#allocation7 + $0x4b8] sm:$0xf0]  ;;  %v12519_v39 = vld [vmem:[#allocation7 + $0x938] sm:$0xf] }
 0x1c3   :  { %4954 = vmatpush.bf16.msrb.mxu0 %v11744_v6  ;;  %4967 = vmatpush.bf16.msrb.mxu1 %v12768_v8  ;;  %v12265_v6 = vld [vmem:[#allocation7 + $0x7b8] sm:$0xf0] }
 0x1c4   :  { %4980 = vmatpush.bf16.msrb.mxu2 %v11748_v12  ;;  %4993 = vmatpush.bf16.msrb.mxu3 %v12772_v13  ;;  %v16590_v8 = vld [vmem:[#allocation7 + $0xf3c] sm:$0xf]  ;;  %v12388_v12 = vor.u32 %v16365_v46, %v12385_v53  ;;  %v12264_v13 = vor.u32 %v16350_v4, %v12263_v3  ;;  %v12268_v14 = vor.u32 %v16334_v0, %v12265_v6  ;;  %v16222_v0 = vld [vmem:[#allocation7 + $0x3b4] sm:$0xf0] }
 0x1c5   :  { %v13292_v15 = vor.u32 %v16590_v8, %v13289_v25  ;;  %v16494_v46 = vld [vmem:[#allocation7 + $0xc3c] sm:$0xf]  ;;  %v16478_v8 = vld [vmem:[#allocation7 + $0xbb4] sm:$0xf0] }
 0x1c6   :  { %v12905_v51 = vld [vmem:[#allocation7 + $0xcb8] sm:$0xf0] }
 0x1c7   :  { %4955 = vmatpush.bf16.msrb.mxu0 %v11616_v27  ;;  %4968 = vmatpush.bf16.msrb.mxu1 %v12640_v28  ;;  %v12136_v27 = vor.u32 %v16318_v59, %v12135_v58  ;;  %v13160_v28 = vor.u32 %v16574_v20, %v13159_v16  ;;  %v12908_v6 = vor.u32 %v16494_v46, %v12905_v51  ;;  %v16206_v25 = vld [vmem:[#allocation7 + $0x33c] sm:$0xf]  ;;  %v11623_v59 = vld [vmem:[#allocation7 + $0x238] sm:$0xf] }
 0x1c8   :  { %4981 = vmatpush.bf16.msrb.mxu2 %v11620_v31  ;;  %4994 = vmatpush.bf16.msrb.mxu3 %v12644_v34  ;;  %v13164_v31 = vor.u32 %v16558_v23, %v13161_v24  ;;  %v13031_v34 = vld [vmem:[#allocation7 + $0xd38] sm:$0xf]  ;;  %v16174_v22 = vld [vmem:[#allocation7 + $0x23c] sm:$0xf] }
 0x1c9   :  { %v12647_v20 = vld [vmem:[#allocation7 + $0xa38] sm:$0xf] }
 0x1ca   :  { %v12391_v46 = vld [vmem:[#allocation7 + $0x838] sm:$0xf] }
 0x1cb   :  { %4956 = vmatpush.bf16.msrb.mxu0 %v11488_v18  ;;  %4969 = vmatpush.bf16.msrb.mxu1 %v12512_v41  ;;  %v13032_v18 = vor.u32 %v16542_v35, %v13031_v34  ;;  %v11879_v41 = vld [vmem:[#allocation7 + $0x438] sm:$0xf]  ;;  %v12648_v35 = vor.u32 %v16446_v21, %v12647_v20  ;;  %v12143_v21 = vld [vmem:[#allocation7 + $0x640] sm:$0xf] }
 0x1cc   :  { %4982 = vmatpush.bf16.msrb.mxu2 %v11492_v47  ;;  %4995 = vmatpush.bf16.msrb.mxu3 %v12516_v49  ;;  %v12903_v47 = vld [vmem:[#allocation7 + $0xc38] sm:$0xf]  ;;  %v11880_v4 = vor.u32 %v16254_v42, %v11879_v41  ;;  %v16142_v41 = vld [vmem:[#allocation7 + $0x13c] sm:$0xf] }
 0x1cd   :  { %v16510_v49 = vld [vmem:[#allocation7 + $0xcb4] sm:$0xf0]  ;;  %v11497_v42 = vld [vmem:[#allocation7 + $0x1b8] sm:$0xf0] }
 0x1ce   :  { %v12904_v57 = vor.u32 %v16510_v49, %v12903_v47  ;;  %v11367_v47 = vld [vmem:[#allocation7 + $0x38] sm:$0xf]  ;;  %v11496_v49 = vor.u32 %v16158_v37, %v11495_v36  ;;  %v12015_v36 = vld [vmem:[#allocation7 + $0x540] sm:$0xf] }
 0x1cf   :  { %4957 = vmatpush.bf16.msrb.mxu0 %v11360_v1  ;;  %4970 = vmatpush.bf16.msrb.mxu1 %v12384_v5  ;;  %v4751_v52 = vpop.f32.mrf.mxu0  ;;  %v4764_v53 = vpop.f32.mrf.mxu1  ;;  %v12775_v1 = vld [vmem:[#allocation7 + $0xb38] sm:$0xf]  ;;  %v11884_v5 = vor.u32 %v16238_v50, %v11881_v45  ;;  %v16287_v37 = vld [vmem:[#allocation7 + $0x5bc] sm:$0xf0] }
 0x1d0   :  { %4983 = vmatpush.bf16.msrb.mxu2 %v11364_v11  ;;  %4996 = vmatpush.bf16.msrb.mxu3 %v12388_v12  ;;  %v4765_v3 = vadd.f32 %v4764_v53, %v4751_v52  ;;  %v11753_v11 = vld [vmem:[#allocation7 + $0x3b8] sm:$0xf0]  ;;  %v12776_v58 = vor.u32 %v16478_v8, %v12775_v1  ;;  %v16126_v45 = vld [vmem:[#allocation7 + $0xb4] sm:$0xf0]  ;;  %v11500_v52 = vor.u32 %v16142_v41, %v11497_v42  ;;  %v13295_v8 = vld [vmem:[#allocation7 + $0xf40] sm:$0xf] }
 0x1d1   :  { %v16462_v12 = vld [vmem:[#allocation7 + $0xb3c] sm:$0xf]  ;;  %v16382_v51 = vld [vmem:[#allocation7 + $0x8b4] sm:$0xf0]  ;;  %v16271_v41 = vld [vmem:[#allocation7 + $0x544] sm:$0xf] }
 0x1d2   :  { %4958 = vmatmul.bf16.vlgmr.msrb.gmra.mxu0 %v17631_v9  ;;  %4971 = vmatmul.bf16.vlgmr.msrb.gmra.mxu1 %v17633_v10  ;;  %5474 = vst [vmem:[%s18807_s12 + $0x20] sm:$0xff] %v4765_v3  ;;  %v16110_v3 = vld [vmem:[#allocation7 + $0x3c] sm:$0xf]  ;;  %v12017_v42 = vld [vmem:[#allocation7 + $0x5c0] sm:$0xf0] }
 0x1d3   :  { %5002 = vmatpush.bf16.msra.mxu0 %v12264_v13  ;;  %5015 = vmatpush.bf16.msra.mxu1 %v13288_v60  ;;  %v12777_v13 = vld [vmem:[#allocation7 + $0xbb8] sm:$0xf0]  ;;  %v11752_v60 = vor.u32 %v16222_v0, %v11751_v63 }
 0x1d4   :  { %5028 = vmatpush.bf16.msra.mxu2 %v12268_v14  ;;  %5041 = vmatpush.bf16.msra.mxu3 %v13292_v15  ;;  %v16190_v14 = vld [vmem:[#allocation7 + $0x2b4] sm:$0xf0]  ;;  %v11756_v15 = vor.u32 %v16206_v25, %v11753_v11  ;;  %v12780_v16 = vor.u32 %v16462_v12, %v12777_v13  ;;  %v12393_v1 = vld [vmem:[#allocation7 + $0x8b8] sm:$0xf0]  ;;  %v16607_v25 = vld [vmem:[#allocation7 + $0xfbc] sm:$0xf0]  ;;  %v11368_v12 = vor.u32 %v16126_v45, %v11367_v47 }
 0x1d5   :  { %4984 = vmatmul.bf16.vlgmr.msrb.gmra.mxu2 %v17631_v9  ;;  %4997 = vmatmul.bf16.vlgmr.msrb.gmra.mxu3 %v17633_v10  ;;  %v11624_v34 = vor.u32 %v16190_v14, %v11623_v59  ;;  %v16335_v11 = vld [vmem:[#allocation7 + $0x744] sm:$0xf]  ;;  %v12392_v13 = vor.u32 %v16382_v51, %v12391_v46  ;;  %v13296_v20 = vor.u32 %v16607_v25, %v13295_v8  ;;  %v16255_v45 = vld [vmem:[#allocation7 + $0x4bc] sm:$0xf0] }
 0x1d6   :  { %v13297_v59 = vld [vmem:[#allocation7 + $0xfc0] sm:$0xf0]  ;;  %v12016_v47 = vor.u32 %v16287_v37, %v12015_v36  ;;  %v12020_v46 = vor.u32 %v16271_v41, %v12017_v42  ;;  %v11759_v25 = vld [vmem:[#allocation7 + $0x340] sm:$0xf] }
 0x1d7   :  { %5003 = vmatpush.bf16.msra.mxu0 %v12136_v27  ;;  %5016 = vmatpush.bf16.msra.mxu1 %v13160_v28  ;;  %v11625_v27 = vld [vmem:[#allocation7 + $0x2b8] sm:$0xf0]  ;;  %v12657_v36 = vld [vmem:[#allocation7 + $0xac0] sm:$0xf0] }
 0x1d8   :  { %5029 = vmatpush.bf16.msra.mxu2 %v12140_v30  ;;  %5042 = vmatpush.bf16.msra.mxu3 %v13164_v31  ;;  %v4777_v23 = vpop.f32.mrf.mxu2  ;;  %v4790_v24 = vpop.f32.mrf.mxu3  ;;  %v16430_v28 = vld [vmem:[#allocation7 + $0xa3c] sm:$0xf]  ;;  %v11628_v40 = vor.u32 %v16174_v22, %v11625_v27  ;;  %v16319_v22 = vld [vmem:[#allocation7 + $0x6bc] sm:$0xf0] }
 0x1d9   :  { %v4791_v33 = vadd.f32 %v4790_v24, %v4777_v23  ;;  %v4753_v30 = vpop.f32.mrf.mxu0  ;;  %v4766_v31 = vpop.f32.mrf.mxu1  ;;  %v13167_v27 = vld [vmem:[#allocation7 + $0xe40] sm:$0xf] }
 0x1da   :  { %v16559_v30 = vld [vmem:[#allocation7 + $0xe44] sm:$0xf] }
 0x1db   :  { %5004 = vmatpush.bf16.msra.mxu0 %v12008_v17  ;;  %5017 = vmatpush.bf16.msra.mxu1 %v13032_v18  ;;  %5475 = vst [vmem:[%s18807_s12 + $0x28] sm:$0xff] %v4791_v33  ;;  %v12652_v17 = vor.u32 %v16430_v28, %v12649_v29  ;;  %v16414_v18 = vld [vmem:[#allocation7 + $0x9b4] sm:$0xf0]  ;;  %v16575_v28 = vld [vmem:[#allocation7 + $0xebc] sm:$0xf0] }
 0x1dc   :  { %5030 = vmatpush.bf16.msra.mxu2 %v12012_v43  ;;  %5043 = vmatpush.bf16.msra.mxu3 %v13036_v44  ;;  %v16398_v43 = vld [vmem:[#allocation7 + $0x93c] sm:$0xf]  ;;  %v12520_v50 = vor.u32 %v16414_v18, %v12519_v39  ;;  %v16303_v29 = vld [vmem:[#allocation7 + $0x644] sm:$0xf]  ;;  %v16543_v18 = vld [vmem:[#allocation7 + $0xdbc] sm:$0xf0] }
 0x1dd   :  { %v12521_v44 = vld [vmem:[#allocation7 + $0x9b8] sm:$0xf0]  ;;  %v12145_v33 = vld [vmem:[#allocation7 + $0x6c0] sm:$0xf0] }
 0x1de   :  { %v12524_v53 = vor.u32 %v16398_v43, %v12521_v44  ;;  %v13169_v31 = vld [vmem:[#allocation7 + $0xec0] sm:$0xf0]  ;;  %v12148_v39 = vor.u32 %v16303_v29, %v12145_v33  ;;  %v16447_v29 = vld [vmem:[#allocation7 + $0xabc] sm:$0xf0] }
 0x1df   :  { %5005 = vmatpush.bf16.msra.mxu0 %v11880_v4  ;;  %5018 = vmatpush.bf16.msra.mxu1 %v12904_v57  ;;  %v11369_v4 = vld [vmem:[#allocation7 + $0xb8] sm:$0xf0]  ;;  %v16527_v43 = vld [vmem:[#allocation7 + $0xd44] sm:$0xf] }
 0x1e0   :  { %5031 = vmatpush.bf16.msra.mxu2 %v11884_v5  ;;  %5044 = vmatpush.bf16.msra.mxu3 %v12908_v6  ;;  %v16366_v57 = vld [vmem:[#allocation7 + $0x83c] sm:$0xf]  ;;  %v4779_v63 = vpop.f32.mrf.mxu2  ;;  %v4792_v0 = vpop.f32.mrf.mxu3  ;;  %v12271_v5 = vld [vmem:[#allocation7 + $0x740] sm:$0xf]  ;;  %v11372_v14 = vor.u32 %v16110_v3, %v11369_v4  ;;  %v13041_v44 = vld [vmem:[#allocation7 + $0xdc0] sm:$0xf0] }
 0x1e1   :  { %v16351_v6 = vld [vmem:[#allocation7 + $0x7bc] sm:$0xf0]  ;;  %v13044_v51 = vor.u32 %v16527_v43, %v13041_v44  ;;  %v16239_v3 = vld [vmem:[#allocation7 + $0x444] sm:$0xf] }
 0x1e2   :  { %v11889_v4 = vld [vmem:[#allocation7 + $0x4c0] sm:$0xf0]  ;;  %v16159_v44 = vld [vmem:[#allocation7 + $0x1bc] sm:$0xf0] }
 0x1e3   :  { %5006 = vmatpush.bf16.msra.mxu0 %v11752_v60  ;;  %5019 = vmatpush.bf16.msra.mxu1 %v12776_v58  ;;  %v12273_v60 = vld [vmem:[#allocation7 + $0x7c0] sm:$0xf0] }
 0x1e4   :  { %5032 = vmatpush.bf16.msra.mxu2 %v11756_v15  ;;  %5045 = vmatpush.bf16.msra.mxu3 %v12780_v16  ;;  %v16591_v58 = vld [vmem:[#allocation7 + $0xf44] sm:$0xf]  ;;  %v12396_v15 = vor.u32 %v16366_v57, %v12393_v1  ;;  %v12272_v16 = vor.u32 %v16351_v6, %v12271_v5  ;;  %v12276_v23 = vor.u32 %v16335_v11, %v12273_v60  ;;  %v16223_v11 = vld [vmem:[#allocation7 + $0x3bc] sm:$0xf0] }
 0x1e5   :  { %v13300_v24 = vor.u32 %v16591_v58, %v13297_v59  ;;  %v16495_v57 = vld [vmem:[#allocation7 + $0xc44] sm:$0xf]  ;;  %v16479_v58 = vld [vmem:[#allocation7 + $0xbbc] sm:$0xf0] }
 0x1e6   :  { %v12913_v63 = vld [vmem:[#allocation7 + $0xcc0] sm:$0xf0] }
 0x1e7   :  { %5007 = vmatpush.bf16.msra.mxu0 %v11624_v34  ;;  %5020 = vmatpush.bf16.msra.mxu1 %v12648_v35  ;;  %v12144_v34 = vor.u32 %v16319_v22, %v12143_v21  ;;  %v13168_v35 = vor.u32 %v16575_v28, %v13167_v27  ;;  %v12916_v60 = vor.u32 %v16495_v57, %v12913_v63  ;;  %v16207_v59 = vld [vmem:[#allocation7 + $0x344] sm:$0xf]  ;;  %v11631_v22 = vld [vmem:[#allocation7 + $0x240] sm:$0xf] }
 0x1e8   :  { %5033 = vmatpush.bf16.msra.mxu2 %v11628_v40  ;;  %5046 = vmatpush.bf16.msra.mxu3 %v12652_v17  ;;  %v13172_v40 = vor.u32 %v16559_v30, %v13169_v31  ;;  %v13039_v17 = vld [vmem:[#allocation7 + $0xd40] sm:$0xf]  ;;  %v16175_v33 = vld [vmem:[#allocation7 + $0x244] sm:$0xf] }
 0x1e9   :  { %v12655_v28 = vld [vmem:[#allocation7 + $0xa40] sm:$0xf] }
 0x1ea   :  { %v12656_v42 = vor.u32 %v16447_v29, %v12655_v28  ;;  %v11375_v57 = vld [vmem:[#allocation7 + $0x40] sm:$0xf]  ;;  %v12281_v28 = vld [vmem:[#allocation7 + $0x7c8] sm:$0xf0] }
 0x1eb   :  { %5008 = vmatpush.bf16.msra.mxu0 %v11496_v49  ;;  %5021 = vmatpush.bf16.msra.mxu1 %v12520_v50  ;;  %v13040_v49 = vor.u32 %v16543_v18, %v13039_v17  ;;  %v11887_v50 = vld [vmem:[#allocation7 + $0x440] sm:$0xf]  ;;  %v1261_v17 = vld [vmem:[%s18800_s5] sm:$0xff]  ;;  %v16592_v29 = vld [vmem:[#allocation7 + $0xf4c] sm:$0xf] }
 0x1ec   :  { %5034 = vmatpush.bf16.msra.mxu2 %v11500_v52  ;;  %5047 = vmatpush.bf16.msra.mxu3 %v12524_v53  ;;  %v12911_v52 = vld [vmem:[#allocation7 + $0xc40] sm:$0xf]  ;;  %v11888_v6 = vor.u32 %v16255_v45, %v11887_v50 }
 0x1ed   :  { %v16511_v53 = vld [vmem:[#allocation7 + $0xcbc] sm:$0xf0] }
 0x1ee   :  { %v12912_v8 = vor.u32 %v16511_v53, %v12911_v52  ;;  %v11503_v18 = vld [vmem:[#allocation7 + $0x140] sm:$0xf]  ;;  %v11505_v52 = vld [vmem:[#allocation7 + $0x1c0] sm:$0xf0] }
 0x1ef   :  { %5009 = vmatpush.bf16.msra.mxu0 %v11368_v12  ;;  %5022 = vmatpush.bf16.msra.mxu1 %v12392_v13  ;;  %v4803_v0 = vpop.f32.mrf.mxu0  ;;  %v4816_v1 = vpop.f32.mrf.mxu1  ;;  %v12783_v12 = vld [vmem:[#allocation7 + $0xb40] sm:$0xf]  ;;  %v11892_v13 = vor.u32 %v16239_v3, %v11889_v4  ;;  %v16399_v53 = vld [vmem:[#allocation7 + $0x944] sm:$0xf] }
 0x1f0   :  { %5035 = vmatpush.bf16.msra.mxu2 %v11372_v14  ;;  %5048 = vmatpush.bf16.msra.mxu3 %v12396_v15  ;;  %v4817_v5 = vadd.f32 %v4816_v1, %v4803_v0  ;;  %v11761_v14 = vld [vmem:[#allocation7 + $0x3c0] sm:$0xf0]  ;;  %v12784_v21 = vor.u32 %v16479_v58, %v12783_v12  ;;  %v1259_v43 = vpop.xlane.xlu1 %1258  ;;  %v16127_v63 = vld [vmem:[#allocation7 + $0xbc] sm:$0xf0]  ;;  %v11504_v1 = vor.u32 %v16159_v44, %v11503_v18  ;;  %v12153_v44 = vld [vmem:[#allocation7 + $0x6c8] sm:$0xf0] }
 0x1f1   :  { %v16463_v15 = vld [vmem:[#allocation7 + $0xb44] sm:$0xf]  ;;  %v12399_v0 = vld [vmem:[#allocation7 + $0x840] sm:$0xf] }
 0x1f2   :  { %5010 = vmatmul.bf16.vlgmr.msra.gmra.mxu0 %v17631_v9  ;;  %5023 = vmatmul.bf16.vlgmr.msra.gmra.mxu1 %v17633_v10  ;;  %5476 = vst [vmem:[%s18807_s12 + $0x30] sm:$0xff] %v4817_v5  ;;  %v12529_v3 = vld [vmem:[#allocation7 + $0x9c0] sm:$0xf0] }
 0x1f3   :  { %5054 = vmatpush.bf16.msrb.mxu0 %v12272_v16  ;;  %5067 = vmatpush.bf16.msrb.mxu1 %v13296_v20  ;;  %v12785_v16 = vld [vmem:[#allocation7 + $0xbc0] sm:$0xf0]  ;;  %v11760_v20 = vor.u32 %v16223_v11, %v11759_v25  ;;  %v12532_v12 = vor.u32 %v16399_v53, %v12529_v3  ;;  %v13047_v53 = vld [vmem:[#allocation7 + $0xd48] sm:$0xf] }
 0x1f4   :  { %5080 = vmatpush.bf16.msrb.mxu2 %v12276_v23  ;;  %5093 = vmatpush.bf16.msrb.mxu3 %v13300_v24  ;;  %v16191_v23 = vld [vmem:[#allocation7 + $0x2bc] sm:$0xf0]  ;;  %v11764_v24 = vor.u32 %v16207_v59, %v11761_v14  ;;  %v12788_v27 = vor.u32 %v16463_v15, %v12785_v16  ;;  %v11377_v25 = vld [vmem:[#allocation7 + $0xc0] sm:$0xf0]  ;;  %v12279_v15 = vld [vmem:[#allocation7 + $0x748] sm:$0xf] }
 0x1f5   :  { %5036 = vmatmul.bf16.vlgmr.msra.gmra.mxu2 %v17631_v9  ;;  %5049 = vmatmul.bf16.vlgmr.msra.gmra.mxu3 %v17633_v10  ;;  %v11632_v41 = vor.u32 %v16191_v23, %v11631_v22  ;;  %v16352_v16 = vld [vmem:[#allocation7 + $0x7c4] sm:$0xf0]  ;;  %v16336_v23 = vld [vmem:[#allocation7 + $0x74c] sm:$0xf] }
 0x1f6   :  { %v16608_v22 = vld [vmem:[#allocation7 + $0xfc4] sm:$0xf0] }
 0x1f7   :  { %5055 = vmatpush.bf16.msrb.mxu0 %v12144_v34  ;;  %5068 = vmatpush.bf16.msrb.mxu1 %v13168_v35  ;;  %v11633_v34 = vld [vmem:[#allocation7 + $0x2c0] sm:$0xf0] }
 0x1f8   :  { %5081 = vmatpush.bf16.msrb.mxu2 %v12148_v39  ;;  %5094 = vmatpush.bf16.msrb.mxu3 %v13172_v40  ;;  %v4829_v30 = vpop.f32.mrf.mxu2  ;;  %v4842_v31 = vpop.f32.mrf.mxu3  ;;  %v16431_v35 = vld [vmem:[#allocation7 + $0xa44] sm:$0xf]  ;;  %v11636_v50 = vor.u32 %v16175_v33, %v11633_v34  ;;  %v13305_v33 = vld [vmem:[#allocation7 + $0xfc8] sm:$0xf0] }
 0x1f9   :  { %v4843_v37 = vadd.f32 %v4842_v31, %v4829_v30  ;;  %v4805_v39 = vpop.f32.mrf.mxu0  ;;  %v4818_v40 = vpop.f32.mrf.mxu1  ;;  %v12660_v45 = vor.u32 %v16431_v35, %v12657_v36  ;;  %v12280_v35 = vor.u32 %v16352_v16, %v12279_v15  ;;  %v13308_v18 = vor.u32 %v16592_v29, %v13305_v33  ;;  %v16512_v16 = vld [vmem:[#allocation7 + $0xcc4] sm:$0xf0]  ;;  %v1274_v33 = vld [vmem:[%s18802_s7] sm:$0xff] }
 0x1fa   :  { %v16320_v39 = vld [vmem:[#allocation7 + $0x6c4] sm:$0xf0] }
 0x1fb   :  { %5056 = vmatpush.bf16.msrb.mxu0 %v12016_v47  ;;  %5069 = vmatpush.bf16.msrb.mxu1 %v13040_v49  ;;  %v12527_v47 = vld [vmem:[#allocation7 + $0x940] sm:$0xf]  ;;  %5477 = vst [vmem:[%s18807_s12 + $0x38] sm:$0xff] %v4843_v37  ;;  %v12151_v37 = vld [vmem:[#allocation7 + $0x648] sm:$0xf] }
 0x1fc   :  { %5082 = vmatpush.bf16.msrb.mxu2 %v12020_v46  ;;  %5095 = vmatpush.bf16.msrb.mxu3 %v13044_v51  ;;  %v16415_v49 = vld [vmem:[#allocation7 + $0x9bc] sm:$0xf0]  ;;  %v1260_v46 = vmul.f32 0.0009765625, %v1259_v43  ;;  %v16143_v51 = vld [vmem:[#allocation7 + $0x144] sm:$0xf] }
 0x1fd   :  { %v12528_v5 = vor.u32 %v16415_v49, %v12527_v47  ;;  %v11508_v11 = vor.u32 %v16143_v51, %v11505_v52  ;;  %v16304_v43 = vld [vmem:[#allocation7 + $0x64c] sm:$0xf]  ;;  %v16288_v52 = vld [vmem:[#allocation7 + $0x5c4] sm:$0xf0] }
 0x1fe   :  { %v1262_v4 = vmul.f32 %v1261_v17, %v1260_v46  ;;  %v12284_v17 = vor.u32 %v16336_v23, %v12281_v28  ;;  %v16560_v47 = vld [vmem:[#allocation7 + $0xe4c] sm:$0xf]  ;;  %v12152_v46 = vor.u32 %v16320_v39, %v12151_v37  ;;  %v11767_v29 = vld [vmem:[#allocation7 + $0x348] sm:$0xf] }
 0x1ff   :  { %5057 = vmatpush.bf16.msrb.mxu0 %v11888_v6  ;;  %5070 = vmatpush.bf16.msrb.mxu1 %v12912_v8  ;;  %v16383_v6 = vld [vmem:[#allocation7 + $0x8bc] sm:$0xf0]  ;;  %v16111_v8 = vld [vmem:[#allocation7 + $0x44] sm:$0xf]  ;;  %v13177_v49 = vld [vmem:[#allocation7 + $0xec8] sm:$0xf0] }
 0x200   :  { %5083 = vmatpush.bf16.msrb.mxu2 %v11892_v13  ;;  %5096 = vmatpush.bf16.msrb.mxu3 %v12916_v60  ;;  %v16367_v13 = vld [vmem:[#allocation7 + $0x844] sm:$0xf]  ;;  %v1264_v58 = vsel %vm1263_vm2, %v1262_v4, 0.0  ;;  %v4831_v59 = vpop.f32.mrf.mxu2  ;;  %v4844_v14 = vpop.f32.mrf.mxu3  ;;  %v11380_v31 = vor.u32 %v16111_v8, %v11377_v25  ;;  %v12156_v4 = vor.u32 %v16304_v43, %v12153_v44  ;;  %v13049_v8 = vld [vmem:[#allocation7 + $0xdc8] sm:$0xf0] }
 0x201   :  { %v12401_v60 = vld [vmem:[#allocation7 + $0x8c0] sm:$0xf0]  ;;  %v12921_v23 = vld [vmem:[#allocation7 + $0xcc8] sm:$0xf0] }
 0x202   :  { %v12404_v34 = vor.u32 %v16367_v13, %v12401_v60  ;;  %v11895_v13 = vld [vmem:[#allocation7 + $0x448] sm:$0xf]  ;;  %v12793_v43 = vld [vmem:[#allocation7 + $0xbc8] sm:$0xf0] }
 0x203   :  { %5058 = vmatpush.bf16.msrb.mxu0 %v11760_v20  ;;  %5071 = vmatpush.bf16.msrb.mxu1 %v12784_v21  ;;  %v1265_v20 = vrot.slane %v1264_v58, 4  ;;  %v13303_v21 = vld [vmem:[#allocation7 + $0xf48] sm:$0xf] }
 0x204   :  { %5084 = vmatpush.bf16.msrb.mxu2 %v11764_v24  ;;  %5097 = vmatpush.bf16.msrb.mxu3 %v12788_v27  ;;  %v11376_v24 = vor.u32 %v16127_v63, %v11375_v57  ;;  %v12400_v27 = vor.u32 %v16383_v6, %v12399_v0  ;;  %v13304_v36 = vor.u32 %v16608_v22, %v13303_v21  ;;  %v16544_v63 = vld [vmem:[#allocation7 + $0xdc4] sm:$0xf0]  ;;  %v16272_v0 = vld [vmem:[#allocation7 + $0x54c] sm:$0xf] }
 0x205   :  { %v1266_v30 = vadd.f32 %v1265_v20, %v1264_v58  ;;  %v13180_v57 = vor.u32 %v16560_v47, %v13177_v49  ;;  %v16528_v6 = vld [vmem:[#allocation7 + $0xd4c] sm:$0xf]  ;;  %v16256_v60 = vld [vmem:[#allocation7 + $0x4c4] sm:$0xf0] }
 0x206   :  { %v12919_v58 = vld [vmem:[#allocation7 + $0xc48] sm:$0xf]  ;;  %v13052_v15 = vor.u32 %v16528_v6, %v13049_v8  ;;  %v16240_v20 = vld [vmem:[#allocation7 + $0x44c] sm:$0xf] }
 0x207   :  { %5059 = vmatpush.bf16.msrb.mxu0 %v11632_v41  ;;  %5072 = vmatpush.bf16.msrb.mxu1 %v12656_v42  ;;  %v1267_v40 = vrot.slane %v1266_v30, 2  ;;  %v13175_v41 = vld [vmem:[#allocation7 + $0xe48] sm:$0xf]  ;;  %v11897_v21 = vld [vmem:[#allocation7 + $0x4c8] sm:$0xf0] }
 0x208   :  { %5085 = vmatpush.bf16.msrb.mxu2 %v11636_v50  ;;  %5098 = vmatpush.bf16.msrb.mxu3 %v12660_v45  ;;  %v16576_v42 = vld [vmem:[#allocation7 + $0xec4] sm:$0xf0]  ;;  %v16496_v22 = vld [vmem:[#allocation7 + $0xc4c] sm:$0xf]  ;;  %v11900_v39 = vor.u32 %v16240_v20, %v11897_v21 }
 0x209   :  { %v1268_v50 = vadd.f32 %v1267_v40, %v1266_v30  ;;  %v12023_v45 = vld [vmem:[#allocation7 + $0x548] sm:$0xf]  ;;  %v13176_v51 = vor.u32 %v16576_v42, %v13175_v41  ;;  %v12924_v40 = vor.u32 %v16496_v22, %v12921_v23  ;;  %v11769_v41 = vld [vmem:[#allocation7 + $0x3c8] sm:$0xf0] }
 0x20a   :  { %v16464_v42 = vld [vmem:[#allocation7 + $0xb4c] sm:$0xf]  ;;  %v11383_v23 = vld [vmem:[#allocation7 + $0x48] sm:$0xf] }
 0x20b   :  { %5060 = vmatpush.bf16.msrb.mxu0 %v11504_v1  ;;  %5073 = vmatpush.bf16.msrb.mxu1 %v12528_v5  ;;  %v1269_v3 = vrot.slane %v1268_v50, 1  ;;  %v1271_v1 = vld [vmem:[#allocation8] sm:$0x1]  ;;  %v12025_v5 = vld [vmem:[#allocation7 + $0x5c8] sm:$0xf0] }
 0x20c   :  { %5086 = vmatpush.bf16.msrb.mxu2 %v11508_v11  ;;  %5099 = vmatpush.bf16.msrb.mxu3 %v12532_v12  ;;  %v12024_v11 = vor.u32 %v16288_v52, %v12023_v45  ;;  %v13048_v12 = vor.u32 %v16544_v63, %v13047_v53  ;;  %v12028_v14 = vor.u32 %v16272_v0, %v12025_v5  ;;  %v11639_v45 = vld [vmem:[#allocation7 + $0x248] sm:$0xf]  ;;  %v11641_v0 = vld [vmem:[#allocation7 + $0x2c8] sm:$0xf0] }
 0x20d   :  { %v1270_v25 = vadd.f32 %v1269_v3, %v1268_v50  ;;  %v12796_v52 = vor.u32 %v16464_v42, %v12793_v43  ;;  %v12663_v53 = vld [vmem:[#allocation7 + $0xa48] sm:$0xf]  ;;  %v12665_v5 = vld [vmem:[#allocation7 + $0xac8] sm:$0xf0]  ;;  %v16609_v42 = vld [vmem:[#allocation7 + $0xfcc] sm:$0xf0] }
 0x20e   :  { %v16448_v3 = vld [vmem:[#allocation7 + $0xac4] sm:$0xf0]  ;;  %v11513_v20 = vld [vmem:[#allocation7 + $0x1c8] sm:$0xf0]  ;;  %v16337_v43 = vld [vmem:[#allocation7 + $0x754] sm:$0xf] }
 0x20f   :  { %5061 = vmatpush.bf16.msrb.mxu0 %v11376_v24  ;;  %5074 = vmatpush.bf16.msrb.mxu1 %v12400_v27  ;;  %v1272_v59 = vadd.f32 %v1271_v1, %v1270_v25  ;;  %v4855_v27 = vpop.f32.mrf.mxu0  ;;  %v4868_v28 = vpop.f32.mrf.mxu1  ;;  %v16432_v1 = vld [vmem:[#allocation7 + $0xa4c] sm:$0xf] }
 0x210   :  { %5087 = vmatpush.bf16.msrb.mxu2 %v11380_v31  ;;  %5100 = vmatpush.bf16.msrb.mxu3 %v12404_v34  ;;  %v4869_v30 = vadd.f32 %v4868_v28, %v4855_v27  ;;  %v11896_v31 = vor.u32 %v16256_v60, %v11895_v13  ;;  %v12920_v34 = vor.u32 %v16512_v16, %v12919_v58  ;;  %v11511_v13 = vld [vmem:[#allocation7 + $0x148] sm:$0xf]  ;;  %v16144_v16 = vld [vmem:[#allocation7 + $0x14c] sm:$0xf] }
 0x211   :  { %v1273_v24 = vmax.f32 %v1272_v59, 0.0  ;;  %v16160_v60 = vld [vmem:[#allocation7 + $0x1c4] sm:$0xf0]  ;;  %v16400_v21 = vld [vmem:[#allocation7 + $0x94c] sm:$0xf] }
 0x212   :  { %5062 = vmatmul.bf16.vlgmr.msrb.gmra.mxu0 %v17631_v9  ;;  %5075 = vmatmul.bf16.vlgmr.msrb.gmra.mxu1 %v17633_v10  ;;  %5478 = vst [vmem:[%s18807_s12 + $0x40] sm:$0xff] %v4869_v30  ;;  %v12535_v58 = vld [vmem:[#allocation7 + $0x948] sm:$0xf]  ;;  %v12537_v22 = vld [vmem:[#allocation7 + $0x9c8] sm:$0xf0]  ;;  %v11516_v30 = vor.u32 %v16144_v16, %v11513_v20 }
 0x213   :  { %5106 = vmatpush.bf16.msra.mxu0 %v12280_v35  ;;  %5119 = vmatpush.bf16.msra.mxu1 %v13304_v36  ;;  %v16224_v35 = vld [vmem:[#allocation7 + $0x3c4] sm:$0xf0]  ;;  %v1275_v37 = vperm.slane %v1273_v24, 0  ;;  %v11512_v24 = vor.u32 %v16160_v60, %v11511_v13  ;;  %v12031_v13 = vld [vmem:[#allocation7 + $0x550] sm:$0xf] }
 0x214   :  { %5132 = vmatpush.bf16.msra.mxu2 %v12284_v17  ;;  %5145 = vmatpush.bf16.msra.mxu3 %v13308_v18  ;;  %v12791_v36 = vld [vmem:[#allocation7 + $0xb48] sm:$0xf]  ;;  %v16208_v18 = vld [vmem:[#allocation7 + $0x34c] sm:$0xf]  ;;  %v11768_v47 = vor.u32 %v16224_v35, %v11767_v29  ;;  %v16289_v60 = vld [vmem:[#allocation7 + $0x5cc] sm:$0xf0] }
 0x215   :  { %5088 = vmatmul.bf16.vlgmr.msrb.gmra.mxu2 %v17631_v9  ;;  %5101 = vmatmul.bf16.vlgmr.msrb.gmra.mxu3 %v17633_v10  ;;  %v16480_v17 = vld [vmem:[#allocation7 + $0xbc4] sm:$0xf0]  ;;  %v1276_v44 = vmul.f32 %v1275_v37, %v1274_v33  ;;  %v11385_v35 = vld [vmem:[#allocation7 + $0xc8] sm:$0xf0]  ;;  %v16273_v16 = vld [vmem:[#allocation7 + $0x554] sm:$0xf] }
 0x216   :  { %v12792_v49 = vor.u32 %v16480_v17, %v12791_v36  ;;  %v16128_v28 = vld [vmem:[#allocation7 + $0xc4] sm:$0xf0]  ;;  %v16368_v36 = vld [vmem:[#allocation7 + $0x84c] sm:$0xf]  ;;  %v12287_v17 = vld [vmem:[#allocation7 + $0x750] sm:$0xf] }
 0x217   :  { %5107 = vmatpush.bf16.msra.mxu0 %v12152_v46  ;;  %5120 = vmatpush.bf16.msra.mxu1 %v13176_v51  ;;  %v1277_v50 = vsel %vm1263_vm2, %v1276_v44, 0.0  ;;  %v16192_v46 = vld [vmem:[#allocation7 + $0x2c4] sm:$0xf0]  ;;  %v11772_v51 = vor.u32 %v16208_v18, %v11769_v41  ;;  %v4870_v8 = vpop.f32.mrf.mxu1  ;;  %v4857_v25 = vpop.f32.mrf.mxu0  ;;  %v16353_v18 = vld [vmem:[#allocation7 + $0x7cc] sm:$0xf0]  ;;  %v11384_v44 = vor.u32 %v16128_v28, %v11383_v23  ;;  %v12032_v23 = vor.u32 %v16289_v60, %v12031_v13 }
 0x218   :  { %5133 = vmatpush.bf16.msra.mxu2 %v12156_v4  ;;  %5146 = vmatpush.bf16.msra.mxu3 %v13180_v57  ;;  %v16176_v4 = vld [vmem:[#allocation7 + $0x24c] sm:$0xf]  ;;  %v4881_v57 = vpop.f32.mrf.mxu2  ;;  %v4894_v63 = vpop.f32.mrf.mxu3  ;;  %v12407_v29 = vld [vmem:[#allocation7 + $0x848] sm:$0xf]  ;;  %v13311_v41 = vld [vmem:[#allocation7 + $0xf50] sm:$0xf] }
 0x219   :  { %1278 = vadd.xlane.f32.xlu2 %v1277_v50  ;;  %v4895_v6 = vadd.f32 %v4894_v63, %v4881_v57  ;;  %v11644_v59 = vor.u32 %v16176_v4, %v11641_v0  ;;  %v16384_v33 = vld [vmem:[#allocation7 + $0x8c4] sm:$0xf0]  ;;  %v16593_v50 = vld [vmem:[#allocation7 + $0xf54] sm:$0xf]  ;;  %v16321_v4 = vld [vmem:[#allocation7 + $0x6cc] sm:$0xf0] }
 0x21a   :  { %v13183_v0 = vld [vmem:[#allocation7 + $0xe50] sm:$0xf]  ;;  %v16561_v8 = vld [vmem:[#allocation7 + $0xe54] sm:$0xf] }
 0x21b   :  { %5108 = vmatpush.bf16.msra.mxu0 %v12024_v11  ;;  %5121 = vmatpush.bf16.msra.mxu1 %v13048_v12  ;;  %v11640_v11 = vor.u32 %v16192_v46, %v11639_v45  ;;  %v12664_v12 = vor.u32 %v16448_v3, %v12663_v53  ;;  %5479 = vst [vmem:[%s18807_s12 + $0x48] sm:$0xff] %v4895_v6  ;;  %v13313_v45 = vld [vmem:[#allocation7 + $0xfd0] sm:$0xf0]  ;;  %v12159_v3 = vld [vmem:[#allocation7 + $0x650] sm:$0xf] }
 0x21c   :  { %5134 = vmatpush.bf16.msra.mxu2 %v12028_v14  ;;  %5147 = vmatpush.bf16.msra.mxu3 %v13052_v15  ;;  %v12668_v14 = vor.u32 %v16432_v1, %v12665_v5  ;;  %v16416_v15 = vld [vmem:[#allocation7 + $0x9c4] sm:$0xf0]  ;;  %v13312_v53 = vor.u32 %v16609_v42, %v13311_v41  ;;  %v13316_v63 = vor.u32 %v16593_v50, %v13313_v45  ;;  %v16577_v1 = vld [vmem:[#allocation7 + $0xecc] sm:$0xf0]  ;;  %v16305_v5 = vld [vmem:[#allocation7 + $0x654] sm:$0xf] }
 0x21d   :  { %v12536_v27 = vor.u32 %v16416_v15, %v12535_v58  ;;  %v12161_v6 = vld [vmem:[#allocation7 + $0x6d0] sm:$0xf0]  ;;  %v16545_v15 = vld [vmem:[#allocation7 + $0xdcc] sm:$0xf0] }
 0x21e   :  { %v13185_v25 = vld [vmem:[#allocation7 + $0xed0] sm:$0xf0]  ;;  %v12164_v58 = vor.u32 %v16305_v5, %v12161_v6  ;;  %v16257_v28 = vld [vmem:[#allocation7 + $0x4cc] sm:$0xf0] }
 0x21f   :  { %5109 = vmatpush.bf16.msra.mxu0 %v11896_v31  ;;  %5122 = vmatpush.bf16.msra.mxu1 %v12920_v34  ;;  %v12540_v31 = vor.u32 %v16400_v21, %v12537_v22  ;;  %v16112_v34 = vld [vmem:[#allocation7 + $0x4c] sm:$0xf]  ;;  %v12033_v20 = vld [vmem:[#allocation7 + $0x5d0] sm:$0xf0]  ;;  %v11775_v42 = vld [vmem:[#allocation7 + $0x350] sm:$0xf] }
 0x220   :  { %5135 = vmatpush.bf16.msra.mxu2 %v11900_v39  ;;  %5148 = vmatpush.bf16.msra.mxu3 %v12924_v40  ;;  %v4883_v37 = vpop.f32.mrf.mxu2  ;;  %v4896_v39 = vpop.f32.mrf.mxu3  ;;  %v12409_v40 = vld [vmem:[#allocation7 + $0x8c8] sm:$0xf0]  ;;  %v11388_v46 = vor.u32 %v16112_v34, %v11385_v35  ;;  %v16529_v21 = vld [vmem:[#allocation7 + $0xd54] sm:$0xf]  ;;  %v16481_v50 = vld [vmem:[#allocation7 + $0xbcc] sm:$0xf0] }
 0x221   :  { %v13057_v22 = vld [vmem:[#allocation7 + $0xdd0] sm:$0xf0]  ;;  %v16449_v5 = vld [vmem:[#allocation7 + $0xacc] sm:$0xf0] }
 0x222   :  { %v16241_v34 = vld [vmem:[#allocation7 + $0x454] sm:$0xf] }
 0x223   :  { %5110 = vmatpush.bf16.msra.mxu0 %v11768_v47  ;;  %5123 = vmatpush.bf16.msra.mxu1 %v12792_v49  ;;  %v12408_v47 = vor.u32 %v16384_v33, %v12407_v29  ;;  %v12289_v49 = vld [vmem:[#allocation7 + $0x7d0] sm:$0xf0]  ;;  %v12036_v29 = vor.u32 %v16273_v16, %v12033_v20  ;;  %v13060_v33 = vor.u32 %v16529_v21, %v13057_v22  ;;  %v11519_v16 = vld [vmem:[#allocation7 + $0x150] sm:$0xf] }
 0x224   :  { %5136 = vmatpush.bf16.msra.mxu2 %v11772_v51  ;;  %5149 = vmatpush.bf16.msra.mxu3 %v12796_v52  ;;  %v12412_v51 = vor.u32 %v16368_v36, %v12409_v40  ;;  %v12288_v52 = vor.u32 %v16353_v18, %v12287_v17  ;;  %v12292_v57 = vor.u32 %v16337_v43, %v12289_v49  ;;  %v11905_v35 = vld [vmem:[#allocation7 + $0x4d0] sm:$0xf0]  ;;  %v16225_v43 = vld [vmem:[#allocation7 + $0x3cc] sm:$0xf0] }
 0x225   :  { %v16497_v36 = vld [vmem:[#allocation7 + $0xc54] sm:$0xf]  ;;  %v16161_v20 = vld [vmem:[#allocation7 + $0x1cc] sm:$0xf0] }
 0x226   :  { %v12929_v37 = vld [vmem:[#allocation7 + $0xcd0] sm:$0xf0]  ;;  %v12543_v21 = vld [vmem:[#allocation7 + $0x950] sm:$0xf] }
 0x227   :  { %5111 = vmatpush.bf16.msra.mxu0 %v11640_v11  ;;  %5124 = vmatpush.bf16.msra.mxu1 %v12664_v12  ;;  %v12160_v11 = vor.u32 %v16321_v4, %v12159_v3  ;;  %v13184_v12 = vor.u32 %v16577_v1, %v13183_v0  ;;  %v12932_v49 = vor.u32 %v16497_v36, %v12929_v37  ;;  %v16209_v45 = vld [vmem:[#allocation7 + $0x354] sm:$0xf]  ;;  %v11647_v4 = vld [vmem:[#allocation7 + $0x250] sm:$0xf] }
 0x228   :  { %5137 = vmatpush.bf16.msra.mxu2 %v11644_v59  ;;  %5150 = vmatpush.bf16.msra.mxu3 %v12668_v14  ;;  %v13188_v59 = vor.u32 %v16561_v8, %v13185_v25  ;;  %v13055_v14 = vld [vmem:[#allocation7 + $0xd50] sm:$0xf]  ;;  %v16177_v6 = vld [vmem:[#allocation7 + $0x254] sm:$0xf] }
 0x229   :  { %v12671_v1 = vld [vmem:[#allocation7 + $0xa50] sm:$0xf]  ;;  %v12673_v13 = vld [vmem:[#allocation7 + $0xad0] sm:$0xf0] }
 0x22a   :  { %v12415_v36 = vld [vmem:[#allocation7 + $0x850] sm:$0xf] }
 0x22b   :  { %5112 = vmatpush.bf16.msra.mxu0 %v11512_v24  ;;  %5125 = vmatpush.bf16.msra.mxu1 %v12536_v27  ;;  %v13056_v24 = vor.u32 %v16545_v15, %v13055_v14  ;;  %v11903_v27 = vld [vmem:[#allocation7 + $0x450] sm:$0xf]  ;;  %v12672_v15 = vor.u32 %v16449_v5, %v12671_v1  ;;  %v12167_v5 = vld [vmem:[#allocation7 + $0x658] sm:$0xf] }
 0x22c   :  { %5138 = vmatpush.bf16.msra.mxu2 %v11516_v30  ;;  %5151 = vmatpush.bf16.msra.mxu3 %v12540_v31  ;;  %v12927_v30 = vld [vmem:[#allocation7 + $0xc50] sm:$0xf]  ;;  %v11904_v18 = vor.u32 %v16257_v28, %v11903_v27  ;;  %v16145_v27 = vld [vmem:[#allocation7 + $0x154] sm:$0xf] }
 0x22d   :  { %v16513_v31 = vld [vmem:[#allocation7 + $0xccc] sm:$0xf0]  ;;  %v11521_v28 = vld [vmem:[#allocation7 + $0x1d0] sm:$0xf0] }
 0x22e   :  { %v12928_v41 = vor.u32 %v16513_v31, %v12927_v30  ;;  %v11391_v30 = vld [vmem:[#allocation7 + $0x50] sm:$0xf]  ;;  %v11520_v31 = vor.u32 %v16161_v20, %v11519_v16  ;;  %v12039_v16 = vld [vmem:[#allocation7 + $0x558] sm:$0xf] }
 0x22f   :  { %5113 = vmatpush.bf16.msra.mxu0 %v11384_v44  ;;  %5126 = vmatpush.bf16.msra.mxu1 %v12408_v47  ;;  %v4907_v39 = vpop.f32.mrf.mxu0  ;;  %v4920_v40 = vpop.f32.mrf.mxu1  ;;  %v12799_v44 = vld [vmem:[#allocation7 + $0xb50] sm:$0xf]  ;;  %v11908_v47 = vor.u32 %v16241_v34, %v11905_v35  ;;  %v16290_v20 = vld [vmem:[#allocation7 + $0x5d4] sm:$0xf0] }
 0x230   :  { %5139 = vmatpush.bf16.msra.mxu2 %v11388_v46  ;;  %5152 = vmatpush.bf16.msra.mxu3 %v12412_v51  ;;  %v4921_v17 = vadd.f32 %v4920_v40, %v4907_v39  ;;  %v11777_v46 = vld [vmem:[#allocation7 + $0x3d0] sm:$0xf0]  ;;  %v12800_v3 = vor.u32 %v16481_v50, %v12799_v44  ;;  %v16129_v35 = vld [vmem:[#allocation7 + $0xcc] sm:$0xf0]  ;;  %v11524_v39 = vor.u32 %v16145_v27, %v11521_v28  ;;  %v13319_v50 = vld [vmem:[#allocation7 + $0xf58] sm:$0xf] }
 0x231   :  { %v16465_v51 = vld [vmem:[#allocation7 + $0xb54] sm:$0xf]  ;;  %v16385_v37 = vld [vmem:[#allocation7 + $0x8cc] sm:$0xf0]  ;;  %v16274_v27 = vld [vmem:[#allocation7 + $0x55c] sm:$0xf] }
 0x232   :  { %5114 = vmatmul.bf16.vlgmr.msra.gmra.mxu0 %v17631_v9  ;;  %5127 = vmatmul.bf16.vlgmr.msra.gmra.mxu1 %v17633_v10  ;;  %5480 = vst [vmem:[%s18807_s12 + $0x50] sm:$0xff] %v4921_v17  ;;  %v16113_v17 = vld [vmem:[#allocation7 + $0x54] sm:$0xf]  ;;  %v12041_v28 = vld [vmem:[#allocation7 + $0x5d8] sm:$0xf0] }
 0x233   :  { %5158 = vmatpush.bf16.msrb.mxu0 %v12288_v52  ;;  %5171 = vmatpush.bf16.msrb.mxu1 %v13312_v53  ;;  %v12801_v52 = vld [vmem:[#allocation7 + $0xbd0] sm:$0xf0]  ;;  %v11776_v53 = vor.u32 %v16225_v43, %v11775_v42 }
 0x234   :  { %5184 = vmatpush.bf16.msrb.mxu2 %v12292_v57  ;;  %5197 = vmatpush.bf16.msrb.mxu3 %v13316_v63  ;;  %v16193_v57 = vld [vmem:[#allocation7 + $0x2cc] sm:$0xf0]  ;;  %v11780_v63 = vor.u32 %v16209_v45, %v11777_v46  ;;  %v12804_v0 = vor.u32 %v16465_v51, %v12801_v52  ;;  %v12417_v44 = vld [vmem:[#allocation7 + $0x8d0] sm:$0xf0]  ;;  %v16610_v45 = vld [vmem:[#allocation7 + $0xfd4] sm:$0xf0]  ;;  %v11392_v51 = vor.u32 %v16129_v35, %v11391_v30 }
 0x235   :  { %5140 = vmatmul.bf16.vlgmr.msra.gmra.mxu2 %v17631_v9  ;;  %5153 = vmatmul.bf16.vlgmr.msra.gmra.mxu3 %v17633_v10  ;;  %v11648_v14 = vor.u32 %v16193_v57, %v11647_v4  ;;  %v16338_v46 = vld [vmem:[#allocation7 + $0x75c] sm:$0xf]  ;;  %v12416_v52 = vor.u32 %v16385_v37, %v12415_v36  ;;  %v13320_v1 = vor.u32 %v16610_v45, %v13319_v50  ;;  %v16258_v35 = vld [vmem:[#allocation7 + $0x4d4] sm:$0xf0] }
 0x236   :  { %v13321_v4 = vld [vmem:[#allocation7 + $0xfd8] sm:$0xf0]  ;;  %v12040_v30 = vor.u32 %v16290_v20, %v12039_v16  ;;  %v12044_v36 = vor.u32 %v16274_v27, %v12041_v28  ;;  %v11783_v45 = vld [vmem:[#allocation7 + $0x358] sm:$0xf] }
 0x237   :  { %5159 = vmatpush.bf16.msrb.mxu0 %v12160_v11  ;;  %5172 = vmatpush.bf16.msrb.mxu1 %v13184_v12  ;;  %v11649_v11 = vld [vmem:[#allocation7 + $0x2d0] sm:$0xf0]  ;;  %v12681_v16 = vld [vmem:[#allocation7 + $0xad8] sm:$0xf0]  ;;  %v11527_v27 = vld [vmem:[#allocation7 + $0x158] sm:$0xf] }
 0x238   :  { %5185 = vmatpush.bf16.msrb.mxu2 %v12164_v58  ;;  %5198 = vmatpush.bf16.msrb.mxu3 %v13188_v59  ;;  %v4933_v8 = vpop.f32.mrf.mxu2  ;;  %v4946_v25 = vpop.f32.mrf.mxu3  ;;  %v16433_v12 = vld [vmem:[#allocation7 + $0xa54] sm:$0xf]  ;;  %v11652_v22 = vor.u32 %v16177_v6, %v11649_v11  ;;  %v16322_v6 = vld [vmem:[#allocation7 + $0x6d4] sm:$0xf0] }
 0x239   :  { %v4947_v60 = vadd.f32 %v4946_v25, %v4933_v8  ;;  %v4909_v58 = vpop.f32.mrf.mxu0  ;;  %v4922_v59 = vpop.f32.mrf.mxu1  ;;  %v13191_v11 = vld [vmem:[#allocation7 + $0xe58] sm:$0xf] }
 0x23a   :  { %v16562_v58 = vld [vmem:[#allocation7 + $0xe5c] sm:$0xf]  ;;  %v16162_v28 = vld [vmem:[#allocation7 + $0x1d4] sm:$0xf0] }
 0x23b   :  { %5160 = vmatpush.bf16.msrb.mxu0 %v12032_v23  ;;  %5173 = vmatpush.bf16.msrb.mxu1 %v13056_v24  ;;  %5481 = vst [vmem:[%s18807_s12 + $0x58] sm:$0xff] %v4947_v60  ;;  %v12676_v23 = vor.u32 %v16433_v12, %v12673_v13  ;;  %v16417_v24 = vld [vmem:[#allocation7 + $0x9cc] sm:$0xf0]  ;;  %v16578_v12 = vld [vmem:[#allocation7 + $0xed4] sm:$0xf0] }
 0x23c   :  { %5186 = vmatpush.bf16.msrb.mxu2 %v12036_v29  ;;  %5199 = vmatpush.bf16.msrb.mxu3 %v13060_v33  ;;  %v16401_v29 = vld [vmem:[#allocation7 + $0x954] sm:$0xf]  ;;  %v12544_v34 = vor.u32 %v16417_v24, %v12543_v21  ;;  %v16306_v13 = vld [vmem:[#allocation7 + $0x65c] sm:$0xf]  ;;  %v16546_v24 = vld [vmem:[#allocation7 + $0xdd4] sm:$0xf0] }
 0x23d   :  { %v12545_v33 = vld [vmem:[#allocation7 + $0x9d0] sm:$0xf0]  ;;  %v12169_v60 = vld [vmem:[#allocation7 + $0x6d8] sm:$0xf0] }
 0x23e   :  { %v12548_v40 = vor.u32 %v16401_v29, %v12545_v33  ;;  %v13193_v59 = vld [vmem:[#allocation7 + $0xed8] sm:$0xf0]  ;;  %v12172_v21 = vor.u32 %v16306_v13, %v12169_v60  ;;  %v16450_v13 = vld [vmem:[#allocation7 + $0xad4] sm:$0xf0] }
 0x23f   :  { %5161 = vmatpush.bf16.msrb.mxu0 %v11904_v18  ;;  %5174 = vmatpush.bf16.msrb.mxu1 %v12928_v41  ;;  %v11393_v18 = vld [vmem:[#allocation7 + $0xd0] sm:$0xf0]  ;;  %v16530_v29 = vld [vmem:[#allocation7 + $0xd5c] sm:$0xf] }
 0x240   :  { %5187 = vmatpush.bf16.msrb.mxu2 %v11908_v47  ;;  %5200 = vmatpush.bf16.msrb.mxu3 %v12932_v49  ;;  %v16369_v41 = vld [vmem:[#allocation7 + $0x854] sm:$0xf]  ;;  %v4935_v42 = vpop.f32.mrf.mxu2  ;;  %v4948_v43 = vpop.f32.mrf.mxu3  ;;  %v12295_v47 = vld [vmem:[#allocation7 + $0x758] sm:$0xf]  ;;  %v11396_v57 = vor.u32 %v16113_v17, %v11393_v18  ;;  %v13065_v33 = vld [vmem:[#allocation7 + $0xdd8] sm:$0xf0] }
 0x241   :  { %v16354_v49 = vld [vmem:[#allocation7 + $0x7d4] sm:$0xf0]  ;;  %v13068_v37 = vor.u32 %v16530_v29, %v13065_v33  ;;  %v16242_v17 = vld [vmem:[#allocation7 + $0x45c] sm:$0xf] }
 0x242   :  { %v11913_v18 = vld [vmem:[#allocation7 + $0x4d8] sm:$0xf0]  ;;  %v12551_v29 = vld [vmem:[#allocation7 + $0x958] sm:$0xf] }
 0x243   :  { %5162 = vmatpush.bf16.msrb.mxu0 %v11776_v53  ;;  %5175 = vmatpush.bf16.msrb.mxu1 %v12800_v3  ;;  %v12297_v53 = vld [vmem:[#allocation7 + $0x7d8] sm:$0xf0] }
 0x244   :  { %5188 = vmatpush.bf16.msrb.mxu2 %v11780_v63  ;;  %5201 = vmatpush.bf16.msrb.mxu3 %v12804_v0  ;;  %v16594_v3 = vld [vmem:[#allocation7 + $0xf5c] sm:$0xf]  ;;  %v12420_v63 = vor.u32 %v16369_v41, %v12417_v44  ;;  %v12296_v0 = vor.u32 %v16354_v49, %v12295_v47  ;;  %v12300_v8 = vor.u32 %v16338_v46, %v12297_v53  ;;  %v16226_v46 = vld [vmem:[#allocation7 + $0x3d4] sm:$0xf0] }
 0x245   :  { %v13324_v25 = vor.u32 %v16594_v3, %v13321_v4  ;;  %v16498_v41 = vld [vmem:[#allocation7 + $0xc5c] sm:$0xf]  ;;  %v16482_v3 = vld [vmem:[#allocation7 + $0xbd4] sm:$0xf0] }
 0x246   :  { %v12937_v42 = vld [vmem:[#allocation7 + $0xcd8] sm:$0xf0] }
 0x247   :  { %5163 = vmatpush.bf16.msrb.mxu0 %v11648_v14  ;;  %5176 = vmatpush.bf16.msrb.mxu1 %v12672_v15  ;;  %v12168_v14 = vor.u32 %v16322_v6, %v12167_v5  ;;  %v13192_v15 = vor.u32 %v16578_v12, %v13191_v11  ;;  %v12940_v53 = vor.u32 %v16498_v41, %v12937_v42  ;;  %v16210_v4 = vld [vmem:[#allocation7 + $0x35c] sm:$0xf]  ;;  %v11655_v6 = vld [vmem:[#allocation7 + $0x258] sm:$0xf] }
 0x248   :  { %5189 = vmatpush.bf16.msrb.mxu2 %v11652_v22  ;;  %5202 = vmatpush.bf16.msrb.mxu3 %v12676_v23  ;;  %v13196_v22 = vor.u32 %v16562_v58, %v13193_v59  ;;  %v13063_v23 = vld [vmem:[#allocation7 + $0xd58] sm:$0xf]  ;;  %v16178_v60 = vld [vmem:[#allocation7 + $0x25c] sm:$0xf] }
 0x249   :  { %v12679_v12 = vld [vmem:[#allocation7 + $0xa58] sm:$0xf] }
 0x24a   :  { %v12423_v41 = vld [vmem:[#allocation7 + $0x858] sm:$0xf] }
 0x24b   :  { %5164 = vmatpush.bf16.msrb.mxu0 %v11520_v31  ;;  %5177 = vmatpush.bf16.msrb.mxu1 %v12544_v34  ;;  %v13064_v31 = vor.u32 %v16546_v24, %v13063_v23  ;;  %v11911_v34 = vld [vmem:[#allocation7 + $0x458] sm:$0xf]  ;;  %v12680_v24 = vor.u32 %v16450_v13, %v12679_v12  ;;  %v12175_v13 = vld [vmem:[#allocation7 + $0x660] sm:$0xf] }
 0x24c   :  { %5190 = vmatpush.bf16.msrb.mxu2 %v11524_v39  ;;  %5203 = vmatpush.bf16.msrb.mxu3 %v12548_v40  ;;  %v12935_v39 = vld [vmem:[#allocation7 + $0xc58] sm:$0xf]  ;;  %v11912_v49 = vor.u32 %v16258_v35, %v11911_v34  ;;  %v16146_v34 = vld [vmem:[#allocation7 + $0x15c] sm:$0xf] }
 0x24d   :  { %v16514_v40 = vld [vmem:[#allocation7 + $0xcd4] sm:$0xf0]  ;;  %v11529_v35 = vld [vmem:[#allocation7 + $0x1d8] sm:$0xf0] }
 0x24e   :  { %v12936_v50 = vor.u32 %v16514_v40, %v12935_v39  ;;  %v11399_v39 = vld [vmem:[#allocation7 + $0x58] sm:$0xf]  ;;  %v11528_v40 = vor.u32 %v16162_v28, %v11527_v27  ;;  %v12047_v27 = vld [vmem:[#allocation7 + $0x560] sm:$0xf] }
 0x24f   :  { %5165 = vmatpush.bf16.msrb.mxu0 %v11392_v51  ;;  %5178 = vmatpush.bf16.msrb.mxu1 %v12416_v52  ;;  %v4959_v43 = vpop.f32.mrf.mxu0  ;;  %v4972_v44 = vpop.f32.mrf.mxu1  ;;  %v12807_v51 = vld [vmem:[#allocation7 + $0xb58] sm:$0xf]  ;;  %v11916_v52 = vor.u32 %v16242_v17, %v11913_v18  ;;  %v16291_v28 = vld [vmem:[#allocation7 + $0x5dc] sm:$0xf0] }
 0x250   :  { %5191 = vmatpush.bf16.msrb.mxu2 %v11396_v57  ;;  %5204 = vmatpush.bf16.msrb.mxu3 %v12420_v63  ;;  %v4973_v47 = vadd.f32 %v4972_v44, %v4959_v43  ;;  %v11785_v57 = vld [vmem:[#allocation7 + $0x3d8] sm:$0xf0]  ;;  %v12808_v5 = vor.u32 %v16482_v3, %v12807_v51  ;;  %v16130_v18 = vld [vmem:[#allocation7 + $0xd4] sm:$0xf0]  ;;  %v11532_v43 = vor.u32 %v16146_v34, %v11529_v35  ;;  %v13327_v3 = vld [vmem:[#allocation7 + $0xf60] sm:$0xf] }
 0x251   :  { %v16466_v63 = vld [vmem:[#allocation7 + $0xb5c] sm:$0xf]  ;;  %v16386_v42 = vld [vmem:[#allocation7 + $0x8d4] sm:$0xf0]  ;;  %v16275_v34 = vld [vmem:[#allocation7 + $0x564] sm:$0xf] }
 0x252   :  { %5166 = vmatmul.bf16.vlgmr.msrb.gmra.mxu0 %v17631_v9  ;;  %5179 = vmatmul.bf16.vlgmr.msrb.gmra.mxu1 %v17633_v10  ;;  %5482 = vst [vmem:[%s18807_s12 + $0x60] sm:$0xff] %v4973_v47  ;;  %v16114_v47 = vld [vmem:[#allocation7 + $0x5c] sm:$0xf]  ;;  %v12049_v35 = vld [vmem:[#allocation7 + $0x5e0] sm:$0xf0] }
 0x253   :  { %5210 = vmatpush.bf16.msra.mxu0 %v12296_v0  ;;  %5223 = vmatpush.bf16.msra.mxu1 %v13320_v1  ;;  %v12809_v0 = vld [vmem:[#allocation7 + $0xbd8] sm:$0xf0]  ;;  %v11784_v1 = vor.u32 %v16226_v46, %v11783_v45 }
 0x254   :  { %5236 = vmatpush.bf16.msra.mxu2 %v12300_v8  ;;  %5249 = vmatpush.bf16.msra.mxu3 %v13324_v25  ;;  %v16194_v8 = vld [vmem:[#allocation7 + $0x2d4] sm:$0xf0]  ;;  %v11788_v25 = vor.u32 %v16210_v4, %v11785_v57  ;;  %v12812_v11 = vor.u32 %v16466_v63, %v12809_v0  ;;  %v12425_v51 = vld [vmem:[#allocation7 + $0x8d8] sm:$0xf0]  ;;  %v16611_v4 = vld [vmem:[#allocation7 + $0xfdc] sm:$0xf0]  ;;  %v11400_v63 = vor.u32 %v16130_v18, %v11399_v39 }
 0x255   :  { %5192 = vmatmul.bf16.vlgmr.msrb.gmra.mxu2 %v17631_v9  ;;  %5205 = vmatmul.bf16.vlgmr.msrb.gmra.mxu3 %v17633_v10  ;;  %v11656_v23 = vor.u32 %v16194_v8, %v11655_v6  ;;  %v16339_v57 = vld [vmem:[#allocation7 + $0x764] sm:$0xf]  ;;  %v12424_v0 = vor.u32 %v16386_v42, %v12423_v41  ;;  %v13328_v12 = vor.u32 %v16611_v4, %v13327_v3  ;;  %v16259_v18 = vld [vmem:[#allocation7 + $0x4dc] sm:$0xf0] }
 0x256   :  { %v13329_v6 = vld [vmem:[#allocation7 + $0xfe0] sm:$0xf0]  ;;  %v12048_v39 = vor.u32 %v16291_v28, %v12047_v27  ;;  %v12052_v41 = vor.u32 %v16275_v34, %v12049_v35  ;;  %v11791_v4 = vld [vmem:[#allocation7 + $0x360] sm:$0xf] }
 0x257   :  { %5211 = vmatpush.bf16.msra.mxu0 %v12168_v14  ;;  %5224 = vmatpush.bf16.msra.mxu1 %v13192_v15  ;;  %v11657_v14 = vld [vmem:[#allocation7 + $0x2d8] sm:$0xf0]  ;;  %v12689_v27 = vld [vmem:[#allocation7 + $0xae0] sm:$0xf0]  ;;  %v11535_v34 = vld [vmem:[#allocation7 + $0x160] sm:$0xf] }
 0x258   :  { %5237 = vmatpush.bf16.msra.mxu2 %v12172_v21  ;;  %5250 = vmatpush.bf16.msra.mxu3 %v13196_v22  ;;  %v4985_v58 = vpop.f32.mrf.mxu2  ;;  %v4998_v59 = vpop.f32.mrf.mxu3  ;;  %v16434_v15 = vld [vmem:[#allocation7 + $0xa5c] sm:$0xf]  ;;  %v11660_v33 = vor.u32 %v16178_v60, %v11657_v14  ;;  %v16323_v60 = vld [vmem:[#allocation7 + $0x6dc] sm:$0xf0] }
 0x259   :  { %v4999_v20 = vadd.f32 %v4998_v59, %v4985_v58  ;;  %v4961_v21 = vpop.f32.mrf.mxu0  ;;  %v4974_v22 = vpop.f32.mrf.mxu1  ;;  %v13199_v14 = vld [vmem:[#allocation7 + $0xe60] sm:$0xf] }
 0x25a   :  { %v16563_v21 = vld [vmem:[#allocation7 + $0xe64] sm:$0xf]  ;;  %v16163_v35 = vld [vmem:[#allocation7 + $0x1dc] sm:$0xf0] }
 0x25b   :  { %5212 = vmatpush.bf16.msra.mxu0 %v12040_v30  ;;  %5225 = vmatpush.bf16.msra.mxu1 %v13064_v31  ;;  %5483 = vst [vmem:[%s18807_s12 + $0x68] sm:$0xff] %v4999_v20  ;;  %v12684_v30 = vor.u32 %v16434_v15, %v12681_v16  ;;  %v16418_v31 = vld [vmem:[#allocation7 + $0x9d4] sm:$0xf0]  ;;  %v16579_v15 = vld [vmem:[#allocation7 + $0xedc] sm:$0xf0] }
 0x25c   :  { %5238 = vmatpush.bf16.msra.mxu2 %v12044_v36  ;;  %5251 = vmatpush.bf16.msra.mxu3 %v13068_v37  ;;  %v16402_v36 = vld [vmem:[#allocation7 + $0x95c] sm:$0xf]  ;;  %v12552_v17 = vor.u32 %v16418_v31, %v12551_v29  ;;  %v16307_v16 = vld [vmem:[#allocation7 + $0x664] sm:$0xf]  ;;  %v16547_v31 = vld [vmem:[#allocation7 + $0xddc] sm:$0xf0] }
 0x25d   :  { %v12553_v37 = vld [vmem:[#allocation7 + $0x9d8] sm:$0xf0]  ;;  %v12177_v20 = vld [vmem:[#allocation7 + $0x6e0] sm:$0xf0] }
 0x25e   :  { %v12556_v44 = vor.u32 %v16402_v36, %v12553_v37  ;;  %v13201_v22 = vld [vmem:[#allocation7 + $0xee0] sm:$0xf0]  ;;  %v12180_v29 = vor.u32 %v16307_v16, %v12177_v20  ;;  %v16451_v16 = vld [vmem:[#allocation7 + $0xadc] sm:$0xf0] }
 0x25f   :  { %5213 = vmatpush.bf16.msra.mxu0 %v11912_v49  ;;  %5226 = vmatpush.bf16.msra.mxu1 %v12936_v50  ;;  %v11401_v49 = vld [vmem:[#allocation7 + $0xd8] sm:$0xf0]  ;;  %v16531_v36 = vld [vmem:[#allocation7 + $0xd64] sm:$0xf] }
 0x260   :  { %5239 = vmatpush.bf16.msra.mxu2 %v11916_v52  ;;  %5252 = vmatpush.bf16.msra.mxu3 %v12940_v53  ;;  %v16370_v50 = vld [vmem:[#allocation7 + $0x85c] sm:$0xf]  ;;  %v4987_v45 = vpop.f32.mrf.mxu2  ;;  %v5000_v46 = vpop.f32.mrf.mxu3  ;;  %v12303_v52 = vld [vmem:[#allocation7 + $0x760] sm:$0xf]  ;;  %v11404_v8 = vor.u32 %v16114_v47, %v11401_v49  ;;  %v13073_v37 = vld [vmem:[#allocation7 + $0xde0] sm:$0xf0] }
 0x261   :  { %v16355_v53 = vld [vmem:[#allocation7 + $0x7dc] sm:$0xf0]  ;;  %v13076_v42 = vor.u32 %v16531_v36, %v13073_v37  ;;  %v16243_v47 = vld [vmem:[#allocation7 + $0x464] sm:$0xf] }
 0x262   :  { %v11921_v49 = vld [vmem:[#allocation7 + $0x4e0] sm:$0xf0]  ;;  %v12559_v36 = vld [vmem:[#allocation7 + $0x960] sm:$0xf] }
 0x263   :  { %5214 = vmatpush.bf16.msra.mxu0 %v11784_v1  ;;  %5227 = vmatpush.bf16.msra.mxu1 %v12808_v5  ;;  %v12305_v1 = vld [vmem:[#allocation7 + $0x7e0] sm:$0xf0] }
 0x264   :  { %5240 = vmatpush.bf16.msra.mxu2 %v11788_v25  ;;  %5253 = vmatpush.bf16.msra.mxu3 %v12812_v11  ;;  %v16595_v5 = vld [vmem:[#allocation7 + $0xf64] sm:$0xf]  ;;  %v12428_v25 = vor.u32 %v16370_v50, %v12425_v51  ;;  %v12304_v11 = vor.u32 %v16355_v53, %v12303_v52  ;;  %v12308_v58 = vor.u32 %v16339_v57, %v12305_v1  ;;  %v16227_v57 = vld [vmem:[#allocation7 + $0x3dc] sm:$0xf0] }
 0x265   :  { %v13332_v59 = vor.u32 %v16595_v5, %v13329_v6  ;;  %v16499_v50 = vld [vmem:[#allocation7 + $0xc64] sm:$0xf]  ;;  %v16483_v5 = vld [vmem:[#allocation7 + $0xbdc] sm:$0xf0] }
 0x266   :  { %v12945_v45 = vld [vmem:[#allocation7 + $0xce0] sm:$0xf0] }
 0x267   :  { %5215 = vmatpush.bf16.msra.mxu0 %v11656_v23  ;;  %5228 = vmatpush.bf16.msra.mxu1 %v12680_v24  ;;  %v12176_v23 = vor.u32 %v16323_v60, %v12175_v13  ;;  %v13200_v24 = vor.u32 %v16579_v15, %v13199_v14  ;;  %v12948_v1 = vor.u32 %v16499_v50, %v12945_v45  ;;  %v16211_v6 = vld [vmem:[#allocation7 + $0x364] sm:$0xf]  ;;  %v11663_v60 = vld [vmem:[#allocation7 + $0x260] sm:$0xf] }
 0x268   :  { %5241 = vmatpush.bf16.msra.mxu2 %v11660_v33  ;;  %5254 = vmatpush.bf16.msra.mxu3 %v12684_v30  ;;  %v13204_v33 = vor.u32 %v16563_v21, %v13201_v22  ;;  %v13071_v30 = vld [vmem:[#allocation7 + $0xd60] sm:$0xf]  ;;  %v16179_v20 = vld [vmem:[#allocation7 + $0x264] sm:$0xf] }
 0x269   :  { %v12687_v15 = vld [vmem:[#allocation7 + $0xa60] sm:$0xf] }
 0x26a   :  { %v12431_v50 = vld [vmem:[#allocation7 + $0x860] sm:$0xf] }
 0x26b   :  { %5216 = vmatpush.bf16.msra.mxu0 %v11528_v40  ;;  %5229 = vmatpush.bf16.msra.mxu1 %v12552_v17  ;;  %v13072_v40 = vor.u32 %v16547_v31, %v13071_v30  ;;  %v11919_v17 = vld [vmem:[#allocation7 + $0x460] sm:$0xf]  ;;  %v12688_v31 = vor.u32 %v16451_v16, %v12687_v15  ;;  %v12183_v16 = vld [vmem:[#allocation7 + $0x668] sm:$0xf] }
 0x26c   :  { %5242 = vmatpush.bf16.msra.mxu2 %v11532_v43  ;;  %5255 = vmatpush.bf16.msra.mxu3 %v12556_v44  ;;  %v12943_v43 = vld [vmem:[#allocation7 + $0xc60] sm:$0xf]  ;;  %v11920_v53 = vor.u32 %v16259_v18, %v11919_v17  ;;  %v16147_v17 = vld [vmem:[#allocation7 + $0x164] sm:$0xf] }
 0x26d   :  { %v16515_v44 = vld [vmem:[#allocation7 + $0xcdc] sm:$0xf0]  ;;  %v11537_v18 = vld [vmem:[#allocation7 + $0x1e0] sm:$0xf0] }
 0x26e   :  { %v12944_v3 = vor.u32 %v16515_v44, %v12943_v43  ;;  %v11407_v43 = vld [vmem:[#allocation7 + $0x60] sm:$0xf]  ;;  %v11536_v44 = vor.u32 %v16163_v35, %v11535_v34  ;;  %v12055_v34 = vld [vmem:[#allocation7 + $0x568] sm:$0xf] }
 0x26f   :  { %5217 = vmatpush.bf16.msra.mxu0 %v11400_v63  ;;  %5230 = vmatpush.bf16.msra.mxu1 %v12424_v0  ;;  %v5011_v46 = vpop.f32.mrf.mxu0  ;;  %v5024_v51 = vpop.f32.mrf.mxu1  ;;  %v12815_v63 = vld [vmem:[#allocation7 + $0xb60] sm:$0xf]  ;;  %v11924_v0 = vor.u32 %v16243_v47, %v11921_v49  ;;  %v16292_v35 = vld [vmem:[#allocation7 + $0x5e4] sm:$0xf0] }
 0x270   :  { %5243 = vmatpush.bf16.msra.mxu2 %v11404_v8  ;;  %5256 = vmatpush.bf16.msra.mxu3 %v12428_v25  ;;  %v5025_v52 = vadd.f32 %v5024_v51, %v5011_v46  ;;  %v11793_v8 = vld [vmem:[#allocation7 + $0x3e0] sm:$0xf0]  ;;  %v12816_v13 = vor.u32 %v16483_v5, %v12815_v63  ;;  %v16131_v49 = vld [vmem:[#allocation7 + $0xdc] sm:$0xf0]  ;;  %v11540_v46 = vor.u32 %v16147_v17, %v11537_v18  ;;  %v13335_v5 = vld [vmem:[#allocation7 + $0xf68] sm:$0xf] }
 0x271   :  { %v16467_v25 = vld [vmem:[#allocation7 + $0xb64] sm:$0xf]  ;;  %v16387_v45 = vld [vmem:[#allocation7 + $0x8dc] sm:$0xf0]  ;;  %v16276_v17 = vld [vmem:[#allocation7 + $0x56c] sm:$0xf] }
 0x272   :  { %5218 = vmatmul.bf16.vlgmr.msra.gmra.mxu0 %v17631_v9  ;;  %5231 = vmatmul.bf16.vlgmr.msra.gmra.mxu1 %v17633_v10  ;;  %5484 = vst [vmem:[%s18807_s12 + $0x70] sm:$0xff] %v5025_v52  ;;  %v16115_v52 = vld [vmem:[#allocation7 + $0x64] sm:$0xf]  ;;  %v12057_v18 = vld [vmem:[#allocation7 + $0x5e8] sm:$0xf0] }
 0x273   :  { %5262 = vmatpush.bf16.msrb.mxu0 %v12304_v11  ;;  %5275 = vmatpush.bf16.msrb.mxu1 %v13328_v12  ;;  %v12817_v11 = vld [vmem:[#allocation7 + $0xbe0] sm:$0xf0]  ;;  %v11792_v12 = vor.u32 %v16227_v57, %v11791_v4 }
 0x274   :  { %5288 = vmatpush.bf16.msrb.mxu2 %v12308_v58  ;;  %5301 = vmatpush.bf16.msrb.mxu3 %v13332_v59  ;;  %v16195_v58 = vld [vmem:[#allocation7 + $0x2dc] sm:$0xf0]  ;;  %v11796_v59 = vor.u32 %v16211_v6, %v11793_v8  ;;  %v12820_v14 = vor.u32 %v16467_v25, %v12817_v11  ;;  %v12433_v63 = vld [vmem:[#allocation7 + $0x8e0] sm:$0xf0]  ;;  %v16612_v6 = vld [vmem:[#allocation7 + $0xfe4] sm:$0xf0]  ;;  %v11408_v25 = vor.u32 %v16131_v49, %v11407_v43 }
 0x275   :  { %5244 = vmatmul.bf16.vlgmr.msra.gmra.mxu2 %v17631_v9  ;;  %5257 = vmatmul.bf16.vlgmr.msra.gmra.mxu3 %v17633_v10  ;;  %v11664_v30 = vor.u32 %v16195_v58, %v11663_v60  ;;  %v16340_v8 = vld [vmem:[#allocation7 + $0x76c] sm:$0xf]  ;;  %v12432_v11 = vor.u32 %v16387_v45, %v12431_v50  ;;  %v13336_v15 = vor.u32 %v16612_v6, %v13335_v5  ;;  %v16260_v49 = vld [vmem:[#allocation7 + $0x4e4] sm:$0xf0] }
 0x276   :  { %v13337_v60 = vld [vmem:[#allocation7 + $0xfe8] sm:$0xf0]  ;;  %v12056_v43 = vor.u32 %v16292_v35, %v12055_v34  ;;  %v12060_v50 = vor.u32 %v16276_v17, %v12057_v18 }
 0x277   :  { %5263 = vmatpush.bf16.msrb.mxu0 %v12176_v23  ;;  %5276 = vmatpush.bf16.msrb.mxu1 %v13200_v24  ;;  %v11665_v23 = vld [vmem:[#allocation7 + $0x2e0] sm:$0xf0] }
 0x278   :  { %5289 = vmatpush.bf16.msrb.mxu2 %v12180_v29  ;;  %5302 = vmatpush.bf16.msrb.mxu3 %v13204_v33  ;;  %v5037_v21 = vpop.f32.mrf.mxu2  ;;  %v5050_v22 = vpop.f32.mrf.mxu3  ;;  %v16435_v24 = vld [vmem:[#allocation7 + $0xa64] sm:$0xf]  ;;  %v11668_v37 = vor.u32 %v16179_v20, %v11665_v23  ;;  %v16324_v20 = vld [vmem:[#allocation7 + $0x6e4] sm:$0xf0] }
 0x279   :  { %v5051_v28 = vadd.f32 %v5050_v22, %v5037_v21  ;;  %v5013_v29 = vpop.f32.mrf.mxu0  ;;  %v5026_v33 = vpop.f32.mrf.mxu1  ;;  %v13207_v23 = vld [vmem:[#allocation7 + $0xe68] sm:$0xf] }
 0x27a   :  { %v16564_v29 = vld [vmem:[#allocation7 + $0xe6c] sm:$0xf] }
 0x27b   :  { %5264 = vmatpush.bf16.msrb.mxu0 %v12048_v39  ;;  %5277 = vmatpush.bf16.msrb.mxu1 %v13072_v40  ;;  %5485 = vst [vmem:[%s18807_s12 + $0x78] sm:$0xff] %v5051_v28  ;;  %v12692_v39 = vor.u32 %v16435_v24, %v12689_v27  ;;  %v16419_v40 = vld [vmem:[#allocation7 + $0x9dc] sm:$0xf0]  ;;  %v16580_v24 = vld [vmem:[#allocation7 + $0xee4] sm:$0xf0] }
 0x27c   :  { %5290 = vmatpush.bf16.msrb.mxu2 %v12052_v41  ;;  %5303 = vmatpush.bf16.msrb.mxu3 %v13076_v42  ;;  %v16403_v41 = vld [vmem:[#allocation7 + $0x964] sm:$0xf]  ;;  %v12560_v47 = vor.u32 %v16419_v40, %v12559_v36  ;;  %v16308_v27 = vld [vmem:[#allocation7 + $0x66c] sm:$0xf]  ;;  %v16548_v40 = vld [vmem:[#allocation7 + $0xde4] sm:$0xf0] }
 0x27d   :  { %v12561_v42 = vld [vmem:[#allocation7 + $0x9e0] sm:$0xf0]  ;;  %v12185_v28 = vld [vmem:[#allocation7 + $0x6e8] sm:$0xf0] }
 0x27e   :  { %v12564_v51 = vor.u32 %v16403_v41, %v12561_v42  ;;  %v13209_v33 = vld [vmem:[#allocation7 + $0xee8] sm:$0xf0]  ;;  %v12188_v36 = vor.u32 %v16308_v27, %v12185_v28  ;;  %v16196_v27 = vld [vmem:[#allocation7 + $0x2e4] sm:$0xf0] }
 0x27f   :  { %5265 = vmatpush.bf16.msrb.mxu0 %v11920_v53  ;;  %5278 = vmatpush.bf16.msrb.mxu1 %v12944_v3  ;;  %v11409_v53 = vld [vmem:[#allocation7 + $0xe0] sm:$0xf0]  ;;  %v16532_v41 = vld [vmem:[#allocation7 + $0xd6c] sm:$0xf] }
 0x280   :  { %5291 = vmatpush.bf16.msrb.mxu2 %v11924_v0  ;;  %5304 = vmatpush.bf16.msrb.mxu3 %v12948_v1  ;;  %v16371_v3 = vld [vmem:[#allocation7 + $0x864] sm:$0xf]  ;;  %v5039_v4 = vpop.f32.mrf.mxu2  ;;  %v5052_v57 = vpop.f32.mrf.mxu3  ;;  %v12311_v0 = vld [vmem:[#allocation7 + $0x768] sm:$0xf]  ;;  %v11412_v58 = vor.u32 %v16115_v52, %v11409_v53  ;;  %v13081_v42 = vld [vmem:[#allocation7 + $0xde8] sm:$0xf0] }
 0x281   :  { %v16356_v1 = vld [vmem:[#allocation7 + $0x7e4] sm:$0xf0]  ;;  %v13084_v45 = vor.u32 %v16532_v41, %v13081_v42  ;;  %v16244_v52 = vld [vmem:[#allocation7 + $0x46c] sm:$0xf] }
 0x282   :  { %v11929_v53 = vld [vmem:[#allocation7 + $0x4e8] sm:$0xf0] }
 0x283   :  { %5266 = vmatpush.bf16.msrb.mxu0 %v11792_v12  ;;  %5279 = vmatpush.bf16.msrb.mxu1 %v12816_v13  ;;  %v12313_v12 = vld [vmem:[#allocation7 + $0x7e8] sm:$0xf0] }
 0x284   :  { %5292 = vmatpush.bf16.msrb.mxu2 %v11796_v59  ;;  %5305 = vmatpush.bf16.msrb.mxu3 %v12820_v14  ;;  %v16596_v13 = vld [vmem:[#allocation7 + $0xf6c] sm:$0xf]  ;;  %v12436_v59 = vor.u32 %v16371_v3, %v12433_v63  ;;  %v12312_v14 = vor.u32 %v16356_v1, %v12311_v0  ;;  %v12316_v21 = vor.u32 %v16340_v8, %v12313_v12  ;;  %v1280_v0 = vld [vmem:[%s18803_s8] sm:$0xff]  ;;  %v11799_v8 = vld [vmem:[#allocation7 + $0x368] sm:$0xf] }
 0x285   :  { %v13340_v22 = vor.u32 %v16596_v13, %v13337_v60  ;;  %v16500_v3 = vld [vmem:[#allocation7 + $0xc6c] sm:$0xf]  ;;  %v11932_v12 = vor.u32 %v16244_v52, %v11929_v53  ;;  %v16484_v60 = vld [vmem:[#allocation7 + $0xbe4] sm:$0xf0] }
 0x286   :  { %v12953_v4 = vld [vmem:[#allocation7 + $0xce8] sm:$0xf0] }
 0x287   :  { %5267 = vmatpush.bf16.msrb.mxu0 %v11664_v30  ;;  %5280 = vmatpush.bf16.msrb.mxu1 %v12688_v31  ;;  %v12184_v30 = vor.u32 %v16324_v20, %v12183_v16  ;;  %v13208_v31 = vor.u32 %v16580_v24, %v13207_v23  ;;  %v12956_v13 = vor.u32 %v16500_v3, %v12953_v4  ;;  %v12825_v16 = vld [vmem:[#allocation7 + $0xbe8] sm:$0xf0]  ;;  %v11671_v24 = vld [vmem:[#allocation7 + $0x268] sm:$0xf] }
 0x288   :  { %5293 = vmatpush.bf16.msrb.mxu2 %v11668_v37  ;;  %5306 = vmatpush.bf16.msrb.mxu3 %v12692_v39  ;;  %v13212_v37 = vor.u32 %v16564_v29, %v13209_v33  ;;  %v13079_v39 = vld [vmem:[#allocation7 + $0xd68] sm:$0xf]  ;;  %v11672_v41 = vor.u32 %v16196_v27, %v11671_v24  ;;  %v16404_v52 = vld [vmem:[#allocation7 + $0x96c] sm:$0xf]  ;;  %v12321_v24 = vld [vmem:[#allocation7 + $0x7f0] sm:$0xf0] }
 0x289   :  { %v12695_v33 = vld [vmem:[#allocation7 + $0xa68] sm:$0xf]  ;;  %v12569_v53 = vld [vmem:[#allocation7 + $0x9e8] sm:$0xf0]  ;;  %v16597_v27 = vld [vmem:[#allocation7 + $0xf74] sm:$0xf] }
 0x28a   :  { %v11415_v3 = vld [vmem:[#allocation7 + $0x68] sm:$0xf] }
 0x28b   :  { %5268 = vmatpush.bf16.msrb.mxu0 %v11536_v44  ;;  %5281 = vmatpush.bf16.msrb.mxu1 %v12560_v47  ;;  %v13080_v44 = vor.u32 %v16548_v40, %v13079_v39  ;;  %v11927_v47 = vld [vmem:[#allocation7 + $0x468] sm:$0xf]  ;;  %v12697_v39 = vld [vmem:[#allocation7 + $0xae8] sm:$0xf0] }
 0x28c   :  { %5294 = vmatpush.bf16.msrb.mxu2 %v11540_v46  ;;  %5307 = vmatpush.bf16.msrb.mxu3 %v12564_v51  ;;  %v12951_v46 = vld [vmem:[#allocation7 + $0xc68] sm:$0xf]  ;;  %v11928_v5 = vor.u32 %v16260_v49, %v11927_v47 }
 0x28d   :  { %v16516_v51 = vld [vmem:[#allocation7 + $0xce4] sm:$0xf0] }
 0x28e   :  { %v12952_v6 = vor.u32 %v16516_v51, %v12951_v46  ;;  %v12567_v47 = vld [vmem:[#allocation7 + $0x968] sm:$0xf]  ;;  %v16148_v46 = vld [vmem:[#allocation7 + $0x16c] sm:$0xf] }
 0x28f   :  { %5269 = vmatpush.bf16.msrb.mxu0 %v11408_v25  ;;  %5282 = vmatpush.bf16.msrb.mxu1 %v12432_v11  ;;  %v5063_v57 = vpop.f32.mrf.mxu0  ;;  %v5076_v63 = vpop.f32.mrf.mxu1  ;;  %v16228_v25 = vld [vmem:[#allocation7 + $0x3e4] sm:$0xf0]  ;;  %v11545_v51 = vld [vmem:[#allocation7 + $0x1e8] sm:$0xf0] }
 0x290   :  { %5295 = vmatpush.bf16.msrb.mxu2 %v11412_v58  ;;  %5308 = vmatpush.bf16.msrb.mxu3 %v12436_v59  ;;  %v5077_v1 = vadd.f32 %v5076_v63, %v5063_v57  ;;  %v12823_v11 = vld [vmem:[#allocation7 + $0xb68] sm:$0xf]  ;;  %v16212_v58 = vld [vmem:[#allocation7 + $0x36c] sm:$0xf] }
 0x291   :  { %v11801_v59 = vld [vmem:[#allocation7 + $0x3e8] sm:$0xf0]  ;;  %v16132_v4 = vld [vmem:[#allocation7 + $0xe4] sm:$0xf0] }
 0x292   :  { %5270 = vmatmul.bf16.vlgmr.msrb.gmra.mxu0 %v17631_v9  ;;  %5283 = vmatmul.bf16.vlgmr.msrb.gmra.mxu1 %v17633_v10  ;;  %5486 = vst [vmem:[%s18807_s12 + $0x80] sm:$0xff] %v5077_v1  ;;  %v11804_v28 = vor.u32 %v16212_v58, %v11801_v59  ;;  %v12439_v1 = vld [vmem:[#allocation7 + $0x868] sm:$0xf]  ;;  %v12441_v59 = vld [vmem:[#allocation7 + $0x8e8] sm:$0xf0] }
 0x293   :  { %5314 = vmatpush.bf16.msra.mxu0 %v12312_v14  ;;  %5327 = vmatpush.bf16.msra.mxu1 %v13336_v15  ;;  %v1279_v14 = vpop.xlane.xlu2 %1278  ;;  %v16468_v15 = vld [vmem:[#allocation7 + $0xb6c] sm:$0xf] }
 0x294   :  { %5340 = vmatpush.bf16.msra.mxu2 %v12316_v21  ;;  %5353 = vmatpush.bf16.msra.mxu3 %v13340_v22  ;;  %v1281_v20 = vadd.f32 %v1280_v0, %v1279_v14  ;;  %v11800_v21 = vor.u32 %v16228_v25, %v11799_v8  ;;  %v12824_v22 = vor.u32 %v16484_v60, %v12823_v11  ;;  %v12319_v14 = vld [vmem:[#allocation7 + $0x770] sm:$0xf] }
 0x295   :  { %5296 = vmatmul.bf16.vlgmr.msrb.gmra.mxu2 %v17631_v9  ;;  %5309 = vmatmul.bf16.vlgmr.msrb.gmra.mxu3 %v17633_v10  ;;  %v12828_v29 = vor.u32 %v16468_v15, %v12825_v16  ;;  %v11548_v25 = vor.u32 %v16148_v46, %v11545_v51  ;;  %v12572_v11 = vor.u32 %v16404_v52, %v12569_v53  ;;  %v16357_v15 = vld [vmem:[#allocation7 + $0x7ec] sm:$0xf0] }
 0x296   :  { %v11300_v23 = vmul.f32 -1.442695, %v1281_v20  ;;  %v13343_v16 = vld [vmem:[#allocation7 + $0xf70] sm:$0xf] }
 0x297   :  { %5315 = vmatpush.bf16.msra.mxu0 %v12184_v30  ;;  %5328 = vmatpush.bf16.msra.mxu1 %v13208_v31  ;;  %v16452_v30 = vld [vmem:[#allocation7 + $0xae4] sm:$0xf0]  ;;  %v16180_v31 = vld [vmem:[#allocation7 + $0x26c] sm:$0xf]  ;;  %v5065_v17 = vpop.f32.mrf.mxu0  ;;  %v5078_v18 = vpop.f32.mrf.mxu1  ;;  %v16613_v20 = vld [vmem:[#allocation7 + $0xfec] sm:$0xf0] }
 0x298   :  { %5341 = vmatpush.bf16.msra.mxu2 %v12188_v36  ;;  %5354 = vmatpush.bf16.msra.mxu3 %v13212_v37  ;;  %v5089_v34 = vpop.f32.mrf.mxu2  ;;  %v5102_v35 = vpop.f32.mrf.mxu3  ;;  %17269 = vpow2.f32 %v11300_v23  ;;  %v11673_v36 = vld [vmem:[#allocation7 + $0x2e8] sm:$0xf0]  ;;  %v12696_v42 = vor.u32 %v16452_v30, %v12695_v33  ;;  %v12320_v30 = vor.u32 %v16357_v15, %v12319_v14  ;;  %v16309_v17 = vld [vmem:[#allocation7 + $0x674] sm:$0xf]  ;;  %v16549_v53 = vld [vmem:[#allocation7 + $0xdec] sm:$0xf0] }
 0x299   :  { %v16436_v37 = vld [vmem:[#allocation7 + $0xa6c] sm:$0xf]  ;;  %v5103_v40 = vadd.f32 %v5102_v35, %v5089_v34  ;;  %v11676_v49 = vor.u32 %v16180_v31, %v11673_v36  ;;  %v13344_v31 = vor.u32 %v16613_v20, %v13343_v16  ;;  %v12191_v34 = vld [vmem:[#allocation7 + $0x670] sm:$0xf]  ;;  %v12193_v18 = vld [vmem:[#allocation7 + $0x6f0] sm:$0xf0] }
 0x29a   :  { %v16325_v35 = vld [vmem:[#allocation7 + $0x6ec] sm:$0xf0]  ;;  %v12196_v51 = vor.u32 %v16309_v17, %v12193_v18  ;;  %v16245_v15 = vld [vmem:[#allocation7 + $0x474] sm:$0xf] }
 0x29b   :  { %5316 = vmatpush.bf16.msra.mxu0 %v12056_v43  ;;  %5329 = vmatpush.bf16.msra.mxu1 %v13080_v44  ;;  %v11543_v43 = vld [vmem:[#allocation7 + $0x168] sm:$0xf]  ;;  %5487 = vst [vmem:[%s18807_s12 + $0x88] sm:$0xff] %v5103_v40  ;;  %v16581_v40 = vld [vmem:[#allocation7 + $0xeec] sm:$0xf0] }
 0x29c   :  { %5342 = vmatpush.bf16.msra.mxu2 %v12060_v50  ;;  %5355 = vmatpush.bf16.msra.mxu3 %v13084_v45  ;;  %v16164_v44 = vld [vmem:[#allocation7 + $0x1e4] sm:$0xf0]  ;;  %v12700_v50 = vor.u32 %v16436_v37, %v12697_v39  ;;  %v13215_v39 = vld [vmem:[#allocation7 + $0xe70] sm:$0xf]  ;;  %v11937_v16 = vld [vmem:[#allocation7 + $0x4f0] sm:$0xf0] }
 0x29d   :  { %v16420_v45 = vld [vmem:[#allocation7 + $0x9e4] sm:$0xf0]  ;;  %v11544_v63 = vor.u32 %v16164_v44, %v11543_v43  ;;  %v12192_v44 = vor.u32 %v16325_v35, %v12191_v34  ;;  %v16517_v14 = vld [vmem:[#allocation7 + $0xcec] sm:$0xf0]  ;;  %v16501_v20 = vld [vmem:[#allocation7 + $0xc74] sm:$0xf] }
 0x29e   :  { %v17270_v57 = vpop.eup %17269  ;;  %v12568_v0 = vor.u32 %v16420_v45, %v12567_v47  ;;  %v13216_v47 = vor.u32 %v16581_v40, %v13215_v39  ;;  %v13087_v45 = vld [vmem:[#allocation7 + $0xd70] sm:$0xf]  ;;  %v16213_v40 = vld [vmem:[#allocation7 + $0x374] sm:$0xf] }
 0x29f   :  { %5317 = vmatpush.bf16.msra.mxu0 %v11928_v5  ;;  %5330 = vmatpush.bf16.msra.mxu1 %v12952_v6  ;;  %v16388_v5 = vld [vmem:[#allocation7 + $0x8e4] sm:$0xf0]  ;;  %v16116_v6 = vld [vmem:[#allocation7 + $0x6c] sm:$0xf]  ;;  %v17816_v8 = vadd.f32 1.0, %v17270_v57 }
 0x2a0   :  { %5343 = vmatpush.bf16.msra.mxu2 %v11932_v12  ;;  %5356 = vmatpush.bf16.msra.mxu3 %v12956_v13  ;;  %v11417_v12 = vld [vmem:[#allocation7 + $0xe8] sm:$0xf0]  ;;  %v5091_v60 = vpop.f32.mrf.mxu2  ;;  %v5104_v58 = vpop.f32.mrf.mxu3  ;;  %v12440_v23 = vor.u32 %v16388_v5, %v12439_v1  ;;  %v16533_v57 = vld [vmem:[#allocation7 + $0xd74] sm:$0xf]  ;;  %v16229_v34 = vld [vmem:[#allocation7 + $0x3ec] sm:$0xf0] }
 0x2a1   :  { %v16372_v13 = vld [vmem:[#allocation7 + $0x86c] sm:$0xf]  ;;  %17271 = vrcp.f32 %v17816_v8  ;;  %v1297_v5 = vand.u32 2147483648, %v17816_v8  ;;  %vm1291_vm4 = vweird.f32 %v17816_v8  ;;  %v12831_v35 = vld [vmem:[#allocation7 + $0xb70] sm:$0xf] }
 0x2a2   :  { %v12444_v33 = vor.u32 %v16372_v13, %v12441_v59  ;;  %v1295_v13 = vand.u32 2147483647, %v17816_v8  ;;  %v12959_v59 = vld [vmem:[#allocation7 + $0xc70] sm:$0xf]  ;;  %v11809_v17 = vld [vmem:[#allocation7 + $0x3f0] sm:$0xf0] }
 0x2a3   :  { %5318 = vmatpush.bf16.msra.mxu0 %v11800_v21  ;;  %5331 = vmatpush.bf16.msra.mxu1 %v12824_v22  ;;  %v16341_v21 = vld [vmem:[#allocation7 + $0x774] sm:$0xf]  ;;  %v11416_v22 = vor.u32 %v16132_v4, %v11415_v3  ;;  %v16485_v39 = vld [vmem:[#allocation7 + $0xbec] sm:$0xf0] }
 0x2a4   :  { %5344 = vmatpush.bf16.msra.mxu2 %v11804_v28  ;;  %5357 = vmatpush.bf16.msra.mxu3 %v12828_v29  ;;  %v13345_v28 = vld [vmem:[#allocation7 + $0xff0] sm:$0xf0]  ;;  %v11420_v29 = vor.u32 %v16116_v6, %v11417_v12  ;;  %v12324_v36 = vor.u32 %v16341_v21, %v12321_v24  ;;  %v13088_v6 = vor.u32 %v16549_v53, %v13087_v45  ;;  %vm1296_vm6 = vcmp.eq.f32.partialorder %v1295_v13, 8.507059e+37  ;;  %v12575_v13 = vld [vmem:[#allocation7 + $0x970] sm:$0xf] }
 0x2a5   :  { %v13348_v37 = vor.u32 %v16597_v27, %v13345_v28  ;;  %v16277_v3 = vld [vmem:[#allocation7 + $0x574] sm:$0xf]  ;;  %v11807_v28 = vld [vmem:[#allocation7 + $0x370] sm:$0xf] }
 0x2a6   :  { %v12065_v4 = vld [vmem:[#allocation7 + $0x5f0] sm:$0xf0] }
 0x2a7   :  { %5319 = vmatpush.bf16.msra.mxu0 %v11672_v41  ;;  %5332 = vmatpush.bf16.msra.mxu1 %v12696_v42  ;;  %v16565_v41 = vld [vmem:[#allocation7 + $0xe74] sm:$0xf]  ;;  %v17819_v43 = vpop.eup %17271  ;;  %v12068_v60 = vor.u32 %v16277_v3, %v12065_v4 }
 0x2a8   :  { %5345 = vmatpush.bf16.msra.mxu2 %v11676_v49  ;;  %5358 = vmatpush.bf16.msra.mxu3 %v12700_v50  ;;  %v13217_v42 = vld [vmem:[#allocation7 + $0xef0] sm:$0xf0]  ;;  %v12063_v49 = vld [vmem:[#allocation7 + $0x570] sm:$0xf]  ;;  %v1287_v46 = vmul.f32 %v17819_v43, %v17816_v8  ;;  %vm1292_vm3 = vweird.f32 %v17819_v43 }
 0x2a9   :  { %v16293_v50 = vld [vmem:[#allocation7 + $0x5ec] sm:$0xf0]  ;;  %v13220_v52 = vor.u32 %v16565_v41, %v13217_v42  ;;  %v12961_v21 = vld [vmem:[#allocation7 + $0xcf0] sm:$0xf0]  ;;  %vm17835_vm5 = vmor %vm1291_vm4, %vm1292_vm3 }
 0x2aa   :  { %v12064_v1 = vor.u32 %v16293_v50, %v12063_v49  ;;  %v16469_v41 = vld [vmem:[#allocation7 + $0xb74] sm:$0xf]  ;;  %v16453_v49 = vld [vmem:[#allocation7 + $0xaec] sm:$0xf0]  ;;  %v11812_v50 = vor.u32 %v16213_v40, %v11809_v17  ;;  %v13351_v40 = vld [vmem:[#allocation7 + $0xf78] sm:$0xf] }
 0x2ab   :  { %5320 = vmatpush.bf16.msra.mxu0 %v11544_v63  ;;  %5333 = vmatpush.bf16.msra.mxu1 %v12568_v0  ;;  %v13089_v63 = vld [vmem:[#allocation7 + $0xdf0] sm:$0xf0]  ;;  %v1288_v0 = vsub.f32 1.0, %v1287_v46  ;;  %v16614_v17 = vld [vmem:[#allocation7 + $0xff4] sm:$0xf0] }
 0x2ac   :  { %5346 = vmatpush.bf16.msra.mxu2 %v11548_v25  ;;  %5359 = vmatpush.bf16.msra.mxu3 %v12572_v11  ;;  %v11935_v25 = vld [vmem:[#allocation7 + $0x470] sm:$0xf]  ;;  %v13092_v58 = vor.u32 %v16533_v57, %v13089_v63  ;;  %v12833_v42 = vld [vmem:[#allocation7 + $0xbf0] sm:$0xf0] }
 0x2ad   :  { %v16261_v11 = vld [vmem:[#allocation7 + $0x4ec] sm:$0xf0]  ;;  %v1289_v12 = vmul.f32 %v17819_v43, %v1288_v0  ;;  %v12836_v45 = vor.u32 %v16469_v41, %v12833_v42  ;;  %v16181_v46 = vld [vmem:[#allocation7 + $0x274] sm:$0xf] }
 0x2ae   :  { %v11936_v27 = vor.u32 %v16261_v11, %v11935_v25  ;;  %v11681_v4 = vld [vmem:[#allocation7 + $0x2f0] sm:$0xf0]  ;;  %v11551_v11 = vld [vmem:[#allocation7 + $0x170] sm:$0xf] }
 0x2af   :  { %5321 = vmatpush.bf16.msra.mxu0 %v11416_v22  ;;  %5334 = vmatpush.bf16.msra.mxu1 %v12440_v23  ;;  %v1290_v22 = vadd.f32 %v17819_v43, %v1289_v12  ;;  %v5115_v23 = vpop.f32.mrf.mxu0  ;;  %v5128_v24 = vpop.f32.mrf.mxu1  ;;  %v16437_v57 = vld [vmem:[#allocation7 + $0xa74] sm:$0xf]  ;;  %v16165_v12 = vld [vmem:[#allocation7 + $0x1ec] sm:$0xf0] }
 0x2b0   :  { %5347 = vmatpush.bf16.msra.mxu2 %v11420_v29  ;;  %5360 = vmatpush.bf16.msra.mxu3 %v12444_v33  ;;  %v1298_v33 = vor.u32 1.1754944e-38, %v1297_v5  ;;  %v12705_v63 = vld [vmem:[#allocation7 + $0xaf0] sm:$0xf0] }
 0x2b1   :  { %v1294_v8 = vsel %vm17835_vm5, %v17819_v43, %v1290_v22  ;;  %v12832_v43 = vor.u32 %v16485_v39, %v12831_v35  ;;  %v11552_v22 = vor.u32 %v16165_v12, %v11551_v11  ;;  %v16358_v39 = vld [vmem:[#allocation7 + $0x7f4] sm:$0xf0] }
 0x2b2   :  { %5322 = vmatmul.bf16.vlgmr.msra.gmra.mxu0 %v17631_v9  ;;  %5335 = vmatmul.bf16.vlgmr.msra.gmra.mxu1 %v17633_v10  ;;  %v1299_v18 = vsel %vm1296_vm6, %v1298_v33, %v1294_v8  ;;  %v12071_v11 = vld [vmem:[#allocation7 + $0x578] sm:$0xf] }
 0x2b3   :  { %5366 = vmatpush.bf16.msrb.mxu0 %v12320_v30  ;;  %5379 = vmatpush.bf16.msrb.mxu1 %v13344_v31  ;;  %v5129_v30 = vadd.f32 %v5128_v24, %v5115_v23  ;;  %v12960_v31 = vor.u32 %v16517_v14, %v12959_v59  ;;  %v16421_v59 = vld [vmem:[#allocation7 + $0x9ec] sm:$0xf0]  ;;  %v16149_v14 = vld [vmem:[#allocation7 + $0x174] sm:$0xf]  ;;  %v16294_v12 = vld [vmem:[#allocation7 + $0x5f4] sm:$0xf0] }
 0x2b4   :  { %5392 = vmatpush.bf16.msrb.mxu2 %v12324_v36  ;;  %5405 = vmatpush.bf16.msrb.mxu3 %v13348_v37  ;;  %v11940_v36 = vor.u32 %v16245_v15, %v11937_v16  ;;  %v12964_v37 = vor.u32 %v16501_v20, %v12961_v21  ;;  %v11553_v15 = vld [vmem:[#allocation7 + $0x1f0] sm:$0xf0]  ;;  %v11423_v21 = vld [vmem:[#allocation7 + $0x70] sm:$0xf]  ;;  %v12576_v23 = vor.u32 %v16421_v59, %v12575_v13  ;;  %v16550_v59 = vld [vmem:[#allocation7 + $0xdf4] sm:$0xf0] }
 0x2b5   :  { %5348 = vmatmul.bf16.vlgmr.msra.gmra.mxu2 %v17631_v9  ;;  %5361 = vmatmul.bf16.vlgmr.msra.gmra.mxu3 %v17633_v10  ;;  %5488 = vst [vmem:[%s18807_s12 + $0x90] sm:$0xff] %v5129_v30  ;;  %v16405_v16 = vld [vmem:[#allocation7 + $0x974] sm:$0xf]  ;;  %v16133_v24 = vld [vmem:[#allocation7 + $0xec] sm:$0xf0]  ;;  %v11556_v29 = vor.u32 %v16149_v14, %v11553_v15 }
 0x2b6   :  { %1532 = vperm.xlu0 %17266, %v1299_v18   ;;  %v12577_v20 = vld [vmem:[#allocation7 + $0x9f0] sm:$0xf0]  ;;  %v16342_v18 = vld [vmem:[#allocation7 + $0x77c] sm:$0xf]  ;;  %v11424_v41 = vor.u32 %v16133_v24, %v11423_v21  ;;  %v12072_v21 = vor.u32 %v16294_v12, %v12071_v11  ;;  %v16262_v24 = vld [vmem:[#allocation7 + $0x4f4] sm:$0xf0] }
 0x2b7   :  { %5367 = vmatpush.bf16.msrb.mxu0 %v12192_v44  ;;  %5380 = vmatpush.bf16.msrb.mxu1 %v13216_v47  ;;  %v11808_v44 = vor.u32 %v16229_v34, %v11807_v28  ;;  %v12703_v47 = vld [vmem:[#allocation7 + $0xa70] sm:$0xf]  ;;  %v5130_v5 = vpop.f32.mrf.mxu1  ;;  %v12580_v33 = vor.u32 %v16405_v16, %v12577_v20  ;;  %v16117_v30 = vld [vmem:[#allocation7 + $0x74] sm:$0xf]  ;;  %v16278_v14 = vld [vmem:[#allocation7 + $0x57c] sm:$0xf] }
 0x2b8   :  { %5393 = vmatpush.bf16.msrb.mxu2 %v12196_v51  ;;  %5406 = vmatpush.bf16.msrb.mxu3 %v13220_v52  ;;  %v11679_v51 = vld [vmem:[#allocation7 + $0x270] sm:$0xf]  ;;  %v5141_v53 = vpop.f32.mrf.mxu2  ;;  %v5154_v3 = vpop.f32.mrf.mxu3  ;;  %v16373_v34 = vld [vmem:[#allocation7 + $0x874] sm:$0xf]  ;;  %v13225_v5 = vld [vmem:[#allocation7 + $0xef8] sm:$0xf0] }
 0x2b9   :  { %v16197_v52 = vld [vmem:[#allocation7 + $0x2ec] sm:$0xf0]  ;;  %v5155_v0 = vadd.f32 %v5154_v3, %v5141_v53  ;;  %v12073_v15 = vld [vmem:[#allocation7 + $0x5f8] sm:$0xf0] }
 0x2ba   :  { %v11680_v25 = vor.u32 %v16197_v52, %v11679_v51  ;;  %v16389_v28 = vld [vmem:[#allocation7 + $0x8ec] sm:$0xf0]  ;;  %v12199_v51 = vld [vmem:[#allocation7 + $0x678] sm:$0xf]  ;;  %v16534_v16 = vld [vmem:[#allocation7 + $0xd7c] sm:$0xf] }
 0x2bb   :  { %5368 = vmatpush.bf16.msrb.mxu0 %v12064_v1  ;;  %5381 = vmatpush.bf16.msrb.mxu1 %v13088_v6  ;;  %v5117_v1 = vpop.f32.mrf.mxu0  ;;  %v12704_v6 = vor.u32 %v16453_v49, %v12703_v47  ;;  %5489 = vst [vmem:[%s18807_s12 + $0x98] sm:$0xff] %v5155_v0  ;;  %v13353_v47 = vld [vmem:[#allocation7 + $0xff8] sm:$0xf0]  ;;  %v16326_v52 = vld [vmem:[#allocation7 + $0x6f4] sm:$0xf0] }
 0x2bc   :  { %5394 = vmatpush.bf16.msrb.mxu2 %v12068_v60  ;;  %5407 = vmatpush.bf16.msrb.mxu3 %v13092_v58  ;;  %v11684_v60 = vor.u32 %v16181_v46, %v11681_v4  ;;  %v12708_v58 = vor.u32 %v16437_v57, %v12705_v63  ;;  %v13352_v46 = vor.u32 %v16614_v17, %v13351_v40  ;;  %v13223_v4 = vld [vmem:[#allocation7 + $0xe78] sm:$0xf]  ;;  %v16310_v63 = vld [vmem:[#allocation7 + $0x67c] sm:$0xf] }
 0x2bd   :  { %v16582_v57 = vld [vmem:[#allocation7 + $0xef4] sm:$0xf0]  ;;  %v12201_v0 = vld [vmem:[#allocation7 + $0x6f8] sm:$0xf0] }
 0x2be   :  { %v16566_v1 = vld [vmem:[#allocation7 + $0xe7c] sm:$0xf]  ;;  %v12204_v13 = vor.u32 %v16310_v63, %v12201_v0  ;;  %v11815_v17 = vld [vmem:[#allocation7 + $0x378] sm:$0xf] }
 0x2bf   :  { %5369 = vmatpush.bf16.msrb.mxu0 %v11936_v27  ;;  %5382 = vmatpush.bf16.msrb.mxu1 %v12960_v31  ;;  %v12447_v27 = vld [vmem:[#allocation7 + $0x870] sm:$0xf]  ;;  %v11425_v31 = vld [vmem:[#allocation7 + $0xf0] sm:$0xf0]  ;;  %v13097_v20 = vld [vmem:[#allocation7 + $0xdf8] sm:$0xf0] }
 0x2c0   :  { %5395 = vmatpush.bf16.msrb.mxu2 %v11940_v36  ;;  %5408 = vmatpush.bf16.msrb.mxu3 %v12964_v37  ;;  %v5143_v35 = vpop.f32.mrf.mxu2  ;;  %v5156_v8 = vpop.f32.mrf.mxu3  ;;  %v12449_v36 = vld [vmem:[#allocation7 + $0x8f0] sm:$0xf0]  ;;  %v12327_v37 = vld [vmem:[#allocation7 + $0x778] sm:$0xf]  ;;  %v12448_v42 = vor.u32 %v16389_v28, %v12447_v27  ;;  %v11428_v49 = vor.u32 %v16117_v30, %v11425_v31  ;;  %v12076_v27 = vor.u32 %v16278_v14, %v12073_v15  ;;  %v16246_v30 = vld [vmem:[#allocation7 + $0x47c] sm:$0xf] }
 0x2c1   :  { %v13100_v28 = vor.u32 %v16534_v16, %v13097_v20  ;;  %v11945_v31 = vld [vmem:[#allocation7 + $0x4f8] sm:$0xf0]  ;;  %v16454_v63 = vld [vmem:[#allocation7 + $0xaf4] sm:$0xf0] }
 0x2c2   :  { %v12969_v35 = vld [vmem:[#allocation7 + $0xcf8] sm:$0xf0]  ;;  %v11559_v14 = vld [vmem:[#allocation7 + $0x178] sm:$0xf] }
 0x2c3   :  { %5370 = vmatpush.bf16.msrb.mxu0 %v11808_v44  ;;  %5383 = vmatpush.bf16.msrb.mxu1 %v12832_v43  ;;  %v12329_v44 = vld [vmem:[#allocation7 + $0x7f8] sm:$0xf0]  ;;  %v16166_v15 = vld [vmem:[#allocation7 + $0x1f4] sm:$0xf0] }
 0x2c4   :  { %5396 = vmatpush.bf16.msrb.mxu2 %v11812_v50  ;;  %5409 = vmatpush.bf16.msrb.mxu3 %v12836_v45  ;;  %v16598_v43 = vld [vmem:[#allocation7 + $0xf7c] sm:$0xf]  ;;  %v12452_v50 = vor.u32 %v16373_v34, %v12449_v36  ;;  %v12328_v45 = vor.u32 %v16358_v39, %v12327_v37  ;;  %v12332_v53 = vor.u32 %v16342_v18, %v12329_v44  ;;  %v16230_v18 = vld [vmem:[#allocation7 + $0x3f4] sm:$0xf0] }
 0x2c5   :  { %v13356_v3 = vor.u32 %v16598_v43, %v13353_v47  ;;  %v16502_v34 = vld [vmem:[#allocation7 + $0xc7c] sm:$0xf]  ;;  %v16486_v43 = vld [vmem:[#allocation7 + $0xbf4] sm:$0xf0] }
 0x2c6   :  { %v12972_v44 = vor.u32 %v16502_v34, %v12969_v35  ;;  %v16214_v47 = vld [vmem:[#allocation7 + $0x37c] sm:$0xf]  ;;  %v12583_v16 = vld [vmem:[#allocation7 + $0x978] sm:$0xf] }
 0x2c7   :  { %5384 = vmatpush.bf16.msrb.mxu1 %v12704_v6  ;;  %5371 = vmatpush.bf16.msrb.mxu0 %v11680_v25  ;;  %v12200_v6 = vor.u32 %v16326_v52, %v12199_v51  ;;  %v13224_v25 = vor.u32 %v16582_v57, %v13223_v4  ;;  %v11687_v52 = vld [vmem:[#allocation7 + $0x278] sm:$0xf]  ;;  %v16182_v0 = vld [vmem:[#allocation7 + $0x27c] sm:$0xf] }
 0x2c8   :  { %5397 = vmatpush.bf16.msrb.mxu2 %v11684_v60  ;;  %5410 = vmatpush.bf16.msrb.mxu3 %v12708_v58  ;;  %v13228_v60 = vor.u32 %v16566_v1, %v13225_v5  ;;  %v13095_v58 = vld [vmem:[#allocation7 + $0xd78] sm:$0xf]  ;;  %v12713_v11 = vld [vmem:[#allocation7 + $0xaf8] sm:$0xf0] }
 0x2c9   :  { %v12711_v57 = vld [vmem:[#allocation7 + $0xa78] sm:$0xf] }
 0x2ca   :  { %v12455_v34 = vld [vmem:[#allocation7 + $0x878] sm:$0xf] }
 0x2cb   :  { %5372 = vmatpush.bf16.msrb.mxu0 %v11552_v22  ;;  %5385 = vmatpush.bf16.msrb.mxu1 %v12576_v23  ;;  %v13096_v22 = vor.u32 %v16550_v59, %v13095_v58  ;;  %v11943_v23 = vld [vmem:[#allocation7 + $0x478] sm:$0xf]  ;;  %v12712_v59 = vor.u32 %v16454_v63, %v12711_v57  ;;  %v13551_v63 = vld [vmem:[#allocation5 + $0x180] sm:$0xf] }
 0x2cc   :  { %5398 = vmatpush.bf16.msrb.mxu2 %v11556_v29  ;;  %5411 = vmatpush.bf16.msrb.mxu3 %v12580_v33  ;;  %v12967_v29 = vld [vmem:[#allocation7 + $0xc78] sm:$0xf]  ;;  %v11944_v39 = vor.u32 %v16262_v24, %v11943_v23  ;;  %v16150_v23 = vld [vmem:[#allocation7 + $0x17c] sm:$0xf] }
 0x2cd   :  { %v16518_v33 = vld [vmem:[#allocation7 + $0xcf4] sm:$0xf0]  ;;  %v11561_v24 = vld [vmem:[#allocation7 + $0x1f8] sm:$0xf0] }
 0x2ce   :  { %v12968_v40 = vor.u32 %v16518_v33, %v12967_v29  ;;  %v11431_v29 = vld [vmem:[#allocation7 + $0x78] sm:$0xf]  ;;  %v11560_v33 = vor.u32 %v16166_v15, %v11559_v14  ;;  %v13519_v14 = vld [vmem:[#allocation5 + $0x140] sm:$0xf] }
 0x2cf   :  { %5373 = vmatpush.bf16.msrb.mxu0 %v11424_v41  ;;  %5386 = vmatpush.bf16.msrb.mxu1 %v12448_v42  ;;  %v5167_v8 = vpop.f32.mrf.mxu0  ;;  %v5180_v36 = vpop.f32.mrf.mxu1  ;;  %v12839_v41 = vld [vmem:[#allocation7 + $0xb78] sm:$0xf]  ;;  %v11948_v42 = vor.u32 %v16246_v30, %v11945_v31  ;;  %v16659_v15 = vld [vmem:[#allocation5 + $0x15c] sm:$0xf0] }
 0x2d0   :  { %5399 = vmatpush.bf16.msrb.mxu2 %v11428_v49  ;;  %5412 = vmatpush.bf16.msrb.mxu3 %v12452_v50  ;;  %v5181_v37 = vadd.f32 %v5180_v36, %v5167_v8  ;;  %v11817_v49 = vld [vmem:[#allocation7 + $0x3f8] sm:$0xf0]  ;;  %v12840_v51 = vor.u32 %v16486_v43, %v12839_v41  ;;  %v16134_v31 = vld [vmem:[#allocation7 + $0xf4] sm:$0xf0]  ;;  %v11564_v8 = vor.u32 %v16150_v23, %v11561_v24  ;;  %v13839_v43 = vld [vmem:[#allocation5 + $0x3c0] sm:$0xf] }
 0x2d1   :  { %v16470_v50 = vld [vmem:[#allocation7 + $0xb7c] sm:$0xf]  ;;  %v16390_v35 = vld [vmem:[#allocation7 + $0x8f4] sm:$0xf0]  ;;  %v16655_v23 = vld [vmem:[#allocation5 + $0x144] sm:$0xf] }
 0x2d2   :  { %5374 = vmatmul.bf16.vlgmr.msrb.gmra.mxu0 %v17631_v9  ;;  %5387 = vmatmul.bf16.vlgmr.msrb.gmra.mxu1 %v17633_v10  ;;  %5490 = vst [vmem:[%s18807_s12 + $0xa0] sm:$0xff] %v5181_v37  ;;  %v16118_v37 = vld [vmem:[#allocation7 + $0x7c] sm:$0xf]  ;;  %v13521_v24 = vld [vmem:[#allocation5 + $0x160] sm:$0xf0] }
 0x2d3   :  { %5418 = vmatpush.bf16.msra.mxu0 %v12328_v45  ;;  %5431 = vmatpush.bf16.msra.mxu1 %v13352_v46  ;;  %v12841_v45 = vld [vmem:[#allocation7 + $0xbf8] sm:$0xf0]  ;;  %v11816_v46 = vor.u32 %v16230_v18, %v11815_v17 }
 0x2d4   :  { %5444 = vmatpush.bf16.msra.mxu2 %v12332_v53  ;;  %5457 = vmatpush.bf16.msra.mxu3 %v13356_v3  ;;  %v16198_v53 = vld [vmem:[#allocation7 + $0x2f4] sm:$0xf0]  ;;  %v11820_v3 = vor.u32 %v16214_v47, %v11817_v49  ;;  %v12844_v4 = vor.u32 %v16470_v50, %v12841_v45  ;;  %v12457_v41 = vld [vmem:[#allocation7 + $0x8f8] sm:$0xf0]  ;;  %v16739_v47 = vld [vmem:[#allocation5 + $0x3dc] sm:$0xf0]  ;;  %v11432_v50 = vor.u32 %v16134_v31, %v11431_v29 }
 0x2d5   :  { %5400 = vmatmul.bf16.vlgmr.msrb.gmra.mxu2 %v17631_v9  ;;  %5413 = vmatmul.bf16.vlgmr.msrb.gmra.mxu3 %v17633_v10  ;;  %v11688_v58 = vor.u32 %v16198_v53, %v11687_v52  ;;  %v16671_v49 = vld [vmem:[#allocation5 + $0x1c4] sm:$0xf]  ;;  %v12456_v45 = vor.u32 %v16390_v35, %v12455_v34  ;;  %v13840_v57 = vor.u32 %v16739_v47, %v13839_v43  ;;  %v16651_v31 = vld [vmem:[#allocation5 + $0x11c] sm:$0xf0] }
 0x2d6   :  { %v13841_v52 = vld [vmem:[#allocation5 + $0x3e0] sm:$0xf0]  ;;  %v13520_v29 = vor.u32 %v16659_v15, %v13519_v14  ;;  %v13524_v34 = vor.u32 %v16655_v23, %v13521_v24  ;;  %v16643_v43 = vld [vmem:[#allocation5 + $0xdc] sm:$0xf0] }
 0x2d7   :  { %5419 = vmatpush.bf16.msra.mxu0 %v12200_v6  ;;  %5432 = vmatpush.bf16.msra.mxu1 %v13224_v25  ;;  %v11689_v6 = vld [vmem:[#allocation7 + $0x2f8] sm:$0xf0]  ;;  %v13711_v47 = vld [vmem:[#allocation5 + $0x2c0] sm:$0xf] }
 0x2d8   :  { %5445 = vmatpush.bf16.msra.mxu2 %v12204_v13  ;;  %5458 = vmatpush.bf16.msra.mxu3 %v13228_v60  ;;  %v5193_v1 = vpop.f32.mrf.mxu2  ;;  %v5206_v5 = vpop.f32.mrf.mxu3  ;;  %v16438_v25 = vld [vmem:[#allocation7 + $0xa7c] sm:$0xf]  ;;  %v11692_v20 = vor.u32 %v16182_v0, %v11689_v6  ;;  %v16667_v0 = vld [vmem:[#allocation5 + $0x19c] sm:$0xf0] }
 0x2d9   :  { %v5207_v12 = vadd.f32 %v5206_v5, %v5193_v1  ;;  %v5169_v13 = vpop.f32.mrf.mxu0  ;;  %v5182_v60 = vpop.f32.mrf.mxu1  ;;  %v13807_v6 = vld [vmem:[#allocation5 + $0x380] sm:$0xf] }
 0x2da   :  { %v16727_v13 = vld [vmem:[#allocation5 + $0x384] sm:$0xf]  ;;  %v13647_v23 = vld [vmem:[#allocation5 + $0x240] sm:$0xf] }
 0x2db   :  { %5420 = vmatpush.bf16.msra.mxu0 %v12072_v21  ;;  %5433 = vmatpush.bf16.msra.mxu1 %v13096_v22  ;;  %5491 = vst [vmem:[%s18807_s12 + $0xa8] sm:$0xff] %v5207_v12  ;;  %v12716_v21 = vor.u32 %v16438_v25, %v12713_v11  ;;  %v16422_v22 = vld [vmem:[#allocation7 + $0x9f4] sm:$0xf0]  ;;  %v16731_v25 = vld [vmem:[#allocation5 + $0x39c] sm:$0xf0] }
 0x2dc   :  { %5446 = vmatpush.bf16.msra.mxu2 %v12076_v27  ;;  %5459 = vmatpush.bf16.msra.mxu3 %v13100_v28  ;;  %v16406_v27 = vld [vmem:[#allocation7 + $0x97c] sm:$0xf]  ;;  %v12584_v30 = vor.u32 %v16422_v22, %v12583_v16  ;;  %v16663_v11 = vld [vmem:[#allocation5 + $0x184] sm:$0xf]  ;;  %v16723_v22 = vld [vmem:[#allocation5 + $0x35c] sm:$0xf0] }
 0x2dd   :  { %v12585_v28 = vld [vmem:[#allocation7 + $0x9f8] sm:$0xf0]  ;;  %v13553_v12 = vld [vmem:[#allocation5 + $0x1a0] sm:$0xf0] }
 0x2de   :  { %v12588_v36 = vor.u32 %v16406_v27, %v12585_v28  ;;  %v13809_v60 = vld [vmem:[#allocation5 + $0x3a0] sm:$0xf0]  ;;  %v13556_v16 = vor.u32 %v16663_v11, %v13553_v12 }
 0x2df   :  { %5421 = vmatpush.bf16.msra.mxu0 %v11944_v39  ;;  %5434 = vmatpush.bf16.msra.mxu1 %v12968_v40  ;;  %v11433_v39 = vld [vmem:[#allocation7 + $0xf8] sm:$0xf0]  ;;  %v16719_v27 = vld [vmem:[#allocation5 + $0x344] sm:$0xf] }
 0x2e0   :  { %5447 = vmatpush.bf16.msra.mxu2 %v11948_v42  ;;  %5460 = vmatpush.bf16.msra.mxu3 %v12972_v44  ;;  %v16374_v40 = vld [vmem:[#allocation7 + $0x87c] sm:$0xf]  ;;  %v5195_v17 = vpop.f32.mrf.mxu2  ;;  %v5208_v18 = vpop.f32.mrf.mxu3  ;;  %v13583_v42 = vld [vmem:[#allocation5 + $0x1c0] sm:$0xf]  ;;  %v11436_v53 = vor.u32 %v16118_v37, %v11433_v39  ;;  %v13777_v28 = vld [vmem:[#allocation5 + $0x360] sm:$0xf0] }
 0x2e1   :  { %v16675_v44 = vld [vmem:[#allocation5 + $0x1dc] sm:$0xf0]  ;;  %v13780_v35 = vor.u32 %v16719_v27, %v13777_v28  ;;  %v16647_v37 = vld [vmem:[#allocation5 + $0x104] sm:$0xf] }
 0x2e2   :  { %v13489_v39 = vld [vmem:[#allocation5 + $0x120] sm:$0xf0]  ;;  %v16691_v28 = vld [vmem:[#allocation5 + $0x25c] sm:$0xf0] }
 0x2e3   :  { %5422 = vmatpush.bf16.msra.mxu0 %v11816_v46  ;;  %5435 = vmatpush.bf16.msra.mxu1 %v12840_v51  ;;  %v13585_v46 = vld [vmem:[#allocation5 + $0x1e0] sm:$0xf0] }
 0x2e4   :  { %5448 = vmatpush.bf16.msra.mxu2 %v11820_v3  ;;  %5461 = vmatpush.bf16.msra.mxu3 %v12844_v4  ;;  %v16735_v51 = vld [vmem:[#allocation5 + $0x3c4] sm:$0xf]  ;;  %v12460_v3 = vor.u32 %v16374_v40, %v12457_v41  ;;  %v13584_v4 = vor.u32 %v16675_v44, %v13583_v42  ;;  %v13588_v1 = vor.u32 %v16671_v49, %v13585_v46  ;;  %v13455_v44 = vld [vmem:[#allocation5 + $0xc0] sm:$0xf] }
 0x2e5   :  { %v13844_v5 = vor.u32 %v16735_v51, %v13841_v52  ;;  %v16711_v40 = vld [vmem:[#allocation5 + $0x304] sm:$0xf]  ;;  %v13492_v49 = vor.u32 %v16647_v37, %v13489_v39  ;;  %v13615_v37 = vld [vmem:[#allocation5 + $0x200] sm:$0xf] }
 0x2e6   :  { %v13745_v17 = vld [vmem:[#allocation5 + $0x320] sm:$0xf0]  ;;  %v16683_v39 = vld [vmem:[#allocation5 + $0x21c] sm:$0xf0] }
 0x2e7   :  { %5423 = vmatpush.bf16.msra.mxu0 %v11688_v58  ;;  %5436 = vmatpush.bf16.msra.mxu1 %v12712_v59  ;;  %v13552_v58 = vor.u32 %v16667_v0, %v13551_v63  ;;  %v13808_v59 = vor.u32 %v16731_v25, %v13807_v6  ;;  %v16639_v46 = vld [vmem:[#allocation5 + $0xc4] sm:$0xf]  ;;  %v16635_v63 = vld [vmem:[#allocation5 + $0x9c] sm:$0xf0] }
 0x2e8   :  { %5449 = vmatpush.bf16.msra.mxu2 %v11692_v20  ;;  %5462 = vmatpush.bf16.msra.mxu3 %v12716_v21  ;;  %v13812_v20 = vor.u32 %v16727_v13, %v13809_v60  ;;  %v13775_v21 = vld [vmem:[#allocation5 + $0x340] sm:$0xf]  ;;  %v13457_v51 = vld [vmem:[#allocation5 + $0xe0] sm:$0xf0] }
 0x2e9   :  { %v16703_v52 = vld [vmem:[#allocation5 + $0x2c4] sm:$0xf]  ;;  %v13460_v0 = vor.u32 %v16639_v46, %v13457_v51  ;;  %v16699_v6 = vld [vmem:[#allocation5 + $0x29c] sm:$0xf0]  ;;  %v13616_v51 = vor.u32 %v16683_v39, %v13615_v37  ;;  %v16652_v37 = vld [vmem:[#allocation5 + $0x124] sm:$0xf0] }
 0x2ea   :  { %v16631_v25 = vld [vmem:[#allocation5 + $0x84] sm:$0xf] }
 0x2eb   :  { %5424 = vmatpush.bf16.msra.mxu0 %v11560_v33  ;;  %5437 = vmatpush.bf16.msra.mxu1 %v12584_v30  ;;  %v13776_v33 = vor.u32 %v16723_v22, %v13775_v21  ;;  %v13487_v30 = vld [vmem:[#allocation5 + $0x100] sm:$0xf]  ;;  %v13425_v13 = vld [vmem:[#allocation5 + $0xa0] sm:$0xf0] }
 0x2ec   :  { %5450 = vmatpush.bf16.msra.mxu2 %v11564_v8  ;;  %5463 = vmatpush.bf16.msra.mxu3 %v12588_v36  ;;  %v13743_v8 = vld [vmem:[#allocation5 + $0x300] sm:$0xf]  ;;  %v13488_v41 = vor.u32 %v16651_v31, %v13487_v30  ;;  %v16695_v60 = vld [vmem:[#allocation5 + $0x284] sm:$0xf]  ;;  %v13428_v24 = vor.u32 %v16631_v25, %v13425_v13  ;;  %v16668_v25 = vld [vmem:[#allocation5 + $0x1a4] sm:$0xf0] }
 0x2ed   :  { %v16715_v36 = vld [vmem:[#allocation5 + $0x31c] sm:$0xf0]  ;;  %v16687_v30 = vld [vmem:[#allocation5 + $0x244] sm:$0xf]  ;;  %v13815_v13 = vld [vmem:[#allocation5 + $0x388] sm:$0xf] }
 0x2ee   :  { %v13744_v42 = vor.u32 %v16715_v36, %v13743_v8  ;;  %v13391_v21 = vld [vmem:[#allocation5 + $0x40] sm:$0xf]  ;;  %v13649_v31 = vld [vmem:[#allocation5 + $0x260] sm:$0xf0]  ;;  %v13648_v8 = vor.u32 %v16691_v28, %v13647_v23  ;;  %v16660_v23 = vld [vmem:[#allocation5 + $0x164] sm:$0xf0] }
 0x2ef   :  { %5425 = vmatpush.bf16.msra.mxu0 %v11432_v50  ;;  %5438 = vmatpush.bf16.msra.mxu1 %v12456_v45  ;;  %v5219_v18 = vpop.f32.mrf.mxu0  ;;  %v13748_v50 = vor.u32 %v16711_v40, %v13745_v17  ;;  %v16707_v45 = vld [vmem:[#allocation5 + $0x2dc] sm:$0xf0]  ;;  %v13652_v17 = vor.u32 %v16687_v30, %v13649_v31  ;;  %v13783_v28 = vld [vmem:[#allocation5 + $0x348] sm:$0xf]  ;;  %v13529_v30 = vld [vmem:[#allocation5 + $0x168] sm:$0xf0] }
 0x2f0   :  { %5451 = vmatpush.bf16.msra.mxu2 %v11436_v53  ;;  %5464 = vmatpush.bf16.msra.mxu3 %v12460_v3  ;;  %v13713_v53 = vld [vmem:[#allocation5 + $0x2e0] sm:$0xf0]  ;;  %v13456_v3 = vor.u32 %v16643_v43, %v13455_v44  ;;  %v16627_v22 = vld [vmem:[#allocation5 + $0x5c] sm:$0xf0]  ;;  %v13591_v43 = vld [vmem:[#allocation5 + $0x1c8] sm:$0xf] }
 0x2f1   :  { %v16619_v36 = vld [vmem:[#allocation5 + $0x1c] sm:$0xf0]  ;;  %v13617_v44 = vld [vmem:[#allocation5 + $0x220] sm:$0xf0]  ;;  %v16720_v31 = vld [vmem:[#allocation5 + $0x34c] sm:$0xf] }
 0x2f2   :  { %5426 = vmatmul.bf16.vlgmr.msra.gmra.mxu0 %v17631_v9  ;;  %5439 = vmatmul.bf16.vlgmr.msra.gmra.mxu1 %v17633_v10 }
 0x2f3   :  { %6277 = vmatpush.bf16.msrb.mxu0 %v13584_v4  ;;  %6290 = vmatpush.bf16.msrb.mxu1 %v13840_v57  ;;  %v13712_v4 = vor.u32 %v16707_v45, %v13711_v47  ;;  %v13423_v57 = vld [vmem:[#allocation5 + $0x80] sm:$0xf]  ;;  %v16676_v47 = vld [vmem:[#allocation5 + $0x1e4] sm:$0xf0]  ;;  %v16672_v45 = vld [vmem:[#allocation5 + $0x1cc] sm:$0xf] }
 0x2f4   :  { %6303 = vmatpush.bf16.msrb.mxu2 %v13588_v1  ;;  %6316 = vmatpush.bf16.msrb.mxu3 %v13844_v5  ;;  %v13716_v1 = vor.u32 %v16703_v52, %v13713_v53  ;;  %v13679_v5 = vld [vmem:[#allocation5 + $0x280] sm:$0xf]  ;;  %v13593_v52 = vld [vmem:[#allocation5 + $0x1e8] sm:$0xf0] }
 0x2f5   :  { %5452 = vmatmul.bf16.vlgmr.msra.gmra.mxu2 %v17631_v9  ;;  %5465 = vmatmul.bf16.vlgmr.msra.gmra.mxu3 %v17633_v10  ;;  %v5232_v9 = vpop.f32.mrf.mxu1  ;;  %v16736_v53 = vld [vmem:[#allocation5 + $0x3cc] sm:$0xf] }
 0x2f6   :  { %v5233_v10 = vadd.f32 %v5232_v9, %v5219_v18  ;;  %v16615_v18 = vld [vmem:[#allocation5 + $0x4] sm:$0xf] }
 0x2f7   :  { %6278 = vmatpush.bf16.msrb.mxu0 %v13552_v58  ;;  %6291 = vmatpush.bf16.msrb.mxu1 %v13808_v59  ;;  %v13681_v58 = vld [vmem:[#allocation5 + $0x2a0] sm:$0xf0]  ;;  %v5221_v14 = vpop.f32.mrf.mxu0 }
 0x2f8   :  { %6304 = vmatpush.bf16.msrb.mxu2 %v13556_v16  ;;  %6317 = vmatpush.bf16.msrb.mxu3 %v13812_v20  ;;  %5492 = vst [vmem:[%s18807_s12 + $0xb0] sm:$0xff] %v5233_v10  ;;  %v5245_v11 = vpop.f32.mrf.mxu2  ;;  %v5258_v12 = vpop.f32.mrf.mxu3  ;;  %v13424_v16 = vor.u32 %v16635_v63, %v13423_v57  ;;  %v13680_v20 = vor.u32 %v16699_v6, %v13679_v5  ;;  %v13361_v9 = vld [vmem:[#allocation5 + $0x20] sm:$0xf0]  ;;  %v13559_v6 = vld [vmem:[#allocation5 + $0x188] sm:$0xf] }
 0x2f9   :  { %v5259_v59 = vadd.f32 %v5258_v12, %v5245_v11  ;;  %v13684_v27 = vor.u32 %v16695_v60, %v13681_v58  ;;  %v16679_v10 = vld [vmem:[#allocation5 + $0x204] sm:$0xf]  ;;  %v13364_v57 = vor.u32 %v16615_v18, %v13361_v9  ;;  %v13596_v11 = vor.u32 %v16672_v45, %v13593_v52  ;;  %v16732_v60 = vld [vmem:[#allocation5 + $0x3a4] sm:$0xf0]  ;;  %v16664_v58 = vld [vmem:[#allocation5 + $0x18c] sm:$0xf] }
 0x2fa   :  { %v13620_v63 = vor.u32 %v16679_v10, %v13617_v44  ;;  %v16728_v14 = vld [vmem:[#allocation5 + $0x38c] sm:$0xf]  ;;  %v16716_v18 = vld [vmem:[#allocation5 + $0x324] sm:$0xf0] }
 0x2fb   :  { %6279 = vmatpush.bf16.msrb.mxu0 %v13520_v29  ;;  %6292 = vmatpush.bf16.msrb.mxu1 %v13776_v33  ;;  %5493 = vst [vmem:[%s18807_s12 + $0xb8] sm:$0xff] %v5259_v59  ;;  %v16623_v29 = vld [vmem:[#allocation5 + $0x44] sm:$0xf]  ;;  %v13561_v59 = vld [vmem:[#allocation5 + $0x1a8] sm:$0xf0] }
 0x2fc   :  { %6305 = vmatpush.bf16.msrb.mxu2 %v13524_v34  ;;  %6318 = vmatpush.bf16.msrb.mxu3 %v13780_v35  ;;  %v13393_v33 = vld [vmem:[#allocation5 + $0x60] sm:$0xf0]  ;;  %v13359_v34 = vld [vmem:[#allocation5] sm:$0xf]  ;;  %v13392_v35 = vor.u32 %v16627_v22, %v13391_v21  ;;  %v13816_v21 = vor.u32 %v16732_v60, %v13815_v13  ;;  %v13527_v22 = vld [vmem:[#allocation5 + $0x148] sm:$0xf] }
 0x2fd   :  { %v5234_v15 = vpop.f32.mrf.mxu1  ;;  %v13396_v40 = vor.u32 %v16623_v29, %v13393_v33  ;;  %v13360_v46 = vor.u32 %v16619_v36, %v13359_v34  ;;  %v16724_v29 = vld [vmem:[#allocation5 + $0x364] sm:$0xf0]  ;;  %v16656_v33 = vld [vmem:[#allocation5 + $0x14c] sm:$0xf] }
 0x2fe   :  { %v13817_v15 = vld [vmem:[#allocation5 + $0x3a8] sm:$0xf0]  ;;  %v13495_v36 = vld [vmem:[#allocation5 + $0x108] sm:$0xf]  ;;  %v13532_v39 = vor.u32 %v16656_v33, %v13529_v30 }
 0x2ff   :  { %6280 = vmatpush.bf16.msrb.mxu0 %v13488_v41  ;;  %6293 = vmatpush.bf16.msrb.mxu1 %v13744_v42  ;;  %v13785_v34 = vld [vmem:[#allocation5 + $0x368] sm:$0xf0]  ;;  %v13463_v45 = vld [vmem:[#allocation5 + $0xc8] sm:$0xf] }
 0x300   :  { %6306 = vmatpush.bf16.msrb.mxu2 %v13492_v49  ;;  %6319 = vmatpush.bf16.msrb.mxu3 %v13748_v50  ;;  %v5247_v41 = vpop.f32.mrf.mxu2  ;;  %v5260_v42 = vpop.f32.mrf.mxu3  ;;  %v13847_v49 = vld [vmem:[#allocation5 + $0x3c8] sm:$0xf]  ;;  %v16648_v9 = vld [vmem:[#allocation5 + $0x10c] sm:$0xf] }
 0x301   :  { %v16740_v50 = vld [vmem:[#allocation5 + $0x3e4] sm:$0xf0]  ;;  %v13497_v10 = vld [vmem:[#allocation5 + $0x128] sm:$0xf0] }
 0x302   :  { %v13848_v5 = vor.u32 %v16740_v50, %v13847_v49  ;;  %v16712_v41 = vld [vmem:[#allocation5 + $0x30c] sm:$0xf]  ;;  %v13496_v49 = vor.u32 %v16652_v37, %v13495_v36  ;;  %v13500_v52 = vor.u32 %v16648_v9, %v13497_v10  ;;  %v13687_v13 = vld [vmem:[#allocation5 + $0x288] sm:$0xf] }
 0x303   :  { %6281 = vmatpush.bf16.msrb.mxu0 %v13456_v3  ;;  %6294 = vmatpush.bf16.msrb.mxu1 %v13712_v4  ;;  %v13849_v3 = vld [vmem:[#allocation5 + $0x3e8] sm:$0xf0]  ;;  %v5631_v4 = vunpack.c.l.b16 %v17611_v19  ;;  %v16700_v60 = vld [vmem:[#allocation5 + $0x2a4] sm:$0xf0] }
 0x304   :  { %6307 = vmatpush.bf16.msrb.mxu2 %v13460_v0  ;;  %6320 = vmatpush.bf16.msrb.mxu3 %v13716_v1  ;;  %v5632_v0 = vunpack.c.h.b16 %v17611_v19  ;;  %v13592_v1 = vor.u32 %v16676_v47, %v13591_v43  ;;  %v13852_v12 = vor.u32 %v16736_v53, %v13849_v3  ;;  %v13560_v19 = vor.u32 %v16668_v25, %v13559_v6  ;;  %v13753_v42 = vld [vmem:[#allocation5 + $0x328] sm:$0xf0]  ;;  %v16708_v3 = vld [vmem:[#allocation5 + $0x2e4] sm:$0xf0] }
 0x305   :  { %v13756_v53 = vor.u32 %v16712_v41, %v13753_v42  ;;  %v13431_v6 = vld [vmem:[#allocation5 + $0x88] sm:$0xf]  ;;  %v13401_v36 = vld [vmem:[#allocation5 + $0x68] sm:$0xf0] }
 0x306   :  { %v16636_v25 = vld [vmem:[#allocation5 + $0xa4] sm:$0xf0]  ;;  %v16688_v37 = vld [vmem:[#allocation5 + $0x24c] sm:$0xf] }
 0x307   :  { %6282 = vmatpush.bf16.msrb.mxu0 %v13424_v16  ;;  %6295 = vmatpush.bf16.msrb.mxu1 %v13680_v20  ;;  %v17870_v16 = vpack.c.b16 %v5631_v4, %v5631_v4  ;;  %v17872_v20 = vpack.c.b16 %v5632_v0, %v5632_v0  ;;  %v16640_v4 = vld [vmem:[#allocation5 + $0xcc] sm:$0xf]  ;;  %v16628_v33 = vld [vmem:[#allocation5 + $0x64] sm:$0xf0] }
 0x308   :  { %6308 = vmatpush.bf16.msrb.mxu2 %v13428_v24  ;;  %6321 = vmatpush.bf16.msrb.mxu3 %v13684_v27  ;;  %v13564_v24 = vor.u32 %v16664_v58, %v13561_v59  ;;  %v13820_v27 = vor.u32 %v16728_v14, %v13817_v15  ;;  %v13721_v0 = vld [vmem:[#allocation5 + $0x2e8] sm:$0xf0]  ;;  %v13655_v30 = vld [vmem:[#allocation5 + $0x248] sm:$0xf] }
 0x309   :  { %v16632_v58 = vld [vmem:[#allocation5 + $0x8c] sm:$0xf]  ;;  %v16620_v9 = vld [vmem:[#allocation5 + $0x24] sm:$0xf0] }
 0x30a   :  { %v13433_v15 = vld [vmem:[#allocation5 + $0xa8] sm:$0xf0]  ;;  %v13623_v10 = vld [vmem:[#allocation5 + $0x208] sm:$0xf] }
 0x30b   :  { %6283 = vmatpush.bf16.msrb.mxu0 %v13392_v35  ;;  %6296 = vmatpush.bf16.msrb.mxu1 %v13648_v8  ;;  %v13528_v35 = vor.u32 %v16660_v23, %v13527_v22  ;;  %v13784_v8 = vor.u32 %v16724_v29, %v13783_v28  ;;  %v13688_v28 = vor.u32 %v16700_v60, %v13687_v13  ;;  %v13399_v29 = vld [vmem:[#allocation5 + $0x48] sm:$0xf]  ;;  %v13567_v13 = vld [vmem:[#allocation5 + $0x190] sm:$0xf] }
 0x30c   :  { %6309 = vmatpush.bf16.msrb.mxu2 %v13396_v40  ;;  %6322 = vmatpush.bf16.msrb.mxu3 %v13652_v17  ;;  %v13788_v40 = vor.u32 %v16720_v31, %v13785_v34  ;;  %v13751_v17 = vld [vmem:[#allocation5 + $0x308] sm:$0xf]  ;;  %v13436_v31 = vor.u32 %v16632_v58, %v13433_v15  ;;  %v16669_v60 = vld [vmem:[#allocation5 + $0x1ac] sm:$0xf0] }
 0x30d   :  { %v13752_v50 = vor.u32 %v16716_v18, %v13751_v17  ;;  %v13400_v17 = vor.u32 %v16628_v33, %v13399_v29  ;;  %v16684_v41 = vld [vmem:[#allocation5 + $0x224] sm:$0xf0]  ;;  %v16733_v15 = vld [vmem:[#allocation5 + $0x3ac] sm:$0xf0] }
 0x30e   :  { %v16661_v29 = vld [vmem:[#allocation5 + $0x16c] sm:$0xf0] }
 0x30f   :  { %6284 = vmatpush.bf16.msrb.mxu0 %v13360_v46  ;;  %6297 = vmatpush.bf16.msrb.mxu1 %v13616_v51  ;;  %v5271_v44 = vpop.f32.mrf.mxu0  ;;  %v5284_v43 = vpop.f32.mrf.mxu1  ;;  %v16644_v46 = vld [vmem:[#allocation5 + $0xe4] sm:$0xf0] }
 0x310   :  { %6310 = vmatpush.bf16.msrb.mxu2 %v13364_v57  ;;  %6323 = vmatpush.bf16.msrb.mxu3 %v13620_v63  ;;  %v5285_v47 = vadd.f32 %v5284_v43, %v5271_v44  ;;  %v13719_v51 = vld [vmem:[#allocation5 + $0x2c8] sm:$0xf]  ;;  %v13465_v57 = vld [vmem:[#allocation5 + $0xe8] sm:$0xf0] }
 0x311   :  { %v16704_v63 = vld [vmem:[#allocation5 + $0x2cc] sm:$0xf] }
 0x312   :  { %6285 = vmatmul.bf16.vlgmr.msrb.gmra.mxu0 %v17870_v16  ;;  %6298 = vmatmul.bf16.vlgmr.msrb.gmra.mxu1 %v17872_v20  ;;  %5494 = vst [vmem:[%s18807_s12 + $0xc0] sm:$0xff] %v5285_v47  ;;  %v16616_v43 = vld [vmem:[#allocation5 + $0xc] sm:$0xf] }
 0x313   :  { %6329 = vmatpush.bf16.msra.mxu0 %v13592_v1  ;;  %6342 = vmatpush.bf16.msra.mxu1 %v13848_v5  ;;  %v13464_v1 = vor.u32 %v16644_v46, %v13463_v45  ;;  %v13720_v5 = vor.u32 %v16708_v3, %v13719_v51  ;;  %v13369_v47 = vld [vmem:[#allocation5 + $0x28] sm:$0xf0]  ;;  %v13599_v51 = vld [vmem:[#allocation5 + $0x1d0] sm:$0xf] }
 0x314   :  { %6355 = vmatpush.bf16.msra.mxu2 %v13596_v11  ;;  %6368 = vmatpush.bf16.msra.mxu3 %v13852_v12  ;;  %v13468_v11 = vor.u32 %v16640_v4, %v13465_v57  ;;  %v13724_v12 = vor.u32 %v16704_v63, %v13721_v0  ;;  %v13625_v46 = vld [vmem:[#allocation5 + $0x228] sm:$0xf0]  ;;  %v16741_v3 = vld [vmem:[#allocation5 + $0x3ec] sm:$0xf0]  ;;  %v16673_v4 = vld [vmem:[#allocation5 + $0x1d4] sm:$0xf]  ;;  %v13624_v63 = vor.u32 %v16684_v41, %v13623_v10 }
 0x315   :  { %6311 = vmatmul.bf16.vlgmr.msrb.gmra.mxu2 %v17870_v16  ;;  %6324 = vmatmul.bf16.vlgmr.msrb.gmra.mxu3 %v17872_v20  ;;  %v13601_v0 = vld [vmem:[#allocation5 + $0x1f0] sm:$0xf0]  ;;  %v13759_v41 = vld [vmem:[#allocation5 + $0x310] sm:$0xf] }
 0x316   :  { %v13604_v58 = vor.u32 %v16673_v4, %v13601_v0  ;;  %v13727_v4 = vld [vmem:[#allocation5 + $0x2d0] sm:$0xf] }
 0x317   :  { %6330 = vmatpush.bf16.msra.mxu0 %v13560_v19  ;;  %6343 = vmatpush.bf16.msra.mxu1 %v13816_v21  ;;  %v16696_v19 = vld [vmem:[#allocation5 + $0x28c] sm:$0xf]  ;;  %v5273_v23 = vpop.f32.mrf.mxu0  ;;  %v16709_v0 = vld [vmem:[#allocation5 + $0x2ec] sm:$0xf0] }
 0x318   :  { %6356 = vmatpush.bf16.msra.mxu2 %v13564_v24  ;;  %6369 = vmatpush.bf16.msra.mxu3 %v13820_v27  ;;  %v5297_v59 = vpop.f32.mrf.mxu2  ;;  %v5310_v14 = vpop.f32.mrf.mxu3  ;;  %v13689_v21 = vld [vmem:[#allocation5 + $0x2a8] sm:$0xf0]  ;;  %v13432_v27 = vor.u32 %v16636_v25, %v13431_v6  ;;  %v13372_v6 = vor.u32 %v16616_v43, %v13369_v47  ;;  %v13825_v23 = vld [vmem:[#allocation5 + $0x3b0] sm:$0xf0] }
 0x319   :  { %v5311_v22 = vadd.f32 %v5310_v14, %v5297_v59  ;;  %v5286_v24 = vpop.f32.mrf.mxu1  ;;  %v13692_v34 = vor.u32 %v16696_v19, %v13689_v21  ;;  %v13823_v14 = vld [vmem:[#allocation5 + $0x390] sm:$0xf]  ;;  %v16665_v19 = vld [vmem:[#allocation5 + $0x194] sm:$0xf] }
 0x31a   :  { %v13569_v21 = vld [vmem:[#allocation5 + $0x1b0] sm:$0xf0]  ;;  %v13568_v24 = vor.u32 %v16669_v60, %v13567_v13  ;;  %v13439_v13 = vld [vmem:[#allocation5 + $0x90] sm:$0xf] }
 0x31b   :  { %6331 = vmatpush.bf16.msra.mxu0 %v13528_v35  ;;  %6344 = vmatpush.bf16.msra.mxu1 %v13784_v8  ;;  %5495 = vst [vmem:[%s18807_s12 + $0xc8] sm:$0xff] %v5311_v22  ;;  %v16692_v35 = vld [vmem:[#allocation5 + $0x264] sm:$0xf0]  ;;  %v16624_v8 = vld [vmem:[#allocation5 + $0x4c] sm:$0xf]  ;;  %v13572_v33 = vor.u32 %v16665_v19, %v13569_v21 }
 0x31c   :  { %6357 = vmatpush.bf16.msra.mxu2 %v13532_v39  ;;  %6370 = vmatpush.bf16.msra.mxu3 %v13788_v40  ;;  %v13657_v39 = vld [vmem:[#allocation5 + $0x268] sm:$0xf0]  ;;  %v13367_v40 = vld [vmem:[#allocation5 + $0x8] sm:$0xf]  ;;  %v13656_v18 = vor.u32 %v16692_v35, %v13655_v30  ;;  %v13404_v42 = vor.u32 %v16624_v8, %v13401_v36  ;;  %v16729_v22 = vld [vmem:[#allocation5 + $0x394] sm:$0xf] }
 0x31d   :  { %v13660_v44 = vor.u32 %v16688_v37, %v13657_v39  ;;  %v13368_v57 = vor.u32 %v16620_v9, %v13367_v40  ;;  %v13828_v30 = vor.u32 %v16729_v22, %v13825_v23  ;;  %v16657_v35 = vld [vmem:[#allocation5 + $0x154] sm:$0xf]  ;;  %v16637_v60 = vld [vmem:[#allocation5 + $0xac] sm:$0xf0] }
 0x31e   :  { %v13537_v8 = vld [vmem:[#allocation5 + $0x170] sm:$0xf0] }
 0x31f   :  { %6332 = vmatpush.bf16.msra.mxu0 %v13496_v49  ;;  %6345 = vmatpush.bf16.msra.mxu1 %v13752_v50  ;;  %v16680_v49 = vld [vmem:[#allocation5 + $0x20c] sm:$0xf]  ;;  %v16721_v36 = vld [vmem:[#allocation5 + $0x354] sm:$0xf]  ;;  %v13540_v9 = vor.u32 %v16657_v35, %v13537_v8  ;;  %v16629_v35 = vld [vmem:[#allocation5 + $0x6c] sm:$0xf0] }
 0x320   :  { %6358 = vmatpush.bf16.msra.mxu2 %v13500_v52  ;;  %6371 = vmatpush.bf16.msra.mxu3 %v13756_v53  ;;  %v5299_v50 = vpop.f32.mrf.mxu2  ;;  %v5312_v45 = vpop.f32.mrf.mxu3  ;;  %v16677_v52 = vld [vmem:[#allocation5 + $0x1ec] sm:$0xf0]  ;;  %v13628_v25 = vor.u32 %v16680_v49, %v13625_v46  ;;  %v13793_v37 = vld [vmem:[#allocation5 + $0x370] sm:$0xf0] }
 0x321   :  { %v13855_v53 = vld [vmem:[#allocation5 + $0x3d0] sm:$0xf]  ;;  %v13796_v10 = vor.u32 %v16721_v36, %v13793_v37  ;;  %v13505_v43 = vld [vmem:[#allocation5 + $0x130] sm:$0xf0] }
 0x322   :  { %v16713_v47 = vld [vmem:[#allocation5 + $0x314] sm:$0xf]  ;;  %v13663_v8 = vld [vmem:[#allocation5 + $0x250] sm:$0xf] }
 0x323   :  { %6333 = vmatpush.bf16.msra.mxu0 %v13464_v1  ;;  %6346 = vmatpush.bf16.msra.mxu1 %v13720_v5  ;;  %v16737_v1 = vld [vmem:[#allocation5 + $0x3d4] sm:$0xf] }
 0x324   :  { %6359 = vmatpush.bf16.msra.mxu2 %v13468_v11  ;;  %6372 = vmatpush.bf16.msra.mxu3 %v13724_v12  ;;  %v13857_v5 = vld [vmem:[#allocation5 + $0x3f0] sm:$0xf0]  ;;  %v13600_v11 = vor.u32 %v16677_v52, %v13599_v51  ;;  %v13856_v12 = vor.u32 %v16741_v3, %v13855_v53  ;;  %v13471_v53 = vld [vmem:[#allocation5 + $0xd0] sm:$0xf] }
 0x325   :  { %v13860_v59 = vor.u32 %v16737_v1, %v13857_v5  ;;  %v13761_v49 = vld [vmem:[#allocation5 + $0x330] sm:$0xf0]  ;;  %v16645_v3 = vld [vmem:[#allocation5 + $0xec] sm:$0xf0] }
 0x326   :  { %v16641_v1 = vld [vmem:[#allocation5 + $0xd4] sm:$0xf] }
 0x327   :  { %6334 = vmatpush.bf16.msra.mxu0 %v13432_v27  ;;  %6347 = vmatpush.bf16.msra.mxu1 %v13688_v28  ;;  %v13824_v27 = vor.u32 %v16733_v15, %v13823_v14  ;;  %v13535_v28 = vld [vmem:[#allocation5 + $0x150] sm:$0xf]  ;;  %v13473_v5 = vld [vmem:[#allocation5 + $0xf0] sm:$0xf0] }
 0x328   :  { %6360 = vmatpush.bf16.msra.mxu2 %v13436_v31  ;;  %6373 = vmatpush.bf16.msra.mxu3 %v13692_v34  ;;  %v13791_v31 = vld [vmem:[#allocation5 + $0x350] sm:$0xf]  ;;  %v13536_v39 = vor.u32 %v16661_v29, %v13535_v28  ;;  %v16633_v19 = vld [vmem:[#allocation5 + $0x94] sm:$0xf] }
 0x329   :  { %v16725_v34 = vld [vmem:[#allocation5 + $0x36c] sm:$0xf0]  ;;  %v13441_v23 = vld [vmem:[#allocation5 + $0xb0] sm:$0xf0] }
 0x32a   :  { %v13792_v40 = vor.u32 %v16725_v34, %v13791_v31  ;;  %v13695_v14 = vld [vmem:[#allocation5 + $0x290] sm:$0xf]  ;;  %v13444_v36 = vor.u32 %v16633_v19, %v13441_v23  ;;  %v16734_v23 = vld [vmem:[#allocation5 + $0x3b4] sm:$0xf0] }
 0x32b   :  { %6335 = vmatpush.bf16.msra.mxu0 %v13400_v17  ;;  %6348 = vmatpush.bf16.msra.mxu1 %v13656_v18  ;;  %v13503_v17 = vld [vmem:[#allocation5 + $0x110] sm:$0xf] }
 0x32c   :  { %6361 = vmatpush.bf16.msra.mxu2 %v13404_v42  ;;  %6374 = vmatpush.bf16.msra.mxu3 %v13660_v44  ;;  %v16653_v18 = vld [vmem:[#allocation5 + $0x12c] sm:$0xf0]  ;;  %v16649_v44 = vld [vmem:[#allocation5 + $0x114] sm:$0xf] }
 0x32d   :  { %v16717_v42 = vld [vmem:[#allocation5 + $0x32c] sm:$0xf0]  ;;  %v13504_v51 = vor.u32 %v16653_v18, %v13503_v17  ;;  %v13409_v17 = vld [vmem:[#allocation5 + $0x70] sm:$0xf0] }
 0x32e   :  { %v13760_v52 = vor.u32 %v16717_v42, %v13759_v41  ;;  %v16701_v15 = vld [vmem:[#allocation5 + $0x2ac] sm:$0xf0]  ;;  %v16689_v18 = vld [vmem:[#allocation5 + $0x254] sm:$0xf] }
 0x32f   :  { %6336 = vmatpush.bf16.msra.mxu0 %v13368_v57  ;;  %6349 = vmatpush.bf16.msra.mxu1 %v13624_v63  ;;  %v5323_v50 = vpop.f32.mrf.mxu0  ;;  %v5336_v45 = vpop.f32.mrf.mxu1  ;;  %v13508_v57 = vor.u32 %v16649_v44, %v13505_v43  ;;  %v13764_v63 = vor.u32 %v16713_v47, %v13761_v49  ;;  %v13696_v31 = vor.u32 %v16701_v15, %v13695_v14  ;;  %v13407_v34 = vld [vmem:[#allocation5 + $0x50] sm:$0xf]  ;;  %v13575_v14 = vld [vmem:[#allocation5 + $0x198] sm:$0xf] }
 0x330   :  { %6362 = vmatpush.bf16.msra.mxu2 %v13372_v6  ;;  %6375 = vmatpush.bf16.msra.mxu3 %v13628_v25  ;;  %v5337_v46 = vadd.f32 %v5336_v45, %v5323_v50  ;;  %v16705_v6 = vld [vmem:[#allocation5 + $0x2d4] sm:$0xf]  ;;  %v13408_v41 = vor.u32 %v16629_v35, %v13407_v34  ;;  %v16621_v44 = vld [vmem:[#allocation5 + $0x2c] sm:$0xf0]  ;;  %v16670_v15 = vld [vmem:[#allocation5 + $0x1b4] sm:$0xf0] }
 0x331   :  { %v13729_v25 = vld [vmem:[#allocation5 + $0x2f0] sm:$0xf0]  ;;  %v13631_v43 = vld [vmem:[#allocation5 + $0x210] sm:$0xf]  ;;  %v16662_v34 = vld [vmem:[#allocation5 + $0x174] sm:$0xf0] }
 0x332   :  { %6337 = vmatmul.bf16.vlgmr.msra.gmra.mxu0 %v17870_v16  ;;  %6350 = vmatmul.bf16.vlgmr.msra.gmra.mxu1 %v17872_v20  ;;  %5496 = vst [vmem:[%s18807_s12 + $0xd0] sm:$0xff] %v5337_v46  ;;  %v16685_v47 = vld [vmem:[#allocation5 + $0x22c] sm:$0xf0]  ;;  %v16617_v45 = vld [vmem:[#allocation5 + $0x14] sm:$0xf] }
 0x333   :  { %6381 = vmatpush.bf16.msrb.mxu0 %v13600_v11  ;;  %6394 = vmatpush.bf16.msrb.mxu1 %v13856_v12  ;;  %v13472_v11 = vor.u32 %v16645_v3, %v13471_v53  ;;  %v13728_v12 = vor.u32 %v16709_v0, %v13727_v4  ;;  %v13377_v46 = vld [vmem:[#allocation5 + $0x30] sm:$0xf0]  ;;  %v13607_v4 = vld [vmem:[#allocation5 + $0x1d8] sm:$0xf] }
 0x334   :  { %6407 = vmatpush.bf16.msrb.mxu2 %v13604_v58  ;;  %6420 = vmatpush.bf16.msrb.mxu3 %v13860_v59  ;;  %v13476_v58 = vor.u32 %v16641_v1, %v13473_v5  ;;  %v13732_v59 = vor.u32 %v16705_v6, %v13729_v25  ;;  %v13633_v3 = vld [vmem:[#allocation5 + $0x230] sm:$0xf0]  ;;  %v16742_v0 = vld [vmem:[#allocation5 + $0x3f4] sm:$0xf0]  ;;  %v16674_v1 = vld [vmem:[#allocation5 + $0x1dc] sm:$0xf]  ;;  %v13632_v6 = vor.u32 %v16685_v47, %v13631_v43 }
 0x335   :  { %6363 = vmatmul.bf16.vlgmr.msra.gmra.mxu2 %v17870_v16  ;;  %6376 = vmatmul.bf16.vlgmr.msra.gmra.mxu3 %v17872_v20  ;;  %v13609_v25 = vld [vmem:[#allocation5 + $0x1f8] sm:$0xf0]  ;;  %v13767_v47 = vld [vmem:[#allocation5 + $0x318] sm:$0xf] }
 0x336   :  { %v13612_v19 = vor.u32 %v16674_v1, %v13609_v25  ;;  %v13735_v1 = vld [vmem:[#allocation5 + $0x2d8] sm:$0xf] }
 0x337   :  { %6382 = vmatpush.bf16.msrb.mxu0 %v13568_v24  ;;  %6395 = vmatpush.bf16.msrb.mxu1 %v13824_v27  ;;  %v16697_v24 = vld [vmem:[#allocation5 + $0x294] sm:$0xf]  ;;  %v5325_v29 = vpop.f32.mrf.mxu0  ;;  %v16710_v25 = vld [vmem:[#allocation5 + $0x2f4] sm:$0xf0] }
 0x338   :  { %6408 = vmatpush.bf16.msrb.mxu2 %v13572_v33  ;;  %6421 = vmatpush.bf16.msrb.mxu3 %v13828_v30  ;;  %v5349_v21 = vpop.f32.mrf.mxu2  ;;  %v5362_v22 = vpop.f32.mrf.mxu3  ;;  %v13697_v27 = vld [vmem:[#allocation5 + $0x2b0] sm:$0xf0]  ;;  %v13440_v30 = vor.u32 %v16637_v60, %v13439_v13  ;;  %v13380_v13 = vor.u32 %v16617_v45, %v13377_v46  ;;  %v13833_v29 = vld [vmem:[#allocation5 + $0x3b8] sm:$0xf0] }
 0x339   :  { %v5363_v28 = vadd.f32 %v5362_v22, %v5349_v21  ;;  %v5338_v33 = vpop.f32.mrf.mxu1  ;;  %v13700_v37 = vor.u32 %v16697_v24, %v13697_v27  ;;  %v13831_v22 = vld [vmem:[#allocation5 + $0x398] sm:$0xf]  ;;  %v16666_v24 = vld [vmem:[#allocation5 + $0x19c] sm:$0xf] }
 0x33a   :  { %v13577_v27 = vld [vmem:[#allocation5 + $0x1b8] sm:$0xf0]  ;;  %v13576_v33 = vor.u32 %v16670_v15, %v13575_v14  ;;  %v13447_v14 = vld [vmem:[#allocation5 + $0x98] sm:$0xf] }
 0x33b   :  { %6383 = vmatpush.bf16.msrb.mxu0 %v13536_v39  ;;  %6396 = vmatpush.bf16.msrb.mxu1 %v13792_v40  ;;  %5497 = vst [vmem:[%s18807_s12 + $0xd8] sm:$0xff] %v5363_v28  ;;  %v16693_v39 = vld [vmem:[#allocation5 + $0x26c] sm:$0xf0]  ;;  %v16625_v40 = vld [vmem:[#allocation5 + $0x54] sm:$0xf]  ;;  %v13580_v35 = vor.u32 %v16666_v24, %v13577_v27 }
 0x33c   :  { %6409 = vmatpush.bf16.msrb.mxu2 %v13540_v9  ;;  %6422 = vmatpush.bf16.msrb.mxu3 %v13796_v10  ;;  %v13665_v9 = vld [vmem:[#allocation5 + $0x270] sm:$0xf0]  ;;  %v13375_v10 = vld [vmem:[#allocation5 + $0x10] sm:$0xf]  ;;  %v13664_v42 = vor.u32 %v16693_v39, %v13663_v8  ;;  %v13412_v49 = vor.u32 %v16625_v40, %v13409_v17  ;;  %v16730_v28 = vld [vmem:[#allocation5 + $0x39c] sm:$0xf] }
 0x33d   :  { %v13668_v50 = vor.u32 %v16689_v18, %v13665_v9  ;;  %v13376_v5 = vor.u32 %v16621_v44, %v13375_v10  ;;  %v13836_v8 = vor.u32 %v16730_v28, %v13833_v29  ;;  %v16658_v39 = vld [vmem:[#allocation5 + $0x15c] sm:$0xf]  ;;  %v16638_v15 = vld [vmem:[#allocation5 + $0xb4] sm:$0xf0] }
 0x33e   :  { %v13545_v40 = vld [vmem:[#allocation5 + $0x178] sm:$0xf0] }
 0x33f   :  { %6384 = vmatpush.bf16.msrb.mxu0 %v13504_v51  ;;  %6397 = vmatpush.bf16.msrb.mxu1 %v13760_v52  ;;  %v16681_v51 = vld [vmem:[#allocation5 + $0x214] sm:$0xf]  ;;  %v16722_v17 = vld [vmem:[#allocation5 + $0x35c] sm:$0xf]  ;;  %v13548_v44 = vor.u32 %v16658_v39, %v13545_v40  ;;  %v16630_v39 = vld [vmem:[#allocation5 + $0x74] sm:$0xf0] }
 0x340   :  { %6410 = vmatpush.bf16.msrb.mxu2 %v13508_v57  ;;  %6423 = vmatpush.bf16.msrb.mxu3 %v13764_v63  ;;  %v5351_v52 = vpop.f32.mrf.mxu2  ;;  %v5364_v53 = vpop.f32.mrf.mxu3  ;;  %v16678_v57 = vld [vmem:[#allocation5 + $0x1f4] sm:$0xf0]  ;;  %v13636_v60 = vor.u32 %v16681_v51, %v13633_v3  ;;  %v13801_v18 = vld [vmem:[#allocation5 + $0x378] sm:$0xf0] }
 0x341   :  { %v13863_v63 = vld [vmem:[#allocation5 + $0x3d8] sm:$0xf]  ;;  %v13804_v43 = vor.u32 %v16722_v17, %v13801_v18  ;;  %v13513_v45 = vld [vmem:[#allocation5 + $0x138] sm:$0xf0] }
 0x342   :  { %v16714_v46 = vld [vmem:[#allocation5 + $0x31c] sm:$0xf]  ;;  %v13671_v40 = vld [vmem:[#allocation5 + $0x258] sm:$0xf] }
 0x343   :  { %6385 = vmatpush.bf16.msrb.mxu0 %v13472_v11  ;;  %6398 = vmatpush.bf16.msrb.mxu1 %v13728_v12  ;;  %v16738_v11 = vld [vmem:[#allocation5 + $0x3dc] sm:$0xf] }
 0x344   :  { %6411 = vmatpush.bf16.msrb.mxu2 %v13476_v58  ;;  %6424 = vmatpush.bf16.msrb.mxu3 %v13732_v59  ;;  %v13865_v12 = vld [vmem:[#allocation5 + $0x3f8] sm:$0xf0]  ;;  %v13608_v58 = vor.u32 %v16678_v57, %v13607_v4  ;;  %v13864_v59 = vor.u32 %v16742_v0, %v13863_v63  ;;  %v13479_v63 = vld [vmem:[#allocation5 + $0xd8] sm:$0xf] }
 0x345   :  { %v13868_v21 = vor.u32 %v16738_v11, %v13865_v12  ;;  %v13769_v51 = vld [vmem:[#allocation5 + $0x338] sm:$0xf0]  ;;  %v16646_v0 = vld [vmem:[#allocation5 + $0xf4] sm:$0xf0] }
 0x346   :  { %v16642_v11 = vld [vmem:[#allocation5 + $0xdc] sm:$0xf] }
 0x347   :  { %6386 = vmatpush.bf16.msrb.mxu0 %v13440_v30  ;;  %6399 = vmatpush.bf16.msrb.mxu1 %v13696_v31  ;;  %v13832_v30 = vor.u32 %v16734_v23, %v13831_v22  ;;  %v13543_v31 = vld [vmem:[#allocation5 + $0x158] sm:$0xf]  ;;  %v13481_v12 = vld [vmem:[#allocation5 + $0xf8] sm:$0xf0] }
 0x348   :  { %6412 = vmatpush.bf16.msrb.mxu2 %v13444_v36  ;;  %6425 = vmatpush.bf16.msrb.mxu3 %v13700_v37  ;;  %v13799_v36 = vld [vmem:[#allocation5 + $0x358] sm:$0xf]  ;;  %v13544_v9 = vor.u32 %v16662_v34, %v13543_v31  ;;  %v16634_v24 = vld [vmem:[#allocation5 + $0x9c] sm:$0xf] }
 0x349   :  { %v16726_v37 = vld [vmem:[#allocation5 + $0x374] sm:$0xf0]  ;;  %v13449_v29 = vld [vmem:[#allocation5 + $0xb8] sm:$0xf0] }
 0x34a   :  { %v13800_v10 = vor.u32 %v16726_v37, %v13799_v36  ;;  %v13703_v22 = vld [vmem:[#allocation5 + $0x298] sm:$0xf]  ;;  %v13452_v17 = vor.u32 %v16634_v24, %v13449_v29  ;;  %v17207_v29 = vld [vmem:[#allocation7 + $0xe7c] sm:$0xf0] }
 0x34b   :  { %6387 = vmatpush.bf16.msrb.mxu0 %v13408_v41  ;;  %6400 = vmatpush.bf16.msrb.mxu1 %v13664_v42  ;;  %v13511_v41 = vld [vmem:[#allocation5 + $0x118] sm:$0xf] }
 0x34c   :  { %6413 = vmatpush.bf16.msrb.mxu2 %v13412_v49  ;;  %6426 = vmatpush.bf16.msrb.mxu3 %v13668_v50  ;;  %v16654_v42 = vld [vmem:[#allocation5 + $0x134] sm:$0xf0]  ;;  %v16650_v50 = vld [vmem:[#allocation5 + $0x11c] sm:$0xf] }
 0x34d   :  { %v16718_v49 = vld [vmem:[#allocation5 + $0x334] sm:$0xf0]  ;;  %v13512_v4 = vor.u32 %v16654_v42, %v13511_v41  ;;  %v13417_v41 = vld [vmem:[#allocation5 + $0x78] sm:$0xf0] }
 0x34e   :  { %v13768_v57 = vor.u32 %v16718_v49, %v13767_v47  ;;  %v16702_v23 = vld [vmem:[#allocation5 + $0x2b4] sm:$0xf0]  ;;  %v16690_v42 = vld [vmem:[#allocation5 + $0x25c] sm:$0xf] }
 0x34f   :  { %6388 = vmatpush.bf16.msrb.mxu0 %v13376_v5  ;;  %6401 = vmatpush.bf16.msrb.mxu1 %v13632_v6  ;;  %v5375_v52 = vpop.f32.mrf.mxu0  ;;  %v5388_v53 = vpop.f32.mrf.mxu1  ;;  %v13516_v5 = vor.u32 %v16650_v50, %v13513_v45  ;;  %v13772_v6 = vor.u32 %v16714_v46, %v13769_v51  ;;  %v13704_v36 = vor.u32 %v16702_v23, %v13703_v22  ;;  %v13415_v37 = vld [vmem:[#allocation5 + $0x58] sm:$0xf]  ;;  %v14656_v22 = vld [vmem:[#allocation7 + $0x600] sm:$0xf] }
 0x350   :  { %6414 = vmatpush.bf16.msrb.mxu2 %v13380_v13  ;;  %6427 = vmatpush.bf16.msrb.mxu3 %v13636_v60  ;;  %v5389_v3 = vadd.f32 %v5388_v53, %v5375_v52  ;;  %v16706_v13 = vld [vmem:[#allocation5 + $0x2dc] sm:$0xf]  ;;  %v13416_v47 = vor.u32 %v16630_v39, %v13415_v37  ;;  %v16622_v50 = vld [vmem:[#allocation5 + $0x34] sm:$0xf0]  ;;  %v16951_v23 = vld [vmem:[#allocation7 + $0x67c] sm:$0xf0] }
 0x351   :  { %v13737_v60 = vld [vmem:[#allocation5 + $0x2f8] sm:$0xf0]  ;;  %v13639_v45 = vld [vmem:[#allocation5 + $0x218] sm:$0xf]  ;;  %v16919_v37 = vld [vmem:[#allocation7 + $0x57c] sm:$0xf0] }
 0x352   :  { %6389 = vmatmul.bf16.vlgmr.msrb.gmra.mxu0 %v17870_v16  ;;  %6402 = vmatmul.bf16.vlgmr.msrb.gmra.mxu1 %v17872_v20  ;;  %5498 = vst [vmem:[%s18807_s12 + $0xe0] sm:$0xff] %v5389_v3  ;;  %v16686_v46 = vld [vmem:[#allocation5 + $0x234] sm:$0xf0]  ;;  %v16618_v53 = vld [vmem:[#allocation5 + $0x1c] sm:$0xf] }
 0x353   :  { %6433 = vmatpush.bf16.msra.mxu0 %v13608_v58  ;;  %6446 = vmatpush.bf16.msra.mxu1 %v13864_v59  ;;  %v13480_v58 = vor.u32 %v16646_v0, %v13479_v63  ;;  %v13736_v59 = vor.u32 %v16710_v25, %v13735_v1  ;;  %v13385_v3 = vld [vmem:[#allocation5 + $0x38] sm:$0xf0]  ;;  %v14784_v1 = vld [vmem:[#allocation7 + $0x700] sm:$0xf] }
 0x354   :  { %6459 = vmatpush.bf16.msra.mxu2 %v13612_v19  ;;  %6472 = vmatpush.bf16.msra.mxu3 %v13868_v21  ;;  %v13484_v19 = vor.u32 %v16642_v11, %v13481_v12  ;;  %v13740_v21 = vor.u32 %v16706_v13, %v13737_v60  ;;  %v13641_v0 = vld [vmem:[#allocation5 + $0x238] sm:$0xf0]  ;;  %v17239_v25 = vld [vmem:[#allocation7 + $0xf7c] sm:$0xf0]  ;;  %v16967_v11 = vld [vmem:[#allocation7 + $0x704] sm:$0xf]  ;;  %v13640_v13 = vor.u32 %v16686_v46, %v13639_v45 }
 0x355   :  { %6415 = vmatmul.bf16.vlgmr.msrb.gmra.mxu2 %v17870_v16  ;;  %6428 = vmatmul.bf16.vlgmr.msrb.gmra.mxu3 %v17872_v20  ;;  %v14786_v60 = vld [vmem:[#allocation7 + $0x780] sm:$0xf0]  ;;  %v15424_v46 = vld [vmem:[#allocation7 + $0xc00] sm:$0xf] }
 0x356   :  { %v14789_v24 = vor.u32 %v16967_v11, %v14786_v60  ;;  %v14274_v60 = vld [vmem:[#allocation7 + $0x380] sm:$0xf0] }
 0x357   :  { %6434 = vmatpush.bf16.msra.mxu0 %v13576_v33  ;;  %6447 = vmatpush.bf16.msra.mxu1 %v13832_v30  ;;  %v16698_v33 = vld [vmem:[#allocation5 + $0x29c] sm:$0xf]  ;;  %v5377_v34 = vpop.f32.mrf.mxu0 }
 0x358   :  { %6460 = vmatpush.bf16.msra.mxu2 %v13580_v35  ;;  %6473 = vmatpush.bf16.msra.mxu3 %v13836_v8  ;;  %v5401_v27 = vpop.f32.mrf.mxu2  ;;  %v5414_v28 = vpop.f32.mrf.mxu3  ;;  %v13705_v30 = vld [vmem:[#allocation5 + $0x2b8] sm:$0xf0]  ;;  %v13448_v8 = vor.u32 %v16638_v15, %v13447_v14  ;;  %v13388_v14 = vor.u32 %v16618_v53, %v13385_v3  ;;  %v15682_v34 = vld [vmem:[#allocation7 + $0xe80] sm:$0xf0] }
 0x359   :  { %v5415_v31 = vadd.f32 %v5414_v28, %v5401_v27  ;;  %v5390_v35 = vpop.f32.mrf.mxu1  ;;  %v13708_v18 = vor.u32 %v16698_v33, %v13705_v30  ;;  %v15680_v28 = vld [vmem:[#allocation7 + $0xe00] sm:$0xf]  ;;  %v16935_v33 = vld [vmem:[#allocation7 + $0x604] sm:$0xf] }
 0x35a   :  { %v14658_v30 = vld [vmem:[#allocation7 + $0x680] sm:$0xf0]  ;;  %v14657_v35 = vor.u32 %v16951_v23, %v14656_v22  ;;  %v16823_v22 = vld [vmem:[#allocation7 + $0x27c] sm:$0xf0]  ;;  %v254_v23 = vadd.f32 %v17641_v56, %v17627_v62 }
 0x35b   :  { %6435 = vmatpush.bf16.msra.mxu0 %v13544_v9  ;;  %6448 = vmatpush.bf16.msra.mxu1 %v13800_v10  ;;  %5499 = vst [vmem:[%s18807_s12 + $0xe8] sm:$0xff] %v5415_v31  ;;  %v16694_v9 = vld [vmem:[#allocation5 + $0x274] sm:$0xf0]  ;;  %v16626_v10 = vld [vmem:[#allocation5 + $0x5c] sm:$0xf]  ;;  %v14661_v39 = vor.u32 %v16935_v33, %v14658_v30 }
 0x35c   :  { %6461 = vmatpush.bf16.msra.mxu2 %v13548_v44  ;;  %6474 = vmatpush.bf16.msra.mxu3 %v13804_v43  ;;  %v13673_v44 = vld [vmem:[#allocation5 + $0x278] sm:$0xf0]  ;;  %v13383_v43 = vld [vmem:[#allocation5 + $0x18] sm:$0xf]  ;;  %v13672_v49 = vor.u32 %v16694_v9, %v13671_v40  ;;  %v13420_v51 = vor.u32 %v16626_v10, %v13417_v41  ;;  %v17191_v31 = vld [vmem:[#allocation7 + $0xe04] sm:$0xf] }
 0x35d   :  { %v13676_v52 = vor.u32 %v16690_v42, %v13673_v44  ;;  %v13384_v12 = vor.u32 %v16622_v50, %v13383_v43  ;;  %v15685_v40 = vor.u32 %v17191_v31, %v15682_v34  ;;  %v16903_v9 = vld [vmem:[#allocation7 + $0x504] sm:$0xf]  ;;  %v14016_v56 = vld [vmem:[#allocation7 + $0x100] sm:$0xf] }
 0x35e   :  { %v14530_v10 = vld [vmem:[#allocation7 + $0x580] sm:$0xf0] }
 0x35f   :  { %6436 = vmatpush.bf16.msra.mxu0 %v13512_v4  ;;  %6449 = vmatpush.bf16.msra.mxu1 %v13768_v57  ;;  %v16682_v4 = vld [vmem:[#allocation5 + $0x21c] sm:$0xf]  ;;  %v17159_v41 = vld [vmem:[#allocation7 + $0xd04] sm:$0xf]  ;;  %v14533_v50 = vor.u32 %v16903_v9, %v14530_v10  ;;  %v263_v9 = vmax.f32 %v254_v23, 0.0 }
 0x360   :  { %6462 = vmatpush.bf16.msra.mxu2 %v13516_v5  ;;  %6475 = vmatpush.bf16.msra.mxu3 %v13772_v6  ;;  %v5403_v57 = vpop.f32.mrf.mxu2  ;;  %v5416_v63 = vpop.f32.mrf.mxu3  ;;  %v16983_v5 = vld [vmem:[#allocation7 + $0x77c] sm:$0xf0]  ;;  %v13644_v15 = vor.u32 %v16682_v4, %v13641_v0  ;;  %v15554_v42 = vld [vmem:[#allocation7 + $0xd80] sm:$0xf0] }
 0x361   :  { %v15808_v6 = vld [vmem:[#allocation7 + $0xf00] sm:$0xf]  ;;  %v15557_v45 = vor.u32 %v17159_v41, %v15554_v42  ;;  %v14402_v53 = vld [vmem:[#allocation7 + $0x480] sm:$0xf0] }
 0x362   :  { %v17127_v3 = vld [vmem:[#allocation7 + $0xc04] sm:$0xf]  ;;  %v17047_v42 = vld [vmem:[#allocation7 + $0x97c] sm:$0xf0] }
 0x363   :  { %6437 = vmatpush.bf16.msra.mxu0 %v13480_v58  ;;  %6450 = vmatpush.bf16.msra.mxu1 %v13736_v59  ;;  %v17223_v58 = vld [vmem:[#allocation7 + $0xf04] sm:$0xf] }
 0x364   :  { %6463 = vmatpush.bf16.msra.mxu2 %v13484_v19  ;;  %6476 = vmatpush.bf16.msra.mxu3 %v13740_v21  ;;  %v15810_v59 = vld [vmem:[#allocation7 + $0xf80] sm:$0xf0]  ;;  %v14785_v19 = vor.u32 %v16983_v5, %v14784_v1  ;;  %v15809_v21 = vor.u32 %v17239_v25, %v15808_v6  ;;  %v14272_v1 = vld [vmem:[#allocation7 + $0x300] sm:$0xf] }
 0x365   :  { %v15813_v27 = vor.u32 %v17223_v58, %v15810_v59  ;;  %v15426_v4 = vld [vmem:[#allocation7 + $0xc80] sm:$0xf0]  ;;  %v16855_v5 = vld [vmem:[#allocation7 + $0x37c] sm:$0xf0] }
 0x366   :  { %v15296_v6 = vld [vmem:[#allocation7 + $0xb00] sm:$0xf]  ;;  %v15429_v11 = vor.u32 %v17127_v3, %v15426_v4  ;;  %v17095_v58 = vld [vmem:[#allocation7 + $0xb04] sm:$0xf] }
 0x367   :  { %6438 = vmatpush.bf16.msra.mxu0 %v13448_v8  ;;  %6451 = vmatpush.bf16.msra.mxu1 %v13704_v36  ;;  %v15681_v8 = vor.u32 %v17207_v29, %v15680_v28  ;;  %v14528_v36 = vld [vmem:[#allocation7 + $0x500] sm:$0xf]  ;;  %v15298_v59 = vld [vmem:[#allocation7 + $0xb80] sm:$0xf0] }
 0x368   :  { %6464 = vmatpush.bf16.msra.mxu2 %v13452_v17  ;;  %6477 = vmatpush.bf16.msra.mxu3 %v13708_v18  ;;  %v15552_v17 = vld [vmem:[#allocation7 + $0xd00] sm:$0xf]  ;;  %v14529_v44 = vor.u32 %v16919_v37, %v14528_v36  ;;  %v16807_v33 = vld [vmem:[#allocation7 + $0x204] sm:$0xf] }
 0x369   :  { %v17175_v18 = vld [vmem:[#allocation7 + $0xd7c] sm:$0xf0]  ;;  %v14146_v34 = vld [vmem:[#allocation7 + $0x280] sm:$0xf0] }
 0x36a   :  { %v15553_v43 = vor.u32 %v17175_v18, %v15552_v17  ;;  %v15168_v28 = vld [vmem:[#allocation7 + $0xa00] sm:$0xf]  ;;  %v14149_v10 = vor.u32 %v16807_v33, %v14146_v34  ;;  %v17208_v34 = vld [vmem:[#allocation7 + $0xe84] sm:$0xf0] }
 0x36b   :  { %6439 = vmatpush.bf16.msra.mxu0 %v13416_v47  ;;  %6452 = vmatpush.bf16.msra.mxu1 %v13672_v49  ;;  %v14400_v47 = vld [vmem:[#allocation7 + $0x400] sm:$0xf] }
 0x36c   :  { %6465 = vmatpush.bf16.msra.mxu2 %v13420_v51  ;;  %6478 = vmatpush.bf16.msra.mxu3 %v13676_v52  ;;  %v16887_v49 = vld [vmem:[#allocation7 + $0x47c] sm:$0xf0]  ;;  %v16871_v52 = vld [vmem:[#allocation7 + $0x404] sm:$0xf] }
 0x36d   :  { %v17143_v51 = vld [vmem:[#allocation7 + $0xc7c] sm:$0xf0]  ;;  %v14401_v63 = vor.u32 %v16887_v49, %v14400_v47  ;;  %v14405_v25 = vor.u32 %v16871_v52, %v14402_v53  ;;  %v17031_v47 = vld [vmem:[#allocation7 + $0x904] sm:$0xf] }
 0x36e   :  { %v15425_v0 = vor.u32 %v17143_v51, %v15424_v46  ;;  %v17079_v29 = vld [vmem:[#allocation7 + $0xa7c] sm:$0xf0]  ;;  %v15042_v49 = vld [vmem:[#allocation7 + $0x980] sm:$0xf0] }
 0x36f   :  { %6440 = vmatpush.bf16.msra.mxu0 %v13384_v12  ;;  %6453 = vmatpush.bf16.msra.mxu1 %v13640_v13  ;;  %v5427_v57 = vpop.f32.mrf.mxu0  ;;  %v17111_v12 = vld [vmem:[#allocation7 + $0xb7c] sm:$0xf0]  ;;  %v16839_v13 = vld [vmem:[#allocation7 + $0x304] sm:$0xf] }
 0x370   :  { %6466 = vmatpush.bf16.msra.mxu2 %v13388_v14  ;;  %6479 = vmatpush.bf16.msra.mxu3 %v13644_v15  ;;  %v240_v14 = vadd.f32 %v17639_v55, %v17627_v62  ;;  %v14273_v15 = vor.u32 %v16855_v5, %v14272_v1  ;;  %v17063_v55 = vld [vmem:[#allocation7 + $0xa04] sm:$0xf]  ;;  %v15169_v62 = vor.u32 %v17079_v29, %v15168_v28  ;;  %v16791_v17 = vld [vmem:[#allocation7 + $0x17c] sm:$0xf0]  ;;  %v14664_v28 = vld [vmem:[#allocation7 + $0x608] sm:$0xf] }
 0x371   :  { %v15040_v18 = vld [vmem:[#allocation7 + $0x900] sm:$0xf]  ;;  %v14914_v5 = vld [vmem:[#allocation7 + $0x880] sm:$0xf0]  ;;  %v16952_v29 = vld [vmem:[#allocation7 + $0x684] sm:$0xf0] }
 0x372   :  { %6441 = vmatmul.bf16.vlgmr.msra.gmra.mxu0 %v17870_v16  ;;  %6454 = vmatmul.bf16.vlgmr.msra.gmra.mxu1 %v17872_v20  ;;  %v15041_v46 = vor.u32 %v17047_v42, %v15040_v18  ;;  %v16759_v51 = vld [vmem:[#allocation7 + $0x7c] sm:$0xf0]  ;;  %v16904_v42 = vld [vmem:[#allocation7 + $0x50c] sm:$0xf] }
 0x373   :  { %9872 = vmatpush.bf16.msrb.mxu0 %v14785_v19  ;;  %9885 = vmatpush.bf16.msrb.mxu1 %v15809_v21  ;;  %v15297_v19 = vor.u32 %v17111_v12, %v15296_v6  ;;  %v14144_v21 = vld [vmem:[#allocation7 + $0x200] sm:$0xf]  ;;  %v14792_v6 = vld [vmem:[#allocation7 + $0x708] sm:$0xf] }
 0x374   :  { %9898 = vmatpush.bf16.msrb.mxu2 %v14789_v24  ;;  %9911 = vmatpush.bf16.msrb.mxu3 %v15813_v27  ;;  %v14277_v24 = vor.u32 %v16839_v13, %v14274_v60  ;;  %v15301_v27 = vor.u32 %v17095_v58, %v15298_v59  ;;  %v14912_v52 = vld [vmem:[#allocation7 + $0x800] sm:$0xf]  ;;  %v17240_v12 = vld [vmem:[#allocation7 + $0xf84] sm:$0xf0]  ;;  %v16968_v13 = vld [vmem:[#allocation7 + $0x70c] sm:$0xf] }
 0x375   :  { %6467 = vmatmul.bf16.vlgmr.msra.gmra.mxu2 %v17870_v16  ;;  %6480 = vmatmul.bf16.vlgmr.msra.gmra.mxu3 %v17872_v20  ;;  %v5440_v16 = vpop.f32.mrf.mxu1  ;;  %v17015_v53 = vld [vmem:[#allocation7 + $0x87c] sm:$0xf0]  ;;  %v14794_v59 = vld [vmem:[#allocation7 + $0x788] sm:$0xf0] }
 0x376   :  { %v5441_v20 = vadd.f32 %v5440_v16, %v5427_v57  ;;  %v15045_v57 = vor.u32 %v17031_v47, %v15042_v49  ;;  %v16743_v16 = vld [vmem:[#allocation7 + $0x4] sm:$0xf]  ;;  %v14913_v58 = vor.u32 %v17015_v53, %v14912_v52  ;;  %v14797_v33 = vor.u32 %v16968_v13, %v14794_v59  ;;  %v15562_v47 = vld [vmem:[#allocation7 + $0xd88] sm:$0xf0]  ;;  %v15432_v53 = vld [vmem:[#allocation7 + $0xc08] sm:$0xf] }
 0x377   :  { %9873 = vmatpush.bf16.msrb.mxu0 %v14657_v35  ;;  %9886 = vmatpush.bf16.msrb.mxu1 %v15681_v8  ;;  %v15170_v35 = vld [vmem:[#allocation7 + $0xa80] sm:$0xf0]  ;;  %v262_v8 = vmax.f32 %v240_v14, 0.0  ;;  %v5429_v37 = vpop.f32.mrf.mxu0  ;;  %v17224_v14 = vld [vmem:[#allocation7 + $0xf0c] sm:$0xf] }
 0x378   :  { %9899 = vmatpush.bf16.msrb.mxu2 %v14661_v39  ;;  %9912 = vmatpush.bf16.msrb.mxu3 %v15685_v40  ;;  %5500 = vst [vmem:[%s18807_s12 + $0xf0] sm:$0xff] %v5441_v20  ;;  %v5453_v30 = vpop.f32.mrf.mxu2  ;;  %v5466_v31 = vpop.f32.mrf.mxu3  ;;  %v14145_v40 = vor.u32 %v16823_v22, %v14144_v21  ;;  %v15173_v41 = vor.u32 %v17063_v55, %v15170_v35  ;;  %v13890_v20 = vld [vmem:[#allocation7 + $0x80] sm:$0xf0]  ;;  %v16936_v55 = vld [vmem:[#allocation7 + $0x60c] sm:$0xf] }
 0x379   :  { %v5467_v36 = vadd.f32 %v5466_v31, %v5453_v30  ;;  %v267_v3 = vpack.c.bf16 %v263_v9, %v262_v8  ;;  %v13893_v21 = vor.u32 %v16743_v16, %v13890_v20  ;;  %v15688_v31 = vld [vmem:[#allocation7 + $0xe08] sm:$0xf]  ;;  %v14666_v35 = vld [vmem:[#allocation7 + $0x688] sm:$0xf0] }
 0x37a   :  { %v17192_v8 = vld [vmem:[#allocation7 + $0xe0c] sm:$0xf]  ;;  %v14669_v18 = vor.u32 %v16936_v55, %v14666_v35 }
 0x37b   :  { %9874 = vmatpush.bf16.msrb.mxu0 %v14529_v44  ;;  %9887 = vmatpush.bf16.msrb.mxu1 %v15553_v43  ;;  %5501 = vst [vmem:[%s18807_s12 + $0xf8] sm:$0xff] %v5467_v36  ;;  %v16775_v44 = vld [vmem:[#allocation7 + $0x104] sm:$0xf]  ;;  %v7307_v23 = vunpack.c.h.b16 %v267_v3  ;;  %v15690_v36 = vld [vmem:[#allocation7 + $0xe88] sm:$0xf0] }
 0x37c   :  { %9900 = vmatpush.bf16.msrb.mxu2 %v14533_v50  ;;  %9913 = vmatpush.bf16.msrb.mxu3 %v15557_v45  ;;  %v14018_v43 = vld [vmem:[#allocation7 + $0x180] sm:$0xf0]  ;;  %v13888_v50 = vld [vmem:[#allocation7] sm:$0xf]  ;;  %v14017_v45 = vor.u32 %v16791_v17, %v14016_v56  ;;  %v14536_v56 = vld [vmem:[#allocation7 + $0x508] sm:$0xf]  ;;  %v15693_v9 = vor.u32 %v17192_v8, %v15690_v36 }
 0x37d   :  { %v5442_v39 = vpop.f32.mrf.mxu1  ;;  %v14021_v4 = vor.u32 %v16775_v44, %v14018_v43  ;;  %v13889_v60 = vor.u32 %v16759_v51, %v13888_v50  ;;  %v16920_v17 = vld [vmem:[#allocation7 + $0x584] sm:$0xf0]  ;;  %v14538_v44 = vld [vmem:[#allocation7 + $0x588] sm:$0xf0] }
 0x37e   :  { %v17920_v39 = vpack.c.b16 %v7307_v23, %v7307_v23  ;;  %v17160_v43 = vld [vmem:[#allocation7 + $0xd0c] sm:$0xf]  ;;  %v14537_v49 = vor.u32 %v16920_v17, %v14536_v56  ;;  %v14541_v51 = vor.u32 %v16904_v42, %v14538_v44  ;;  %v14152_v23 = vld [vmem:[#allocation7 + $0x208] sm:$0xf] }
 0x37f   :  { %9875 = vmatpush.bf16.msrb.mxu0 %v14401_v63  ;;  %9888 = vmatpush.bf16.msrb.mxu1 %v15425_v0  ;;  %v16999_v63 = vld [vmem:[#allocation7 + $0x804] sm:$0xf]  ;;  %v15565_v52 = vor.u32 %v17160_v43, %v15562_v47  ;;  %v17128_v16 = vld [vmem:[#allocation7 + $0xc0c] sm:$0xf]  ;;  %v15048_v42 = vld [vmem:[#allocation7 + $0x908] sm:$0xf] }
 0x380   :  { %9901 = vmatpush.bf16.msrb.mxu2 %v14405_v25  ;;  %9914 = vmatpush.bf16.msrb.mxu3 %v15429_v11  ;;  %v5455_v0 = vpop.f32.mrf.mxu2  ;;  %v5468_v1 = vpop.f32.mrf.mxu3  ;;  %v16984_v25 = vld [vmem:[#allocation7 + $0x784] sm:$0xf0]  ;;  %v14917_v22 = vor.u32 %v16999_v63, %v14914_v5  ;;  %v15434_v20 = vld [vmem:[#allocation7 + $0xc88] sm:$0xf0] }
 0x381   :  { %v15816_v11 = vld [vmem:[#allocation7 + $0xf08] sm:$0xf]  ;;  %v15437_v13 = vor.u32 %v17128_v16, %v15434_v20  ;;  %v16840_v59 = vld [vmem:[#allocation7 + $0x30c] sm:$0xf] }
 0x382   :  { %v14154_v55 = vld [vmem:[#allocation7 + $0x288] sm:$0xf0]  ;;  %v17048_v44 = vld [vmem:[#allocation7 + $0x984] sm:$0xf0] }
 0x383   :  { %9876 = vmatpush.bf16.msrb.mxu0 %v14273_v15  ;;  %9889 = vmatpush.bf16.msrb.mxu1 %v15297_v19  ;;  %v15818_v15 = vld [vmem:[#allocation7 + $0xf88] sm:$0xf0]  ;;  %v7306_v19 = vunpack.c.l.b16 %v267_v3  ;;  %v17144_v3 = vld [vmem:[#allocation7 + $0xc84] sm:$0xf0] }
 0x384   :  { %9902 = vmatpush.bf16.msrb.mxu2 %v14277_v24  ;;  %9915 = vmatpush.bf16.msrb.mxu3 %v15301_v27  ;;  %v14793_v24 = vor.u32 %v16984_v25, %v14792_v6  ;;  %v15817_v27 = vor.u32 %v17240_v12, %v15816_v11  ;;  %v15821_v30 = vor.u32 %v17224_v14, %v15818_v15  ;;  %v14280_v25 = vld [vmem:[#allocation7 + $0x308] sm:$0xf]  ;;  %v14282_v14 = vld [vmem:[#allocation7 + $0x388] sm:$0xf0] }
 0x385   :  { %v17918_v37 = vpack.c.b16 %v7306_v19, %v7306_v19  ;;  %v15433_v6 = vor.u32 %v17144_v3, %v15432_v53  ;;  %v16856_v11 = vld [vmem:[#allocation7 + $0x384] sm:$0xf0]  ;;  %v17096_v15 = vld [vmem:[#allocation7 + $0xb0c] sm:$0xf] }
 0x386   :  { %v15306_v19 = vld [vmem:[#allocation7 + $0xb88] sm:$0xf0]  ;;  %v14920_v53 = vld [vmem:[#allocation7 + $0x808] sm:$0xf] }
 0x387   :  { %9877 = vmatpush.bf16.msrb.mxu0 %v14145_v40  ;;  %9890 = vmatpush.bf16.msrb.mxu1 %v15169_v62  ;;  %v14665_v40 = vor.u32 %v16952_v29, %v14664_v28  ;;  %v15689_v62 = vor.u32 %v17208_v34, %v15688_v31  ;;  %v15309_v28 = vor.u32 %v17096_v15, %v15306_v19  ;;  %v15176_v29 = vld [vmem:[#allocation7 + $0xa08] sm:$0xf]  ;;  %v17064_v35 = vld [vmem:[#allocation7 + $0xa0c] sm:$0xf]  ;;  %v17225_v15 = vld [vmem:[#allocation7 + $0xf14] sm:$0xf] }
 0x388   :  { %9903 = vmatpush.bf16.msrb.mxu2 %v14149_v10  ;;  %9916 = vmatpush.bf16.msrb.mxu3 %v15173_v41  ;;  %v15560_v10 = vld [vmem:[#allocation7 + $0xd08] sm:$0xf]  ;;  %v15178_v8 = vld [vmem:[#allocation7 + $0xa88] sm:$0xf0]  ;;  %v15826_v19 = vld [vmem:[#allocation7 + $0xf90] sm:$0xf0] }
 0x389   :  { %v17176_v41 = vld [vmem:[#allocation7 + $0xd84] sm:$0xf0]  ;;  %v16776_v43 = vld [vmem:[#allocation7 + $0x10c] sm:$0xf] }
 0x38a   :  { %v15561_v50 = vor.u32 %v17176_v41, %v15560_v10  ;;  %v15181_v41 = vor.u32 %v17064_v35, %v15178_v8  ;;  %v14026_v47 = vld [vmem:[#allocation7 + $0x188] sm:$0xf0]  ;;  %v17016_v3 = vld [vmem:[#allocation7 + $0x884] sm:$0xf0]  ;;  %v17193_v35 = vld [vmem:[#allocation7 + $0xe14] sm:$0xf] }
 0x38b   :  { %9878 = vmatpush.bf16.msrb.mxu0 %v14017_v45  ;;  %9891 = vmatpush.bf16.msrb.mxu1 %v15041_v46  ;;  %v14408_v45 = vld [vmem:[#allocation7 + $0x408] sm:$0xf]  ;;  %v16744_v16 = vld [vmem:[#allocation7 + $0xc] sm:$0xf]  ;;  %v15698_v8 = vld [vmem:[#allocation7 + $0xe90] sm:$0xf0] }
 0x38c   :  { %9904 = vmatpush.bf16.msrb.mxu2 %v14021_v4  ;;  %9917 = vmatpush.bf16.msrb.mxu3 %v15045_v57  ;;  %v16888_v46 = vld [vmem:[#allocation7 + $0x484] sm:$0xf0]  ;;  %v16872_v4 = vld [vmem:[#allocation7 + $0x40c] sm:$0xf] }
 0x38d   :  { %v14410_v57 = vld [vmem:[#allocation7 + $0x488] sm:$0xf0]  ;;  %v14409_v5 = vor.u32 %v16888_v46, %v14408_v45  ;;  %v13896_v45 = vld [vmem:[#allocation7 + $0x8] sm:$0xf] }
 0x38e   :  { %v14413_v12 = vor.u32 %v16872_v4, %v14410_v57  ;;  %v14029_v4 = vor.u32 %v16776_v43, %v14026_v47  ;;  %v13898_v20 = vld [vmem:[#allocation7 + $0x88] sm:$0xf0]  ;;  %v17161_v43 = vld [vmem:[#allocation7 + $0xd14] sm:$0xf] }
 0x38f   :  { %9879 = vmatpush.bf16.msrb.mxu0 %v13889_v60  ;;  %9892 = vmatpush.bf16.msrb.mxu1 %v14913_v58  ;;  %v6286_v63 = vpop.f32.mrf.mxu0  ;;  %v6299_v0 = vpop.f32.mrf.mxu1  ;;  %v15304_v60 = vld [vmem:[#allocation7 + $0xb08] sm:$0xf]  ;;  %v15570_v47 = vld [vmem:[#allocation7 + $0xd90] sm:$0xf0] }
 0x390   :  { %9905 = vmatpush.bf16.msrb.mxu2 %v13893_v21  ;;  %9918 = vmatpush.bf16.msrb.mxu3 %v14917_v22  ;;  %v17926_v1 = vadd.f32 %v6299_v0, %v6286_v63  ;;  %v17112_v58 = vld [vmem:[#allocation7 + $0xb84] sm:$0xf0]  ;;  %v14281_v21 = vor.u32 %v16856_v11, %v14280_v25  ;;  %v17000_v63 = vld [vmem:[#allocation7 + $0x80c] sm:$0xf]  ;;  %v14800_v25 = vld [vmem:[#allocation7 + $0x710] sm:$0xf] }
 0x391   :  { %v15305_v22 = vor.u32 %v17112_v58, %v15304_v60  ;;  %v16985_v11 = vld [vmem:[#allocation7 + $0x78c] sm:$0xf0]  ;;  %v16969_v60 = vld [vmem:[#allocation7 + $0x714] sm:$0xf] }
 0x392   :  { %9880 = vmatmul.bf16.vlgmr.msrb.gmra.mxu0 %v17918_v37  ;;  %9893 = vmatmul.bf16.vlgmr.msrb.gmra.mxu1 %v17920_v39 }
 0x393   :  { %9924 = vmatpush.bf16.msra.mxu0 %v14793_v24  ;;  %9937 = vmatpush.bf16.msra.mxu1 %v15817_v27  ;;  %v16824_v24 = vld [vmem:[#allocation7 + $0x284] sm:$0xf0]  ;;  %v14285_v27 = vor.u32 %v16840_v59, %v14282_v14  ;;  %v14921_v59 = vor.u32 %v17016_v3, %v14920_v53  ;;  %v14802_v14 = vld [vmem:[#allocation7 + $0x790] sm:$0xf0]  ;;  %v15440_v53 = vld [vmem:[#allocation7 + $0xc10] sm:$0xf] }
 0x394   :  { %9950 = vmatpush.bf16.msra.mxu2 %v14797_v33  ;;  %9963 = vmatpush.bf16.msra.mxu3 %v15821_v30  ;;  %v17080_v33 = vld [vmem:[#allocation7 + $0xa84] sm:$0xf0]  ;;  %v16808_v30 = vld [vmem:[#allocation7 + $0x20c] sm:$0xf]  ;;  %v14153_v56 = vor.u32 %v16824_v24, %v14152_v23  ;;  %v14801_v23 = vor.u32 %v16985_v11, %v14800_v25  ;;  %v17145_v3 = vld [vmem:[#allocation7 + $0xc8c] sm:$0xf0] }
 0x395   :  { %9906 = vmatmul.bf16.vlgmr.msrb.gmra.mxu2 %v17918_v37  ;;  %9919 = vmatmul.bf16.vlgmr.msrb.gmra.mxu3 %v17920_v39  ;;  %v15177_v17 = vor.u32 %v17080_v33, %v15176_v29  ;;  %v14157_v10 = vor.u32 %v16808_v30, %v14154_v55  ;;  %v14805_v29 = vor.u32 %v16969_v60, %v14802_v14  ;;  %v15696_v30 = vld [vmem:[#allocation7 + $0xe10] sm:$0xf]  ;;  %v14674_v55 = vld [vmem:[#allocation7 + $0x690] sm:$0xf0] }
 0x396   :  { %v15829_v33 = vor.u32 %v17225_v15, %v15826_v19  ;;  %v14288_v25 = vld [vmem:[#allocation7 + $0x310] sm:$0xf]  ;;  %v14290_v14 = vld [vmem:[#allocation7 + $0x390] sm:$0xf0] }
 0x397   :  { %9925 = vmatpush.bf16.msra.mxu0 %v14665_v40  ;;  %9938 = vmatpush.bf16.msra.mxu1 %v15689_v62  ;;  %v6288_v40 = vpop.f32.mrf.mxu0  ;;  %v6301_v62 = vpop.f32.mrf.mxu1  ;;  %v16857_v11 = vld [vmem:[#allocation7 + $0x38c] sm:$0xf0]  ;;  %v17097_v15 = vld [vmem:[#allocation7 + $0xb14] sm:$0xf] }
 0x398   :  { %9951 = vmatpush.bf16.msra.mxu2 %v14669_v18  ;;  %9964 = vmatpush.bf16.msra.mxu3 %v15693_v9  ;;  %v6312_v31 = vpop.f32.mrf.mxu2  ;;  %v6325_v34 = vpop.f32.mrf.mxu3  ;;  %v14024_v18 = vld [vmem:[#allocation7 + $0x108] sm:$0xf]  ;;  %v15312_v60 = vld [vmem:[#allocation7 + $0xb10] sm:$0xf]  ;;  %v15314_v19 = vld [vmem:[#allocation7 + $0xb90] sm:$0xf0] }
 0x399   :  { %v17928_v36 = vadd.f32 %v6325_v34, %v6312_v31  ;;  %v16792_v9 = vld [vmem:[#allocation7 + $0x184] sm:$0xf0]  ;;  %v17209_v31 = vld [vmem:[#allocation7 + $0xe8c] sm:$0xf0]  ;;  %v16937_v34 = vld [vmem:[#allocation7 + $0x614] sm:$0xf] }
 0x39a   :  { %v14025_v46 = vor.u32 %v16792_v9, %v14024_v18  ;;  %v15697_v62 = vor.u32 %v17209_v31, %v15696_v30  ;;  %v14677_v18 = vor.u32 %v16937_v34, %v14674_v55  ;;  %v15701_v9 = vor.u32 %v17193_v35, %v15698_v8  ;;  %v16809_v30 = vld [vmem:[#allocation7 + $0x214] sm:$0xf] }
 0x39b   :  { %9926 = vmatpush.bf16.msra.mxu0 %v14537_v49  ;;  %9939 = vmatpush.bf16.msra.mxu1 %v15561_v50  ;;  %v17032_v49 = vld [vmem:[#allocation7 + $0x90c] sm:$0xf]  ;;  %v14162_v55 = vld [vmem:[#allocation7 + $0x290] sm:$0xf0] }
 0x39c   :  { %9952 = vmatpush.bf16.msra.mxu2 %v14541_v51  ;;  %9965 = vmatpush.bf16.msra.mxu3 %v15565_v52  ;;  %v15050_v50 = vld [vmem:[#allocation7 + $0x988] sm:$0xf0]  ;;  %v15049_v51 = vor.u32 %v17048_v44, %v15048_v42  ;;  %v16760_v52 = vld [vmem:[#allocation7 + $0x84] sm:$0xf0]  ;;  %v16905_v42 = vld [vmem:[#allocation7 + $0x514] sm:$0xf] }
 0x39d   :  { %v15053_v57 = vor.u32 %v17032_v49, %v15050_v50  ;;  %v13897_v58 = vor.u32 %v16760_v52, %v13896_v45  ;;  %v14546_v44 = vld [vmem:[#allocation7 + $0x590] sm:$0xf0]  ;;  %v14416_v45 = vld [vmem:[#allocation7 + $0x410] sm:$0xf]  ;;  %v15573_v52 = vor.u32 %v17161_v43, %v15570_v47 }
 0x39e   :  { %v17065_v35 = vld [vmem:[#allocation7 + $0xa14] sm:$0xf] }
 0x39f   :  { %9927 = vmatpush.bf16.msra.mxu0 %v14409_v5  ;;  %9940 = vmatpush.bf16.msra.mxu1 %v15433_v6  ;;  %v14922_v6 = vld [vmem:[#allocation7 + $0x888] sm:$0xf0]  ;;  %v15186_v8 = vld [vmem:[#allocation7 + $0xa90] sm:$0xf0] }
 0x3a0   :  { %9953 = vmatpush.bf16.msra.mxu2 %v14413_v12  ;;  %9966 = vmatpush.bf16.msra.mxu3 %v15437_v13  ;;  %v6314_v0 = vpop.f32.mrf.mxu2  ;;  %v6327_v5 = vpop.f32.mrf.mxu3  ;;  %v15824_v12 = vld [vmem:[#allocation7 + $0xf10] sm:$0xf]  ;;  %v16777_v43 = vld [vmem:[#allocation7 + $0x114] sm:$0xf] }
 0x3a1   :  { %v17241_v13 = vld [vmem:[#allocation7 + $0xf8c] sm:$0xf0]  ;;  %v14034_v47 = vld [vmem:[#allocation7 + $0x190] sm:$0xf0] }
 0x3a2   :  { %v15825_v24 = vor.u32 %v17241_v13, %v15824_v12 }
 0x3a3   :  { %9928 = vmatpush.bf16.msra.mxu0 %v14281_v21  ;;  %9941 = vmatpush.bf16.msra.mxu1 %v15305_v22  ;;  %v13901_v21 = vor.u32 %v16744_v16, %v13898_v20  ;;  %v14925_v22 = vor.u32 %v17000_v63, %v14922_v6  ;;  %v17129_v16 = vld [vmem:[#allocation7 + $0xc14] sm:$0xf]  ;;  %v15441_v6 = vor.u32 %v17145_v3, %v15440_v53  ;;  %v14928_v53 = vld [vmem:[#allocation7 + $0x810] sm:$0xf] }
 0x3a4   :  { %9954 = vmatpush.bf16.msra.mxu2 %v14285_v27  ;;  %9967 = vmatpush.bf16.msra.mxu3 %v15309_v28  ;;  %v14672_v27 = vld [vmem:[#allocation7 + $0x610] sm:$0xf]  ;;  %v15442_v20 = vld [vmem:[#allocation7 + $0xc90] sm:$0xf0] }
 0x3a5   :  { %v16953_v28 = vld [vmem:[#allocation7 + $0x68c] sm:$0xf0]  ;;  %v15445_v13 = vor.u32 %v17129_v16, %v15442_v20  ;;  %v16745_v16 = vld [vmem:[#allocation7 + $0x14] sm:$0xf] }
 0x3a6   :  { %v14673_v40 = vor.u32 %v16953_v28, %v14672_v27  ;;  %v15317_v28 = vor.u32 %v17097_v15, %v15314_v19  ;;  %v17017_v3 = vld [vmem:[#allocation7 + $0x88c] sm:$0xf0]  ;;  %v13906_v20 = vld [vmem:[#allocation7 + $0x90] sm:$0xf0]  ;;  %v14810_v19 = vld [vmem:[#allocation7 + $0x798] sm:$0xf0] }
 0x3a7   :  { %9929 = vmatpush.bf16.msra.mxu0 %v14153_v56  ;;  %9942 = vmatpush.bf16.msra.mxu1 %v15177_v17  ;;  %v14544_v56 = vld [vmem:[#allocation7 + $0x510] sm:$0xf]  ;;  %v14929_v15 = vor.u32 %v17017_v3, %v14928_v53  ;;  %v14424_v53 = vld [vmem:[#allocation7 + $0x418] sm:$0xf] }
 0x3a8   :  { %9955 = vmatpush.bf16.msra.mxu2 %v14157_v10  ;;  %9968 = vmatpush.bf16.msra.mxu3 %v15181_v41  ;;  %v16921_v17 = vld [vmem:[#allocation7 + $0x58c] sm:$0xf0]  ;;  %v16890_v3 = vld [vmem:[#allocation7 + $0x494] sm:$0xf0] }
 0x3a9   :  { %v15568_v10 = vld [vmem:[#allocation7 + $0xd10] sm:$0xf]  ;;  %v14545_v49 = vor.u32 %v16921_v17, %v14544_v56 }
 0x3aa   :  { %v17177_v41 = vld [vmem:[#allocation7 + $0xd8c] sm:$0xf0] }
 0x3ab   :  { %9930 = vmatpush.bf16.msra.mxu0 %v14025_v46  ;;  %9943 = vmatpush.bf16.msra.mxu1 %v15049_v51  ;;  %v15569_v50 = vor.u32 %v17177_v41, %v15568_v10  ;;  %v16889_v46 = vld [vmem:[#allocation7 + $0x48c] sm:$0xf0]  ;;  %v14549_v51 = vor.u32 %v16905_v42, %v14546_v44  ;;  %v14165_v10 = vor.u32 %v16809_v30, %v14162_v55 }
 0x3ac   :  { %9956 = vmatpush.bf16.msra.mxu2 %v14029_v4  ;;  %9969 = vmatpush.bf16.msra.mxu3 %v15053_v57  ;;  %v16873_v4 = vld [vmem:[#allocation7 + $0x414] sm:$0xf]  ;;  %v14417_v5 = vor.u32 %v16889_v46, %v14416_v45  ;;  %v15189_v41 = vor.u32 %v17065_v35, %v15186_v8  ;;  %v15056_v42 = vld [vmem:[#allocation7 + $0x910] sm:$0xf]  ;;  %v15704_v35 = vld [vmem:[#allocation7 + $0xe18] sm:$0xf] }
 0x3ad   :  { %v14418_v57 = vld [vmem:[#allocation7 + $0x490] sm:$0xf0]  ;;  %v17049_v44 = vld [vmem:[#allocation7 + $0x98c] sm:$0xf0]  ;;  %v17210_v8 = vld [vmem:[#allocation7 + $0xe94] sm:$0xf0] }
 0x3ae   :  { %v14421_v12 = vor.u32 %v16873_v4, %v14418_v57  ;;  %v13904_v45 = vld [vmem:[#allocation7 + $0x10] sm:$0xf]  ;;  %v14037_v4 = vor.u32 %v16777_v43, %v14034_v47  ;;  %v15576_v43 = vld [vmem:[#allocation7 + $0xd18] sm:$0xf] }
 0x3af   :  { %9931 = vmatpush.bf16.msra.mxu0 %v13897_v58  ;;  %9944 = vmatpush.bf16.msra.mxu1 %v14921_v59  ;;  %v17934_v63 = vpop.f32.mrf.mxu0  ;;  %v17936_v0 = vpop.f32.mrf.mxu1  ;;  %v17113_v58 = vld [vmem:[#allocation7 + $0xb8c] sm:$0xf0]  ;;  %v16841_v59 = vld [vmem:[#allocation7 + $0x314] sm:$0xf]  ;;  %v17178_v47 = vld [vmem:[#allocation7 + $0xd94] sm:$0xf0] }
 0x3b0   :  { %9957 = vmatpush.bf16.msra.mxu2 %v13901_v21  ;;  %9970 = vmatpush.bf16.msra.mxu3 %v14925_v22  ;;  %v14289_v21 = vor.u32 %v16857_v11, %v14288_v25  ;;  %v15313_v22 = vor.u32 %v17113_v58, %v15312_v60  ;;  %v14293_v27 = vor.u32 %v16841_v59, %v14290_v14  ;;  %v14930_v11 = vld [vmem:[#allocation7 + $0x890] sm:$0xf0]  ;;  %v15832_v60 = vld [vmem:[#allocation7 + $0xf18] sm:$0xf]  ;;  %v16970_v59 = vld [vmem:[#allocation7 + $0x71c] sm:$0xf] }
 0x3b1   :  { %v17242_v58 = vld [vmem:[#allocation7 + $0xf94] sm:$0xf0]  ;;  %v14813_v30 = vor.u32 %v16970_v59, %v14810_v19 }
 0x3b2   :  { %9932 = vmatmul.bf16.vlgmr.msra.gmra.mxu0 %v17918_v37  ;;  %9945 = vmatmul.bf16.vlgmr.msra.gmra.mxu1 %v17920_v39  ;;  %v14296_v59 = vld [vmem:[#allocation7 + $0x318] sm:$0xf] }
 0x3b3   :  { %9976 = vmatpush.bf16.msrb.mxu0 %v14801_v23  ;;  %9989 = vmatpush.bf16.msrb.mxu1 %v15825_v24  ;;  %v14160_v23 = vld [vmem:[#allocation7 + $0x210] sm:$0xf] }
 0x3b4   :  { %10002 = vmatpush.bf16.msrb.mxu2 %v14805_v29  ;;  %10015 = vmatpush.bf16.msrb.mxu3 %v15829_v33  ;;  %v16825_v24 = vld [vmem:[#allocation7 + $0x28c] sm:$0xf0] }
 0x3b5   :  { %9958 = vmatmul.bf16.vlgmr.msra.gmra.mxu2 %v17918_v37  ;;  %9971 = vmatmul.bf16.vlgmr.msra.gmra.mxu3 %v17920_v39  ;;  %v15184_v29 = vld [vmem:[#allocation7 + $0xa10] sm:$0xf]  ;;  %v14161_v56 = vor.u32 %v16825_v24, %v14160_v23  ;;  %v13909_v23 = vor.u32 %v16745_v16, %v13906_v20  ;;  %v15448_v16 = vld [vmem:[#allocation7 + $0xc18] sm:$0xf] }
 0x3b6   :  { %v17081_v33 = vld [vmem:[#allocation7 + $0xa8c] sm:$0xf0]  ;;  %v17146_v20 = vld [vmem:[#allocation7 + $0xc94] sm:$0xf0] }
 0x3b7   :  { %9977 = vmatpush.bf16.msrb.mxu0 %v14673_v40  ;;  %9990 = vmatpush.bf16.msrb.mxu1 %v15697_v62  ;;  %v6340_v40 = vpop.f32.mrf.mxu0  ;;  %v6353_v62 = vpop.f32.mrf.mxu1  ;;  %v15185_v17 = vor.u32 %v17081_v33, %v15184_v29  ;;  %v14680_v29 = vld [vmem:[#allocation7 + $0x618] sm:$0xf] }
 0x3b8   :  { %10003 = vmatpush.bf16.msrb.mxu2 %v14677_v18  ;;  %10016 = vmatpush.bf16.msrb.mxu3 %v15701_v9  ;;  %v17938_v31 = vpop.f32.mrf.mxu2  ;;  %v17940_v34 = vpop.f32.mrf.mxu3  ;;  %v14032_v18 = vld [vmem:[#allocation7 + $0x110] sm:$0xf]  ;;  %v16954_v33 = vld [vmem:[#allocation7 + $0x694] sm:$0xf0]  ;;  %v16938_v40 = vld [vmem:[#allocation7 + $0x61c] sm:$0xf] }
 0x3b9   :  { %v16793_v9 = vld [vmem:[#allocation7 + $0x18c] sm:$0xf0]  ;;  %v14682_v62 = vld [vmem:[#allocation7 + $0x698] sm:$0xf0] }
 0x3ba   :  { %v14033_v46 = vor.u32 %v16793_v9, %v14032_v18  ;;  %v14681_v18 = vor.u32 %v16954_v33, %v14680_v29  ;;  %v15705_v9 = vor.u32 %v17210_v8, %v15704_v35 }
 0x3bb   :  { %9978 = vmatpush.bf16.msrb.mxu0 %v14545_v49  ;;  %9991 = vmatpush.bf16.msrb.mxu1 %v15569_v50  ;;  %v17033_v49 = vld [vmem:[#allocation7 + $0x914] sm:$0xf] }
 0x3bc   :  { %10004 = vmatpush.bf16.msrb.mxu2 %v14549_v51  ;;  %10017 = vmatpush.bf16.msrb.mxu3 %v15573_v52  ;;  %v15058_v50 = vld [vmem:[#allocation7 + $0x990] sm:$0xf0]  ;;  %v15057_v51 = vor.u32 %v17049_v44, %v15056_v42  ;;  %v16761_v52 = vld [vmem:[#allocation7 + $0x8c] sm:$0xf0]  ;;  %v14685_v42 = vor.u32 %v16938_v40, %v14682_v62  ;;  %v15192_v40 = vld [vmem:[#allocation7 + $0xa18] sm:$0xf] }
 0x3bd   :  { %v15061_v57 = vor.u32 %v17033_v49, %v15058_v50  ;;  %v13905_v14 = vor.u32 %v16761_v52, %v13904_v45  ;;  %v16906_v49 = vld [vmem:[#allocation7 + $0x51c] sm:$0xf]  ;;  %v15577_v52 = vor.u32 %v17178_v47, %v15576_v43  ;;  %v17082_v62 = vld [vmem:[#allocation7 + $0xa94] sm:$0xf0] }
 0x3be   :  { %v14554_v50 = vld [vmem:[#allocation7 + $0x598] sm:$0xf0]  ;;  %v15193_v47 = vor.u32 %v17082_v62, %v15192_v40 }
 0x3bf   :  { %9979 = vmatpush.bf16.msrb.mxu0 %v14417_v5  ;;  %9992 = vmatpush.bf16.msrb.mxu1 %v15441_v6  ;;  %v17001_v5 = vld [vmem:[#allocation7 + $0x814] sm:$0xf]  ;;  %v17162_v45 = vld [vmem:[#allocation7 + $0xd1c] sm:$0xf] }
 0x3c0   :  { %10005 = vmatpush.bf16.msrb.mxu2 %v14421_v12  ;;  %10018 = vmatpush.bf16.msrb.mxu3 %v15445_v13  ;;  %v6366_v6 = vpop.f32.mrf.mxu2  ;;  %v6379_v25 = vpop.f32.mrf.mxu3  ;;  %v14808_v12 = vld [vmem:[#allocation7 + $0x718] sm:$0xf]  ;;  %v14933_v24 = vor.u32 %v17001_v5, %v14930_v11  ;;  %v16874_v5 = vld [vmem:[#allocation7 + $0x41c] sm:$0xf] }
 0x3c1   :  { %v16986_v13 = vld [vmem:[#allocation7 + $0x794] sm:$0xf0]  ;;  %v14426_v6 = vld [vmem:[#allocation7 + $0x498] sm:$0xf0] }
 0x3c2   :  { %v17130_v25 = vld [vmem:[#allocation7 + $0xc1c] sm:$0xf] }
 0x3c3   :  { %9980 = vmatpush.bf16.msrb.mxu0 %v14289_v21  ;;  %9993 = vmatpush.bf16.msrb.mxu1 %v15313_v22  ;;  %v17226_v21 = vld [vmem:[#allocation7 + $0xf1c] sm:$0xf] }
 0x3c4   :  { %10006 = vmatpush.bf16.msrb.mxu2 %v14293_v27  ;;  %10019 = vmatpush.bf16.msrb.mxu3 %v15317_v28  ;;  %v15834_v22 = vld [vmem:[#allocation7 + $0xf98] sm:$0xf0]  ;;  %v14809_v27 = vor.u32 %v16986_v13, %v14808_v12  ;;  %v15833_v28 = vor.u32 %v17242_v58, %v15832_v60  ;;  %v14425_v60 = vor.u32 %v16890_v3, %v14424_v53 }
 0x3c5   :  { %v15837_v55 = vor.u32 %v17226_v21, %v15834_v22  ;;  %v15450_v11 = vld [vmem:[#allocation7 + $0xc98] sm:$0xf0]  ;;  %v15449_v58 = vor.u32 %v17146_v20, %v15448_v16  ;;  %v15320_v21 = vld [vmem:[#allocation7 + $0xb18] sm:$0xf] }
 0x3c6   :  { %v15453_v19 = vor.u32 %v17130_v25, %v15450_v11  ;;  %v17114_v22 = vld [vmem:[#allocation7 + $0xb94] sm:$0xf0]  ;;  %v16778_v53 = vld [vmem:[#allocation7 + $0x11c] sm:$0xf] }
 0x3c7   :  { %9981 = vmatpush.bf16.msrb.mxu0 %v14161_v56  ;;  %9994 = vmatpush.bf16.msrb.mxu1 %v15185_v17  ;;  %v17194_v56 = vld [vmem:[#allocation7 + $0xe1c] sm:$0xf]  ;;  %v15321_v33 = vor.u32 %v17114_v22, %v15320_v21  ;;  %v13912_v16 = vld [vmem:[#allocation7 + $0x18] sm:$0xf] }
 0x3c8   :  { %10007 = vmatpush.bf16.msrb.mxu2 %v14165_v10  ;;  %10020 = vmatpush.bf16.msrb.mxu3 %v15189_v41  ;;  %v15706_v17 = vld [vmem:[#allocation7 + $0xe98] sm:$0xf0]  ;;  %v14552_v10 = vld [vmem:[#allocation7 + $0x518] sm:$0xf] }
 0x3c9   :  { %v16922_v41 = vld [vmem:[#allocation7 + $0x594] sm:$0xf0]  ;;  %v15709_v44 = vor.u32 %v17194_v56, %v15706_v17  ;;  %v16810_v56 = vld [vmem:[#allocation7 + $0x21c] sm:$0xf] }
 0x3ca   :  { %v14042_v3 = vld [vmem:[#allocation7 + $0x198] sm:$0xf0]  ;;  %v14936_v25 = vld [vmem:[#allocation7 + $0x818] sm:$0xf] }
 0x3cb   :  { %9982 = vmatpush.bf16.msrb.mxu0 %v14033_v46  ;;  %9995 = vmatpush.bf16.msrb.mxu1 %v15057_v51  ;;  %v15578_v46 = vld [vmem:[#allocation7 + $0xd98] sm:$0xf0]  ;;  %v14553_v51 = vor.u32 %v16922_v41, %v14552_v10  ;;  %v17018_v11 = vld [vmem:[#allocation7 + $0x894] sm:$0xf0] }
 0x3cc   :  { %10008 = vmatpush.bf16.msrb.mxu2 %v14037_v4  ;;  %10021 = vmatpush.bf16.msrb.mxu3 %v15061_v57  ;;  %v14557_v4 = vor.u32 %v16906_v49, %v14554_v50  ;;  %v15581_v57 = vor.u32 %v17162_v45, %v15578_v46  ;;  %v17066_v10 = vld [vmem:[#allocation7 + $0xa1c] sm:$0xf]  ;;  %v14040_v49 = vld [vmem:[#allocation7 + $0x118] sm:$0xf] }
 0x3cd   :  { %v15194_v41 = vld [vmem:[#allocation7 + $0xa98] sm:$0xf0]  ;;  %v16794_v50 = vld [vmem:[#allocation7 + $0x194] sm:$0xf0] }
 0x3ce   :  { %v15197_v46 = vor.u32 %v17066_v10, %v15194_v41  ;;  %v14041_v20 = vor.u32 %v16794_v50, %v14040_v49  ;;  %v14938_v22 = vld [vmem:[#allocation7 + $0x898] sm:$0xf0]  ;;  %v14688_v10 = vld [vmem:[#allocation7 + $0x620] sm:$0xf]  ;;  %v16939_v49 = vld [vmem:[#allocation7 + $0x624] sm:$0xf] }
 0x3cf   :  { %9983 = vmatpush.bf16.msrb.mxu0 %v13905_v14  ;;  %9996 = vmatpush.bf16.msrb.mxu1 %v14929_v15  ;;  %v17946_v12 = vpop.f32.mrf.mxu0  ;;  %v17948_v13 = vpop.f32.mrf.mxu1  ;;  %v16858_v14 = vld [vmem:[#allocation7 + $0x394] sm:$0xf0]  ;;  %v14429_v15 = vor.u32 %v16874_v5, %v14426_v6  ;;  %v16955_v41 = vld [vmem:[#allocation7 + $0x69c] sm:$0xf0]  ;;  %v14690_v50 = vld [vmem:[#allocation7 + $0x6a0] sm:$0xf0] }
 0x3d0   :  { %10009 = vmatpush.bf16.msrb.mxu2 %v13909_v23  ;;  %10022 = vmatpush.bf16.msrb.mxu3 %v14933_v24  ;;  %v16842_v23 = vld [vmem:[#allocation7 + $0x31c] sm:$0xf]  ;;  %v14297_v29 = vor.u32 %v16858_v14, %v14296_v59  ;;  %v16762_v6 = vld [vmem:[#allocation7 + $0x94] sm:$0xf0] }
 0x3d1   :  { %v14298_v24 = vld [vmem:[#allocation7 + $0x398] sm:$0xf0] }
 0x3d2   :  { %9984 = vmatmul.bf16.vlgmr.msrb.gmra.mxu0 %v17918_v37  ;;  %9997 = vmatmul.bf16.vlgmr.msrb.gmra.mxu1 %v17920_v39  ;;  %v14301_v35 = vor.u32 %v16842_v23, %v14298_v24  ;;  %v16746_v59 = vld [vmem:[#allocation7 + $0x1c] sm:$0xf]  ;;  %v14816_v23 = vld [vmem:[#allocation7 + $0x720] sm:$0xf] }
 0x3d3   :  { %10028 = vmatpush.bf16.msra.mxu0 %v14809_v27  ;;  %10041 = vmatpush.bf16.msra.mxu1 %v15833_v28  ;;  %v17098_v27 = vld [vmem:[#allocation7 + $0xb1c] sm:$0xf]  ;;  %v16987_v24 = vld [vmem:[#allocation7 + $0x79c] sm:$0xf0] }
 0x3d4   :  { %10054 = vmatpush.bf16.msra.mxu2 %v14813_v30  ;;  %10067 = vmatpush.bf16.msra.mxu3 %v15837_v55  ;;  %v15322_v28 = vld [vmem:[#allocation7 + $0xb98] sm:$0xf0]  ;;  %v14168_v30 = vld [vmem:[#allocation7 + $0x218] sm:$0xf] }
 0x3d5   :  { %10010 = vmatmul.bf16.vlgmr.msrb.gmra.mxu2 %v17918_v37  ;;  %10023 = vmatmul.bf16.vlgmr.msrb.gmra.mxu3 %v17920_v39  ;;  %v16826_v55 = vld [vmem:[#allocation7 + $0x294] sm:$0xf0]  ;;  %v15325_v8 = vor.u32 %v17098_v27, %v15322_v28  ;;  %v13914_v14 = vld [vmem:[#allocation7 + $0x98] sm:$0xf0]  ;;  %v15840_v27 = vld [vmem:[#allocation7 + $0xf20] sm:$0xf] }
 0x3d6   :  { %v14169_v43 = vor.u32 %v16826_v55, %v14168_v30  ;;  %v17243_v28 = vld [vmem:[#allocation7 + $0xf9c] sm:$0xf0]  ;;  %v14937_v30 = vor.u32 %v17018_v11, %v14936_v25  ;;  %v14818_v55 = vld [vmem:[#allocation7 + $0x7a0] sm:$0xf0]  ;;  %v13917_v40 = vor.u32 %v16746_v59, %v13914_v14  ;;  %v17966_v59 = vadd.f32 %v17940_v34, %v17938_v31 }
 0x3d7   :  { %10029 = vmatpush.bf16.msra.mxu0 %v14681_v18  ;;  %10042 = vmatpush.bf16.msra.mxu1 %v15705_v9  ;;  %v14170_v9 = vld [vmem:[#allocation7 + $0x298] sm:$0xf0]  ;;  %v14562_v25 = vld [vmem:[#allocation7 + $0x5a0] sm:$0xf0]  ;;  %v14432_v14 = vld [vmem:[#allocation7 + $0x420] sm:$0xf]  ;;  %v17971_v31 = vadd.f32 %v17948_v13, %v17946_v12 }
 0x3d8   :  { %10055 = vmatpush.bf16.msra.mxu2 %v14685_v42  ;;  %10068 = vmatpush.bf16.msra.mxu3 %v15709_v44  ;;  %v17950_v17 = vpop.f32.mrf.mxu2  ;;  %v17952_v18 = vpop.f32.mrf.mxu3  ;;  %v14173_v45 = vor.u32 %v16810_v56, %v14170_v9  ;;  %v14817_v56 = vor.u32 %v16987_v24, %v14816_v23  ;;  %v15841_v9 = vor.u32 %v17243_v28, %v15840_v27  ;;  %v17163_v11 = vld [vmem:[#allocation7 + $0xd24] sm:$0xf]  ;;  %v17147_v23 = vld [vmem:[#allocation7 + $0xc9c] sm:$0xf0] }
 0x3d9   :  { %v6392_v42 = vpop.f32.mrf.mxu0  ;;  %v6405_v44 = vpop.f32.mrf.mxu1  ;;  %v16875_v24 = vld [vmem:[#allocation7 + $0x424] sm:$0xf]  ;;  %v15328_v12 = vld [vmem:[#allocation7 + $0xb20] sm:$0xf] }
 0x3da   :  { %v14434_v28 = vld [vmem:[#allocation7 + $0x4a0] sm:$0xf0]  ;;  %v17115_v13 = vld [vmem:[#allocation7 + $0xb9c] sm:$0xf0] }
 0x3db   :  { %10030 = vmatpush.bf16.msra.mxu0 %v14553_v51  ;;  %10043 = vmatpush.bf16.msra.mxu1 %v15577_v52  ;;  %v15064_v51 = vld [vmem:[#allocation7 + $0x918] sm:$0xf] }
 0x3dc   :  { %10056 = vmatpush.bf16.msra.mxu2 %v14557_v4  ;;  %10069 = vmatpush.bf16.msra.mxu3 %v15581_v57  ;;  %v17050_v52 = vld [vmem:[#allocation7 + $0x994] sm:$0xf0]  ;;  %v17034_v4 = vld [vmem:[#allocation7 + $0x91c] sm:$0xf] }
 0x3dd   :  { %v15066_v57 = vld [vmem:[#allocation7 + $0x998] sm:$0xf0]  ;;  %v15065_v5 = vor.u32 %v17050_v52, %v15064_v51  ;;  %v14689_v51 = vor.u32 %v16955_v41, %v14688_v10  ;;  %v16843_v41 = vld [vmem:[#allocation7 + $0x324] sm:$0xf] }
 0x3df   :  { %10031 = vmatpush.bf16.msra.mxu0 %v14425_v60  ;;  %10044 = vmatpush.bf16.msra.mxu1 %v15449_v58  ;;  %v14045_v60 = vor.u32 %v16778_v53, %v14042_v3  ;;  %v15069_v58 = vor.u32 %v17034_v4, %v15066_v57  ;;  %v14560_v53 = vld [vmem:[#allocation7 + $0x520] sm:$0xf]  ;;  %v14693_v4 = vor.u32 %v16939_v49, %v14690_v50 }
 0x3e0   :  { %10057 = vmatpush.bf16.msra.mxu2 %v14429_v15  ;;  %10070 = vmatpush.bf16.msra.mxu3 %v15453_v19  ;;  %v17002_v15 = vld [vmem:[#allocation7 + $0x81c] sm:$0xf]  ;;  %v6418_v19 = vpop.f32.mrf.mxu2  ;;  %v6431_v21 = vpop.f32.mrf.mxu3  ;;  %v16923_v3 = vld [vmem:[#allocation7 + $0x59c] sm:$0xf0] }
 0x3e1   :  { %v14941_v62 = vor.u32 %v17002_v15, %v14938_v22  ;;  %v16891_v15 = vld [vmem:[#allocation7 + $0x49c] sm:$0xf0] }
 0x3e2   :  { %v15456_v22 = vld [vmem:[#allocation7 + $0xc20] sm:$0xf] }
 0x3e3   :  { %10032 = vmatpush.bf16.msra.mxu0 %v14297_v29  ;;  %10045 = vmatpush.bf16.msra.mxu1 %v15321_v33  ;;  %v16971_v29 = vld [vmem:[#allocation7 + $0x724] sm:$0xf]  ;;  %v13913_v33 = vor.u32 %v16762_v6, %v13912_v16  ;;  %v15584_v16 = vld [vmem:[#allocation7 + $0xd20] sm:$0xf]  ;;  %v17956_v6 = vadd.f32 %v17936_v0, %v17934_v63  ;;  %v14561_v63 = vor.u32 %v16923_v3, %v14560_v53 }
 0x3e4   :  { %10058 = vmatpush.bf16.msra.mxu2 %v14301_v35  ;;  %10071 = vmatpush.bf16.msra.mxu3 %v15325_v8  ;;  %v17227_v35 = vld [vmem:[#allocation7 + $0xf24] sm:$0xf]  ;;  %v14821_v42 = vor.u32 %v16971_v29, %v14818_v55  ;;  %v15200_v53 = vld [vmem:[#allocation7 + $0xa20] sm:$0xf] }
 0x3e5   :  { %v15842_v8 = vld [vmem:[#allocation7 + $0xfa0] sm:$0xf0]  ;;  %v17083_v3 = vld [vmem:[#allocation7 + $0xa9c] sm:$0xf0] }
 0x3e6   :  { %v15845_v44 = vor.u32 %v17227_v35, %v15842_v8  ;;  %v17131_v29 = vld [vmem:[#allocation7 + $0xc24] sm:$0xf]  ;;  %v14433_v35 = vor.u32 %v16891_v15, %v14432_v14  ;;  %v15457_v8 = vor.u32 %v17147_v23, %v15456_v22  ;;  %v15201_v14 = vor.u32 %v17083_v3, %v15200_v53  ;;  %v14048_v15 = vld [vmem:[#allocation7 + $0x120] sm:$0xf]  ;;  %v17228_v53 = vld [vmem:[#allocation7 + $0xf2c] sm:$0xf] }
 0x3e7   :  { %10033 = vmatpush.bf16.msra.mxu0 %v14169_v43  ;;  %10046 = vmatpush.bf16.msra.mxu1 %v15193_v47  ;;  %v15712_v43 = vld [vmem:[#allocation7 + $0xe20] sm:$0xf]  ;;  %v15850_v3 = vld [vmem:[#allocation7 + $0xfa8] sm:$0xf0] }
 0x3e8   :  { %10059 = vmatpush.bf16.msra.mxu2 %v14173_v45  ;;  %10072 = vmatpush.bf16.msra.mxu3 %v15197_v46  ;;  %v17211_v47 = vld [vmem:[#allocation7 + $0xe9c] sm:$0xf0]  ;;  %v17195_v45 = vld [vmem:[#allocation7 + $0xe24] sm:$0xf] }
 0x3e9   :  { %v15714_v46 = vld [vmem:[#allocation7 + $0xea0] sm:$0xf0]  ;;  %v15713_v52 = vor.u32 %v17211_v47, %v15712_v43 }
 0x3ea   :  { %v15717_v57 = vor.u32 %v17195_v45, %v15714_v46  ;;  %v15330_v43 = vld [vmem:[#allocation7 + $0xba0] sm:$0xf0]  ;;  %v15329_v45 = vor.u32 %v17115_v13, %v15328_v12 }
 0x3eb   :  { %10034 = vmatpush.bf16.msra.mxu0 %v14041_v20  ;;  %10047 = vmatpush.bf16.msra.mxu1 %v15065_v5  ;;  %v17179_v20 = vld [vmem:[#allocation7 + $0xd9c] sm:$0xf0]  ;;  %v16907_v5 = vld [vmem:[#allocation7 + $0x524] sm:$0xf] }
 0x3ec   :  { %10060 = vmatpush.bf16.msra.mxu2 %v14045_v60  ;;  %10073 = vmatpush.bf16.msra.mxu3 %v15069_v58  ;;  %v15586_v60 = vld [vmem:[#allocation7 + $0xda0] sm:$0xf0]  ;;  %v6485_v58 = vadd.f32 %v17928_v36, %v17926_v1  ;;  %v15585_v0 = vor.u32 %v17179_v20, %v15584_v16  ;;  %v14565_v19 = vor.u32 %v16907_v5, %v14562_v25 }
 0x3ed   :  { %v15589_v21 = vor.u32 %v17163_v11, %v15586_v60  ;;  %v14178_v20 = vld [vmem:[#allocation7 + $0x2a0] sm:$0xf0] }
 0x3ee   :  { %v6486_v27 = vadd.f32 %v6485_v58, %v17956_v6  ;;  %v17067_v5 = vld [vmem:[#allocation7 + $0xa24] sm:$0xf] }
 0x3ef   :  { %10035 = vmatpush.bf16.msra.mxu0 %v13913_v33  ;;  %10048 = vmatpush.bf16.msra.mxu1 %v14937_v30  ;;  %v15458_v33 = vld [vmem:[#allocation7 + $0xca0] sm:$0xf0]  ;;  %v6442_v34 = vpop.f32.mrf.mxu0  ;;  %v6455_v30 = vpop.f32.mrf.mxu1 }
 0x3f0   :  { %10061 = vmatpush.bf16.msra.mxu2 %v13917_v40  ;;  %10074 = vmatpush.bf16.msra.mxu3 %v14941_v62  ;;  %v6487_v55 = vadd.f32 %v6486_v27, %v17966_v59  ;;  %v14304_v40 = vld [vmem:[#allocation7 + $0x320] sm:$0xf]  ;;  %v15461_v10 = vor.u32 %v17131_v29, %v15458_v33  ;;  %v17979_v49 = vadd.f32 %v6455_v30, %v6442_v34  ;;  %v15202_v25 = vld [vmem:[#allocation7 + $0xaa0] sm:$0xf0] }
 0x3f1   :  { %v16859_v62 = vld [vmem:[#allocation7 + $0x39c] sm:$0xf0]  ;;  %v15205_v22 = vor.u32 %v17067_v5, %v15202_v25  ;;  %v14050_v29 = vld [vmem:[#allocation7 + $0x1a0] sm:$0xf0]  ;;  %v14696_v5 = vld [vmem:[#allocation7 + $0x628] sm:$0xf] }
 0x3f2   :  { %10036 = vmatmul.bf16.vlgmr.msra.gmra.mxu0 %v17918_v37  ;;  %10049 = vmatmul.bf16.vlgmr.msra.gmra.mxu1 %v17920_v39  ;;  %v6488_v47 = vadd.f32 %v6487_v55, %v17971_v31  ;;  %v14305_v50 = vor.u32 %v16859_v62, %v14304_v40  ;;  %v17051_v27 = vld [vmem:[#allocation7 + $0x99c] sm:$0xf0]  ;;  %v17035_v33 = vld [vmem:[#allocation7 + $0x924] sm:$0xf]  ;;  %v16956_v25 = vld [vmem:[#allocation7 + $0x6a4] sm:$0xf0] }
 0x3f3   :  { %10080 = vmatpush.bf16.msrb.mxu0 %v14817_v56  ;;  %10093 = vmatpush.bf16.msrb.mxu1 %v15841_v9  ;;  %v17976_v56 = vadd.f32 %v17952_v18, %v17950_v17  ;;  %v14437_v9 = vor.u32 %v16875_v24, %v14434_v28  ;;  %v14176_v17 = vld [vmem:[#allocation7 + $0x220] sm:$0xf]  ;;  %v16779_v28 = vld [vmem:[#allocation7 + $0x124] sm:$0xf] }
 0x3f4   :  { %10106 = vmatpush.bf16.msrb.mxu2 %v14821_v42  ;;  %10119 = vmatpush.bf16.msrb.mxu3 %v15845_v44  ;;  %v14306_v42 = vld [vmem:[#allocation7 + $0x3a0] sm:$0xf0]  ;;  %v16827_v18 = vld [vmem:[#allocation7 + $0x29c] sm:$0xf0] }
 0x3f5   :  { %10062 = vmatmul.bf16.vlgmr.msra.gmra.mxu2 %v17918_v37  ;;  %10075 = vmatmul.bf16.vlgmr.msra.gmra.mxu3 %v17920_v39  ;;  %v17099_v44 = vld [vmem:[#allocation7 + $0xb24] sm:$0xf]  ;;  %v6489_v46 = vadd.f32 %v6488_v47, %v17976_v56  ;;  %v15072_v24 = vld [vmem:[#allocation7 + $0x920] sm:$0xf]  ;;  %v14824_v47 = vld [vmem:[#allocation7 + $0x728] sm:$0xf] }
 0x3f6   :  { %v15074_v34 = vld [vmem:[#allocation7 + $0x9a0] sm:$0xf0]  ;;  %v13920_v30 = vld [vmem:[#allocation7 + $0x20] sm:$0xf] }
 0x3f7   :  { %10081 = vmatpush.bf16.msrb.mxu0 %v14689_v51  ;;  %10094 = vmatpush.bf16.msrb.mxu1 %v15713_v52  ;;  %v14309_v51 = vor.u32 %v16843_v41, %v14306_v42  ;;  %v15333_v52 = vor.u32 %v17099_v44, %v15330_v43  ;;  %v6444_v60 = vpop.f32.mrf.mxu0  ;;  %v6457_v58 = vpop.f32.mrf.mxu1  ;;  %v14944_v40 = vld [vmem:[#allocation7 + $0x820] sm:$0xf]  ;;  %v16747_v12 = vld [vmem:[#allocation7 + $0x24] sm:$0xf] }
 0x3f8   :  { %10107 = vmatpush.bf16.msrb.mxu2 %v14693_v4  ;;  %10120 = vmatpush.bf16.msrb.mxu3 %v15717_v57  ;;  %v16811_v4 = vld [vmem:[#allocation7 + $0x224] sm:$0xf]  ;;  %v6468_v57 = vpop.f32.mrf.mxu2  ;;  %v6481_v16 = vpop.f32.mrf.mxu3  ;;  %v17019_v62 = vld [vmem:[#allocation7 + $0x89c] sm:$0xf0]  ;;  %v15853_v58 = vor.u32 %v17228_v53, %v15850_v3  ;;  %v16860_v53 = vld [vmem:[#allocation7 + $0x3a4] sm:$0xf0] }
 0x3f9   :  { %v17982_v11 = vadd.f32 %v6481_v16, %v6468_v57  ;;  %v13922_v13 = vld [vmem:[#allocation7 + $0xa0] sm:$0xf0]  ;;  %v15336_v3 = vld [vmem:[#allocation7 + $0xb28] sm:$0xf] }
 0x3fa   :  { %v17003_v41 = vld [vmem:[#allocation7 + $0x824] sm:$0xf] }
 0x3fb   :  { %10082 = vmatpush.bf16.msrb.mxu0 %v14561_v63  ;;  %10095 = vmatpush.bf16.msrb.mxu1 %v15585_v0  ;;  %v6490_v63 = vadd.f32 %v6489_v46, %v17979_v49  ;;  %v14177_v0 = vor.u32 %v16827_v18, %v14176_v17  ;;  %v14946_v43 = vld [vmem:[#allocation7 + $0x8a0] sm:$0xf0]  ;;  %v17244_v17 = vld [vmem:[#allocation7 + $0xfa4] sm:$0xf0]  ;;  %v16972_v18 = vld [vmem:[#allocation7 + $0x72c] sm:$0xf] }
 0x3fc   :  { %10108 = vmatpush.bf16.msrb.mxu2 %v14565_v19  ;;  %10121 = vmatpush.bf16.msrb.mxu3 %v15589_v21  ;;  %v16795_v19 = vld [vmem:[#allocation7 + $0x19c] sm:$0xf0]  ;;  %v14181_v21 = vor.u32 %v16811_v4, %v14178_v20  ;;  %v13925_v4 = vor.u32 %v16747_v12, %v13922_v13  ;;  %v14949_v57 = vor.u32 %v17003_v41, %v14946_v43  ;;  %v15464_v41 = vld [vmem:[#allocation7 + $0xc28] sm:$0xf]  ;;  %v14442_v43 = vld [vmem:[#allocation7 + $0x4a8] sm:$0xf0] }
 0x3fd   :  { %v6491_v23 = vadd.f32 %v6490_v63, %v17982_v11  ;;  %v14049_v55 = vor.u32 %v16795_v19, %v14048_v15  ;;  %v15720_v63 = vld [vmem:[#allocation7 + $0xe28] sm:$0xf]  ;;  %v14698_v15 = vld [vmem:[#allocation7 + $0x6a8] sm:$0xf0] }
 0x3fe   :  { %v17196_v19 = vld [vmem:[#allocation7 + $0xe2c] sm:$0xf] }
 0x3ff   :  { %10083 = vmatpush.bf16.msrb.mxu0 %v14433_v35  ;;  %10096 = vmatpush.bf16.msrb.mxu1 %v15457_v8  ;;  %v15073_v35 = vor.u32 %v17051_v27, %v15072_v24  ;;  %v16763_v8 = vld [vmem:[#allocation7 + $0x9c] sm:$0xf0]  ;;  %v14568_v24 = vld [vmem:[#allocation7 + $0x528] sm:$0xf] }
 0x400   :  { %10109 = vmatpush.bf16.msrb.mxu2 %v14437_v9  ;;  %10122 = vmatpush.bf16.msrb.mxu3 %v15461_v10  ;;  %v14053_v9 = vor.u32 %v16779_v28, %v14050_v29  ;;  %v15077_v10 = vor.u32 %v17035_v33, %v15074_v34  ;;  %v6470_v42 = vpop.f32.mrf.mxu2  ;;  %v6483_v44 = vpop.f32.mrf.mxu3  ;;  %v13921_v46 = vor.u32 %v16763_v8, %v13920_v30  ;;  %v16924_v27 = vld [vmem:[#allocation7 + $0x5a4] sm:$0xf0]  ;;  %v16908_v30 = vld [vmem:[#allocation7 + $0x52c] sm:$0xf] }
 0x401   :  { %6492 = vadd.xlane.f32.xlu1 %v6491_v23  ;;  %v15592_v33 = vld [vmem:[#allocation7 + $0xd28] sm:$0xf]  ;;  %v15594_v8 = vld [vmem:[#allocation7 + $0xda8] sm:$0xf0] }
 0x402   :  { %v17180_v34 = vld [vmem:[#allocation7 + $0xda4] sm:$0xf0]  ;;  %v16876_v44 = vld [vmem:[#allocation7 + $0x42c] sm:$0xf] }
 0x403   :  { %10084 = vmatpush.bf16.msrb.mxu0 %v14305_v50  ;;  %10097 = vmatpush.bf16.msrb.mxu1 %v15329_v45  ;;  %v16988_v50 = vld [vmem:[#allocation7 + $0x7a4] sm:$0xf0] }
 0x404   :  { %10110 = vmatpush.bf16.msrb.mxu2 %v14309_v51  ;;  %10123 = vmatpush.bf16.msrb.mxu3 %v15333_v52  ;;  %v15848_v45 = vld [vmem:[#allocation7 + $0xf28] sm:$0xf]  ;;  %v14945_v51 = vor.u32 %v17019_v62, %v14944_v40  ;;  %v14826_v52 = vld [vmem:[#allocation7 + $0x7a8] sm:$0xf0]  ;;  %v14825_v16 = vor.u32 %v16988_v50, %v14824_v47  ;;  %v14569_v40 = vor.u32 %v16924_v27, %v14568_v24 }
 0x405   :  { %v15849_v20 = vor.u32 %v17244_v17, %v15848_v45  ;;  %v14829_v60 = vor.u32 %v16972_v18, %v14826_v52  ;;  %v15593_v62 = vor.u32 %v17180_v34, %v15592_v33  ;;  %v17148_v42 = vld [vmem:[#allocation7 + $0xca4] sm:$0xf0]  ;;  %v17132_v47 = vld [vmem:[#allocation7 + $0xc2c] sm:$0xf] }
 0x406   :  { %v15466_v50 = vld [vmem:[#allocation7 + $0xca8] sm:$0xf0]  ;;  %v14312_v52 = vld [vmem:[#allocation7 + $0x328] sm:$0xf] }
 0x407   :  { %10085 = vmatpush.bf16.msrb.mxu0 %v14177_v0  ;;  %10098 = vmatpush.bf16.msrb.mxu1 %v15201_v14  ;;  %v17212_v0 = vld [vmem:[#allocation7 + $0xea4] sm:$0xf0]  ;;  %v16940_v14 = vld [vmem:[#allocation7 + $0x62c] sm:$0xf] }
 0x408   :  { %10111 = vmatpush.bf16.msrb.mxu2 %v14181_v21  ;;  %10124 = vmatpush.bf16.msrb.mxu3 %v15205_v22  ;;  %v15722_v21 = vld [vmem:[#allocation7 + $0xea8] sm:$0xf0]  ;;  %v14697_v22 = vor.u32 %v16956_v25, %v14696_v5  ;;  %v15721_v23 = vor.u32 %v17212_v0, %v15720_v63  ;;  %v14701_v28 = vor.u32 %v16940_v14, %v14698_v15  ;;  %v14184_v14 = vld [vmem:[#allocation7 + $0x228] sm:$0xf] }
 0x409   :  { %v15725_v29 = vor.u32 %v17196_v19, %v15722_v21  ;;  %v14314_v5 = vld [vmem:[#allocation7 + $0x3a8] sm:$0xf0]  ;;  %v14313_v63 = vor.u32 %v16860_v53, %v14312_v52  ;;  %v16828_v15 = vld [vmem:[#allocation7 + $0x2a4] sm:$0xf0] }
 0x40a   :  { %v17100_v25 = vld [vmem:[#allocation7 + $0xb2c] sm:$0xf] }
 0x40b   :  { %10086 = vmatpush.bf16.msrb.mxu0 %v14049_v55  ;;  %10099 = vmatpush.bf16.msrb.mxu1 %v15073_v35  ;;  %v14570_v55 = vld [vmem:[#allocation7 + $0x5a8] sm:$0xf0] }
 0x40c   :  { %10112 = vmatpush.bf16.msrb.mxu2 %v14053_v9  ;;  %10125 = vmatpush.bf16.msrb.mxu3 %v15077_v10  ;;  %v17164_v35 = vld [vmem:[#allocation7 + $0xd2c] sm:$0xf]  ;;  %v14440_v9 = vld [vmem:[#allocation7 + $0x428] sm:$0xf]  ;;  %v14573_v12 = vor.u32 %v16908_v30, %v14570_v55 }
 0x40d   :  { %v16892_v10 = vld [vmem:[#allocation7 + $0x4a4] sm:$0xf0]  ;;  %v15597_v13 = vor.u32 %v17164_v35, %v15594_v8  ;;  %v16812_v24 = vld [vmem:[#allocation7 + $0x22c] sm:$0xf]  ;;  %v14185_v8 = vor.u32 %v16828_v15, %v14184_v14 }
 0x40e   :  { %v17068_v33 = vld [vmem:[#allocation7 + $0xa2c] sm:$0xf] }
 0x40f   :  { %10087 = vmatpush.bf16.msrb.mxu0 %v13921_v46  ;;  %10100 = vmatpush.bf16.msrb.mxu1 %v14945_v51  ;;  %v9881_v45 = vpop.f32.mrf.mxu0  ;;  %v9894_v17 = vpop.f32.mrf.mxu1  ;;  %v14441_v46 = vor.u32 %v16892_v10, %v14440_v9  ;;  %v15465_v51 = vor.u32 %v17148_v42, %v15464_v41  ;;  %v15210_v34 = vld [vmem:[#allocation7 + $0xaa8] sm:$0xf0]  ;;  %v16796_v9 = vld [vmem:[#allocation7 + $0x1a4] sm:$0xf0] }
 0x410   :  { %10113 = vmatpush.bf16.msrb.mxu2 %v13925_v4  ;;  %10126 = vmatpush.bf16.msrb.mxu3 %v14949_v57  ;;  %v9895_v18 = vadd.f32 %v9894_v17, %v9881_v45  ;;  %v14445_v4 = vor.u32 %v16876_v44, %v14442_v43  ;;  %v15469_v57 = vor.u32 %v17132_v47, %v15466_v50  ;;  %v15080_v10 = vld [vmem:[#allocation7 + $0x928] sm:$0xf]  ;;  %v16780_v42 = vld [vmem:[#allocation7 + $0x12c] sm:$0xf] }
 0x411   :  { %v17052_v41 = vld [vmem:[#allocation7 + $0x9a4] sm:$0xf0]  ;;  %v14058_v44 = vld [vmem:[#allocation7 + $0x1a8] sm:$0xf0] }
 0x412   :  { %10088 = vmatmul.bf16.vlgmr.msrb.gmra.mxu0 %v17918_v37  ;;  %10101 = vmatmul.bf16.vlgmr.msrb.gmra.mxu1 %v17920_v39  ;;  %15934 = vst [vmem:[%s18807_s12 + $0x100] sm:$0xff] %v9895_v18  ;;  %v17036_v43 = vld [vmem:[#allocation7 + $0x92c] sm:$0xf]  ;;  %v13928_v50 = vld [vmem:[#allocation7 + $0x28] sm:$0xf]  ;;  %v15081_v17 = vor.u32 %v17052_v41, %v15080_v10  ;;  %v14061_v52 = vor.u32 %v16780_v42, %v14058_v44 }
 0x413   :  { %10132 = vmatpush.bf16.msra.mxu0 %v14825_v16  ;;  %10145 = vmatpush.bf16.msra.mxu1 %v15849_v20  ;;  %v17116_v16 = vld [vmem:[#allocation7 + $0xba4] sm:$0xf0]  ;;  %v16844_v20 = vld [vmem:[#allocation7 + $0x32c] sm:$0xf]  ;;  %v16925_v41 = vld [vmem:[#allocation7 + $0x5ac] sm:$0xf0] }
 0x414   :  { %10158 = vmatpush.bf16.msra.mxu2 %v14829_v60  ;;  %10171 = vmatpush.bf16.msra.mxu3 %v15853_v58  ;;  %v15338_v60 = vld [vmem:[#allocation7 + $0xba8] sm:$0xf0]  ;;  %v6534_v58 = vld [vmem:[%s18804_s9] sm:$0xff]  ;;  %v15337_v0 = vor.u32 %v17116_v16, %v15336_v3  ;;  %v14317_v19 = vor.u32 %v16844_v20, %v14314_v5  ;;  %v16764_v18 = vld [vmem:[#allocation7 + $0xa4] sm:$0xf0] }
 0x415   :  { %10114 = vmatmul.bf16.vlgmr.msrb.gmra.mxu2 %v17918_v37  ;;  %10127 = vmatmul.bf16.vlgmr.msrb.gmra.mxu3 %v17920_v39  ;;  %v15341_v21 = vor.u32 %v17100_v25, %v15338_v60  ;;  %v15082_v47 = vld [vmem:[#allocation7 + $0x9a8] sm:$0xf0]  ;;  %v14832_v25 = vld [vmem:[#allocation7 + $0x730] sm:$0xf]  ;;  %v13929_v14 = vor.u32 %v16764_v18, %v13928_v50  ;;  %v16909_v50 = vld [vmem:[#allocation7 + $0x534] sm:$0xf] }
 0x416   :  { %v15085_v53 = vor.u32 %v17036_v43, %v15082_v47  ;;  %v16748_v3 = vld [vmem:[#allocation7 + $0x2c] sm:$0xf]  ;;  %v16989_v60 = vld [vmem:[#allocation7 + $0x7ac] sm:$0xf0]  ;;  %v15602_v18 = vld [vmem:[#allocation7 + $0xdb0] sm:$0xf0] }
 0x417   :  { %10133 = vmatpush.bf16.msra.mxu0 %v14697_v22  ;;  %10146 = vmatpush.bf16.msra.mxu1 %v15721_v23  ;;  %v15208_v22 = vld [vmem:[#allocation7 + $0xa28] sm:$0xf]  ;;  %v9883_v55 = vpop.f32.mrf.mxu0  ;;  %v9896_v35 = vpop.f32.mrf.mxu1  ;;  %v14954_v5 = vld [vmem:[#allocation7 + $0x8a8] sm:$0xf0]  ;;  %v15600_v43 = vld [vmem:[#allocation7 + $0xd30] sm:$0xf] }
 0x418   :  { %10159 = vmatpush.bf16.msra.mxu2 %v14701_v28  ;;  %10172 = vmatpush.bf16.msra.mxu3 %v15725_v29  ;;  %v17084_v23 = vld [vmem:[#allocation7 + $0xaa4] sm:$0xf0]  ;;  %v9907_v27 = vpop.f32.mrf.mxu2  ;;  %v9920_v28 = vpop.f32.mrf.mxu3  ;;  %v14186_v29 = vld [vmem:[#allocation7 + $0x2a8] sm:$0xf0]  ;;  %v15728_v55 = vld [vmem:[#allocation7 + $0xe30] sm:$0xf] }
 0x419   :  { %v9921_v30 = vadd.f32 %v9920_v28, %v9907_v27  ;;  %v14833_v27 = vor.u32 %v16989_v60, %v14832_v25  ;;  %v17213_v35 = vld [vmem:[#allocation7 + $0xeac] sm:$0xf0]  ;;  %v17133_v25 = vld [vmem:[#allocation7 + $0xc34] sm:$0xf] }
 0x41a   :  { %6537 = vperm.xlu1 %17267, %v6534_v58   ;;  %v15856_v58 = vld [vmem:[#allocation7 + $0xf30] sm:$0xf]  ;;  %v15474_v60 = vld [vmem:[#allocation7 + $0xcb0] sm:$0xf0] }
 0x41b   :  { %10134 = vmatpush.bf16.msra.mxu0 %v14569_v40  ;;  %10147 = vmatpush.bf16.msra.mxu1 %v15593_v62  ;;  %v15209_v40 = vor.u32 %v17084_v23, %v15208_v22  ;;  %v14056_v62 = vld [vmem:[#allocation7 + $0x128] sm:$0xf]  ;;  %15935 = vst [vmem:[%s18807_s12 + $0x108] sm:$0xff] %v9921_v30  ;;  %v15858_v22 = vld [vmem:[#allocation7 + $0xfb0] sm:$0xf0] }
 0x41c   :  { %10160 = vmatpush.bf16.msra.mxu2 %v14573_v12  ;;  %10173 = vmatpush.bf16.msra.mxu3 %v15597_v13  ;;  %v14189_v12 = vor.u32 %v16812_v24, %v14186_v29  ;;  %v15213_v13 = vor.u32 %v17068_v33, %v15210_v34  ;;  %v14057_v45 = vor.u32 %v16796_v9, %v14056_v62  ;;  %v14704_v29 = vld [vmem:[#allocation7 + $0x630] sm:$0xf]  ;;  %v17197_v62 = vld [vmem:[#allocation7 + $0xe34] sm:$0xf] }
 0x41d   :  { %v16957_v33 = vld [vmem:[#allocation7 + $0x6ac] sm:$0xf0]  ;;  %v15730_v9 = vld [vmem:[#allocation7 + $0xeb0] sm:$0xf0] }
 0x41e   :  { %v14705_v10 = vor.u32 %v16957_v33, %v14704_v29  ;;  %v15733_v44 = vor.u32 %v17197_v62, %v15730_v9  ;;  %v17181_v47 = vld [vmem:[#allocation7 + $0xdac] sm:$0xf0]  ;;  %v14322_v29 = vld [vmem:[#allocation7 + $0x3b0] sm:$0xf0] }
 0x41f   :  { %10135 = vmatpush.bf16.msra.mxu0 %v14441_v46  ;;  %10148 = vmatpush.bf16.msra.mxu1 %v15465_v51  ;;  %v14952_v46 = vld [vmem:[#allocation7 + $0x828] sm:$0xf]  ;;  %v17101_v33 = vld [vmem:[#allocation7 + $0xb34] sm:$0xf]  ;;  %v15216_v9 = vld [vmem:[#allocation7 + $0xa30] sm:$0xf] }
 0x420   :  { %10161 = vmatpush.bf16.msra.mxu2 %v14445_v4  ;;  %10174 = vmatpush.bf16.msra.mxu3 %v15469_v57  ;;  %v17020_v51 = vld [vmem:[#allocation7 + $0x8a4] sm:$0xf0]  ;;  %v13930_v4 = vld [vmem:[#allocation7 + $0xa8] sm:$0xf0]  ;;  %v9909_v16 = vpop.f32.mrf.mxu2  ;;  %v9922_v20 = vpop.f32.mrf.mxu3 }
 0x421   :  { %v17004_v57 = vld [vmem:[#allocation7 + $0x82c] sm:$0xf]  ;;  %v14953_v15 = vor.u32 %v17020_v51, %v14952_v46  ;;  %v13933_v23 = vor.u32 %v16748_v3, %v13930_v4  ;;  %v15601_v51 = vor.u32 %v17181_v47, %v15600_v43  ;;  %v17149_v16 = vld [vmem:[#allocation7 + $0xcac] sm:$0xf0]  ;;  %v16877_v20 = vld [vmem:[#allocation7 + $0x434] sm:$0xf] }
 0x422   :  { %v14957_v24 = vor.u32 %v17004_v57, %v14954_v5  ;;  %v15472_v57 = vld [vmem:[#allocation7 + $0xc30] sm:$0xf]  ;;  %v14450_v5 = vld [vmem:[#allocation7 + $0x4b0] sm:$0xf0] }
 0x423   :  { %10136 = vmatpush.bf16.msra.mxu0 %v14313_v63  ;;  %10149 = vmatpush.bf16.msra.mxu1 %v15337_v0  ;;  %v17245_v63 = vld [vmem:[#allocation7 + $0xfac] sm:$0xf0]  ;;  %v16973_v0 = vld [vmem:[#allocation7 + $0x734] sm:$0xf] }
 0x424   :  { %10162 = vmatpush.bf16.msra.mxu2 %v14317_v19  ;;  %10175 = vmatpush.bf16.msra.mxu3 %v15341_v21  ;;  %v14834_v19 = vld [vmem:[#allocation7 + $0x7b0] sm:$0xf0]  ;;  %v15857_v28 = vor.u32 %v17245_v63, %v15856_v58 }
 0x425   :  { %v17229_v21 = vld [vmem:[#allocation7 + $0xf34] sm:$0xf]  ;;  %v14837_v34 = vor.u32 %v16973_v0, %v14834_v19  ;;  %v14320_v19 = vld [vmem:[#allocation7 + $0x330] sm:$0xf] }
 0x426   :  { %v15861_v30 = vor.u32 %v17229_v21, %v15858_v22  ;;  %v16861_v21 = vld [vmem:[#allocation7 + $0x3ac] sm:$0xf0]  ;;  %v15218_v43 = vld [vmem:[#allocation7 + $0xab0] sm:$0xf0] }
 0x427   :  { %10137 = vmatpush.bf16.msra.mxu0 %v14185_v8  ;;  %10150 = vmatpush.bf16.msra.mxu1 %v15209_v40  ;;  %v16941_v8 = vld [vmem:[#allocation7 + $0x634] sm:$0xf]  ;;  %v15344_v22 = vld [vmem:[#allocation7 + $0xb30] sm:$0xf] }
 0x428   :  { %10163 = vmatpush.bf16.msra.mxu2 %v14189_v12  ;;  %10176 = vmatpush.bf16.msra.mxu3 %v15213_v13  ;;  %v14706_v40 = vld [vmem:[#allocation7 + $0x6b0] sm:$0xf0]  ;;  %v15729_v12 = vor.u32 %v17213_v35, %v15728_v55  ;;  %v14576_v13 = vld [vmem:[#allocation7 + $0x530] sm:$0xf] }
 0x429   :  { %v14709_v42 = vor.u32 %v16941_v8, %v14706_v40  ;;  %v14577_v46 = vor.u32 %v16925_v41, %v14576_v13  ;;  %v14192_v35 = vld [vmem:[#allocation7 + $0x230] sm:$0xf] }
 0x42a   :  { %v16829_v8 = vld [vmem:[#allocation7 + $0x2ac] sm:$0xf0] }
 0x42b   :  { %10138 = vmatpush.bf16.msra.mxu0 %v14057_v45  ;;  %10151 = vmatpush.bf16.msra.mxu1 %v15081_v17  ;;  %v14578_v45 = vld [vmem:[#allocation7 + $0x5b0] sm:$0xf0] }
 0x42c   :  { %10164 = vmatpush.bf16.msra.mxu2 %v14061_v52  ;;  %10177 = vmatpush.bf16.msra.mxu3 %v15085_v53  ;;  %v17165_v17 = vld [vmem:[#allocation7 + $0xd34] sm:$0xf]  ;;  %v14448_v52 = vld [vmem:[#allocation7 + $0x430] sm:$0xf]  ;;  %v14581_v3 = vor.u32 %v16909_v50, %v14578_v45 }
 0x42d   :  { %v16893_v53 = vld [vmem:[#allocation7 + $0x4ac] sm:$0xf0]  ;;  %v15605_v4 = vor.u32 %v17165_v17, %v15602_v18  ;;  %v14193_v17 = vor.u32 %v16829_v8, %v14192_v35 }
 0x42f   :  { %10139 = vmatpush.bf16.msra.mxu0 %v13929_v14  ;;  %10152 = vmatpush.bf16.msra.mxu1 %v14953_v15  ;;  %v9933_v58 = vpop.f32.mrf.mxu0  ;;  %v9946_v63 = vpop.f32.mrf.mxu1  ;;  %v14449_v14 = vor.u32 %v16893_v53, %v14448_v52  ;;  %v15473_v15 = vor.u32 %v17149_v16, %v15472_v57  ;;  %v15088_v52 = vld [vmem:[#allocation7 + $0x930] sm:$0xf]  ;;  %v16781_v57 = vld [vmem:[#allocation7 + $0x134] sm:$0xf] }
 0x430   :  { %10165 = vmatpush.bf16.msra.mxu2 %v13933_v23  ;;  %10178 = vmatpush.bf16.msra.mxu3 %v14957_v24  ;;  %v9947_v0 = vadd.f32 %v9946_v63, %v9933_v58  ;;  %v14453_v23 = vor.u32 %v16877_v20, %v14450_v5  ;;  %v15477_v24 = vor.u32 %v17133_v25, %v15474_v60  ;;  %v14066_v16 = vld [vmem:[#allocation7 + $0x1b0] sm:$0xf0]  ;;  %v13936_v25 = vld [vmem:[#allocation7 + $0x30] sm:$0xf] }
 0x431   :  { %v17037_v20 = vld [vmem:[#allocation7 + $0x934] sm:$0xf]  ;;  %v16765_v63 = vld [vmem:[#allocation7 + $0xac] sm:$0xf0] }
 0x432   :  { %10140 = vmatmul.bf16.vlgmr.msra.gmra.mxu0 %v17918_v37  ;;  %10153 = vmatmul.bf16.vlgmr.msra.gmra.mxu1 %v17920_v39  ;;  %15936 = vst [vmem:[%s18807_s12 + $0x110] sm:$0xff] %v9947_v0  ;;  %v15090_v5 = vld [vmem:[#allocation7 + $0x9b0] sm:$0xf0]  ;;  %v14960_v0 = vld [vmem:[#allocation7 + $0x830] sm:$0xf]  ;;  %v13937_v35 = vor.u32 %v16765_v63, %v13936_v25 }
 0x433   :  { %10184 = vmatpush.bf16.msrb.mxu0 %v14833_v27  ;;  %10197 = vmatpush.bf16.msrb.mxu1 %v15857_v28  ;;  %v17117_v27 = vld [vmem:[#allocation7 + $0xbac] sm:$0xf0]  ;;  %v16845_v28 = vld [vmem:[#allocation7 + $0x334] sm:$0xf]  ;;  %v16910_v25 = vld [vmem:[#allocation7 + $0x53c] sm:$0xf] }
 0x434   :  { %10210 = vmatpush.bf16.msrb.mxu2 %v14837_v34  ;;  %10223 = vmatpush.bf16.msrb.mxu3 %v15861_v30  ;;  %v15346_v34 = vld [vmem:[#allocation7 + $0xbb0] sm:$0xf0]  ;;  %v14321_v30 = vor.u32 %v16861_v21, %v14320_v19  ;;  %v15345_v55 = vor.u32 %v17117_v27, %v15344_v22  ;;  %v14325_v40 = vor.u32 %v16845_v28, %v14322_v29  ;;  %v14840_v29 = vld [vmem:[#allocation7 + $0x738] sm:$0xf]  ;;  %v15610_v63 = vld [vmem:[#allocation7 + $0xdb8] sm:$0xf0] }
 0x435   :  { %10166 = vmatmul.bf16.vlgmr.msra.gmra.mxu2 %v17918_v37  ;;  %10179 = vmatmul.bf16.vlgmr.msra.gmra.mxu3 %v17920_v39  ;;  %v15349_v62 = vor.u32 %v17101_v33, %v15346_v34  ;;  %v15093_v19 = vor.u32 %v17037_v20, %v15090_v5  ;;  %v16749_v21 = vld [vmem:[#allocation7 + $0x34] sm:$0xf]  ;;  %v16990_v33 = vld [vmem:[#allocation7 + $0x7b4] sm:$0xf0] }
 0x436   :  { %v13938_v22 = vld [vmem:[#allocation7 + $0xb0] sm:$0xf0]  ;;  %v15864_v34 = vld [vmem:[#allocation7 + $0xf38] sm:$0xf] }
 0x437   :  { %10185 = vmatpush.bf16.msrb.mxu0 %v14705_v10  ;;  %10198 = vmatpush.bf16.msrb.mxu1 %v15729_v12  ;;  %v17085_v10 = vld [vmem:[#allocation7 + $0xaac] sm:$0xf0]  ;;  %v16813_v12 = vld [vmem:[#allocation7 + $0x234] sm:$0xf]  ;;  %v9935_v50 = vpop.f32.mrf.mxu0  ;;  %v9948_v45 = vpop.f32.mrf.mxu1  ;;  %v15608_v20 = vld [vmem:[#allocation7 + $0xd38] sm:$0xf] }
 0x438   :  { %10211 = vmatpush.bf16.msrb.mxu2 %v14709_v42  ;;  %10224 = vmatpush.bf16.msrb.mxu3 %v15733_v44  ;;  %v9959_v13 = vpop.f32.mrf.mxu2  ;;  %v9972_v41 = vpop.f32.mrf.mxu3  ;;  %v14194_v42 = vld [vmem:[#allocation7 + $0x2b0] sm:$0xf0]  ;;  %v15217_v18 = vor.u32 %v17085_v10, %v15216_v9  ;;  %v15866_v9 = vld [vmem:[#allocation7 + $0xfb8] sm:$0xf0]  ;;  %v13941_v10 = vor.u32 %v16749_v21, %v13938_v22  ;;  %v15736_v50 = vld [vmem:[#allocation7 + $0xe38] sm:$0xf] }
 0x439   :  { %v17069_v44 = vld [vmem:[#allocation7 + $0xa34] sm:$0xf]  ;;  %v9973_v47 = vadd.f32 %v9972_v41, %v9959_v13  ;;  %v14197_v53 = vor.u32 %v16813_v12, %v14194_v42  ;;  %v14841_v13 = vor.u32 %v16990_v33, %v14840_v29  ;;  %v14712_v42 = vld [vmem:[#allocation7 + $0x638] sm:$0xf]  ;;  %v17134_v29 = vld [vmem:[#allocation7 + $0xc3c] sm:$0xf] }
 0x43a   :  { %v14962_v28 = vld [vmem:[#allocation7 + $0x8b0] sm:$0xf0]  ;;  %v17214_v45 = vld [vmem:[#allocation7 + $0xeb4] sm:$0xf0]  ;;  %v15482_v33 = vld [vmem:[#allocation7 + $0xcb8] sm:$0xf0] }
 0x43b   :  { %10186 = vmatpush.bf16.msrb.mxu0 %v14577_v46  ;;  %10199 = vmatpush.bf16.msrb.mxu1 %v15601_v51  ;;  %v14064_v46 = vld [vmem:[#allocation7 + $0x130] sm:$0xf]  ;;  %15937 = vst [vmem:[%s18807_s12 + $0x118] sm:$0xff] %v9973_v47  ;;  %v17182_v5 = vld [vmem:[#allocation7 + $0xdb4] sm:$0xf0] }
 0x43c   :  { %10212 = vmatpush.bf16.msrb.mxu2 %v14581_v3  ;;  %10225 = vmatpush.bf16.msrb.mxu3 %v15605_v4  ;;  %v16797_v51 = vld [vmem:[#allocation7 + $0x1ac] sm:$0xf0]  ;;  %v15221_v3 = vor.u32 %v17069_v44, %v15218_v43  ;;  %v16958_v44 = vld [vmem:[#allocation7 + $0x6b4] sm:$0xf0] }
 0x43d   :  { %v17053_v4 = vld [vmem:[#allocation7 + $0x9ac] sm:$0xf0]  ;;  %v14065_v60 = vor.u32 %v16797_v51, %v14064_v46  ;;  %v17198_v46 = vld [vmem:[#allocation7 + $0xe3c] sm:$0xf] }
 0x43e   :  { %v15089_v58 = vor.u32 %v17053_v4, %v15088_v52  ;;  %v15738_v51 = vld [vmem:[#allocation7 + $0xeb8] sm:$0xf0]  ;;  %v14713_v52 = vor.u32 %v16958_v44, %v14712_v42  ;;  %v16926_v4 = vld [vmem:[#allocation7 + $0x5b4] sm:$0xf0] }
 0x43f   :  { %10187 = vmatpush.bf16.msrb.mxu0 %v14449_v14  ;;  %10200 = vmatpush.bf16.msrb.mxu1 %v15473_v15  ;;  %v17021_v14 = vld [vmem:[#allocation7 + $0x8ac] sm:$0xf0]  ;;  %v14069_v15 = vor.u32 %v16781_v57, %v14066_v16  ;;  %v15741_v16 = vor.u32 %v17198_v46, %v15738_v51  ;;  %v14330_v42 = vld [vmem:[#allocation7 + $0x3b8] sm:$0xf0]  ;;  %v15224_v51 = vld [vmem:[#allocation7 + $0xa38] sm:$0xf] }
 0x440   :  { %10213 = vmatpush.bf16.msrb.mxu2 %v14453_v23  ;;  %10226 = vmatpush.bf16.msrb.mxu3 %v15477_v24  ;;  %v17005_v23 = vld [vmem:[#allocation7 + $0x834] sm:$0xf]  ;;  %v9961_v24 = vpop.f32.mrf.mxu2  ;;  %v9974_v27 = vpop.f32.mrf.mxu3  ;;  %v14961_v8 = vor.u32 %v17021_v14, %v14960_v0  ;;  %v15609_v14 = vor.u32 %v17182_v5, %v15608_v20  ;;  %v17102_v44 = vld [vmem:[#allocation7 + $0xb3c] sm:$0xf] }
 0x441   :  { %v14965_v12 = vor.u32 %v17005_v23, %v14962_v28  ;;  %v15480_v23 = vld [vmem:[#allocation7 + $0xc38] sm:$0xf]  ;;  %v16878_v27 = vld [vmem:[#allocation7 + $0x43c] sm:$0xf] }
 0x442   :  { %v17150_v24 = vld [vmem:[#allocation7 + $0xcb4] sm:$0xf0]  ;;  %v14458_v28 = vld [vmem:[#allocation7 + $0x4b8] sm:$0xf0] }
 0x443   :  { %10188 = vmatpush.bf16.msrb.mxu0 %v14321_v30  ;;  %10201 = vmatpush.bf16.msrb.mxu1 %v15345_v55  ;;  %v17246_v30 = vld [vmem:[#allocation7 + $0xfb4] sm:$0xf0]  ;;  %v16974_v55 = vld [vmem:[#allocation7 + $0x73c] sm:$0xf] }
 0x444   :  { %10214 = vmatpush.bf16.msrb.mxu2 %v14325_v40  ;;  %10227 = vmatpush.bf16.msrb.mxu3 %v15349_v62  ;;  %v14842_v40 = vld [vmem:[#allocation7 + $0x7b8] sm:$0xf0]  ;;  %v15865_v41 = vor.u32 %v17246_v30, %v15864_v34 }
 0x445   :  { %v17230_v62 = vld [vmem:[#allocation7 + $0xf3c] sm:$0xf]  ;;  %v14845_v43 = vor.u32 %v16974_v55, %v14842_v40  ;;  %v14328_v40 = vld [vmem:[#allocation7 + $0x338] sm:$0xf] }
 0x446   :  { %v15869_v47 = vor.u32 %v17230_v62, %v15866_v9  ;;  %v16862_v62 = vld [vmem:[#allocation7 + $0x3b4] sm:$0xf0]  ;;  %v15226_v20 = vld [vmem:[#allocation7 + $0xab8] sm:$0xf0] }
 0x447   :  { %10189 = vmatpush.bf16.msrb.mxu0 %v14193_v17  ;;  %10202 = vmatpush.bf16.msrb.mxu1 %v15217_v18  ;;  %v16942_v17 = vld [vmem:[#allocation7 + $0x63c] sm:$0xf]  ;;  %v15352_v9 = vld [vmem:[#allocation7 + $0xb38] sm:$0xf] }
 0x448   :  { %10215 = vmatpush.bf16.msrb.mxu2 %v14197_v53  ;;  %10228 = vmatpush.bf16.msrb.mxu3 %v15221_v3  ;;  %v14714_v18 = vld [vmem:[#allocation7 + $0x6b8] sm:$0xf0]  ;;  %v15737_v53 = vor.u32 %v17214_v45, %v15736_v50  ;;  %v14584_v3 = vld [vmem:[#allocation7 + $0x538] sm:$0xf] }
 0x449   :  { %v14717_v57 = vor.u32 %v16942_v17, %v14714_v18  ;;  %v14585_v0 = vor.u32 %v16926_v4, %v14584_v3  ;;  %v14200_v45 = vld [vmem:[#allocation7 + $0x238] sm:$0xf] }
 0x44a   :  { %v16830_v17 = vld [vmem:[#allocation7 + $0x2b4] sm:$0xf0] }
 0x44b   :  { %10190 = vmatpush.bf16.msrb.mxu0 %v14065_v60  ;;  %10203 = vmatpush.bf16.msrb.mxu1 %v15089_v58  ;;  %v14586_v60 = vld [vmem:[#allocation7 + $0x5b8] sm:$0xf0] }
 0x44c   :  { %10216 = vmatpush.bf16.msrb.mxu2 %v14069_v15  ;;  %10229 = vmatpush.bf16.msrb.mxu3 %v15093_v19  ;;  %v17166_v58 = vld [vmem:[#allocation7 + $0xd3c] sm:$0xf]  ;;  %v14456_v15 = vld [vmem:[#allocation7 + $0x438] sm:$0xf]  ;;  %v14589_v21 = vor.u32 %v16910_v25, %v14586_v60 }
 0x44d   :  { %v16894_v19 = vld [vmem:[#allocation7 + $0x4b4] sm:$0xf0]  ;;  %v15613_v22 = vor.u32 %v17166_v58, %v15610_v63  ;;  %v14201_v58 = vor.u32 %v16830_v17, %v14200_v45 }
 0x44f   :  { %10191 = vmatpush.bf16.msrb.mxu0 %v13937_v35  ;;  %10204 = vmatpush.bf16.msrb.mxu1 %v14961_v8  ;;  %v9985_v34 = vpop.f32.mrf.mxu0  ;;  %v9998_v30 = vpop.f32.mrf.mxu1  ;;  %v14457_v35 = vor.u32 %v16894_v19, %v14456_v15  ;;  %v15481_v8 = vor.u32 %v17150_v24, %v15480_v23  ;;  %v15096_v15 = vld [vmem:[#allocation7 + $0x938] sm:$0xf]  ;;  %v16782_v23 = vld [vmem:[#allocation7 + $0x13c] sm:$0xf] }
 0x450   :  { %10217 = vmatpush.bf16.msrb.mxu2 %v13941_v10  ;;  %10230 = vmatpush.bf16.msrb.mxu3 %v14965_v12  ;;  %v9999_v55 = vadd.f32 %v9998_v30, %v9985_v34  ;;  %v14461_v10 = vor.u32 %v16878_v27, %v14458_v28  ;;  %v15485_v12 = vor.u32 %v17134_v29, %v15482_v33  ;;  %v14074_v24 = vld [vmem:[#allocation7 + $0x1b8] sm:$0xf0]  ;;  %v13944_v29 = vld [vmem:[#allocation7 + $0x38] sm:$0xf] }
 0x451   :  { %v17038_v27 = vld [vmem:[#allocation7 + $0x93c] sm:$0xf]  ;;  %v16766_v30 = vld [vmem:[#allocation7 + $0xb4] sm:$0xf0] }
 0x452   :  { %10192 = vmatmul.bf16.vlgmr.msrb.gmra.mxu0 %v17918_v37  ;;  %10205 = vmatmul.bf16.vlgmr.msrb.gmra.mxu1 %v17920_v39  ;;  %15938 = vst [vmem:[%s18807_s12 + $0x120] sm:$0xff] %v9999_v55  ;;  %v15098_v28 = vld [vmem:[#allocation7 + $0x9b8] sm:$0xf0]  ;;  %v14968_v55 = vld [vmem:[#allocation7 + $0x838] sm:$0xf]  ;;  %v13945_v45 = vor.u32 %v16766_v30, %v13944_v29 }
 0x453   :  { %10236 = vmatpush.bf16.msra.mxu0 %v14841_v13  ;;  %10249 = vmatpush.bf16.msra.mxu1 %v15865_v41  ;;  %v17118_v13 = vld [vmem:[#allocation7 + $0xbb4] sm:$0xf0]  ;;  %v16846_v41 = vld [vmem:[#allocation7 + $0x33c] sm:$0xf]  ;;  %v16911_v29 = vld [vmem:[#allocation7 + $0x544] sm:$0xf] }
 0x454   :  { %10262 = vmatpush.bf16.msra.mxu2 %v14845_v43  ;;  %10275 = vmatpush.bf16.msra.mxu3 %v15869_v47  ;;  %v15354_v43 = vld [vmem:[#allocation7 + $0xbb8] sm:$0xf0]  ;;  %v14329_v47 = vor.u32 %v16862_v62, %v14328_v40  ;;  %v15353_v50 = vor.u32 %v17118_v13, %v15352_v9  ;;  %v14333_v18 = vor.u32 %v16846_v41, %v14330_v42  ;;  %v14848_v42 = vld [vmem:[#allocation7 + $0x740] sm:$0xf]  ;;  %v15618_v30 = vld [vmem:[#allocation7 + $0xdc0] sm:$0xf0] }
 0x455   :  { %10218 = vmatmul.bf16.vlgmr.msrb.gmra.mxu2 %v17918_v37  ;;  %10231 = vmatmul.bf16.vlgmr.msrb.gmra.mxu3 %v17920_v39  ;;  %v15357_v46 = vor.u32 %v17102_v44, %v15354_v43  ;;  %v15101_v40 = vor.u32 %v17038_v27, %v15098_v28  ;;  %v16750_v62 = vld [vmem:[#allocation7 + $0x3c] sm:$0xf]  ;;  %v16991_v44 = vld [vmem:[#allocation7 + $0x7bc] sm:$0xf0] }
 0x456   :  { %v13946_v9 = vld [vmem:[#allocation7 + $0xb8] sm:$0xf0]  ;;  %v15872_v43 = vld [vmem:[#allocation7 + $0xf40] sm:$0xf] }
 0x457   :  { %10237 = vmatpush.bf16.msra.mxu0 %v14713_v52  ;;  %10250 = vmatpush.bf16.msra.mxu1 %v15737_v53  ;;  %v17086_v52 = vld [vmem:[#allocation7 + $0xab4] sm:$0xf0]  ;;  %v16814_v53 = vld [vmem:[#allocation7 + $0x23c] sm:$0xf]  ;;  %v9987_v25 = vpop.f32.mrf.mxu0  ;;  %v10000_v60 = vpop.f32.mrf.mxu1  ;;  %v15616_v27 = vld [vmem:[#allocation7 + $0xd40] sm:$0xf] }
 0x458   :  { %10263 = vmatpush.bf16.msra.mxu2 %v14717_v57  ;;  %10276 = vmatpush.bf16.msra.mxu3 %v15741_v16  ;;  %v10011_v3 = vpop.f32.mrf.mxu2  ;;  %v10024_v4 = vpop.f32.mrf.mxu3  ;;  %v14202_v57 = vld [vmem:[#allocation7 + $0x2b8] sm:$0xf0]  ;;  %v15225_v63 = vor.u32 %v17086_v52, %v15224_v51  ;;  %v15874_v51 = vld [vmem:[#allocation7 + $0xfc0] sm:$0xf0]  ;;  %v13949_v52 = vor.u32 %v16750_v62, %v13946_v9  ;;  %v15744_v25 = vld [vmem:[#allocation7 + $0xe40] sm:$0xf] }
 0x459   :  { %v17070_v16 = vld [vmem:[#allocation7 + $0xa3c] sm:$0xf]  ;;  %v10025_v5 = vadd.f32 %v10024_v4, %v10011_v3  ;;  %v14205_v19 = vor.u32 %v16814_v53, %v14202_v57  ;;  %v14849_v3 = vor.u32 %v16991_v44, %v14848_v42  ;;  %v14720_v57 = vld [vmem:[#allocation7 + $0x640] sm:$0xf]  ;;  %v17135_v42 = vld [vmem:[#allocation7 + $0xc44] sm:$0xf] }
 0x45a   :  { %v14970_v41 = vld [vmem:[#allocation7 + $0x8b8] sm:$0xf0]  ;;  %v17215_v60 = vld [vmem:[#allocation7 + $0xebc] sm:$0xf0]  ;;  %v15490_v44 = vld [vmem:[#allocation7 + $0xcc0] sm:$0xf0] }
 0x45b   :  { %10238 = vmatpush.bf16.msra.mxu0 %v14585_v0  ;;  %10251 = vmatpush.bf16.msra.mxu1 %v15609_v14  ;;  %v14072_v0 = vld [vmem:[#allocation7 + $0x138] sm:$0xf]  ;;  %15939 = vst [vmem:[%s18807_s12 + $0x128] sm:$0xff] %v10025_v5  ;;  %v17183_v28 = vld [vmem:[#allocation7 + $0xdbc] sm:$0xf0] }
 0x45c   :  { %10264 = vmatpush.bf16.msra.mxu2 %v14589_v21  ;;  %10277 = vmatpush.bf16.msra.mxu3 %v15613_v22  ;;  %v16798_v14 = vld [vmem:[#allocation7 + $0x1b4] sm:$0xf0]  ;;  %v15229_v21 = vor.u32 %v17070_v16, %v15226_v20  ;;  %v16959_v16 = vld [vmem:[#allocation7 + $0x6bc] sm:$0xf0] }
 0x45d   :  { %v17054_v22 = vld [vmem:[#allocation7 + $0x9b4] sm:$0xf0]  ;;  %v14073_v33 = vor.u32 %v16798_v14, %v14072_v0  ;;  %v17199_v0 = vld [vmem:[#allocation7 + $0xe44] sm:$0xf] }
 0x45e   :  { %v15097_v34 = vor.u32 %v17054_v22, %v15096_v15  ;;  %v15746_v14 = vld [vmem:[#allocation7 + $0xec0] sm:$0xf0]  ;;  %v14721_v15 = vor.u32 %v16959_v16, %v14720_v57  ;;  %v16927_v22 = vld [vmem:[#allocation7 + $0x5bc] sm:$0xf0] }
 0x45f   :  { %10239 = vmatpush.bf16.msra.mxu0 %v14457_v35  ;;  %10252 = vmatpush.bf16.msra.mxu1 %v15481_v8  ;;  %v17022_v35 = vld [vmem:[#allocation7 + $0x8b4] sm:$0xf0]  ;;  %v14077_v8 = vor.u32 %v16782_v23, %v14074_v24  ;;  %v15749_v24 = vor.u32 %v17199_v0, %v15746_v14  ;;  %v14338_v57 = vld [vmem:[#allocation7 + $0x3c0] sm:$0xf0]  ;;  %v15232_v14 = vld [vmem:[#allocation7 + $0xa40] sm:$0xf] }
 0x460   :  { %10265 = vmatpush.bf16.msra.mxu2 %v14461_v10  ;;  %10278 = vmatpush.bf16.msra.mxu3 %v15485_v12  ;;  %v17006_v10 = vld [vmem:[#allocation7 + $0x83c] sm:$0xf]  ;;  %v10013_v12 = vpop.f32.mrf.mxu2  ;;  %v10026_v13 = vpop.f32.mrf.mxu3  ;;  %v14969_v17 = vor.u32 %v17022_v35, %v14968_v55  ;;  %v15617_v35 = vor.u32 %v17183_v28, %v15616_v27  ;;  %v17103_v16 = vld [vmem:[#allocation7 + $0xb44] sm:$0xf] }
 0x461   :  { %v14973_v53 = vor.u32 %v17006_v10, %v14970_v41  ;;  %v15488_v10 = vld [vmem:[#allocation7 + $0xc40] sm:$0xf]  ;;  %v16879_v13 = vld [vmem:[#allocation7 + $0x444] sm:$0xf] }
 0x462   :  { %v17151_v12 = vld [vmem:[#allocation7 + $0xcbc] sm:$0xf0]  ;;  %v14466_v41 = vld [vmem:[#allocation7 + $0x4c0] sm:$0xf0] }
 0x463   :  { %10240 = vmatpush.bf16.msra.mxu0 %v14329_v47  ;;  %10253 = vmatpush.bf16.msra.mxu1 %v15353_v50  ;;  %v17247_v47 = vld [vmem:[#allocation7 + $0xfbc] sm:$0xf0]  ;;  %v16975_v50 = vld [vmem:[#allocation7 + $0x744] sm:$0xf] }
 0x464   :  { %10266 = vmatpush.bf16.msra.mxu2 %v14333_v18  ;;  %10279 = vmatpush.bf16.msra.mxu3 %v15357_v46  ;;  %v14850_v18 = vld [vmem:[#allocation7 + $0x7c0] sm:$0xf0]  ;;  %v15873_v4 = vor.u32 %v17247_v47, %v15872_v43 }
 0x465   :  { %v17231_v46 = vld [vmem:[#allocation7 + $0xf44] sm:$0xf]  ;;  %v14853_v20 = vor.u32 %v16975_v50, %v14850_v18  ;;  %v14336_v18 = vld [vmem:[#allocation7 + $0x340] sm:$0xf] }
 0x466   :  { %v15877_v5 = vor.u32 %v17231_v46, %v15874_v51  ;;  %v16863_v46 = vld [vmem:[#allocation7 + $0x3bc] sm:$0xf0]  ;;  %v15234_v27 = vld [vmem:[#allocation7 + $0xac0] sm:$0xf0] }
 0x467   :  { %10241 = vmatpush.bf16.msra.mxu0 %v14201_v58  ;;  %10254 = vmatpush.bf16.msra.mxu1 %v15225_v63  ;;  %v16943_v58 = vld [vmem:[#allocation7 + $0x644] sm:$0xf]  ;;  %v15360_v51 = vld [vmem:[#allocation7 + $0xb40] sm:$0xf] }
 0x468   :  { %10267 = vmatpush.bf16.msra.mxu2 %v14205_v19  ;;  %10280 = vmatpush.bf16.msra.mxu3 %v15229_v21  ;;  %v14722_v63 = vld [vmem:[#allocation7 + $0x6c0] sm:$0xf0]  ;;  %v15745_v19 = vor.u32 %v17215_v60, %v15744_v25  ;;  %v14592_v21 = vld [vmem:[#allocation7 + $0x540] sm:$0xf] }
 0x469   :  { %v14725_v23 = vor.u32 %v16943_v58, %v14722_v63  ;;  %v14593_v55 = vor.u32 %v16927_v22, %v14592_v21  ;;  %v14208_v60 = vld [vmem:[#allocation7 + $0x240] sm:$0xf] }
 0x46a   :  { %v16831_v58 = vld [vmem:[#allocation7 + $0x2bc] sm:$0xf0] }
 0x46b   :  { %10242 = vmatpush.bf16.msra.mxu0 %v14073_v33  ;;  %10255 = vmatpush.bf16.msra.mxu1 %v15097_v34  ;;  %v14594_v33 = vld [vmem:[#allocation7 + $0x5c0] sm:$0xf0] }
 0x46c   :  { %10268 = vmatpush.bf16.msra.mxu2 %v14077_v8  ;;  %10281 = vmatpush.bf16.msra.mxu3 %v15101_v40  ;;  %v17167_v34 = vld [vmem:[#allocation7 + $0xd44] sm:$0xf]  ;;  %v14464_v8 = vld [vmem:[#allocation7 + $0x440] sm:$0xf]  ;;  %v14597_v62 = vor.u32 %v16911_v29, %v14594_v33 }
 0x46d   :  { %v16895_v40 = vld [vmem:[#allocation7 + $0x4bc] sm:$0xf0]  ;;  %v15621_v9 = vor.u32 %v17167_v34, %v15618_v30  ;;  %v6495_v34 = vld [vmem:[%s18800_s5] sm:$0xff]  ;;  %v14209_v30 = vor.u32 %v16831_v58, %v14208_v60  ;;  %v14856_v58 = vld [vmem:[#allocation7 + $0x748] sm:$0xf] }
 0x46f   :  { %10243 = vmatpush.bf16.msra.mxu0 %v13945_v45  ;;  %10256 = vmatpush.bf16.msra.mxu1 %v14969_v17  ;;  %v10037_v43 = vpop.f32.mrf.mxu0  ;;  %v10050_v47 = vpop.f32.mrf.mxu1  ;;  %v14465_v45 = vor.u32 %v16895_v40, %v14464_v8  ;;  %v15489_v17 = vor.u32 %v17151_v12, %v15488_v10  ;;  %v14080_v8 = vld [vmem:[#allocation7 + $0x140] sm:$0xf] }
 0x470   :  { %10269 = vmatpush.bf16.msra.mxu2 %v13949_v52  ;;  %10282 = vmatpush.bf16.msra.mxu3 %v14973_v53  ;;  %v10051_v50 = vadd.f32 %v10050_v47, %v10037_v43  ;;  %v14469_v52 = vor.u32 %v16879_v13, %v14466_v41  ;;  %v15493_v53 = vor.u32 %v17135_v42, %v15490_v44  ;;  %v16799_v40 = vld [vmem:[#allocation7 + $0x1bc] sm:$0xf0]  ;;  %v16783_v41 = vld [vmem:[#allocation7 + $0x144] sm:$0xf] }
 0x471   :  { %v17055_v13 = vld [vmem:[#allocation7 + $0x9bc] sm:$0xf0]  ;;  %v14082_v42 = vld [vmem:[#allocation7 + $0x1c0] sm:$0xf0] }
 0x472   :  { %10244 = vmatmul.bf16.vlgmr.msra.gmra.mxu0 %v17918_v37  ;;  %10257 = vmatmul.bf16.vlgmr.msra.gmra.mxu1 %v17920_v39  ;;  %15940 = vst [vmem:[%s18807_s12 + $0x130] sm:$0xff] %v10051_v50  ;;  %v17039_v44 = vld [vmem:[#allocation7 + $0x944] sm:$0xf]  ;;  %v13952_v50 = vld [vmem:[#allocation7 + $0x40] sm:$0xf] }
 0x473   :  { %10288 = vmatpush.bf16.msrb.mxu0 %v14849_v3  ;;  %10301 = vmatpush.bf16.msrb.mxu1 %v15873_v4  ;;  %v17119_v3 = vld [vmem:[#allocation7 + $0xbbc] sm:$0xf0]  ;;  %v16847_v4 = vld [vmem:[#allocation7 + $0x344] sm:$0xf] }
 0x474   :  { %10314 = vmatpush.bf16.msrb.mxu2 %v14853_v20  ;;  %10327 = vmatpush.bf16.msrb.mxu3 %v15877_v5  ;;  %v15362_v20 = vld [vmem:[#allocation7 + $0xbc0] sm:$0xf0]  ;;  %v14337_v5 = vor.u32 %v16863_v46, %v14336_v18  ;;  %v15361_v25 = vor.u32 %v17119_v3, %v15360_v51  ;;  %v14341_v63 = vor.u32 %v16847_v4, %v14338_v57  ;;  %v17023_v51 = vld [vmem:[#allocation7 + $0x8bc] sm:$0xf0] }
 0x475   :  { %10270 = vmatmul.bf16.vlgmr.msra.gmra.mxu2 %v17918_v37  ;;  %10283 = vmatmul.bf16.vlgmr.msra.gmra.mxu3 %v17920_v39  ;;  %v15365_v0 = vor.u32 %v17103_v16, %v15362_v20  ;;  %v15106_v43 = vld [vmem:[#allocation7 + $0x9c0] sm:$0xf0]  ;;  %v14081_v18 = vor.u32 %v16799_v40, %v14080_v8  ;;  %v14085_v4 = vor.u32 %v16783_v41, %v14082_v42  ;;  %v15752_v40 = vld [vmem:[#allocation7 + $0xe48] sm:$0xf] }
 0x476   :  { %v15109_v57 = vor.u32 %v17039_v44, %v15106_v43  ;;  %v17007_v16 = vld [vmem:[#allocation7 + $0x844] sm:$0xf]  ;;  %v14600_v43 = vld [vmem:[#allocation7 + $0x548] sm:$0xf] }
 0x477   :  { %10289 = vmatpush.bf16.msrb.mxu0 %v14721_v15  ;;  %10302 = vmatpush.bf16.msrb.mxu1 %v15745_v19  ;;  %v17087_v15 = vld [vmem:[#allocation7 + $0xabc] sm:$0xf0]  ;;  %v16815_v19 = vld [vmem:[#allocation7 + $0x244] sm:$0xf]  ;;  %v10039_v29 = vpop.f32.mrf.mxu0  ;;  %v10052_v33 = vpop.f32.mrf.mxu1 }
 0x478   :  { %10315 = vmatpush.bf16.msrb.mxu2 %v14725_v23  ;;  %10328 = vmatpush.bf16.msrb.mxu3 %v15749_v24  ;;  %v10063_v21 = vpop.f32.mrf.mxu2  ;;  %v10076_v22 = vpop.f32.mrf.mxu3  ;;  %v14210_v23 = vld [vmem:[#allocation7 + $0x2c0] sm:$0xf0] }
 0x479   :  { %v17071_v24 = vld [vmem:[#allocation7 + $0xa44] sm:$0xf]  ;;  %v10077_v28 = vadd.f32 %v10076_v22, %v10063_v21  ;;  %v14858_v22 = vld [vmem:[#allocation7 + $0x7c8] sm:$0xf0] }
 0x47a   :  { %v15237_v10 = vor.u32 %v17071_v24, %v15234_v27  ;;  %v14978_v20 = vld [vmem:[#allocation7 + $0x8c0] sm:$0xf0]  ;;  %v15882_v24 = vld [vmem:[#allocation7 + $0xfc8] sm:$0xf0] }
 0x47b   :  { %10290 = vmatpush.bf16.msrb.mxu0 %v14593_v55  ;;  %10303 = vmatpush.bf16.msrb.mxu1 %v15617_v35  ;;  %v15233_v55 = vor.u32 %v17087_v15, %v15232_v14  ;;  %v6493_v35 = vpop.xlane.xlu1 %6492  ;;  %15941 = vst [vmem:[%s18807_s12 + $0x138] sm:$0xff] %v10077_v28  ;;  %v17248_v14 = vld [vmem:[#allocation7 + $0xfc4] sm:$0xf0]  ;;  %v16976_v15 = vld [vmem:[#allocation7 + $0x74c] sm:$0xf]  ;;  %v14981_v29 = vor.u32 %v17007_v16, %v14978_v20 }
 0x47c   :  { %10316 = vmatpush.bf16.msrb.mxu2 %v14597_v62  ;;  %10329 = vmatpush.bf16.msrb.mxu3 %v15621_v9  ;;  %v15104_v62 = vld [vmem:[#allocation7 + $0x940] sm:$0xf]  ;;  %v14213_v9 = vor.u32 %v16815_v19, %v14210_v23  ;;  %v6494_v12 = vmul.f32 0.0009765625, %v6493_v35  ;;  %v17232_v23 = vld [vmem:[#allocation7 + $0xf4c] sm:$0xf]  ;;  %v14861_v35 = vor.u32 %v16976_v15, %v14858_v22 }
 0x47d   :  { %v15105_v46 = vor.u32 %v17055_v13, %v15104_v62  ;;  %v15885_v8 = vor.u32 %v17232_v23, %v15882_v24  ;;  %v17216_v62 = vld [vmem:[#allocation7 + $0xec4] sm:$0xf0]  ;;  %v15754_v13 = vld [vmem:[#allocation7 + $0xec8] sm:$0xf0] }
 0x47e   :  { %v6496_v47 = vmul.f32 %v6495_v34, %v6494_v12  ;;  %v17200_v12 = vld [vmem:[#allocation7 + $0xe4c] sm:$0xf]  ;;  %v15753_v44 = vor.u32 %v17216_v62, %v15752_v40  ;;  %v14472_v16 = vld [vmem:[#allocation7 + $0x448] sm:$0xf] }
 0x47f   :  { %10291 = vmatpush.bf16.msrb.mxu0 %v14465_v45  ;;  %10304 = vmatpush.bf16.msrb.mxu1 %v15489_v17  ;;  %v16767_v45 = vld [vmem:[#allocation7 + $0xbc] sm:$0xf0]  ;;  %v16896_v20 = vld [vmem:[#allocation7 + $0x4c4] sm:$0xf0]  ;;  %v15498_v15 = vld [vmem:[#allocation7 + $0xcc8] sm:$0xf0] }
 0x480   :  { %10317 = vmatpush.bf16.msrb.mxu2 %v14469_v52  ;;  %10330 = vmatpush.bf16.msrb.mxu3 %v15493_v53  ;;  %v14976_v17 = vld [vmem:[#allocation7 + $0x840] sm:$0xf]  ;;  %v16751_v52 = vld [vmem:[#allocation7 + $0x44] sm:$0xf]  ;;  %v6497_v3 = vsel %vm1263_vm2, %v6496_v47, 0.0  ;;  %v10078_v60 = vpop.f32.mrf.mxu3  ;;  %v13953_v19 = vor.u32 %v16767_v45, %v13952_v50  ;;  %v15757_v45 = vor.u32 %v17200_v12, %v15754_v13  ;;  %v14473_v24 = vor.u32 %v16896_v20, %v14472_v16 }
 0x481   :  { %v13954_v53 = vld [vmem:[#allocation7 + $0xc0] sm:$0xf0]  ;;  %v14977_v21 = vor.u32 %v17023_v51, %v14976_v17  ;;  %v16928_v47 = vld [vmem:[#allocation7 + $0x5c4] sm:$0xf0]  ;;  %v14602_v51 = vld [vmem:[#allocation7 + $0x5c8] sm:$0xf0] }
 0x482   :  { %v13957_v28 = vor.u32 %v16751_v52, %v13954_v53  ;;  %v15624_v17 = vld [vmem:[#allocation7 + $0xd48] sm:$0xf]  ;;  %v17168_v52 = vld [vmem:[#allocation7 + $0xd4c] sm:$0xf]  ;;  %v6504_v13 = vld [vmem:[#allocation8] sm:$0x1] }
 0x483   :  { %10292 = vmatpush.bf16.msrb.mxu0 %v14337_v5  ;;  %10305 = vmatpush.bf16.msrb.mxu1 %v15361_v25  ;;  %v6498_v5 = vrot.slane %v6497_v3, 4  ;;  %v10065_v25 = vpop.f32.mrf.mxu2  ;;  %v15626_v53 = vld [vmem:[#allocation7 + $0xdc8] sm:$0xf0]  ;;  %v15496_v60 = vld [vmem:[#allocation7 + $0xc48] sm:$0xf] }
 0x484   :  { %10318 = vmatpush.bf16.msrb.mxu2 %v14341_v63  ;;  %10331 = vmatpush.bf16.msrb.mxu3 %v15365_v0  ;;  %v16992_v63 = vld [vmem:[#allocation7 + $0x7c4] sm:$0xf0]  ;;  %v15629_v25 = vor.u32 %v17168_v52, %v15626_v53  ;;  %v17104_v40 = vld [vmem:[#allocation7 + $0xb4c] sm:$0xf] }
 0x485   :  { %v15880_v0 = vld [vmem:[#allocation7 + $0xf48] sm:$0xf]  ;;  %v6499_v27 = vadd.f32 %v6498_v5, %v6497_v3  ;;  %v14857_v33 = vor.u32 %v16992_v63, %v14856_v58  ;;  %v16880_v63 = vld [vmem:[#allocation7 + $0x44c] sm:$0xf] }
 0x486   :  { %v15881_v34 = vor.u32 %v17248_v14, %v15880_v0  ;;  %v17152_v58 = vld [vmem:[#allocation7 + $0xcc4] sm:$0xf0]  ;;  %v14474_v0 = vld [vmem:[#allocation7 + $0x4c8] sm:$0xf0] }
 0x487   :  { %10293 = vmatpush.bf16.msrb.mxu0 %v14209_v30  ;;  %10306 = vmatpush.bf16.msrb.mxu1 %v15233_v55  ;;  %v14728_v30 = vld [vmem:[#allocation7 + $0x648] sm:$0xf]  ;;  %v6500_v41 = vrot.slane %v6499_v27, 2  ;;  %v17136_v14 = vld [vmem:[#allocation7 + $0xc4c] sm:$0xf] }
 0x488   :  { %10319 = vmatpush.bf16.msrb.mxu2 %v14213_v9  ;;  %10332 = vmatpush.bf16.msrb.mxu3 %v15237_v10  ;;  %v16960_v55 = vld [vmem:[#allocation7 + $0x6c4] sm:$0xf0]  ;;  %v16944_v9 = vld [vmem:[#allocation7 + $0x64c] sm:$0xf] }
 0x489   :  { %v14730_v10 = vld [vmem:[#allocation7 + $0x6c8] sm:$0xf0]  ;;  %v14729_v42 = vor.u32 %v16960_v55, %v14728_v30  ;;  %v6501_v3 = vadd.f32 %v6500_v41, %v6499_v27  ;;  %v15497_v27 = vor.u32 %v17152_v58, %v15496_v60  ;;  %v15501_v30 = vor.u32 %v17136_v14, %v15498_v15  ;;  %v17120_v55 = vld [vmem:[#allocation7 + $0xbc4] sm:$0xf0] }
 0x48a   :  { %v14733_v50 = vor.u32 %v16944_v9, %v14730_v10  ;;  %v15370_v62 = vld [vmem:[#allocation7 + $0xbc8] sm:$0xf0]  ;;  %v14216_v41 = vld [vmem:[#allocation7 + $0x248] sm:$0xf] }
 0x48b   :  { %10294 = vmatpush.bf16.msrb.mxu0 %v14081_v18  ;;  %10307 = vmatpush.bf16.msrb.mxu1 %v15105_v46  ;;  %v17184_v18 = vld [vmem:[#allocation7 + $0xdc4] sm:$0xf0]  ;;  %v16912_v46 = vld [vmem:[#allocation7 + $0x54c] sm:$0xf]  ;;  %v6502_v22 = vrot.slane %v6501_v3, 1 }
 0x48c   :  { %10320 = vmatpush.bf16.msrb.mxu2 %v14085_v4  ;;  %10333 = vmatpush.bf16.msrb.mxu3 %v15109_v57  ;;  %v14601_v4 = vor.u32 %v16928_v47, %v14600_v43  ;;  %v15625_v57 = vor.u32 %v17184_v18, %v15624_v17  ;;  %v14605_v5 = vor.u32 %v16912_v46, %v14602_v51  ;;  %v15240_v47 = vld [vmem:[#allocation7 + $0xa48] sm:$0xf]  ;;  %v14218_v46 = vld [vmem:[#allocation7 + $0x2c8] sm:$0xf0] }
 0x48d   :  { %v6503_v9 = vadd.f32 %v6502_v22, %v6501_v3  ;;  %v15373_v43 = vor.u32 %v17104_v40, %v15370_v62  ;;  %v17072_v51 = vld [vmem:[#allocation7 + $0xa4c] sm:$0xf]  ;;  %v16800_v60 = vld [vmem:[#allocation7 + $0x1c4] sm:$0xf0] }
 0x48e   :  { %v15242_v52 = vld [vmem:[#allocation7 + $0xac8] sm:$0xf0]  ;;  %v15112_v58 = vld [vmem:[#allocation7 + $0x948] sm:$0xf] }
 0x48f   :  { %10295 = vmatpush.bf16.msrb.mxu0 %v13953_v19  ;;  %10308 = vmatpush.bf16.msrb.mxu1 %v14977_v21  ;;  %v10089_v19 = vpop.f32.mrf.mxu0  ;;  %v10102_v21 = vpop.f32.mrf.mxu1  ;;  %v6505_v3 = vadd.f32 %v6504_v13, %v6503_v9  ;;  %v14090_v14 = vld [vmem:[#allocation7 + $0x1c8] sm:$0xf0]  ;;  %v6507_v9 = vld [vmem:[%s18802_s7] sm:$0xff]  ;;  %v16993_v13 = vld [vmem:[#allocation7 + $0x7cc] sm:$0xf0] }
 0x490   :  { %10321 = vmatpush.bf16.msrb.mxu2 %v13957_v28  ;;  %10334 = vmatpush.bf16.msrb.mxu3 %v14981_v29  ;;  %v10103_v23 = vadd.f32 %v10102_v21, %v10089_v19  ;;  %v14344_v28 = vld [vmem:[#allocation7 + $0x348] sm:$0xf]  ;;  %v17040_v19 = vld [vmem:[#allocation7 + $0x94c] sm:$0xf] }
 0x491   :  { %v16864_v29 = vld [vmem:[#allocation7 + $0x3c4] sm:$0xf0]  ;;  %v6506_v15 = vmax.f32 %v6505_v3, 0.0  ;;  %v15114_v21 = vld [vmem:[#allocation7 + $0x9c8] sm:$0xf0] }
 0x492   :  { %10296 = vmatmul.bf16.vlgmr.msrb.gmra.mxu0 %v17918_v37  ;;  %10309 = vmatmul.bf16.vlgmr.msrb.gmra.mxu1 %v17920_v39  ;;  %15942 = vst [vmem:[%s18807_s12 + $0x140] sm:$0xff] %v10103_v23  ;;  %v14345_v10 = vor.u32 %v16864_v29, %v14344_v28  ;;  %v13960_v23 = vld [vmem:[#allocation7 + $0x48] sm:$0xf]  ;;  %v17008_v40 = vld [vmem:[#allocation7 + $0x84c] sm:$0xf] }
 0x493   :  { %10340 = vmatpush.bf16.msra.mxu0 %v14857_v33  ;;  %10353 = vmatpush.bf16.msra.mxu1 %v15881_v34  ;;  %v15368_v33 = vld [vmem:[#allocation7 + $0xb48] sm:$0xf]  ;;  %v14477_v34 = vor.u32 %v16880_v63, %v14474_v0  ;;  %v16784_v0 = vld [vmem:[#allocation7 + $0x14c] sm:$0xf]  ;;  %v14736_v3 = vld [vmem:[#allocation7 + $0x650] sm:$0xf] }
 0x494   :  { %10366 = vmatpush.bf16.msra.mxu2 %v14861_v35  ;;  %10379 = vmatpush.bf16.msra.mxu3 %v15885_v8  ;;  %v16848_v35 = vld [vmem:[#allocation7 + $0x34c] sm:$0xf]  ;;  %v15369_v12 = vor.u32 %v17120_v55, %v15368_v33  ;;  %v17056_v63 = vld [vmem:[#allocation7 + $0x9c4] sm:$0xf0]  ;;  %v14093_v28 = vor.u32 %v16784_v0, %v14090_v14  ;;  %v14738_v0 = vld [vmem:[#allocation7 + $0x6d0] sm:$0xf0] }
 0x495   :  { %10322 = vmatmul.bf16.vlgmr.msrb.gmra.mxu2 %v17918_v37  ;;  %10335 = vmatmul.bf16.vlgmr.msrb.gmra.mxu3 %v17920_v39  ;;  %v14346_v8 = vld [vmem:[#allocation7 + $0x3c8] sm:$0xf0]  ;;  %v14984_v29 = vld [vmem:[#allocation7 + $0x848] sm:$0xf]  ;;  %v15762_v14 = vld [vmem:[#allocation7 + $0xed0] sm:$0xf0] }
 0x496   :  { %v17024_v33 = vld [vmem:[#allocation7 + $0x8c4] sm:$0xf0]  ;;  %v14986_v62 = vld [vmem:[#allocation7 + $0x8c8] sm:$0xf0] }
 0x497   :  { %10341 = vmatpush.bf16.msra.mxu0 %v14729_v42  ;;  %10354 = vmatpush.bf16.msra.mxu1 %v15753_v44  ;;  %v16832_v42 = vld [vmem:[#allocation7 + $0x2c4] sm:$0xf0]  ;;  %v14349_v44 = vor.u32 %v16848_v35, %v14346_v8  ;;  %v10104_v53 = vpop.f32.mrf.mxu1  ;;  %v13962_v8 = vld [vmem:[#allocation7 + $0xc8] sm:$0xf0] }
 0x498   :  { %10367 = vmatpush.bf16.msra.mxu2 %v14733_v50  ;;  %10380 = vmatpush.bf16.msra.mxu3 %v15757_v45  ;;  %v17088_v50 = vld [vmem:[#allocation7 + $0xac4] sm:$0xf0]  ;;  %v16816_v45 = vld [vmem:[#allocation7 + $0x24c] sm:$0xf]  ;;  %v10115_v17 = vpop.f32.mrf.mxu2  ;;  %v10128_v18 = vpop.f32.mrf.mxu3  ;;  %v14989_v53 = vor.u32 %v17008_v40, %v14986_v62  ;;  %v16897_v40 = vld [vmem:[#allocation7 + $0x4cc] sm:$0xf0] }
 0x499   :  { %v15241_v16 = vor.u32 %v17088_v50, %v15240_v47  ;;  %v14221_v20 = vor.u32 %v16816_v45, %v14218_v46  ;;  %v14985_v47 = vor.u32 %v17024_v33, %v14984_v29  ;;  %v14866_v45 = vld [vmem:[#allocation7 + $0x7d0] sm:$0xf0] }
 0x49a   :  { %v17233_v46 = vld [vmem:[#allocation7 + $0xf54] sm:$0xf] }
 0x49b   :  { %10342 = vmatpush.bf16.msra.mxu0 %v14601_v4  ;;  %10355 = vmatpush.bf16.msra.mxu1 %v15625_v57  ;;  %v10091_v4 = vpop.f32.mrf.mxu0  ;;  %v14217_v57 = vor.u32 %v16832_v42, %v14216_v41  ;;  %v15888_v42 = vld [vmem:[#allocation7 + $0xf50] sm:$0xf]  ;;  %v16913_v29 = vld [vmem:[#allocation7 + $0x554] sm:$0xf] }
 0x49c   :  { %10368 = vmatpush.bf16.msra.mxu2 %v14605_v5  ;;  %10381 = vmatpush.bf16.msra.mxu3 %v15629_v25  ;;  %v15245_v5 = vor.u32 %v17072_v51, %v15242_v52  ;;  %v14088_v25 = vld [vmem:[#allocation7 + $0x148] sm:$0xf]  ;;  %v15890_v51 = vld [vmem:[#allocation7 + $0xfd0] sm:$0xf0]  ;;  %v10129_v52 = vadd.f32 %v10128_v18, %v10115_v17 }
 0x49d   :  { %v14089_v22 = vor.u32 %v16800_v60, %v14088_v25  ;;  %v17201_v18 = vld [vmem:[#allocation7 + $0xe54] sm:$0xf] }
 0x49e   :  { %15943 = vst [vmem:[%s18807_s12 + $0x148] sm:$0xff] %v10129_v52  ;;  %v14610_v33 = vld [vmem:[#allocation7 + $0x5d0] sm:$0xf0]  ;;  %v16865_v52 = vld [vmem:[#allocation7 + $0x3cc] sm:$0xf0] }
 0x49f   :  { %10343 = vmatpush.bf16.msra.mxu0 %v14473_v24  ;;  %10356 = vmatpush.bf16.msra.mxu1 %v15497_v27  ;;  %v16768_v24 = vld [vmem:[#allocation7 + $0xc4] sm:$0xf0]  ;;  %v15113_v27 = vor.u32 %v17056_v63, %v15112_v58  ;;  %v15893_v58 = vor.u32 %v17233_v46, %v15890_v51  ;;  %v16945_v63 = vld [vmem:[#allocation7 + $0x654] sm:$0xf]  ;;  %v14613_v62 = vor.u32 %v16913_v29, %v14610_v33  ;;  %v14352_v51 = vld [vmem:[#allocation7 + $0x350] sm:$0xf] }
 0x4a0   :  { %10369 = vmatpush.bf16.msra.mxu2 %v14477_v34  ;;  %10382 = vmatpush.bf16.msra.mxu3 %v15501_v30  ;;  %v16752_v34 = vld [vmem:[#allocation7 + $0x4c] sm:$0xf]  ;;  %v15117_v30 = vor.u32 %v17040_v19, %v15114_v21  ;;  %v10117_v55 = vpop.f32.mrf.mxu2  ;;  %v10130_v35 = vpop.f32.mrf.mxu3  ;;  %v13961_v41 = vor.u32 %v16768_v24, %v13960_v23  ;;  %v14608_v21 = vld [vmem:[#allocation7 + $0x550] sm:$0xf]  ;;  %v14741_v23 = vor.u32 %v16945_v63, %v14738_v0  ;;  %v17073_v29 = vld [vmem:[#allocation7 + $0xa54] sm:$0xf] }
 0x4a1   :  { %v13965_v50 = vor.u32 %v16752_v34, %v13962_v8  ;;  %v15765_v24 = vor.u32 %v17201_v18, %v15762_v14  ;;  %v17169_v34 = vld [vmem:[#allocation7 + $0xd54] sm:$0xf]  ;;  %v14480_v8 = vld [vmem:[#allocation7 + $0x450] sm:$0xf] }
 0x4a2   :  { %v14224_v63 = vld [vmem:[#allocation7 + $0x250] sm:$0xf]  ;;  %v15250_v33 = vld [vmem:[#allocation7 + $0xad0] sm:$0xf0] }
 0x4a3   :  { %10344 = vmatpush.bf16.msra.mxu0 %v14345_v10  ;;  %10357 = vmatpush.bf16.msra.mxu1 %v15369_v12  ;;  %v6508_v10 = vperm.slane %v6506_v15, 0  ;;  %v14864_v12 = vld [vmem:[#allocation7 + $0x750] sm:$0xf] }
 0x4a4   :  { %10370 = vmatpush.bf16.msra.mxu2 %v14349_v44  ;;  %10383 = vmatpush.bf16.msra.mxu3 %v15373_v43  ;;  %v17249_v44 = vld [vmem:[#allocation7 + $0xfcc] sm:$0xf0]  ;;  %v16977_v43 = vld [vmem:[#allocation7 + $0x754] sm:$0xf] }
 0x4a5   :  { %v6509_v4 = vmul.f32 %v6508_v10, %v6507_v9  ;;  %v15889_v25 = vor.u32 %v17249_v44, %v15888_v42  ;;  %v14869_v60 = vor.u32 %v16977_v43, %v14866_v45  ;;  %v15504_v10 = vld [vmem:[#allocation7 + $0xc50] sm:$0xf]  ;;  %v14482_v44 = vld [vmem:[#allocation7 + $0x4d0] sm:$0xf0]  ;;  %v14481_v45 = vor.u32 %v16897_v40, %v14480_v8 }
 0x4a6   :  { %v17137_v43 = vld [vmem:[#allocation7 + $0xc54] sm:$0xf]  ;;  %v16833_v0 = vld [vmem:[#allocation7 + $0x2cc] sm:$0xf0]  ;;  %v15253_v40 = vor.u32 %v17073_v29, %v15250_v33  ;;  %v15768_v33 = vld [vmem:[#allocation7 + $0xe58] sm:$0xf] }
 0x4a7   :  { %10345 = vmatpush.bf16.msra.mxu0 %v14217_v57  ;;  %10358 = vmatpush.bf16.msra.mxu1 %v15241_v16  ;;  %v14865_v57 = vor.u32 %v16993_v13, %v14864_v12  ;;  %v16961_v16 = vld [vmem:[#allocation7 + $0x6cc] sm:$0xf0]  ;;  %v6510_v17 = vsel %vm1263_vm2, %v6509_v4, 0.0  ;;  %v16881_v13 = vld [vmem:[#allocation7 + $0x454] sm:$0xf] }
 0x4a8   :  { %10371 = vmatpush.bf16.msra.mxu2 %v14221_v20  ;;  %10384 = vmatpush.bf16.msra.mxu3 %v15245_v5  ;;  %v15760_v20 = vld [vmem:[#allocation7 + $0xe50] sm:$0xf]  ;;  %v14737_v15 = vor.u32 %v16961_v16, %v14736_v3  ;;  %v14485_v3 = vor.u32 %v16881_v13, %v14482_v44  ;;  %v16849_v16 = vld [vmem:[#allocation7 + $0x354] sm:$0xf] }
 0x4a9   :  { %v17217_v5 = vld [vmem:[#allocation7 + $0xecc] sm:$0xf0]  ;;  %6511 = vadd.xlane.f32.xlu2 %v6510_v17  ;;  %v17041_v13 = vld [vmem:[#allocation7 + $0x954] sm:$0xf] }
 0x4aa   :  { %v15761_v19 = vor.u32 %v17217_v5, %v15760_v20  ;;  %v17153_v12 = vld [vmem:[#allocation7 + $0xccc] sm:$0xf0]  ;;  %v14354_v20 = vld [vmem:[#allocation7 + $0x3d0] sm:$0xf0] }
 0x4ab   :  { %10346 = vmatpush.bf16.msra.mxu0 %v14089_v22  ;;  %10359 = vmatpush.bf16.msra.mxu1 %v15113_v27  ;;  %v16929_v22 = vld [vmem:[#allocation7 + $0x5cc] sm:$0xf0]  ;;  %v15505_v46 = vor.u32 %v17153_v12, %v15504_v10  ;;  %v17105_v5 = vld [vmem:[#allocation7 + $0xb54] sm:$0xf]  ;;  %v14357_v17 = vor.u32 %v16849_v16, %v14354_v20 }
 0x4ac   :  { %10372 = vmatpush.bf16.msra.mxu2 %v14093_v28  ;;  %10385 = vmatpush.bf16.msra.mxu3 %v15117_v30  ;;  %v15632_v27 = vld [vmem:[#allocation7 + $0xd50] sm:$0xf]  ;;  %v15634_v30 = vld [vmem:[#allocation7 + $0xdd0] sm:$0xf0]  ;;  %v14609_v55 = vor.u32 %v16929_v22, %v14608_v21 }
 0x4ad   :  { %v17185_v28 = vld [vmem:[#allocation7 + $0xdcc] sm:$0xf0]  ;;  %v15637_v9 = vor.u32 %v17169_v34, %v15634_v30  ;;  %v16817_v22 = vld [vmem:[#allocation7 + $0x254] sm:$0xf]  ;;  %v14225_v34 = vor.u32 %v16833_v0, %v14224_v63  ;;  %v16978_v63 = vld [vmem:[#allocation7 + $0x75c] sm:$0xf] }
 0x4ae   :  { %v15633_v35 = vor.u32 %v17185_v28, %v15632_v27  ;;  %v17089_v21 = vld [vmem:[#allocation7 + $0xacc] sm:$0xf0]  ;;  %v14226_v28 = vld [vmem:[#allocation7 + $0x2d0] sm:$0xf0] }
 0x4af   :  { %10347 = vmatpush.bf16.msra.mxu0 %v13961_v41  ;;  %10360 = vmatpush.bf16.msra.mxu1 %v14985_v47  ;;  %v10141_v41 = vpop.f32.mrf.mxu0  ;;  %v10154_v42 = vpop.f32.mrf.mxu1  ;;  %v15506_v47 = vld [vmem:[#allocation7 + $0xcd0] sm:$0xf0]  ;;  %v14229_v8 = vor.u32 %v16817_v22, %v14226_v28  ;;  %v13968_v44 = vld [vmem:[#allocation7 + $0x50] sm:$0xf] }
 0x4b0   :  { %10373 = vmatpush.bf16.msra.mxu2 %v13965_v50  ;;  %10386 = vmatpush.bf16.msra.mxu3 %v14989_v53  ;;  %v10155_v50 = vadd.f32 %v10154_v42, %v10141_v41  ;;  %v15376_v53 = vld [vmem:[#allocation7 + $0xb50] sm:$0xf]  ;;  %v15509_v4 = vor.u32 %v17137_v43, %v15506_v47  ;;  %v16785_v10 = vld [vmem:[#allocation7 + $0x154] sm:$0xf] }
 0x4b1   :  { %v14098_v12 = vld [vmem:[#allocation7 + $0x1d0] sm:$0xf0] }
 0x4b2   :  { %10348 = vmatmul.bf16.vlgmr.msra.gmra.mxu0 %v17918_v37  ;;  %10361 = vmatmul.bf16.vlgmr.msra.gmra.mxu1 %v17920_v39  ;;  %15944 = vst [vmem:[%s18807_s12 + $0x150] sm:$0xff] %v10155_v50  ;;  %v15122_v41 = vld [vmem:[#allocation7 + $0x9d0] sm:$0xf0]  ;;  %v16769_v50 = vld [vmem:[#allocation7 + $0xcc] sm:$0xf0] }
 0x4b3   :  { %10392 = vmatpush.bf16.msrb.mxu0 %v14865_v57  ;;  %10405 = vmatpush.bf16.msrb.mxu1 %v15889_v25  ;;  %v17121_v57 = vld [vmem:[#allocation7 + $0xbcc] sm:$0xf0]  ;;  %v15378_v25 = vld [vmem:[#allocation7 + $0xbd0] sm:$0xf0]  ;;  %v13969_v0 = vor.u32 %v16769_v50, %v13968_v44  ;;  %v16914_v44 = vld [vmem:[#allocation7 + $0x55c] sm:$0xf] }
 0x4b4   :  { %10418 = vmatpush.bf16.msrb.mxu2 %v14869_v60  ;;  %10431 = vmatpush.bf16.msrb.mxu3 %v15893_v58  ;;  %v14353_v60 = vor.u32 %v16865_v52, %v14352_v51  ;;  %v15377_v58 = vor.u32 %v17121_v57, %v15376_v53  ;;  %v15381_v18 = vor.u32 %v17105_v5, %v15378_v25  ;;  %v1363_v42 = vld [vmem:[#allocation2] sm:$0x1]  ;;  %v14872_v5 = vld [vmem:[#allocation7 + $0x758] sm:$0xf]  ;;  %v15642_v50 = vld [vmem:[#allocation7 + $0xdd8] sm:$0xf0] }
 0x4b5   :  { %10374 = vmatmul.bf16.vlgmr.msra.gmra.mxu2 %v17918_v37  ;;  %10387 = vmatmul.bf16.vlgmr.msra.gmra.mxu3 %v17920_v39  ;;  %v14101_v51 = vor.u32 %v16785_v10, %v14098_v12  ;;  %v15125_v52 = vor.u32 %v17041_v13, %v15122_v41  ;;  %v13970_v57 = vld [vmem:[#allocation7 + $0xd0] sm:$0xf0]  ;;  %v16994_v25 = vld [vmem:[#allocation7 + $0x7d4] sm:$0xf0] }
 0x4b6   :  { %v17009_v16 = vld [vmem:[#allocation7 + $0x854] sm:$0xf]  ;;  %v14873_v22 = vor.u32 %v16994_v25, %v14872_v5  ;;  %v16930_v10 = vld [vmem:[#allocation7 + $0x5d4] sm:$0xf0]  ;;  %v14490_v25 = vld [vmem:[#allocation7 + $0x4d8] sm:$0xf0] }
 0x4b7   :  { %10393 = vmatpush.bf16.msrb.mxu0 %v14737_v15  ;;  %10406 = vmatpush.bf16.msrb.mxu1 %v15761_v19  ;;  %v15248_v19 = vld [vmem:[#allocation7 + $0xa50] sm:$0xf]  ;;  %v10156_v27 = vpop.f32.mrf.mxu1  ;;  %v14994_v20 = vld [vmem:[#allocation7 + $0x8d0] sm:$0xf0]  ;;  %v15640_v41 = vld [vmem:[#allocation7 + $0xd58] sm:$0xf] }
 0x4b8   :  { %10419 = vmatpush.bf16.msrb.mxu2 %v14741_v23  ;;  %10432 = vmatpush.bf16.msrb.mxu3 %v15765_v24  ;;  %v10167_v14 = vpop.f32.mrf.mxu2  ;;  %v10180_v15 = vpop.f32.mrf.mxu3  ;;  %v15249_v30 = vor.u32 %v17089_v21, %v15248_v19  ;;  %v14997_v21 = vor.u32 %v17009_v16, %v14994_v20  ;;  %v16962_v27 = vld [vmem:[#allocation7 + $0x6d4] sm:$0xf0]  ;;  %v16882_v16 = vld [vmem:[#allocation7 + $0x45c] sm:$0xf] }
 0x4b9   :  { %v10181_v23 = vadd.f32 %v10180_v15, %v10167_v14  ;;  %v10143_v24 = vpop.f32.mrf.mxu0  ;;  %v17234_v14 = vld [vmem:[#allocation7 + $0xf5c] sm:$0xf] }
 0x4ba   :  { %v15898_v15 = vld [vmem:[#allocation7 + $0xfd8] sm:$0xf0]  ;;  %v14744_v24 = vld [vmem:[#allocation7 + $0x658] sm:$0xf] }
 0x4bb   :  { %10394 = vmatpush.bf16.msrb.mxu0 %v14609_v55  ;;  %10407 = vmatpush.bf16.msrb.mxu1 %v15633_v35  ;;  %15945 = vst [vmem:[%s18807_s12 + $0x158] sm:$0xff] %v10181_v23  ;;  %v14096_v55 = vld [vmem:[#allocation7 + $0x150] sm:$0xf]  ;;  %v15901_v29 = vor.u32 %v17234_v14, %v15898_v15  ;;  %v16866_v14 = vld [vmem:[#allocation7 + $0x3d4] sm:$0xf0] }
 0x4bc   :  { %10420 = vmatpush.bf16.msrb.mxu2 %v14613_v62  ;;  %10433 = vmatpush.bf16.msrb.mxu3 %v15637_v9  ;;  %v16801_v35 = vld [vmem:[#allocation7 + $0x1cc] sm:$0xf0]  ;;  %v15384_v15 = vld [vmem:[#allocation7 + $0xb58] sm:$0xf] }
 0x4bd   :  { %v15120_v62 = vld [vmem:[#allocation7 + $0x950] sm:$0xf]  ;;  %v14097_v43 = vor.u32 %v16801_v35, %v14096_v55  ;;  %v14746_v55 = vld [vmem:[#allocation7 + $0x6d8] sm:$0xf0] }
 0x4be   :  { %v17057_v9 = vld [vmem:[#allocation7 + $0x9cc] sm:$0xf0]  ;;  %v17202_v35 = vld [vmem:[#allocation7 + $0xe5c] sm:$0xf] }
 0x4bf   :  { %10395 = vmatpush.bf16.msrb.mxu0 %v14481_v45  ;;  %10408 = vmatpush.bf16.msrb.mxu1 %v15505_v46  ;;  %v15121_v47 = vor.u32 %v17057_v9, %v15120_v62  ;;  %v14992_v45 = vld [vmem:[#allocation7 + $0x850] sm:$0xf]  ;;  %v14616_v9 = vld [vmem:[#allocation7 + $0x558] sm:$0xf] }
 0x4c0   :  { %10421 = vmatpush.bf16.msrb.mxu2 %v14485_v3  ;;  %10434 = vmatpush.bf16.msrb.mxu3 %v15509_v4  ;;  %v17025_v46 = vld [vmem:[#allocation7 + $0x8cc] sm:$0xf0]  ;;  %v10169_v53 = vpop.f32.mrf.mxu2  ;;  %v10182_v3 = vpop.f32.mrf.mxu3  ;;  %v16753_v4 = vld [vmem:[#allocation7 + $0x54] sm:$0xf] }
 0x4c1   :  { %1366 = vperm.xlu2 %17268, %v1363_v42   ;;  %v13973_v19 = vor.u32 %v16753_v4, %v13970_v57  ;;  %v17186_v42 = vld [vmem:[#allocation7 + $0xdd4] sm:$0xf0] }
 0x4c2   :  { %v15512_v4 = vld [vmem:[#allocation7 + $0xc58] sm:$0xf] }
 0x4c3   :  { %10396 = vmatpush.bf16.msrb.mxu0 %v14353_v60  ;;  %10409 = vmatpush.bf16.msrb.mxu1 %v15377_v58  ;;  %v15896_v60 = vld [vmem:[#allocation7 + $0xf58] sm:$0xf] }
 0x4c4   :  { %10422 = vmatpush.bf16.msrb.mxu2 %v14357_v17  ;;  %10435 = vmatpush.bf16.msrb.mxu3 %v15381_v18  ;;  %v17250_v58 = vld [vmem:[#allocation7 + $0xfd4] sm:$0xf0]  ;;  %v14993_v17 = vor.u32 %v17025_v46, %v14992_v45  ;;  %v14874_v18 = vld [vmem:[#allocation7 + $0x7d8] sm:$0xf0]  ;;  %v14617_v45 = vor.u32 %v16930_v10, %v14616_v9  ;;  %v15641_v46 = vor.u32 %v17186_v42, %v15640_v41 }
 0x4c5   :  { %v15897_v23 = vor.u32 %v17250_v58, %v15896_v60  ;;  %v14877_v28 = vor.u32 %v16978_v63, %v14874_v18  ;;  %v17154_v57 = vld [vmem:[#allocation7 + $0xcd4] sm:$0xf0]  ;;  %v17138_v60 = vld [vmem:[#allocation7 + $0xc5c] sm:$0xf] }
 0x4c6   :  { %v15514_v58 = vld [vmem:[#allocation7 + $0xcd8] sm:$0xf0]  ;;  %v14360_v18 = vld [vmem:[#allocation7 + $0x358] sm:$0xf] }
 0x4c7   :  { %10397 = vmatpush.bf16.msrb.mxu0 %v14225_v34  ;;  %10410 = vmatpush.bf16.msrb.mxu1 %v15249_v30  ;;  %v17218_v34 = vld [vmem:[#allocation7 + $0xed4] sm:$0xf0]  ;;  %v16946_v30 = vld [vmem:[#allocation7 + $0x65c] sm:$0xf] }
 0x4c8   :  { %10423 = vmatpush.bf16.msrb.mxu2 %v14229_v8  ;;  %10436 = vmatpush.bf16.msrb.mxu3 %v15253_v40  ;;  %v15770_v8 = vld [vmem:[#allocation7 + $0xed8] sm:$0xf0]  ;;  %v14745_v40 = vor.u32 %v16962_v27, %v14744_v24  ;;  %v15769_v62 = vor.u32 %v17218_v34, %v15768_v33  ;;  %v14749_v12 = vor.u32 %v16946_v30, %v14746_v55  ;;  %v14232_v34 = vld [vmem:[#allocation7 + $0x258] sm:$0xf] }
 0x4c9   :  { %v15773_v13 = vor.u32 %v17202_v35, %v15770_v8  ;;  %v14362_v24 = vld [vmem:[#allocation7 + $0x3d8] sm:$0xf0]  ;;  %v16834_v30 = vld [vmem:[#allocation7 + $0x2d4] sm:$0xf0] }
 0x4ca   :  { %v17106_v27 = vld [vmem:[#allocation7 + $0xb5c] sm:$0xf]  ;;  %v17090_v9 = vld [vmem:[#allocation7 + $0xad4] sm:$0xf0] }
 0x4cb   :  { %10398 = vmatpush.bf16.msrb.mxu0 %v14097_v43  ;;  %10411 = vmatpush.bf16.msrb.mxu1 %v15121_v47  ;;  %v14618_v43 = vld [vmem:[#allocation7 + $0x5d8] sm:$0xf0] }
 0x4cc   :  { %10424 = vmatpush.bf16.msrb.mxu2 %v14101_v51  ;;  %10437 = vmatpush.bf16.msrb.mxu3 %v15125_v52  ;;  %v17170_v47 = vld [vmem:[#allocation7 + $0xd5c] sm:$0xf]  ;;  %v14488_v51 = vld [vmem:[#allocation7 + $0x458] sm:$0xf]  ;;  %v14621_v53 = vor.u32 %v16914_v44, %v14618_v43 }
 0x4cd   :  { %v16898_v52 = vld [vmem:[#allocation7 + $0x4d4] sm:$0xf0]  ;;  %v15645_v3 = vor.u32 %v17170_v47, %v15642_v50  ;;  %v16818_v10 = vld [vmem:[#allocation7 + $0x25c] sm:$0xf]  ;;  %v14233_v47 = vor.u32 %v16834_v30, %v14232_v34 }
 0x4ce   :  { %v14234_v42 = vld [vmem:[#allocation7 + $0x2d8] sm:$0xf0] }
 0x4cf   :  { %10399 = vmatpush.bf16.msrb.mxu0 %v13969_v0  ;;  %10412 = vmatpush.bf16.msrb.mxu1 %v14993_v17  ;;  %v10193_v20 = vpop.f32.mrf.mxu0  ;;  %v10206_v5 = vpop.f32.mrf.mxu1  ;;  %v14489_v0 = vor.u32 %v16898_v52, %v14488_v51  ;;  %v15513_v17 = vor.u32 %v17154_v57, %v15512_v4  ;;  %v17074_v44 = vld [vmem:[#allocation7 + $0xa5c] sm:$0xf]  ;;  %v14237_v51 = vor.u32 %v16818_v10, %v14234_v42 }
 0x4d0   :  { %10425 = vmatpush.bf16.msrb.mxu2 %v13973_v19  ;;  %10438 = vmatpush.bf16.msrb.mxu3 %v14997_v21  ;;  %v10207_v63 = vadd.f32 %v10206_v5, %v10193_v20  ;;  %v14493_v19 = vor.u32 %v16882_v16, %v14490_v25  ;;  %v15517_v21 = vor.u32 %v17138_v60, %v15514_v58  ;;  %v15258_v43 = vld [vmem:[#allocation7 + $0xad8] sm:$0xf0]  ;;  %v13976_v5 = vld [vmem:[#allocation7 + $0x58] sm:$0xf] }
 0x4d1   :  { %v15261_v52 = vor.u32 %v17074_v44, %v15258_v43  ;;  %v16786_v4 = vld [vmem:[#allocation7 + $0x15c] sm:$0xf]  ;;  %v16770_v58 = vld [vmem:[#allocation7 + $0xd4] sm:$0xf0]  ;;  %v15776_v44 = vld [vmem:[#allocation7 + $0xe60] sm:$0xf] }
 0x4d2   :  { %10400 = vmatmul.bf16.vlgmr.msrb.gmra.mxu0 %v17918_v37  ;;  %10413 = vmatmul.bf16.vlgmr.msrb.gmra.mxu1 %v17920_v39  ;;  %15946 = vst [vmem:[%s18807_s12 + $0x160] sm:$0xff] %v10207_v63  ;;  %v14106_v57 = vld [vmem:[#allocation7 + $0x1d8] sm:$0xf0]  ;;  %v15000_v63 = vld [vmem:[#allocation7 + $0x858] sm:$0xf]  ;;  %v13977_v34 = vor.u32 %v16770_v58, %v13976_v5 }
 0x4d3   :  { %10444 = vmatpush.bf16.msra.mxu0 %v14873_v22  ;;  %10457 = vmatpush.bf16.msra.mxu1 %v15897_v23  ;;  %v17122_v22 = vld [vmem:[#allocation7 + $0xbd4] sm:$0xf0]  ;;  %v16850_v23 = vld [vmem:[#allocation7 + $0x35c] sm:$0xf]  ;;  %v17219_v43 = vld [vmem:[#allocation7 + $0xedc] sm:$0xf0] }
 0x4d4   :  { %10470 = vmatpush.bf16.msra.mxu2 %v14877_v28  ;;  %10483 = vmatpush.bf16.msra.mxu3 %v15901_v29  ;;  %v15386_v28 = vld [vmem:[#allocation7 + $0xbd8] sm:$0xf0]  ;;  %v14361_v29 = vor.u32 %v16866_v14, %v14360_v18  ;;  %v15385_v33 = vor.u32 %v17122_v22, %v15384_v15  ;;  %v14365_v55 = vor.u32 %v16850_v23, %v14362_v24  ;;  %v14880_v24 = vld [vmem:[#allocation7 + $0x760] sm:$0xf]  ;;  %v16915_v5 = vld [vmem:[#allocation7 + $0x564] sm:$0xf] }
 0x4d5   :  { %10426 = vmatmul.bf16.vlgmr.msrb.gmra.mxu2 %v17918_v37  ;;  %10439 = vmatmul.bf16.vlgmr.msrb.gmra.mxu3 %v17920_v39  ;;  %v15389_v35 = vor.u32 %v17106_v27, %v15386_v28  ;;  %v17042_v16 = vld [vmem:[#allocation7 + $0x95c] sm:$0xf]  ;;  %v16995_v27 = vld [vmem:[#allocation7 + $0x7dc] sm:$0xf0]  ;;  %v15650_v58 = vld [vmem:[#allocation7 + $0xde0] sm:$0xf0] }
 0x4d6   :  { %v15130_v20 = vld [vmem:[#allocation7 + $0x9d8] sm:$0xf0]  ;;  %v15904_v28 = vld [vmem:[#allocation7 + $0xf60] sm:$0xf] }
 0x4d7   :  { %10445 = vmatpush.bf16.msra.mxu0 %v14745_v40  ;;  %10458 = vmatpush.bf16.msra.mxu1 %v15769_v62  ;;  %v15256_v62 = vld [vmem:[#allocation7 + $0xa58] sm:$0xf]  ;;  %v10208_v41 = vpop.f32.mrf.mxu1  ;;  %v15133_v18 = vor.u32 %v17042_v16, %v15130_v20  ;;  %v17010_v22 = vld [vmem:[#allocation7 + $0x85c] sm:$0xf]  ;;  %v15648_v16 = vld [vmem:[#allocation7 + $0xd60] sm:$0xf] }
 0x4d8   :  { %10471 = vmatpush.bf16.msra.mxu2 %v14749_v12  ;;  %10484 = vmatpush.bf16.msra.mxu3 %v15773_v13  ;;  %v10219_v8 = vpop.f32.mrf.mxu2  ;;  %v10232_v40 = vpop.f32.mrf.mxu3  ;;  %v15257_v50 = vor.u32 %v17090_v9, %v15256_v62  ;;  %v15002_v23 = vld [vmem:[#allocation7 + $0x8d8] sm:$0xf0]  ;;  %v14881_v9 = vor.u32 %v16995_v27, %v14880_v24  ;;  %v17187_v20 = vld [vmem:[#allocation7 + $0xddc] sm:$0xf0]  ;;  %v14498_v27 = vld [vmem:[#allocation7 + $0x4e0] sm:$0xf0] }
 0x4d9   :  { %v10233_v12 = vadd.f32 %v10232_v40, %v10219_v8  ;;  %v10195_v13 = vpop.f32.mrf.mxu0  ;;  %v15906_v8 = vld [vmem:[#allocation7 + $0xfe0] sm:$0xf0]  ;;  %v15005_v62 = vor.u32 %v17010_v22, %v15002_v23 }
 0x4da   :  { %v16963_v13 = vld [vmem:[#allocation7 + $0x6dc] sm:$0xf0]  ;;  %v16883_v22 = vld [vmem:[#allocation7 + $0x464] sm:$0xf] }
 0x4db   :  { %10446 = vmatpush.bf16.msra.mxu0 %v14617_v45  ;;  %10459 = vmatpush.bf16.msra.mxu1 %v15641_v46  ;;  %15947 = vst [vmem:[%s18807_s12 + $0x168] sm:$0xff] %v10233_v12  ;;  %v14104_v45 = vld [vmem:[#allocation7 + $0x158] sm:$0xf]  ;;  %v14752_v12 = vld [vmem:[#allocation7 + $0x660] sm:$0xf] }
 0x4dc   :  { %10472 = vmatpush.bf16.msra.mxu2 %v14621_v53  ;;  %10485 = vmatpush.bf16.msra.mxu3 %v15645_v3  ;;  %v16802_v46 = vld [vmem:[#allocation7 + $0x1d4] sm:$0xf0] }
 0x4dd   :  { %v15128_v53 = vld [vmem:[#allocation7 + $0x958] sm:$0xf]  ;;  %v14105_v25 = vor.u32 %v16802_v46, %v14104_v45  ;;  %v17203_v45 = vld [vmem:[#allocation7 + $0xe64] sm:$0xf] }
 0x4de   :  { %v17058_v3 = vld [vmem:[#allocation7 + $0x9d4] sm:$0xf0]  ;;  %v15778_v46 = vld [vmem:[#allocation7 + $0xee0] sm:$0xf0] }
 0x4df   :  { %10447 = vmatpush.bf16.msra.mxu0 %v14489_v0  ;;  %10460 = vmatpush.bf16.msra.mxu1 %v15513_v17  ;;  %v15129_v60 = vor.u32 %v17058_v3, %v15128_v53  ;;  %v17026_v0 = vld [vmem:[#allocation7 + $0x8d4] sm:$0xf0]  ;;  %v14109_v17 = vor.u32 %v16786_v4, %v14106_v57  ;;  %v14624_v53 = vld [vmem:[#allocation7 + $0x560] sm:$0xf]  ;;  %v15781_v57 = vor.u32 %v17203_v45, %v15778_v46 }
 0x4e0   :  { %10473 = vmatpush.bf16.msra.mxu2 %v14493_v19  ;;  %10486 = vmatpush.bf16.msra.mxu3 %v15517_v21  ;;  %v10221_v14 = vpop.f32.mrf.mxu2  ;;  %v10234_v15 = vpop.f32.mrf.mxu3  ;;  %v16754_v19 = vld [vmem:[#allocation7 + $0x5c] sm:$0xf]  ;;  %v15001_v30 = vor.u32 %v17026_v0, %v15000_v63  ;;  %v16931_v3 = vld [vmem:[#allocation7 + $0x5dc] sm:$0xf0]  ;;  %v15649_v0 = vor.u32 %v17187_v20, %v15648_v16 }
 0x4e1   :  { %v13978_v21 = vld [vmem:[#allocation7 + $0xd8] sm:$0xf0]  ;;  %v14625_v63 = vor.u32 %v16931_v3, %v14624_v53  ;;  %v15264_v53 = vld [vmem:[#allocation7 + $0xa60] sm:$0xf] }
 0x4e2   :  { %v13981_v40 = vor.u32 %v16754_v19, %v13978_v21  ;;  %v15520_v19 = vld [vmem:[#allocation7 + $0xc60] sm:$0xf] }
 0x4e3   :  { %10448 = vmatpush.bf16.msra.mxu0 %v14361_v29  ;;  %10461 = vmatpush.bf16.msra.mxu1 %v15385_v33  ;;  %v17251_v29 = vld [vmem:[#allocation7 + $0xfdc] sm:$0xf0]  ;;  %v16979_v33 = vld [vmem:[#allocation7 + $0x764] sm:$0xf] }
 0x4e4   :  { %10474 = vmatpush.bf16.msra.mxu2 %v14365_v55  ;;  %10487 = vmatpush.bf16.msra.mxu3 %v15389_v35  ;;  %v14882_v55 = vld [vmem:[#allocation7 + $0x7e0] sm:$0xf0]  ;;  %v15905_v10 = vor.u32 %v17251_v29, %v15904_v28  ;;  %v17155_v21 = vld [vmem:[#allocation7 + $0xcdc] sm:$0xf0] }
 0x4e5   :  { %v17235_v35 = vld [vmem:[#allocation7 + $0xf64] sm:$0xf]  ;;  %v14885_v41 = vor.u32 %v16979_v33, %v14882_v55  ;;  %v14368_v55 = vld [vmem:[#allocation7 + $0x360] sm:$0xf] }
 0x4e6   :  { %v15909_v42 = vor.u32 %v17235_v35, %v15906_v8  ;;  %v17139_v28 = vld [vmem:[#allocation7 + $0xc64] sm:$0xf]  ;;  %v16867_v35 = vld [vmem:[#allocation7 + $0x3dc] sm:$0xf0] }
 0x4e7   :  { %10449 = vmatpush.bf16.msra.mxu0 %v14233_v47  ;;  %10462 = vmatpush.bf16.msra.mxu1 %v15257_v50  ;;  %v16947_v47 = vld [vmem:[#allocation7 + $0x664] sm:$0xf]  ;;  %v15392_v8 = vld [vmem:[#allocation7 + $0xb60] sm:$0xf] }
 0x4e8   :  { %10475 = vmatpush.bf16.msra.mxu2 %v14237_v51  ;;  %10488 = vmatpush.bf16.msra.mxu3 %v15261_v52  ;;  %v14754_v50 = vld [vmem:[#allocation7 + $0x6e0] sm:$0xf0]  ;;  %v14753_v51 = vor.u32 %v16963_v13, %v14752_v12  ;;  %v15777_v52 = vor.u32 %v17219_v43, %v15776_v44  ;;  %v14369_v44 = vor.u32 %v16867_v35, %v14368_v55  ;;  %v17091_v3 = vld [vmem:[#allocation7 + $0xadc] sm:$0xf0] }
 0x4e9   :  { %v14757_v4 = vor.u32 %v16947_v47, %v14754_v50  ;;  %v15522_v29 = vld [vmem:[#allocation7 + $0xce0] sm:$0xf0]  ;;  %v14240_v47 = vld [vmem:[#allocation7 + $0x260] sm:$0xf] }
 0x4ea   :  { %v14370_v12 = vld [vmem:[#allocation7 + $0x3e0] sm:$0xf0]  ;;  %v16835_v50 = vld [vmem:[#allocation7 + $0x2dc] sm:$0xf0] }
 0x4eb   :  { %10450 = vmatpush.bf16.msra.mxu0 %v14105_v25  ;;  %10463 = vmatpush.bf16.msra.mxu1 %v15129_v60  ;;  %v14626_v25 = vld [vmem:[#allocation7 + $0x5e0] sm:$0xf0]  ;;  %v15008_v55 = vld [vmem:[#allocation7 + $0x860] sm:$0xf] }
 0x4ec   :  { %10476 = vmatpush.bf16.msra.mxu2 %v14109_v17  ;;  %10489 = vmatpush.bf16.msra.mxu3 %v15133_v18  ;;  %v17171_v60 = vld [vmem:[#allocation7 + $0xd64] sm:$0xf]  ;;  %v14496_v17 = vld [vmem:[#allocation7 + $0x460] sm:$0xf]  ;;  %v14629_v14 = vor.u32 %v16915_v5, %v14626_v25 }
 0x4ed   :  { %v16899_v18 = vld [vmem:[#allocation7 + $0x4dc] sm:$0xf0]  ;;  %v15653_v15 = vor.u32 %v17171_v60, %v15650_v58  ;;  %v17107_v13 = vld [vmem:[#allocation7 + $0xb64] sm:$0xf] }
 0x4ee   :  { %v14242_v5 = vld [vmem:[#allocation7 + $0x2e0] sm:$0xf0]  ;;  %v17027_v35 = vld [vmem:[#allocation7 + $0x8dc] sm:$0xf0] }
 0x4ef   :  { %10451 = vmatpush.bf16.msra.mxu0 %v13977_v34  ;;  %10464 = vmatpush.bf16.msra.mxu1 %v15001_v30  ;;  %v10245_v23 = vpop.f32.mrf.mxu0  ;;  %v10258_v24 = vpop.f32.mrf.mxu1  ;;  %v14497_v34 = vor.u32 %v16899_v18, %v14496_v17  ;;  %v15521_v30 = vor.u32 %v17155_v21, %v15520_v19  ;;  %v17075_v25 = vld [vmem:[#allocation7 + $0xa64] sm:$0xf]  ;;  %v14112_v17 = vld [vmem:[#allocation7 + $0x160] sm:$0xf] }
 0x4f0   :  { %10477 = vmatpush.bf16.msra.mxu2 %v13981_v40  ;;  %10490 = vmatpush.bf16.msra.mxu3 %v15005_v62  ;;  %v10259_v33 = vadd.f32 %v10258_v24, %v10245_v23  ;;  %v14501_v40 = vor.u32 %v16883_v22, %v14498_v27  ;;  %v15525_v62 = vor.u32 %v17139_v28, %v15522_v29  ;;  %v15266_v60 = vld [vmem:[#allocation7 + $0xae0] sm:$0xf0]  ;;  %v16803_v18 = vld [vmem:[#allocation7 + $0x1dc] sm:$0xf0] }
 0x4f1   :  { %v15136_v19 = vld [vmem:[#allocation7 + $0x960] sm:$0xf]  ;;  %v16787_v22 = vld [vmem:[#allocation7 + $0x164] sm:$0xf] }
 0x4f2   :  { %10452 = vmatmul.bf16.vlgmr.msra.gmra.mxu0 %v17918_v37  ;;  %10465 = vmatmul.bf16.vlgmr.msra.gmra.mxu1 %v17920_v39  ;;  %15948 = vst [vmem:[%s18807_s12 + $0x170] sm:$0xff] %v10259_v33  ;;  %v17059_v21 = vld [vmem:[#allocation7 + $0x9dc] sm:$0xf0]  ;;  %v14114_v23 = vld [vmem:[#allocation7 + $0x1e0] sm:$0xf0]  ;;  %v14113_v33 = vor.u32 %v16803_v18, %v14112_v17 }
 0x4f3   :  { %10496 = vmatpush.bf16.msrb.mxu0 %v14881_v9  ;;  %10509 = vmatpush.bf16.msrb.mxu1 %v15905_v10  ;;  %v17123_v9 = vld [vmem:[#allocation7 + $0xbdc] sm:$0xf0]  ;;  %v16851_v10 = vld [vmem:[#allocation7 + $0x364] sm:$0xf]  ;;  %v16964_v17 = vld [vmem:[#allocation7 + $0x6e4] sm:$0xf0] }
 0x4f4   :  { %10522 = vmatpush.bf16.msrb.mxu2 %v14885_v41  ;;  %10535 = vmatpush.bf16.msrb.mxu3 %v15909_v42  ;;  %v15394_v41 = vld [vmem:[#allocation7 + $0xbe0] sm:$0xf0]  ;;  %v18074_v42 = vpop.permute.xlu0 %1304  ;;  %v15393_v43 = vor.u32 %v17123_v9, %v15392_v8  ;;  %v14373_v45 = vor.u32 %v16851_v10, %v14370_v12  ;;  %v13984_v29 = vld [vmem:[#allocation7 + $0x60] sm:$0xf]  ;;  %v14117_v8 = vor.u32 %v16787_v22, %v14114_v23  ;;  %v14762_v23 = vld [vmem:[#allocation7 + $0x6e8] sm:$0xf0] }
 0x4f5   :  { %10478 = vmatmul.bf16.vlgmr.msra.gmra.mxu2 %v17918_v37  ;;  %10491 = vmatmul.bf16.vlgmr.msra.gmra.mxu3 %v17920_v39  ;;  %v15397_v46 = vor.u32 %v17107_v13, %v15394_v41  ;;  %v18078_v58 = vmul.f32 %v18074_v42, %v17681_v2  ;;  %v17043_v24 = vld [vmem:[#allocation7 + $0x964] sm:$0xf]  ;;  %v18086_v41 = vmul.f32 %v18074_v42, %v17677_v54 }
 0x4f6   :  { %v15138_v27 = vld [vmem:[#allocation7 + $0x9e0] sm:$0xf0] }
 0x4f7   :  { %10497 = vmatpush.bf16.msrb.mxu0 %v14753_v51  ;;  %10510 = vmatpush.bf16.msrb.mxu1 %v15777_v52  ;;  %v10247_v16 = vpop.f32.mrf.mxu0  ;;  %v10260_v20 = vpop.f32.mrf.mxu1  ;;  %v1315_v28 = vrot.slane %v18078_v58, 4  ;;  %v16755_v10 = vld [vmem:[#allocation7 + $0x64] sm:$0xf] }
 0x4f8   :  { %10523 = vmatpush.bf16.msrb.mxu2 %v14757_v4  ;;  %10536 = vmatpush.bf16.msrb.mxu3 %v15781_v57  ;;  %v10271_v51 = vpop.f32.mrf.mxu2  ;;  %v10284_v52 = vpop.f32.mrf.mxu3  ;;  %v16819_v4 = vld [vmem:[#allocation7 + $0x264] sm:$0xf] }
 0x4f9   :  { %v10285_v57 = vadd.f32 %v10284_v52, %v10271_v51  ;;  %v13986_v12 = vld [vmem:[#allocation7 + $0xe0] sm:$0xf0]  ;;  %v15009_v52 = vor.u32 %v17027_v35, %v15008_v55  ;;  %v18098_v22 = vadd.f32 %v1315_v28, %v18078_v58  ;;  %v1314_v28 = vmul.f32 %v18074_v42, %v17711_v7 }
 0x4fa   :  { %v17011_v13 = vld [vmem:[#allocation7 + $0x864] sm:$0xf]  ;;  %v13989_v16 = vor.u32 %v16755_v10, %v13986_v12  ;;  %v15656_v10 = vld [vmem:[#allocation7 + $0xd68] sm:$0xf] }
 0x4fb   :  { %10498 = vmatpush.bf16.msrb.mxu0 %v14625_v63  ;;  %10511 = vmatpush.bf16.msrb.mxu1 %v15649_v0  ;;  %15949 = vst [vmem:[%s18807_s12 + $0x178] sm:$0xff] %v10285_v57  ;;  %v14241_v63 = vor.u32 %v16835_v50, %v14240_v47  ;;  %v15265_v0 = vor.u32 %v17091_v3, %v15264_v53  ;;  %v16996_v47 = vld [vmem:[#allocation7 + $0x7e4] sm:$0xf0]  ;;  %v14890_v53 = vld [vmem:[#allocation7 + $0x7e8] sm:$0xf0] }
 0x4fc   :  { %10524 = vmatpush.bf16.msrb.mxu2 %v14629_v14  ;;  %10537 = vmatpush.bf16.msrb.mxu3 %v15653_v15  ;;  %v14245_v14 = vor.u32 %v16819_v4, %v14242_v5  ;;  %v15269_v15 = vor.u32 %v17075_v25, %v15266_v60  ;;  %v15912_v50 = vld [vmem:[#allocation7 + $0xf68] sm:$0xf]  ;;  %v17236_v3 = vld [vmem:[#allocation7 + $0xf6c] sm:$0xf]  ;;  %v18090_v57 = vmul.f32 %v18074_v42, %v17685_v26  ;;  %v1321_v5 = vrot.slane %v18086_v41, 4 }
 0x4fd   :  { %v15914_v4 = vld [vmem:[#allocation7 + $0xfe8] sm:$0xf0]  ;;  %v18095_v25 = vmul.f32 %v18074_v42, %v17695_v61  ;;  %v17188_v12 = vld [vmem:[#allocation7 + $0xde4] sm:$0xf0] }
 0x4ff   :  { %10499 = vmatpush.bf16.msrb.mxu0 %v14497_v34  ;;  %10512 = vmatpush.bf16.msrb.mxu1 %v15521_v30  ;;  %v15137_v34 = vor.u32 %v17059_v21, %v15136_v19  ;;  %v16771_v30 = vld [vmem:[#allocation7 + $0xdc] sm:$0xf0]  ;;  %v17220_v19 = vld [vmem:[#allocation7 + $0xee4] sm:$0xf0]  ;;  %v16948_v21 = vld [vmem:[#allocation7 + $0x66c] sm:$0xf] }
 0x500   :  { %10525 = vmatpush.bf16.msrb.mxu2 %v14501_v40  ;;  %10538 = vmatpush.bf16.msrb.mxu3 %v15525_v62  ;;  %v15141_v40 = vor.u32 %v17043_v24, %v15138_v27  ;;  %v10273_v62 = vpop.f32.mrf.mxu2  ;;  %v10286_v9 = vpop.f32.mrf.mxu3  ;;  %v13985_v51 = vor.u32 %v16771_v30, %v13984_v29  ;;  %v17204_v24 = vld [vmem:[#allocation7 + $0xe6c] sm:$0xf]  ;;  %v1327_v29 = vrot.slane %v18090_v57, 4  ;;  %v1313_v30 = vmul.f32 %v18074_v42, %v17708_v48 }
 0x501   :  { %v15786_v27 = vld [vmem:[#allocation7 + $0xee8] sm:$0xf0]  ;;  %v1333_v58 = vrot.slane %v18095_v25, 4  ;;  %v14765_v62 = vor.u32 %v16948_v21, %v14762_v23 }
 0x502   :  { %v15789_v9 = vor.u32 %v17204_v24, %v15786_v27  ;;  %v14506_v21 = vld [vmem:[#allocation7 + $0x4e8] sm:$0xf0] }
 0x503   :  { %10500 = vmatpush.bf16.msrb.mxu0 %v14369_v44  ;;  %10513 = vmatpush.bf16.msrb.mxu1 %v15393_v43  ;;  %v15010_v44 = vld [vmem:[#allocation7 + $0x8e0] sm:$0xf0]  ;;  %v14888_v43 = vld [vmem:[#allocation7 + $0x768] sm:$0xf]  ;;  %v17140_v23 = vld [vmem:[#allocation7 + $0xc6c] sm:$0xf] }
 0x504   :  { %10526 = vmatpush.bf16.msrb.mxu2 %v14373_v45  ;;  %10539 = vmatpush.bf16.msrb.mxu3 %v15397_v46  ;;  %v17252_v45 = vld [vmem:[#allocation7 + $0xfe4] sm:$0xf0]  ;;  %v16980_v46 = vld [vmem:[#allocation7 + $0x76c] sm:$0xf]  ;;  %v15013_v20 = vor.u32 %v17011_v13, %v15010_v44  ;;  %v14889_v60 = vor.u32 %v16996_v47, %v14888_v43 }
 0x505   :  { %v14893_v18 = vor.u32 %v16980_v46, %v14890_v53  ;;  %v16916_v13 = vld [vmem:[#allocation7 + $0x56c] sm:$0xf]  ;;  %v1317_v46 = vrot.slane %v18098_v22, 2  ;;  %v15657_v53 = vor.u32 %v17188_v12, %v15656_v10  ;;  %v15400_v10 = vld [vmem:[#allocation7 + $0xb68] sm:$0xf] }
 0x506   :  { %v14634_v44 = vld [vmem:[#allocation7 + $0x5e8] sm:$0xf0] }
 0x507   :  { %10501 = vmatpush.bf16.msrb.mxu0 %v14241_v63  ;;  %10514 = vmatpush.bf16.msrb.mxu1 %v15265_v0  ;;  %v15913_v63 = vor.u32 %v17252_v45, %v15912_v50  ;;  %v14760_v0 = vld [vmem:[#allocation7 + $0x668] sm:$0xf]  ;;  %v17172_v43 = vld [vmem:[#allocation7 + $0xd6c] sm:$0xf]  ;;  %v1351_v45 = vrot.slane %v1313_v30, 4 }
 0x508   :  { %10527 = vmatpush.bf16.msrb.mxu2 %v14245_v14  ;;  %10540 = vmatpush.bf16.msrb.mxu3 %v15269_v15  ;;  %v15917_v14 = vor.u32 %v17236_v3, %v15914_v4  ;;  %v15784_v15 = vld [vmem:[#allocation7 + $0xe68] sm:$0xf]  ;;  %v14761_v55 = vor.u32 %v16964_v17, %v14760_v0  ;;  %v16884_v17 = vld [vmem:[#allocation7 + $0x46c] sm:$0xf] }
 0x509   :  { %v15785_v35 = vor.u32 %v17220_v19, %v15784_v15  ;;  %v14504_v3 = vld [vmem:[#allocation7 + $0x468] sm:$0xf]  ;;  %v15530_v24 = vld [vmem:[#allocation7 + $0xce8] sm:$0xf0] }
 0x50a   :  { %v16900_v4 = vld [vmem:[#allocation7 + $0x4e4] sm:$0xf0] }
 0x50b   :  { %10502 = vmatpush.bf16.msrb.mxu0 %v14113_v33  ;;  %10515 = vmatpush.bf16.msrb.mxu1 %v15137_v34  ;;  %v1311_v33 = vmul.f32 %v18074_v42, %v17700_v32  ;;  %v1312_v34 = vmul.f32 %v18074_v42, %v17705_v38  ;;  %v15658_v42 = vld [vmem:[#allocation7 + $0xde8] sm:$0xf0]  ;;  %v17156_v0 = vld [vmem:[#allocation7 + $0xce4] sm:$0xf0] }
 0x50c   :  { %10528 = vmatpush.bf16.msrb.mxu2 %v14117_v8  ;;  %10541 = vmatpush.bf16.msrb.mxu3 %v15141_v40  ;;  %v14632_v8 = vld [vmem:[#allocation7 + $0x568] sm:$0xf] }
 0x50d   :  { %v16932_v40 = vld [vmem:[#allocation7 + $0x5e4] sm:$0xf0]  ;;  %v1339_v47 = vrot.slane %v1311_v33, 4  ;;  %v1345_v50 = vrot.slane %v1312_v34, 4 }
 0x50f   :  { %10503 = vmatpush.bf16.msrb.mxu0 %v13985_v51  ;;  %10516 = vmatpush.bf16.msrb.mxu1 %v15009_v52  ;;  %v1357_v51 = vrot.slane %v1314_v28, 4  ;;  %v14633_v52 = vor.u32 %v16932_v40, %v14632_v8  ;;  %v10297_v15 = vpop.f32.mrf.mxu0  ;;  %v10310_v19 = vpop.f32.mrf.mxu1  ;;  %v1340_v27 = vadd.f32 %v1339_v47, %v1311_v33  ;;  %v14505_v8 = vor.u32 %v16900_v4, %v14504_v3  ;;  %v17124_v33 = vld [vmem:[#allocation7 + $0xbe4] sm:$0xf0] }
 0x510   :  { %10529 = vmatpush.bf16.msrb.mxu2 %v13989_v16  ;;  %10542 = vmatpush.bf16.msrb.mxu3 %v15013_v20  ;;  %v1322_v16 = vadd.f32 %v1321_v5, %v18086_v41  ;;  %v14637_v20 = vor.u32 %v16916_v13, %v14634_v44  ;;  %v10311_v41 = vadd.f32 %v10310_v19, %v10297_v15 }
 0x511   :  { %v1358_v5 = vadd.f32 %v1357_v51, %v1314_v28  ;;  %v15402_v28 = vld [vmem:[#allocation7 + $0xbe8] sm:$0xf0]  ;;  %v1341_v44 = vrot.slane %v1340_v27, 2  ;;  %v14248_v51 = vld [vmem:[#allocation7 + $0x268] sm:$0xf] }
 0x512   :  { %10504 = vmatmul.bf16.vlgmr.msrb.gmra.mxu0 %v17918_v37  ;;  %10517 = vmatmul.bf16.vlgmr.msrb.gmra.mxu1 %v17920_v39  ;;  %15950 = vst [vmem:[%s18807_s12 + $0x180] sm:$0xff] %v10311_v41  ;;  %v17076_v41 = vld [vmem:[#allocation7 + $0xa6c] sm:$0xf] }
 0x513   :  { %10548 = vmatpush.bf16.msra.mxu0 %v14889_v60  ;;  %10561 = vmatpush.bf16.msra.mxu1 %v15913_v63  ;;  %v15661_v60 = vor.u32 %v17172_v43, %v15658_v42  ;;  %v15528_v63 = vld [vmem:[#allocation7 + $0xc68] sm:$0xf]  ;;  %v1359_v47 = vrot.slane %v1358_v5, 2 }
 0x514   :  { %10574 = vmatpush.bf16.msra.mxu2 %v14893_v18  ;;  %10587 = vmatpush.bf16.msra.mxu3 %v15917_v14  ;;  %v1328_v18 = vadd.f32 %v1327_v29, %v18090_v57  ;;  %v1334_v14 = vadd.f32 %v1333_v58, %v18095_v25  ;;  %v15529_v40 = vor.u32 %v17156_v0, %v15528_v63  ;;  %v1323_v57 = vrot.slane %v1322_v16, 2  ;;  %v17108_v58 = vld [vmem:[#allocation7 + $0xb6c] sm:$0xf]  ;;  %v17092_v63 = vld [vmem:[#allocation7 + $0xae4] sm:$0xf0] }
 0x515   :  { %10530 = vmatmul.bf16.vlgmr.msrb.gmra.mxu2 %v17918_v37  ;;  %10543 = vmatmul.bf16.vlgmr.msrb.gmra.mxu3 %v17920_v39  ;;  %v14509_v25 = vor.u32 %v16884_v17, %v14506_v21  ;;  %v15533_v29 = vor.u32 %v17140_v23, %v15530_v24  ;;  %v15405_v3 = vor.u32 %v17108_v58, %v15402_v28  ;;  %v16820_v0 = vld [vmem:[#allocation7 + $0x26c] sm:$0xf] }
 0x516   :  { %v1329_v12 = vrot.slane %v1328_v18, 2  ;;  %v1335_v13 = vrot.slane %v1334_v14, 2  ;;  %v18124_v17 = vadd.f32 %v1317_v46, %v18098_v22  ;;  %v18126_v15 = vadd.f32 %v1323_v57, %v1322_v16  ;;  %v14250_v24 = vld [vmem:[#allocation7 + $0x2e8] sm:$0xf0]  ;;  %v14120_v16 = vld [vmem:[#allocation7 + $0x168] sm:$0xf] }
 0x517   :  { %10549 = vmatpush.bf16.msra.mxu0 %v14761_v55  ;;  %10562 = vmatpush.bf16.msra.mxu1 %v15785_v35  ;;  %v1346_v55 = vadd.f32 %v1345_v50, %v1312_v34  ;;  %v1352_v35 = vadd.f32 %v1351_v45, %v1313_v30  ;;  %v16852_v34 = vld [vmem:[#allocation7 + $0x36c] sm:$0xf]  ;;  %v15401_v45 = vor.u32 %v17124_v33, %v15400_v10  ;;  %v10299_v21 = vpop.f32.mrf.mxu0  ;;  %v10312_v23 = vpop.f32.mrf.mxu1  ;;  %v16804_v57 = vld [vmem:[#allocation7 + $0x1e4] sm:$0xf0] }
 0x518   :  { %10575 = vmatpush.bf16.msra.mxu2 %v14765_v62  ;;  %10588 = vmatpush.bf16.msra.mxu3 %v15789_v9  ;;  %v14376_v62 = vld [vmem:[#allocation7 + $0x368] sm:$0xf]  ;;  %v14378_v30 = vld [vmem:[#allocation7 + $0x3e8] sm:$0xf0]  ;;  %v10323_v4 = vpop.f32.mrf.mxu2  ;;  %v1319_v58 = vrot.slane %v18124_v17, 1  ;;  %v1325_v28 = vrot.slane %v18126_v15, 1 }
 0x519   :  { %v16868_v9 = vld [vmem:[#allocation7 + $0x3e4] sm:$0xf0]  ;;  %v1347_v43 = vrot.slane %v1346_v55, 2  ;;  %v1353_v42 = vrot.slane %v1352_v35, 2  ;;  %v14122_v33 = vld [vmem:[#allocation7 + $0x1e8] sm:$0xf0] }
 0x51a   :  { %v14377_v50 = vor.u32 %v16868_v9, %v14376_v62  ;;  %v18130_v62 = vadd.f32 %v1335_v13, %v1334_v14  ;;  %v18132_v9 = vadd.f32 %v1341_v44, %v1340_v27  ;;  %v14253_v14 = vor.u32 %v16820_v0, %v14250_v24  ;;  %v16756_v0 = vld [vmem:[#allocation7 + $0x6c] sm:$0xf] }
 0x51b   :  { %10550 = vmatpush.bf16.msra.mxu0 %v14633_v52  ;;  %10563 = vmatpush.bf16.msra.mxu1 %v15657_v53  ;;  %v16836_v52 = vld [vmem:[#allocation7 + $0x2e4] sm:$0xf0]  ;;  %v14381_v53 = vor.u32 %v16852_v34, %v14378_v30  ;;  %v18134_v10 = vadd.f32 %v1347_v43, %v1346_v55  ;;  %v17044_v34 = vld [vmem:[#allocation7 + $0x96c] sm:$0xf]  ;;  %v14121_v43 = vor.u32 %v16804_v57, %v14120_v16 }
 0x51c   :  { %10576 = vmatpush.bf16.msra.mxu2 %v14637_v20  ;;  %10589 = vmatpush.bf16.msra.mxu3 %v15661_v60  ;;  %v10336_v20 = vpop.f32.mrf.mxu3  ;;  %v15272_v60 = vld [vmem:[#allocation7 + $0xa68] sm:$0xf]  ;;  %v14249_v22 = vor.u32 %v16836_v52, %v14248_v51  ;;  %v15146_v30 = vld [vmem:[#allocation7 + $0x9e8] sm:$0xf0]  ;;  %v1337_v13 = vrot.slane %v18130_v62, 1  ;;  %v6512_v21 = vpop.xlane.xlu2 %6511 }
 0x51d   :  { %v10337_v19 = vadd.f32 %v10336_v20, %v10323_v4  ;;  %v15273_v46 = vor.u32 %v17092_v63, %v15272_v60  ;;  %v15144_v55 = vld [vmem:[#allocation7 + $0x968] sm:$0xf]  ;;  %v1349_v44 = vrot.slane %v18134_v10, 1  ;;  %v15149_v52 = vor.u32 %v17044_v34, %v15146_v30  ;;  %v14898_v34 = vld [vmem:[#allocation7 + $0x7f0] sm:$0xf0] }
 0x51e   :  { %v13992_v4 = vld [vmem:[#allocation7 + $0x68] sm:$0xf]  ;;  %v17237_v30 = vld [vmem:[#allocation7 + $0xf74] sm:$0xf] }
 0x51f   :  { %10551 = vmatpush.bf16.msra.mxu0 %v14505_v8  ;;  %10564 = vmatpush.bf16.msra.mxu1 %v15529_v40  ;;  %v15274_v8 = vld [vmem:[#allocation7 + $0xae8] sm:$0xf0]  ;;  %v18128_v40 = vadd.f32 %v1329_v12, %v1328_v18  ;;  %15951 = vst [vmem:[%s18807_s12 + $0x188] sm:$0xff] %v10337_v19  ;;  %v18141_v18 = vadd.f32 %v1359_v47, %v1358_v5  ;;  %v1343_v5 = vrot.slane %v18132_v9, 1  ;;  %v16772_v20 = vld [vmem:[#allocation7 + $0xe4] sm:$0xf0] }
 0x520   :  { %10577 = vmatpush.bf16.msra.mxu2 %v14509_v25  ;;  %10590 = vmatpush.bf16.msra.mxu3 %v15533_v29  ;;  %v18136_v25 = vadd.f32 %v1353_v42, %v1352_v35  ;;  %v15277_v27 = vor.u32 %v17076_v41, %v15274_v8  ;;  %v17060_v29 = vld [vmem:[#allocation7 + $0x9e4] sm:$0xf0]  ;;  %v16788_v35 = vld [vmem:[#allocation7 + $0x16c] sm:$0xf]  ;;  %v13993_v23 = vor.u32 %v16772_v20, %v13992_v4 }
 0x521   :  { %v1331_v12 = vrot.slane %v18128_v40, 1  ;;  %v15145_v42 = vor.u32 %v17060_v29, %v15144_v55  ;;  %v14125_v51 = vor.u32 %v16788_v35, %v14122_v33  ;;  %v15016_v60 = vld [vmem:[#allocation7 + $0x868] sm:$0xf]  ;;  %v13994_v19 = vld [vmem:[#allocation7 + $0xe8] sm:$0xf0]  ;;  %v1320_v20 = vadd.f32 %v1319_v58, %v18124_v17 }
 0x522   :  { %v1355_v47 = vrot.slane %v18136_v25, 1  ;;  %v17028_v63 = vld [vmem:[#allocation7 + $0x8e4] sm:$0xf0]  ;;  %v17012_v41 = vld [vmem:[#allocation7 + $0x86c] sm:$0xf]  ;;  %v13997_v16 = vor.u32 %v16756_v0, %v13994_v19  ;;  %v1326_v19 = vadd.f32 %v1325_v28, %v18126_v15  ;;  %v1338_v17 = vadd.f32 %v1337_v13, %v18130_v62 }
 0x523   :  { %10552 = vmatpush.bf16.msra.mxu0 %v14377_v50  ;;  %10565 = vmatpush.bf16.msra.mxu1 %v15401_v45  ;;  %v1361_v50 = vrot.slane %v18141_v18, 1  ;;  %v6513_v45 = vld [vmem:[%s18803_s8] sm:$0xff]  ;;  %v15017_v24 = vor.u32 %v17028_v63, %v15016_v60  ;;  %v15018_v8 = vld [vmem:[#allocation7 + $0x8e8] sm:$0xf0]  ;;  %v17253_v55 = vld [vmem:[#allocation7 + $0xfec] sm:$0xf0]  ;;  %v1344_v15 = vadd.f32 %v1343_v5, %v18132_v9  ;;  %v1350_v28 = vadd.f32 %v1349_v44, %v18134_v10 }
 0x524   :  { %10578 = vmatpush.bf16.msra.mxu2 %v14381_v53  ;;  %10591 = vmatpush.bf16.msra.mxu3 %v15405_v3  ;;  %v10325_v53 = vpop.f32.mrf.mxu2  ;;  %v10338_v3 = vpop.f32.mrf.mxu3  ;;  %v15021_v57 = vor.u32 %v17012_v41, %v15018_v8  ;;  %v16981_v33 = vld [vmem:[#allocation7 + $0x774] sm:$0xf]  ;;  %v14640_v8 = vld [vmem:[#allocation7 + $0x570] sm:$0xf] }
 0x525   :  { %v15922_v53 = vld [vmem:[#allocation7 + $0xff0] sm:$0xf0]  ;;  %v14768_v3 = vld [vmem:[#allocation7 + $0x670] sm:$0xf]  ;;  %v1362_v9 = vadd.f32 %v1361_v50, %v18141_v18 }
 0x526   :  { %v15925_v4 = vor.u32 %v17237_v30, %v15922_v53  ;;  %v16949_v60 = vld [vmem:[#allocation7 + $0x674] sm:$0xf]  ;;  %v17189_v62 = vld [vmem:[#allocation7 + $0xdec] sm:$0xf0] }
 0x527   :  { %10553 = vmatpush.bf16.msra.mxu0 %v14249_v22  ;;  %10566 = vmatpush.bf16.msra.mxu1 %v15273_v46  ;;  %v14896_v22 = vld [vmem:[#allocation7 + $0x770] sm:$0xf]  ;;  %v6514_v46 = vadd.f32 %v6513_v45, %v6512_v21  ;;  %v14770_v63 = vld [vmem:[#allocation7 + $0x6f0] sm:$0xf0] }
 0x528   :  { %10579 = vmatpush.bf16.msra.mxu2 %v14253_v14  ;;  %10592 = vmatpush.bf16.msra.mxu3 %v15277_v27  ;;  %v16997_v14 = vld [vmem:[#allocation7 + $0x7ec] sm:$0xf0]  ;;  %v17205_v0 = vld [vmem:[#allocation7 + $0xe74] sm:$0xf]  ;;  %v14773_v58 = vor.u32 %v16949_v60, %v14770_v63 }
 0x529   :  { %v15920_v27 = vld [vmem:[#allocation7 + $0xf70] sm:$0xf]  ;;  %v14897_v29 = vor.u32 %v16997_v14, %v14896_v22  ;;  %v14642_v13 = vld [vmem:[#allocation7 + $0x5f0] sm:$0xf0] }
 0x52a   :  { %v15921_v35 = vor.u32 %v17253_v55, %v15920_v27  ;;  %v16965_v45 = vld [vmem:[#allocation7 + $0x6ec] sm:$0xf0]  ;;  %v17173_v44 = vld [vmem:[#allocation7 + $0xd74] sm:$0xf] }
 0x52b   :  { %10554 = vmatpush.bf16.msra.mxu0 %v14121_v43  ;;  %10567 = vmatpush.bf16.msra.mxu1 %v15145_v42  ;;  %v13869_v43 = vmul.f32 -1.442695, %v6514_v46  ;;  %v14901_v42 = vor.u32 %v16981_v33, %v14898_v34  ;;  %v14769_v21 = vor.u32 %v16965_v45, %v14768_v3  ;;  %v16933_v22 = vld [vmem:[#allocation7 + $0x5ec] sm:$0xf0]  ;;  %v15666_v14 = vld [vmem:[#allocation7 + $0xdf0] sm:$0xf0] }
 0x52c   :  { %10580 = vmatpush.bf16.msra.mxu2 %v14125_v51  ;;  %10593 = vmatpush.bf16.msra.mxu3 %v15149_v52  ;;  %v15792_v51 = vld [vmem:[#allocation7 + $0xe70] sm:$0xf]  ;;  %v14641_v10 = vor.u32 %v16933_v22, %v14640_v8  ;;  %v16885_v45 = vld [vmem:[#allocation7 + $0x474] sm:$0xf] }
 0x52d   :  { %v17221_v52 = vld [vmem:[#allocation7 + $0xeec] sm:$0xf0]  ;;  %17273 = vpow2.f32 %v13869_v43 }
 0x52e   :  { %v15793_v41 = vor.u32 %v17221_v52, %v15792_v51  ;;  %v15664_v46 = vld [vmem:[#allocation7 + $0xd70] sm:$0xf] }
 0x52f   :  { %10555 = vmatpush.bf16.msra.mxu0 %v13993_v23  ;;  %10568 = vmatpush.bf16.msra.mxu1 %v15017_v24  ;;  %v15794_v23 = vld [vmem:[#allocation7 + $0xef0] sm:$0xf0]  ;;  %v1332_v24 = vadd.f32 %v1331_v12, %v18128_v40  ;;  %v15665_v27 = vor.u32 %v17189_v62, %v15664_v46  ;;  %v14512_v18 = vld [vmem:[#allocation7 + $0x470] sm:$0xf] }
 0x530   :  { %10581 = vmatpush.bf16.msra.mxu2 %v13997_v16  ;;  %10594 = vmatpush.bf16.msra.mxu3 %v15021_v57  ;;  %v1367_v16 = vpop.permute.xlu2 %1366  ;;  %v15797_v40 = vor.u32 %v17205_v0, %v15794_v23  ;;  %v16917_v12 = vld [vmem:[#allocation7 + $0x574] sm:$0xf]  ;;  %v1356_v57 = vadd.f32 %v1355_v47, %v18136_v25  ;;  %v16901_v50 = vld [vmem:[#allocation7 + $0x4ec] sm:$0xf0]  ;;  %v10362_v0 = vpop.f32.mrf.mxu1 }
 0x531   :  { %v1369_v5 = vperm.slane %v1367_v16, 0  ;;  %v14645_v55 = vor.u32 %v16917_v12, %v14642_v13  ;;  %v15536_v30 = vld [vmem:[#allocation7 + $0xc70] sm:$0xf]  ;;  %v14513_v8 = vor.u32 %v16901_v50, %v14512_v18  ;;  %v14258_v18 = vld [vmem:[#allocation7 + $0x2f0] sm:$0xf0] }
 0x532   :  { %10556 = vmatmul.bf16.vlgmr.msra.gmra.mxu0 %v17918_v37  ;;  %10569 = vmatmul.bf16.vlgmr.msra.gmra.mxu1 %v17920_v39  ;;  %v14384_v16 = vld [vmem:[#allocation7 + $0x370] sm:$0xf] }
 0x533   :  { %10600 = vmatpush.bf16.msrb.mxu0 %v14897_v29  ;;  %10613 = vmatpush.bf16.msrb.mxu1 %v15921_v35  ;;  %v15669_v29 = vor.u32 %v17173_v44, %v15666_v14  ;;  %v17274_v35 = vpop.eup %17273  ;;  %v1370_v33 = vadd.f32 %v1369_v5, %v1320_v20  ;;  %v1371_v25 = vadd.f32 %v1369_v5, %v1326_v19  ;;  %v10349_v20 = vpop.f32.mrf.mxu0  ;;  %v16869_v62 = vld [vmem:[#allocation7 + $0x3ec] sm:$0xf0]  ;;  %v17109_v14 = vld [vmem:[#allocation7 + $0xb74] sm:$0xf] }
 0x534   :  { %10626 = vmatpush.bf16.msrb.mxu2 %v14901_v42  ;;  %10639 = vmatpush.bf16.msrb.mxu3 %v15925_v4  ;;  %v1372_v47 = vadd.f32 %v1369_v5, %v1332_v24  ;;  %v1373_v34 = vadd.f32 %v1369_v5, %v1338_v17  ;;  %v18178_v43 = vadd.f32 1.0, %v17274_v35  ;;  %v1374_v42 = vadd.f32 %v1369_v5, %v1344_v15  ;;  %v17157_v4 = vld [vmem:[#allocation7 + $0xcec] sm:$0xf0]  ;;  %v17141_v15 = vld [vmem:[#allocation7 + $0xc74] sm:$0xf] }
 0x535   :  { %10582 = vmatmul.bf16.vlgmr.msra.gmra.mxu2 %v17918_v37  ;;  %10595 = vmatmul.bf16.vlgmr.msra.gmra.mxu3 %v17920_v39  ;;  %v1375_v53 = vadd.f32 %v1369_v5, %v1350_v28  ;;  %v1376_v3 = vadd.f32 %v1369_v5, %v1356_v57  ;;  %v1377_v51 = vadd.f32 %v1369_v5, %v1362_v9  ;;  %v11301_v52 = vmul.f32 -1.442695, %v1370_v33  ;;  %v15538_v28 = vld [vmem:[#allocation7 + $0xcf0] sm:$0xf0]  ;;  %v15408_v12 = vld [vmem:[#allocation7 + $0xb70] sm:$0xf] }
 0x536   :  { %v11302_v60 = vmul.f32 -1.442695, %v1371_v25  ;;  %v11303_v63 = vmul.f32 -1.442695, %v1372_v47  ;;  %17275 = vrcp.f32 %v18178_v43  ;;  %v11304_v19 = vmul.f32 -1.442695, %v1373_v34 }
 0x537   :  { %10601 = vmatpush.bf16.msrb.mxu0 %v14769_v21  ;;  %10614 = vmatpush.bf16.msrb.mxu1 %v15793_v41  ;;  %v11305_v21 = vmul.f32 -1.442695, %v1374_v42  ;;  %v11306_v41 = vmul.f32 -1.442695, %v1375_v53  ;;  %17277 = vpow2.f32 %v11301_v52  ;;  %v11307_v23 = vmul.f32 -1.442695, %v1376_v3 }
 0x538   :  { %10627 = vmatpush.bf16.msrb.mxu2 %v14773_v58  ;;  %10640 = vmatpush.bf16.msrb.mxu3 %v15797_v40  ;;  %v11308_v24 = vmul.f32 -1.442695, %v1377_v51  ;;  %v10363_v17 = vadd.f32 %v10362_v0, %v10349_v20  ;;  %v14514_v58 = vld [vmem:[#allocation7 + $0x4f0] sm:$0xf0]  ;;  %17279 = vpow2.f32 %v11302_v60  ;;  %v15537_v22 = vor.u32 %v17157_v4, %v15536_v30  ;;  %v17125_v57 = vld [vmem:[#allocation7 + $0xbec] sm:$0xf0]  ;;  %v10375_v33 = vpop.f32.mrf.mxu2  ;;  %v10388_v25 = vpop.f32.mrf.mxu3 }
 0x539   :  { %v14517_v46 = vor.u32 %v16885_v45, %v14514_v58  ;;  %17281 = vpow2.f32 %v11303_v63  ;;  %v15541_v40 = vor.u32 %v17141_v15, %v15538_v28  ;;  %v14385_v13 = vor.u32 %v16869_v62, %v14384_v16  ;;  %v16853_v9 = vld [vmem:[#allocation7 + $0x374] sm:$0xf]  ;;  %v17093_v47 = vld [vmem:[#allocation7 + $0xaec] sm:$0xf0]  ;;  %v10364_v53 = vpop.f32.mrf.mxu1 }
 0x53a   :  { %15952 = vst [vmem:[%s18807_s12 + $0x190] sm:$0xff] %v10363_v17  ;;  %17283 = vpow2.f32 %v11304_v19  ;;  %v14386_v5 = vld [vmem:[#allocation7 + $0x3f0] sm:$0xf0]  ;;  %v10389_v30 = vadd.f32 %v10388_v25, %v10375_v33  ;;  %v6528_v15 = vand.u32 2147483647, %v18178_v43  ;;  %v6530_v28 = vand.u32 2147483648, %v18178_v43 }
 0x53b   :  { %10602 = vmatpush.bf16.msrb.mxu0 %v14641_v10  ;;  %10615 = vmatpush.bf16.msrb.mxu1 %v15665_v27  ;;  %17285 = vpow2.f32 %v11305_v21  ;;  %v15409_v10 = vor.u32 %v17125_v57, %v15408_v12  ;;  %v14389_v44 = vor.u32 %v16853_v9, %v14386_v5  ;;  %v15410_v27 = vld [vmem:[#allocation7 + $0xbf0] sm:$0xf0]  ;;  %v10351_v42 = vpop.f32.mrf.mxu0 }
 0x53c   :  { %10628 = vmatpush.bf16.msrb.mxu2 %v14645_v55  ;;  %10641 = vmatpush.bf16.msrb.mxu3 %v15669_v29  ;;  %v15280_v55 = vld [vmem:[#allocation7 + $0xa70] sm:$0xf]  ;;  %v18184_v29 = vpop.eup %17275  ;;  %17287 = vpow2.f32 %v11306_v41  ;;  %v15413_v35 = vor.u32 %v17109_v14, %v15410_v27  ;;  %v16821_v34 = vld [vmem:[#allocation7 + $0x274] sm:$0xf]  ;;  %15953 = vst [vmem:[%s18807_s12 + $0x198] sm:$0xff] %v10389_v30 }
 0x53d   :  { %v17278_v50 = vpop.eup %17277  ;;  %v17077_v3 = vld [vmem:[#allocation7 + $0xa74] sm:$0xf]  ;;  %17289 = vpow2.f32 %v11307_v23  ;;  %v15281_v52 = vor.u32 %v17093_v47, %v15280_v55  ;;  %v14261_v20 = vor.u32 %v16821_v34, %v14258_v18 }
 0x53e   :  { %v15282_v4 = vld [vmem:[#allocation7 + $0xaf0] sm:$0xf0]  ;;  %v17280_v45 = vpop.eup %17279  ;;  %v18186_v51 = vadd.f32 1.0, %v17278_v50  ;;  %17291 = vpow2.f32 %v11308_v24 }
 0x53f   :  { %10603 = vmatpush.bf16.msrb.mxu0 %v14513_v8  ;;  %10616 = vmatpush.bf16.msrb.mxu1 %v15537_v22  ;;  %v17282_v60 = vpop.eup %17281  ;;  %v18188_v63 = vadd.f32 1.0, %v17280_v45  ;;  %v15285_v21 = vor.u32 %v17077_v3, %v15282_v4 }
 0x540   :  { %10629 = vmatpush.bf16.msrb.mxu2 %v14517_v46  ;;  %10642 = vmatpush.bf16.msrb.mxu3 %v15541_v40  ;;  %v17284_v0 = vpop.eup %17283  ;;  %v18193_v19 = vadd.f32 1.0, %v17282_v60  ;;  %17293 = vrcp.f32 %v18186_v51  ;;  %v1421_v58 = vand.u32 2147483648, %v18186_v51  ;;  %v18206_v46 = vmul.f32 %v18184_v29, %v18178_v43  ;;  %v10377_v16 = vpop.f32.mrf.mxu2 }
 0x541   :  { %v17286_v41 = vpop.eup %17285  ;;  %v18196_v23 = vadd.f32 1.0, %v17284_v0  ;;  %17295 = vrcp.f32 %v18188_v63  ;;  %v1436_v22 = vand.u32 2147483648, %v18188_v63  ;;  %v10390_v40 = vpop.f32.mrf.mxu3  ;;  %vm1415_vm7 = vweird.f32 %v18186_v51 }
 0x542   :  { %v17288_v24 = vpop.eup %17287  ;;  %v18199_v17 = vadd.f32 1.0, %v17286_v41  ;;  %17297 = vrcp.f32 %v18193_v19  ;;  %vm1430_vm8 = vweird.f32 %v18188_v63  ;;  %v1434_v9 = vand.u32 2147483647, %v18188_v63 }
 0x543   :  { %10604 = vmatpush.bf16.msrb.mxu0 %v14385_v13  ;;  %10617 = vmatpush.bf16.msrb.mxu1 %v15409_v10  ;;  %v17290_v8 = vpop.eup %17289  ;;  %v18210_v12 = vadd.f32 1.0, %v17288_v24  ;;  %v1419_v13 = vand.u32 2147483647, %v18186_v51  ;;  %17299 = vrcp.f32 %v18196_v23  ;;  %v1451_v5 = vand.u32 2147483648, %v18193_v19 }
 0x544   :  { %10630 = vmatpush.bf16.msrb.mxu2 %v14389_v44  ;;  %10643 = vmatpush.bf16.msrb.mxu3 %v15413_v35  ;;  %v17292_v62 = vpop.eup %17291  ;;  %17301 = vrcp.f32 %v18199_v17  ;;  %v18223_v44 = vadd.f32 1.0, %v17290_v8  ;;  %v1422_v27 = vor.u32 1.1754944e-38, %v1421_v58  ;;  %v1466_v55 = vand.u32 2147483648, %v18196_v23  ;;  %v18416_v8 = vld [vmem:[#allocation7 + $0x8ec] sm:$0xf0] }
 0x545   :  { %v1437_v33 = vor.u32 1.1754944e-38, %v1436_v22  ;;  %vm1445_vm9 = vweird.f32 %v18193_v19  ;;  %v1449_v25 = vand.u32 2147483647, %v18193_v19  ;;  %v1464_v47 = vand.u32 2147483647, %v18196_v23 }
 0x546   :  { %v18215_v57 = vpop.eup %17293  ;;  %v18235_v18 = vadd.f32 1.0, %v17292_v62  ;;  %v1479_v30 = vand.u32 2147483647, %v18199_v17  ;;  %17303 = vrcp.f32 %v18210_v12  ;;  %vm18240_vm11 = vcmp.eq.f32.partialorder %v1419_v13, 8.507059e+37  ;;  %v18272_v13 = vpop.permute.xlu0 %6599 }
 0x547   :  { %10618 = vmatpush.bf16.msrb.mxu1 %v15281_v52  ;;  %v18221_v10 = vpop.eup %17295  ;;  %v1411_v14 = vmul.f32 %v18215_v57, %v18186_v51  ;;  %vm1416_vm10 = vweird.f32 %v18215_v57  ;;  %vm18244_vm12 = vcmp.eq.f32.partialorder %v1434_v9, 8.507059e+37  ;;  %v1452_v45 = vor.u32 1.1754944e-38, %v1451_v5 }
 0x548   :  { %10631 = vmatpush.bf16.msrb.mxu2 %v14261_v20  ;;  %10644 = vmatpush.bf16.msrb.mxu3 %v15285_v21  ;;  %v1426_v35 = vmul.f32 %v18221_v10, %v18188_v63  ;;  %v18233_v34 = vpop.eup %17297  ;;  %vm1460_vm13 = vweird.f32 %v18196_v23  ;;  %vm1431_vm14 = vweird.f32 %v18221_v10  ;;  %v1467_v20 = vor.u32 1.1754944e-38, %v1466_v55  ;;  %vm18278_vm4 = vmor %vm1415_vm7, %vm1416_vm10 }
 0x549   :  { %v1412_v50 = vsub.f32 1.0, %v1411_v14  ;;  %v1441_v4 = vmul.f32 %v18233_v34, %v18193_v19  ;;  %v17300_v52 = vpop.eup %17299  ;;  %vm1475_vm15 = vweird.f32 %v18199_v17  ;;  %vm18255_vm0 = vcmp.eq.f32.partialorder %v1449_v25, 8.507059e+37  ;;  %vm18291_vm5 = vmor %vm1430_vm8, %vm1431_vm14 }
 0x54a   :  { %v1427_v53 = vsub.f32 1.0, %v1426_v35  ;;  %v17302_v0 = vpop.eup %17301  ;;  %v1456_v58 = vmul.f32 %v17300_v52, %v18196_v23  ;;  %vm18260_vm1 = vcmp.eq.f32.partialorder %v1464_v47, 8.507059e+37  ;;  %v1481_v22 = vand.u32 2147483648, %v18199_v17 }
 0x54b   :  { %v1413_v60 = vmul.f32 %v18215_v57, %v1412_v50  ;;  %v1442_v41 = vsub.f32 1.0, %v1441_v4  ;;  %vm1446_vm2 = vweird.f32 %v18233_v34  ;;  %v1471_v40 = vmul.f32 %v17302_v0, %v18199_v17 }
 0x54c   :  { %v1428_v21 = vmul.f32 %v18221_v10, %v1427_v53  ;;  %vm18268_vm3 = vcmp.eq.f32.partialorder %v1479_v30, 8.507059e+37  ;;  %v1457_v55 = vsub.f32 1.0, %v1456_v58  ;;  %v1494_v35 = vand.u32 2147483647, %v18210_v12  ;;  %v18285_v25 = vpop.eup %17303  ;;  %vm18309_vm8 = vmor %vm1445_vm9, %vm1446_vm2 }
 0x54d   :  { %v1414_v16 = vadd.f32 %v18215_v57, %v1413_v60  ;;  %v1443_v14 = vmul.f32 %v18233_v34, %v1442_v41  ;;  %vm1461_vm6 = vweird.f32 %v17300_v52  ;;  %v1472_v51 = vsub.f32 1.0, %v1471_v40 }
 0x54e   :  { %v1429_v5 = vadd.f32 %v18221_v10, %v1428_v21  ;;  %vm1490_vm7 = vweird.f32 %v18210_v12  ;;  %v1496_v50 = vand.u32 2147483648, %v18210_v12  ;;  %17305 = vrcp.f32 %v18223_v44  ;;  %vm1462_vm9 = vmor %vm1460_vm13, %vm1461_vm6  ;;  %v18347_v17 = vpop.permute.xlu0 %1532 }
 0x54f   :  { %v1418_v30 = vsel %vm18278_vm4, %v18215_v57, %v1414_v16  ;;  %v1444_v53 = vadd.f32 %v18233_v34, %v1443_v14  ;;  %v1458_v4 = vmul.f32 %v17300_v52, %v1457_v55  ;;  %v1473_v21 = vmul.f32 %v17302_v0, %v1472_v51  ;;  %v18332_v14 = vpop.f32.mrf.mxu1 }
 0x550   :  { %v1433_v63 = vsel %vm18291_vm5, %v18221_v10, %v1429_v5  ;;  %vm1476_vm10 = vweird.f32 %v17302_v0  ;;  %v1482_v41 = vor.u32 1.1754944e-38, %v1481_v22  ;;  %v1486_v57 = vmul.f32 %v18285_v25, %v18210_v12 }
 0x551   :  { %v1448_v10 = vsel %vm18309_vm8, %v18233_v34, %v1444_v53  ;;  %v1459_v58 = vadd.f32 %v17300_v52, %v1458_v4  ;;  %vm18318_vm14 = vcmp.eq.f32.partialorder %v1494_v35, 8.507059e+37  ;;  %v1509_v19 = vand.u32 2147483647, %v18223_v44  ;;  %v18330_v34 = vpop.f32.mrf.mxu0  ;;  %vm1477_vm2 = vmor %vm1475_vm15, %vm1476_vm10  ;;  %v14256_v53 = vld [vmem:[#allocation7 + $0x270] sm:$0xf] }
 0x552   :  { %v1423_v40 = vsel %vm18240_vm11, %v1422_v27, %v1418_v30  ;;  %v1438_v22 = vsel %vm18244_vm12, %v1437_v33, %v1433_v63  ;;  %v1474_v9 = vadd.f32 %v17302_v0, %v1473_v21  ;;  %v1487_v5 = vsub.f32 1.0, %v1486_v57  ;;  %v16837_v4 = vld [vmem:[#allocation7 + $0x2ec] sm:$0xf0] }
 0x553   :  { %v1463_v55 = vsel %vm1462_vm9, %v17300_v52, %v1459_v58  ;;  %vm1491_vm11 = vweird.f32 %v18285_v25  ;;  %v1497_v27 = vor.u32 1.1754944e-38, %v1496_v50  ;;  %vm1505_vm12 = vweird.f32 %v18223_v44  ;;  %v18382_v57 = vld [vmem:[#allocation7 + $0x170] sm:$0xf] }
 0x554   :  { %17307 = vrcp.f32 %v18235_v18  ;;  %v18340_v23 = vpop.eup %17305  ;;  %v1453_v33 = vsel %vm18255_vm0, %v1452_v45, %v1448_v10  ;;  %v1468_v42 = vsel %vm18260_vm1, %v1467_v20, %v1463_v55  ;;  %v1478_v3 = vsel %vm1477_vm2, %v17302_v0, %v1474_v9  ;;  %vm18367_vm1 = vmor %vm1490_vm7, %vm1491_vm11  ;;  %v18384_v10 = vld [vmem:[#allocation7 + $0x1ec] sm:$0xf0]  ;;  %v16789_v55 = vld [vmem:[#allocation7 + $0x174] sm:$0xf] }
 0x555   :  { %v1488_v52 = vmul.f32 %v18285_v25, %v1487_v5  ;;  %v1483_v35 = vsel %vm18268_vm3, %v1482_v41, %v1478_v3  ;;  %v1501_v47 = vmul.f32 %v18340_v23, %v18223_v44  ;;  %vm18353_vm13 = vcmp.eq.f32.partialorder %v1509_v19, 8.507059e+37  ;;  %v15152_v58 = vld [vmem:[#allocation7 + $0x970] sm:$0xf] }
 0x556   :  { %v1511_v45 = vand.u32 2147483648, %v18223_v44  ;;  %vm6525_vm15 = vweird.f32 %v18184_v29  ;;  %vm1506_vm0 = vweird.f32 %v18340_v23  ;;  %v1535_v0 = vadd.f32 %v18347_v17, %v1423_v40  ;;  %v17061_v5 = vld [vmem:[#allocation7 + $0x9ec] sm:$0xf0] }
 0x557   :  { %v1489_v20 = vadd.f32 %v18285_v25, %v1488_v52  ;;  %v1536_v24 = vadd.f32 %v18347_v17, %v1438_v22  ;;  %v1502_v62 = vsub.f32 1.0, %v1501_v47  ;;  %v1524_v50 = vand.u32 2147483647, %v18235_v18  ;;  %v10416_v47 = vpop.f32.mrf.mxu1  ;;  %vm18424_vm6 = vmor %vm1505_vm12, %vm1506_vm0 }
 0x558   :  { %v1537_v30 = vadd.f32 %v18347_v17, %v1453_v33  ;;  %v1538_v63 = vadd.f32 %v18347_v17, %v1468_v42  ;;  %vm6524_vm3 = vweird.f32 %v18178_v43  ;;  %vm1520_vm4 = vweird.f32 %v18235_v18  ;;  %v14130_v33 = vld [vmem:[#allocation7 + $0x1f0] sm:$0xf0]  ;;  %v18395_v42 = vpop.f32.mrf.mxu3  ;;  %v15930_v47 = vld [vmem:[#allocation7 + $0xff8] sm:$0xf0] }
 0x559   :  { %v1493_v60 = vsel %vm18367_vm1, %v18285_v25, %v1489_v20  ;;  %v1526_v12 = vand.u32 2147483648, %v18235_v18  ;;  %v1539_v21 = vadd.f32 %v18347_v17, %v1483_v35  ;;  %v1543_v41 = vmul.f32 %v1535_v0, %v17681_v2  ;;  %v18393_v2 = vpop.f32.mrf.mxu2  ;;  %v10403_v35 = vpop.f32.mrf.mxu0  ;;  %vm18468_vm10 = vmor %vm6524_vm3, %vm6525_vm15 }
 0x55a   :  { %v18386_v19 = vpop.eup %17307  ;;  %v1498_v40 = vsel %vm18318_vm14, %v1497_v27, %v1493_v60  ;;  %v1503_v25 = vmul.f32 %v18340_v23, %v1502_v62  ;;  %v1544_v22 = vmul.f32 %v1536_v24, %v17677_v54  ;;  %v1545_v9 = vmul.f32 %v1537_v30, %v17685_v26  ;;  %v17045_v54 = vld [vmem:[#allocation7 + $0x974] sm:$0xf]  ;;  %v18414_v24 = vld [vmem:[#allocation7 + $0x870] sm:$0xf] }
 0x55b   :  { %v1512_v3 = vor.u32 1.1754944e-38, %v1511_v45  ;;  %v1516_v52 = vmul.f32 %v18386_v19, %v18235_v18  ;;  %v1540_v16 = vadd.f32 %v18347_v17, %v1498_v40  ;;  %v1546_v27 = vmul.f32 %v1538_v63, %v17695_v61  ;;  %1551 = vst [vmem:[%s18806_s11] sm:$0xff] %v1543_v41  ;;  %v15154_v26 = vld [vmem:[#allocation7 + $0x9f0] sm:$0xf0]  ;;  %v18432_v60 = vld [vmem:[#allocation7 + $0x70] sm:$0xf] }
 0x55c   :  { %v1504_v20 = vadd.f32 %v18340_v23, %v1503_v25  ;;  %vm18405_vm5 = vcmp.eq.f32.partialorder %v1524_v50, 8.507059e+37  ;;  %v1547_v45 = vmul.f32 %v1539_v21, %v17700_v32  ;;  %1552 = vst [vmem:[%s18806_s11 + $0x8] sm:$0xff] %v1544_v22  ;;  %v6521_v61 = vsub.f32 1.0, %v18206_v46  ;;  %v18418_v62 = vld [vmem:[#allocation7 + $0x74] sm:$0xf] }
 0x55d   :  { %v1517_v32 = vsub.f32 1.0, %v1516_v52  ;;  %v1527_v30 = vor.u32 1.1754944e-38, %v1526_v12  ;;  %v1548_v63 = vmul.f32 %v1540_v16, %v17705_v38  ;;  %1553 = vst [vmem:[%s18806_s11 + $0x10] sm:$0xff] %v1545_v9  ;;  %v14257_v46 = vor.u32 %v16837_v4, %v14256_v53  ;;  %v18434_v21 = vld [vmem:[#allocation7 + $0xec] sm:$0xf0] }
 0x55e   :  { %v14002_v41 = vld [vmem:[#allocation7 + $0xf0] sm:$0xf0]  ;;  %v1508_v44 = vsel %vm18424_vm6, %v18340_v23, %v1504_v20  ;;  %1554 = vst [vmem:[%s18806_s11 + $0x18] sm:$0xff] %v1546_v27  ;;  %v6522_v38 = vmul.f32 %v18184_v29, %v6521_v61  ;;  %v14129_v12 = vor.u32 %v18384_v10, %v18382_v57  ;;  %v15153_v40 = vor.u32 %v17061_v5, %v15152_v58  ;;  %v14904_v9 = vld [vmem:[#allocation7 + $0x778] sm:$0xf] }
 0x55f   :  { %v17013_v53 = vld [vmem:[#allocation7 + $0x874] sm:$0xf]  ;;  %v1513_v25 = vsel %vm18353_vm13, %v1512_v3, %v1508_v44  ;;  %v1518_v22 = vmul.f32 %v18386_v19, %v1517_v32  ;;  %vm1521_vm7 = vweird.f32 %v18386_v19  ;;  %1555 = vst [vmem:[%s18806_s11 + $0x20] sm:$0xff] %v1547_v45  ;;  %10605 = vmatpush.bf16.msrb.mxu0 %v14257_v46  ;;  %v14133_v23 = vor.u32 %v16789_v55, %v14130_v33  ;;  %v16998_v52 = vld [vmem:[#allocation7 + $0x7f4] sm:$0xf0] }
 0x560   :  { %v15026_v4 = vld [vmem:[#allocation7 + $0x8f0] sm:$0xf0]  ;;  %v15928_v16 = vld [vmem:[#allocation7 + $0xf78] sm:$0xf]  ;;  %v1541_v10 = vadd.f32 %v18347_v17, %v1513_v25  ;;  %1556 = vst [vmem:[%s18806_s11 + $0x28] sm:$0xff] %v1548_v63  ;;  %v6523_v51 = vadd.f32 %v18184_v29, %v6522_v38  ;;  %vm18459_vm8 = vcmp.eq.f32.partialorder %v6528_v15, 8.507059e+37  ;;  %10619 = vmatpush.bf16.msrb.mxu1 %v15153_v40  ;;  %v15157_v5 = vor.u32 %v17045_v54, %v15154_v26  ;;  %vm18481_vm14 = vmor %vm1520_vm4, %vm1521_vm7 }
 0x561   :  { %v17254_v57 = vld [vmem:[#allocation7 + $0xff4] sm:$0xf0]  ;;  %v16982_v55 = vld [vmem:[#allocation7 + $0x77c] sm:$0xf]  ;;  %v1519_v3 = vadd.f32 %v18386_v19, %v1518_v22  ;;  %v6531_v15 = vor.u32 1.1754944e-38, %v6530_v28  ;;  %10632 = vmatpush.bf16.msrb.mxu2 %v14133_v23  ;;  %v15025_v35 = vor.u32 %v18416_v8, %v18414_v24  ;;  %v14005_v54 = vor.u32 %v18418_v62, %v14002_v41  ;;  %v10429_v8 = vpop.f32.mrf.mxu2  ;;  %v10442_v62 = vpop.f32.mrf.mxu3 }
 0x562   :  { %v14906_v33 = vld [vmem:[#allocation7 + $0x7f8] sm:$0xf0]  ;;  %v1549_v45 = vmul.f32 %v1541_v10, %v17708_v48  ;;  %v6527_v43 = vsel %vm18468_vm10, %v18184_v29, %v6523_v51  ;;  %10645 = vmatpush.bf16.msrb.mxu3 %v15157_v5  ;;  %v14001_v28 = vor.u32 %v18434_v21, %v18432_v60  ;;  %v15029_v61 = vor.u32 %v17013_v53, %v15026_v4  ;;  %v15800_v24 = vld [vmem:[#allocation7 + $0xe78] sm:$0xf] }
 0x563   :  { %v17238_v26 = vld [vmem:[#allocation7 + $0xf7c] sm:$0xf]  ;;  %v1523_v18 = vsel %vm18481_vm14, %v18386_v19, %v1519_v3  ;;  %v6532_v50 = vsel %vm18459_vm8, %v6531_v15, %v6527_v43  ;;  %10606 = vmatpush.bf16.msrb.mxu0 %v14129_v12  ;;  %v15929_v48 = vor.u32 %v17254_v57, %v15928_v16  ;;  %v14909_v32 = vor.u32 %v16982_v55, %v14906_v33  ;;  %v17222_v63 = vld [vmem:[#allocation7 + $0xef4] sm:$0xf0] }
 0x564   :  { %v16950_v29 = vld [vmem:[#allocation7 + $0x67c] sm:$0xf]  ;;  %v1528_v60 = vsel %vm18405_vm5, %v1527_v30, %v1523_v18  ;;  %1557 = vst [vmem:[%s18806_s11 + $0x30] sm:$0xff] %v1549_v45  ;;  %6765 = vperm.xlu0 %17266, %v6532_v50   ;;  %10620 = vmatpush.bf16.msrb.mxu1 %v15025_v35  ;;  %v14905_v21 = vor.u32 %v16998_v52, %v14904_v9  ;;  %v14776_v12 = vld [vmem:[#allocation7 + $0x678] sm:$0xf] }
 0x565   :  { %v14778_v46 = vld [vmem:[#allocation7 + $0x6f8] sm:$0xf0]  ;;  %v15933_v19 = vor.u32 %v17238_v26, %v15930_v47  ;;  %v1542_v38 = vadd.f32 %v18347_v17, %v1528_v60  ;;  %10633 = vmatpush.bf16.msrb.mxu2 %v14005_v54  ;;  %v16966_v40 = vld [vmem:[#allocation7 + $0x6f4] sm:$0xf0]  ;;  %v15801_v0 = vor.u32 %v17222_v63, %v15800_v24  ;;  %v10415_v57 = vadd.f32 %v18332_v14, %v18330_v34 }
 0x566   :  { %v17206_v41 = vld [vmem:[#allocation7 + $0xe7c] sm:$0xf]  ;;  %10646 = vmatpush.bf16.msrb.mxu3 %v15029_v61  ;;  %v14781_v53 = vor.u32 %v16950_v29, %v14778_v46  ;;  %v15672_v25 = vld [vmem:[#allocation7 + $0xd78] sm:$0xf]  ;;  %v14777_v17 = vor.u32 %v16966_v40, %v14776_v12  ;;  %v10441_v33 = vadd.f32 %v18395_v42, %v18393_v2 }
 0x567   :  { %v15802_v44 = vld [vmem:[#allocation7 + $0xef8] sm:$0xf0]  ;;  %v1550_v30 = vmul.f32 %v1542_v38, %v17711_v7  ;;  %10607 = vmatpush.bf16.msrb.mxu0 %v14001_v28  ;;  %v17190_v22 = vld [vmem:[#allocation7 + $0xdf4] sm:$0xf0]  ;;  %10621 = vmatmul.bf16.vlgmr.msrb.gmra.mxu1 %v17920_v39  ;;  %15954 = vst [vmem:[%s18807_s12 + $0x1a0] sm:$0xff] %v10415_v57 }
 0x568   :  { %10665 = vmatpush.bf16.msra.mxu1 %v15929_v48  ;;  %v15805_v4 = vor.u32 %v17206_v41, %v15802_v44  ;;  %v16918_v23 = vld [vmem:[#allocation7 + $0x57c] sm:$0xf]  ;;  %10634 = vmatmul.bf16.vlgmr.msrb.gmra.mxu2 %v17918_v37  ;;  %v14648_v7 = vld [vmem:[#allocation7 + $0x578] sm:$0xf]  ;;  %v15673_v51 = vor.u32 %v17190_v22, %v15672_v25  ;;  %15955 = vst [vmem:[%s18807_s12 + $0x1a8] sm:$0xff] %v10441_v33 }
 0x569   :  { %10678 = vmatpush.bf16.msra.mxu2 %v14909_v32  ;;  %v14650_v9 = vld [vmem:[#allocation7 + $0x5f8] sm:$0xf0]  ;;  %1558 = vst [vmem:[%s18806_s11 + $0x38] sm:$0xff] %v1550_v30  ;;  %10647 = vmatmul.bf16.vlgmr.msrb.gmra.mxu3 %v17920_v39  ;;  %v16934_v10 = vld [vmem:[#allocation7 + $0x5f4] sm:$0xf0] }
 0x56a   :  { %10691 = vmatpush.bf16.msra.mxu3 %v15933_v19  ;;  %v17174_v52 = vld [vmem:[#allocation7 + $0xd7c] sm:$0xf]  ;;  %10608 = vmatmul.bf16.vlgmr.msrb.gmra.mxu0 %v17918_v37  ;;  %v14653_v34 = vor.u32 %v16918_v23, %v14650_v9  ;;  %v15544_v58 = vld [vmem:[#allocation7 + $0xc78] sm:$0xf]  ;;  %v14649_v3 = vor.u32 %v16934_v10, %v14648_v7 }
 0x56b   :  { %10652 = vmatpush.bf16.msra.mxu0 %v14905_v21  ;;  %v15674_v16 = vld [vmem:[#allocation7 + $0xdf8] sm:$0xf0]  ;;  %v17158_v5 = vld [vmem:[#allocation7 + $0xcf4] sm:$0xf0] }
 0x56c   :  { %10666 = vmatpush.bf16.msra.mxu1 %v15801_v0  ;;  %v15677_v14 = vor.u32 %v17174_v52, %v15674_v16  ;;  %v16886_v55 = vld [vmem:[#allocation7 + $0x47c] sm:$0xf]  ;;  %v14520_v54 = vld [vmem:[#allocation7 + $0x478] sm:$0xf]  ;;  %v15545_v47 = vor.u32 %v17158_v5, %v15544_v58  ;;  %v6538_v5 = vpop.permute.xlu1 %6537 }
 0x56d   :  { %10679 = vmatpush.bf16.msra.mxu2 %v14781_v53  ;;  %v14522_v27 = vld [vmem:[#allocation7 + $0x4f8] sm:$0xf0]  ;;  %v16902_v26 = vld [vmem:[#allocation7 + $0x4f4] sm:$0xf0] }
 0x56e   :  { %10692 = vmatpush.bf16.msra.mxu3 %v15805_v4  ;;  %v17142_v15 = vld [vmem:[#allocation7 + $0xc7c] sm:$0xf]  ;;  %v14525_v20 = vor.u32 %v16886_v55, %v14522_v27  ;;  %v15416_v43 = vld [vmem:[#allocation7 + $0xb78] sm:$0xf]  ;;  %v14521_v42 = vor.u32 %v16902_v26, %v14520_v54 }
 0x56f   :  { %10653 = vmatpush.bf16.msra.mxu0 %v14777_v17  ;;  %v15546_v35 = vld [vmem:[#allocation7 + $0xcf8] sm:$0xf0]  ;;  %v17126_v28 = vld [vmem:[#allocation7 + $0xbf4] sm:$0xf0]  ;;  %v10453_v50 = vpop.f32.mrf.mxu0  ;;  %v10466_v48 = vpop.f32.mrf.mxu1 }
 0x570   :  { %10667 = vmatpush.bf16.msra.mxu1 %v15673_v51  ;;  %v15549_v45 = vor.u32 %v17142_v15, %v15546_v35  ;;  %v16854_v2 = vld [vmem:[#allocation7 + $0x37c] sm:$0xf]  ;;  %v14392_v62 = vld [vmem:[#allocation7 + $0x378] sm:$0xf]  ;;  %v15417_v32 = vor.u32 %v17126_v28, %v15416_v43  ;;  %v10467_v29 = vadd.f32 %v10466_v48, %v10453_v50  ;;  %v6541_v50 = vmul.f32 %v6538_v5, %v17928_v36 }
 0x571   :  { %10680 = vmatpush.bf16.msra.mxu2 %v14653_v34  ;;  %v14394_v61 = vld [vmem:[#allocation7 + $0x3f8] sm:$0xf0]  ;;  %v16870_v18 = vld [vmem:[#allocation7 + $0x3f4] sm:$0xf0]  ;;  %v6542_v48 = vmul.f32 %v6538_v5, %v17956_v6 }
 0x572   :  { %10693 = vmatpush.bf16.msra.mxu3 %v15677_v14  ;;  %v17110_v24 = vld [vmem:[#allocation7 + $0xb7c] sm:$0xf]  ;;  %v15288_v63 = vld [vmem:[#allocation7 + $0xa78] sm:$0xf]  ;;  %v14397_v46 = vor.u32 %v16854_v2, %v14394_v61  ;;  %v14393_v44 = vor.u32 %v16870_v18, %v14392_v62  ;;  %15956 = vst [vmem:[%s18807_s12 + $0x1b0] sm:$0xff] %v10467_v29  ;;  %v6554_v29 = vrot.slane %v6541_v50, 4 }
 0x573   :  { %10654 = vmatpush.bf16.msra.mxu0 %v14649_v3  ;;  %v15418_v8 = vld [vmem:[#allocation7 + $0xbf8] sm:$0xf0]  ;;  %v17094_v21 = vld [vmem:[#allocation7 + $0xaf4] sm:$0xf0] }
 0x574   :  { %10668 = vmatpush.bf16.msra.mxu1 %v15545_v47  ;;  %v15421_v60 = vor.u32 %v17110_v24, %v15418_v8  ;;  %v16822_v19 = vld [vmem:[#allocation7 + $0x27c] sm:$0xf]  ;;  %v14264_v40 = vld [vmem:[#allocation7 + $0x278] sm:$0xf]  ;;  %v15289_v30 = vor.u32 %v17094_v21, %v15288_v63  ;;  %v6543_v63 = vmul.f32 %v6538_v5, %v17966_v59  ;;  %v6546_v21 = vmul.f32 %v6538_v5, %v17979_v49 }
 0x575   :  { %10681 = vmatpush.bf16.msra.mxu2 %v14525_v20  ;;  %v14266_v41 = vld [vmem:[#allocation7 + $0x2f8] sm:$0xf0]  ;;  %v16838_v0 = vld [vmem:[#allocation7 + $0x2f4] sm:$0xf0] }
 0x576   :  { %10694 = vmatpush.bf16.msra.mxu3 %v15549_v45  ;;  %v17078_v38 = vld [vmem:[#allocation7 + $0xa7c] sm:$0xf]  ;;  %v14269_v53 = vor.u32 %v16822_v19, %v14266_v41  ;;  %v15160_v25 = vld [vmem:[#allocation7 + $0x978] sm:$0xf]  ;;  %v14265_v17 = vor.u32 %v16838_v0, %v14264_v40  ;;  %v6540_v45 = vmul.f32 %v6538_v5, %v17926_v1  ;;  %v6560_v41 = vrot.slane %v6542_v48, 4 }
 0x577   :  { %10655 = vmatpush.bf16.msra.mxu0 %v14521_v42  ;;  %v15290_v12 = vld [vmem:[#allocation7 + $0xaf8] sm:$0xf0]  ;;  %v17062_v22 = vld [vmem:[#allocation7 + $0x9f4] sm:$0xf0]  ;;  %v10455_v14 = vpop.f32.mrf.mxu0  ;;  %v10468_v58 = vpop.f32.mrf.mxu1 }
 0x578   :  { %10669 = vmatpush.bf16.msra.mxu1 %v15417_v32  ;;  %v15293_v4 = vor.u32 %v17078_v38, %v15290_v12  ;;  %v16790_v23 = vld [vmem:[#allocation7 + $0x17c] sm:$0xf]  ;;  %v10479_v57 = vpop.f32.mrf.mxu2  ;;  %v10492_v7 = vpop.f32.mrf.mxu3  ;;  %v14136_v10 = vld [vmem:[#allocation7 + $0x178] sm:$0xf]  ;;  %v15161_v55 = vor.u32 %v17062_v22, %v15160_v25  ;;  %v6548_v18 = vrot.slane %v6540_v45, 4  ;;  %v6566_v38 = vrot.slane %v6543_v63, 4 }
 0x579   :  { %10682 = vmatpush.bf16.msra.mxu2 %v14397_v46  ;;  %v14138_v9 = vld [vmem:[#allocation7 + $0x1f8] sm:$0xf0]  ;;  %v16806_v51 = vld [vmem:[#allocation7 + $0x1f4] sm:$0xf0]  ;;  %v10493_v34 = vadd.f32 %v10492_v7, %v10479_v57  ;;  %v6544_v46 = vmul.f32 %v6538_v5, %v17971_v31  ;;  %v6547_v12 = vmul.f32 %v6538_v5, %v17982_v11 }
 0x57a   :  { %10695 = vmatpush.bf16.msra.mxu3 %v15421_v60  ;;  %v17046_v52 = vld [vmem:[#allocation7 + $0x97c] sm:$0xf]  ;;  %v15032_v33 = vld [vmem:[#allocation7 + $0x878] sm:$0xf]  ;;  %v14141_v3 = vor.u32 %v16790_v23, %v14138_v9  ;;  %v14137_v54 = vor.u32 %v16806_v51, %v14136_v10  ;;  %v6549_v32 = vadd.f32 %v6548_v18, %v6540_v45  ;;  %v6545_v60 = vmul.f32 %v6538_v5, %v17976_v56 }
 0x57b   :  { %10656 = vmatpush.bf16.msra.mxu0 %v14393_v44  ;;  %v15162_v16 = vld [vmem:[#allocation7 + $0x9f8] sm:$0xf0]  ;;  %v17030_v15 = vld [vmem:[#allocation7 + $0x8f4] sm:$0xf0]  ;;  %15957 = vst [vmem:[%s18807_s12 + $0x1b8] sm:$0xff] %v10493_v34  ;;  %v6555_v44 = vadd.f32 %v6554_v29, %v6541_v50  ;;  %v6572_v40 = vrot.slane %v6544_v46, 4  ;;  %v6567_v25 = vadd.f32 %v6566_v38, %v6543_v63 }
 0x57c   :  { %10670 = vmatpush.bf16.msra.mxu1 %v15289_v30  ;;  %v15165_v27 = vor.u32 %v17046_v52, %v15162_v16  ;;  %v16758_v35 = vld [vmem:[#allocation7 + $0x7c] sm:$0xf]  ;;  %v14008_v43 = vld [vmem:[#allocation7 + $0x78] sm:$0xf]  ;;  %v15033_v2 = vor.u32 %v17030_v15, %v15032_v33  ;;  %v6550_v19 = vrot.slane %v6549_v32, 2  ;;  %v6578_v0 = vrot.slane %v6545_v60, 4 }
 0x57d   :  { %10683 = vmatpush.bf16.msra.mxu2 %v14269_v53  ;;  %v14010_v26 = vld [vmem:[#allocation7 + $0xf8] sm:$0xf0]  ;;  %v16774_v28 = vld [vmem:[#allocation7 + $0xf4] sm:$0xf0]  ;;  %v6561_v53 = vadd.f32 %v6560_v41, %v6542_v48  ;;  %v6573_v22 = vadd.f32 %v6572_v40, %v6544_v46  ;;  %v6590_v23 = vrot.slane %v6547_v12, 4  ;;  %v6568_v51 = vrot.slane %v6567_v25, 2 }
 0x57e   :  { %10696 = vmatpush.bf16.msra.mxu3 %v15293_v4  ;;  %v17014_v47 = vld [vmem:[#allocation7 + $0x87c] sm:$0xf]  ;;  %v14013_v42 = vor.u32 %v16758_v35, %v14010_v26  ;;  %v14009_v24 = vor.u32 %v16774_v28, %v14008_v43  ;;  %v6551_v30 = vadd.f32 %v6550_v19, %v6549_v32  ;;  %v6584_v4 = vrot.slane %v6546_v21, 4 }
 0x57f   :  { %10657 = vmatpush.bf16.msra.mxu0 %v14265_v17  ;;  %v15034_v20 = vld [vmem:[#allocation7 + $0x8f8] sm:$0xf0]  ;;  %v6579_v9 = vadd.f32 %v6578_v0, %v6545_v60  ;;  %v6562_v57 = vrot.slane %v6561_v53, 2  ;;  %v6574_v34 = vrot.slane %v6573_v22, 2  ;;  %v6591_v14 = vadd.f32 %v6590_v23, %v6547_v12 }
 0x580   :  { %10671 = vmatpush.bf16.msra.mxu1 %v15161_v55  ;;  %v15037_v61 = vor.u32 %v17014_v47, %v15034_v20  ;;  %v10481_v8 = vpop.f32.mrf.mxu2  ;;  %v10494_v62 = vpop.f32.mrf.mxu3  ;;  %v6552_v16 = vrot.slane %v6551_v30, 1  ;;  %v6585_v7 = vadd.f32 %v6584_v4, %v6546_v21 }
 0x581   :  { %10684 = vmatpush.bf16.msra.mxu2 %v14141_v3  ;;  %v6580_v58 = vrot.slane %v6579_v9, 2  ;;  %v6563_v55 = vadd.f32 %v6562_v57, %v6561_v53  ;;  %v6575_v26 = vadd.f32 %v6574_v34, %v6573_v22  ;;  %v6592_v47 = vrot.slane %v6591_v14, 2 }
 0x582   :  { %10697 = vmatpush.bf16.msra.mxu3 %v15165_v27  ;;  %v6553_v5 = vadd.f32 %v6552_v16, %v6551_v30  ;;  %v6586_v33 = vrot.slane %v6585_v7, 2  ;;  %v6569_v27 = vadd.f32 %v6568_v51, %v6567_v25 }
 0x583   :  { %10658 = vmatpush.bf16.msra.mxu0 %v14137_v54  ;;  %v6602_v54 = vperm.slane %v18272_v13, 0  ;;  %v6581_v28 = vadd.f32 %v6580_v58, %v6579_v9  ;;  %v6576_v62 = vrot.slane %v6575_v26, 1  ;;  %v6593_v18 = vadd.f32 %v6592_v47, %v6591_v14 }
 0x584   :  { %10672 = vmatpush.bf16.msra.mxu1 %v15033_v2  ;;  %v6564_v2 = vrot.slane %v6563_v55, 1  ;;  %v6570_v8 = vrot.slane %v6569_v27, 1 }
 0x585   :  { %10685 = vmatpush.bf16.msra.mxu2 %v14013_v42  ;;  %v6587_v42 = vadd.f32 %v6586_v33, %v6585_v7  ;;  %v6582_v50 = vrot.slane %v6581_v28, 1  ;;  %v6577_v21 = vadd.f32 %v6576_v62, %v6575_v26  ;;  %v6594_v19 = vrot.slane %v6593_v18, 1 }
 0x586   :  { %10698 = vmatpush.bf16.msra.mxu3 %v15037_v61  ;;  %v6603_v61 = vadd.f32 %v6602_v54, %v6553_v5  ;;  %v6565_v48 = vadd.f32 %v6564_v2, %v6563_v55  ;;  %v6571_v63 = vadd.f32 %v6570_v8, %v6569_v27 }
 0x587   :  { %10659 = vmatpush.bf16.msra.mxu0 %v14009_v24  ;;  %10673 = vmatmul.bf16.vlgmr.msra.gmra.mxu1 %v17920_v39  ;;  %v6588_v13 = vrot.slane %v6587_v42, 1  ;;  %v6583_v41 = vadd.f32 %v6582_v50, %v6581_v28  ;;  %v6595_v0 = vadd.f32 %v6594_v19, %v6593_v18  ;;  %v6607_v30 = vadd.f32 %v6602_v54, %v6577_v21 }
 0x588   :  { %10686 = vmatmul.bf16.vlgmr.msra.gmra.mxu2 %v17918_v37  ;;  %v13870_v32 = vmul.f32 -1.442695, %v6603_v61  ;;  %v6605_v38 = vadd.f32 %v6602_v54, %v6565_v48  ;;  %v6606_v12 = vadd.f32 %v6602_v54, %v6571_v63 }
 0x589   :  { %10699 = vmatmul.bf16.vlgmr.msra.gmra.mxu3 %v17920_v39  ;;  %v6556_v39 = vrot.slane %v6555_v44, 2  ;;  %v6608_v53 = vadd.f32 %v6602_v54, %v6583_v41  ;;  %v6610_v23 = vadd.f32 %v6602_v54, %v6595_v0 }
 0x58a   :  { %10660 = vmatmul.bf16.vlgmr.msra.gmra.mxu0 %v17918_v37  ;;  %17309 = vpow2.f32 %v13870_v32  ;;  %v13873_v25 = vmul.f32 -1.442695, %v6606_v12 }
 0x58b   :  { %v6557_v10 = vadd.f32 %v6556_v39, %v6555_v44  ;;  %v6589_v44 = vadd.f32 %v6588_v13, %v6587_v42  ;;  %v13872_v39 = vmul.f32 -1.442695, %v6605_v38  ;;  %v13877_v16 = vmul.f32 -1.442695, %v6610_v23 }
 0x58d   :  { %v6558_v3 = vrot.slane %v6557_v10, 1  ;;  %v6609_v4 = vadd.f32 %v6602_v54, %v6589_v44 }
 0x58f   :  { %v10505_v37 = vpop.f32.mrf.mxu0  ;;  %v10518_v17 = vpop.f32.mrf.mxu1  ;;  %v6559_v24 = vadd.f32 %v6558_v3, %v6557_v10  ;;  %v13876_v9 = vmul.f32 -1.442695, %v6609_v4 }
 0x590   :  { %v10519_v52 = vadd.f32 %v10518_v17, %v10505_v37  ;;  %v17310_v22 = vpop.eup %17309  ;;  %v13874_v37 = vmul.f32 -1.442695, %v6607_v30  ;;  %v13875_v17 = vmul.f32 -1.442695, %v6608_v53 }
 0x591   :  { %v6604_v29 = vadd.f32 %v6602_v54, %v6559_v24 }
 0x592   :  { %15958 = vst [vmem:[%s18807_s12 + $0x1c0] sm:$0xff] %v10519_v52  ;;  %v18545_v52 = vadd.f32 1.0, %v17310_v22 }
 0x593   :  { %v13871_v40 = vmul.f32 -1.442695, %v6604_v29 }
 0x594   :  { %vm6648_vm9 = vweird.f32 %v18545_v52  ;;  %v6652_v0 = vand.u32 2147483647, %v18545_v52  ;;  %v6654_v4 = vand.u32 2147483648, %v18545_v52 }
 0x595   :  { %17311 = vpow2.f32 %v13871_v40 }
 0x596   :  { %17313 = vpow2.f32 %v13872_v39  ;;  %vm6653_vm7 = vcmp.eq.f32.partialorder %v6652_v0, 8.507059e+37 }
 0x597   :  { %v10507_v45 = vpop.f32.mrf.mxu0  ;;  %v10520_v43 = vpop.f32.mrf.mxu1  ;;  %17315 = vpow2.f32 %v13873_v25 }
 0x598   :  { %v10531_v15 = vpop.f32.mrf.mxu2  ;;  %v10544_v35 = vpop.f32.mrf.mxu3  ;;  %17317 = vpow2.f32 %v13874_v37 }
 0x599   :  { %v10545_v20 = vadd.f32 %v10544_v35, %v10531_v15  ;;  %17319 = vpow2.f32 %v13875_v17 }
 0x59a   :  { %17321 = vpow2.f32 %v13876_v9 }
 0x59b   :  { %15959 = vst [vmem:[%s18807_s12 + $0x1c8] sm:$0xff] %v10545_v20  ;;  %v17312_v57 = vpop.eup %17311  ;;  %17323 = vrcp.f32 %v18545_v52 }
 0x59c   :  { %v17314_v34 = vpop.eup %17313  ;;  %17325 = vpow2.f32 %v13877_v16  ;;  %v18548_v14 = vadd.f32 1.0, %v17312_v57 }
 0x59d   :  { %v17316_v58 = vpop.eup %17315  ;;  %v18553_v33 = vadd.f32 1.0, %v17314_v34 }
 0x59e   :  { %v17318_v5 = vpop.eup %17317  ;;  %v18555_v27 = vadd.f32 1.0, %v17316_v58  ;;  %17327 = vrcp.f32 %v18548_v14  ;;  %vm6663_vm11 = vweird.f32 %v18548_v14  ;;  %v6667_v16 = vand.u32 2147483647, %v18548_v14 }
 0x59f   :  { %v17320_v55 = vpop.eup %17319  ;;  %v18560_v35 = vadd.f32 1.0, %v17318_v5  ;;  %17329 = vrcp.f32 %v18553_v33  ;;  %vm6678_vm12 = vweird.f32 %v18553_v33  ;;  %v6669_v58 = vand.u32 2147483648, %v18548_v14 }
 0x5a0   :  { %v10533_v46 = vpop.f32.mrf.mxu2  ;;  %v10546_v60 = vpop.f32.mrf.mxu3  ;;  %v18562_v20 = vadd.f32 1.0, %v17320_v55  ;;  %17331 = vrcp.f32 %v18555_v27  ;;  %vm6693_vm1 = vweird.f32 %v18555_v27  ;;  %v6682_v5 = vand.u32 2147483647, %v18553_v33 }
 0x5a1   :  { %v17322_v3 = vpop.eup %17321  ;;  %17333 = vrcp.f32 %v18560_v35  ;;  %vm6708_vm4 = vweird.f32 %v18560_v35  ;;  %v6684_v55 = vand.u32 2147483648, %v18553_v33 }
 0x5a2   :  { %v18558_v15 = vpop.eup %17323  ;;  %v18565_v2 = vadd.f32 1.0, %v17322_v3  ;;  %17335 = vrcp.f32 %v18562_v20  ;;  %vm6723_vm8 = vweird.f32 %v18562_v20 }
 0x5a3   :  { %v17326_v47 = vpop.eup %17325  ;;  %v6644_v42 = vmul.f32 %v18558_v15, %v18545_v52  ;;  %vm6649_vm2 = vweird.f32 %v18558_v15 }
 0x5a4   :  { %v18573_v61 = vadd.f32 1.0, %v17326_v47  ;;  %v18576_v24 = vpop.eup %17327  ;;  %17337 = vrcp.f32 %v18565_v2  ;;  %vm18616_vm13 = vmor %vm6648_vm9, %vm6649_vm2  ;;  %vm6738_vm10 = vweird.f32 %v18565_v2 }
 0x5a5   :  { %v6645_v8 = vsub.f32 1.0, %v6644_v42  ;;  %v18580_v62 = vpop.eup %17329  ;;  %v6659_v18 = vmul.f32 %v18576_v24, %v18548_v14  ;;  %vm6664_vm15 = vweird.f32 %v18576_v24 }
 0x5a6   :  { %17339 = vrcp.f32 %v18573_v61  ;;  %v18585_v13 = vpop.eup %17331  ;;  %v6674_v46 = vmul.f32 %v18580_v62, %v18553_v33  ;;  %vm6679_vm0 = vweird.f32 %v18580_v62  ;;  %vm18645_vm14 = vmor %vm6663_vm11, %vm6664_vm15  ;;  %vm6753_vm2 = vweird.f32 %v18573_v61 }
 0x5a7   :  { %v18587_v32 = vpop.eup %17333  ;;  %v6646_v29 = vmul.f32 %v18558_v15, %v6645_v8  ;;  %v6660_v60 = vsub.f32 1.0, %v6659_v18  ;;  %v6689_v21 = vmul.f32 %v18585_v13, %v18555_v27  ;;  %vm6694_vm3 = vweird.f32 %v18585_v13  ;;  %vm18669_vm15 = vmor %vm6678_vm12, %vm6679_vm0 }
 0x5a8   :  { %v18589_v63 = vpop.eup %17335  ;;  %v6704_v41 = vmul.f32 %v18587_v32, %v18560_v35  ;;  %v6675_v40 = vsub.f32 1.0, %v6674_v46  ;;  %vm6709_vm5 = vweird.f32 %v18587_v32  ;;  %v6670_v18 = vor.u32 1.1754944e-38, %v6669_v58 }
 0x5a9   :  { %v6719_v38 = vmul.f32 %v18589_v63, %v18562_v20  ;;  %v6647_v12 = vadd.f32 %v18558_v15, %v6646_v29  ;;  %v6661_v30 = vmul.f32 %v18576_v24, %v6660_v60  ;;  %v6690_v53 = vsub.f32 1.0, %v6689_v21  ;;  %vm18699_vm12 = vmor %vm6708_vm4, %vm6709_vm5 }
 0x5aa   :  { %v18596_v19 = vpop.eup %17337  ;;  %v6705_v39 = vsub.f32 1.0, %v6704_v41  ;;  %v6676_v9 = vmul.f32 %v18580_v62, %v6675_v40  ;;  %vm6724_vm6 = vweird.f32 %v18589_v63  ;;  %v6697_v60 = vand.u32 2147483647, %v18555_v27 }
 0x5ab   :  { %v6734_v25 = vmul.f32 %v18596_v19, %v18565_v2  ;;  %v6720_v37 = vsub.f32 1.0, %v6719_v38  ;;  %v6651_v17 = vsel %vm18616_vm13, %v18558_v15, %v6647_v12  ;;  %v6662_v52 = vadd.f32 %v18576_v24, %v6661_v30  ;;  %vm18712_vm0 = vmor %vm6723_vm8, %vm6724_vm6 }
 0x5ac   :  { %v18600_v44 = vpop.eup %17339  ;;  %v6691_v57 = vmul.f32 %v18585_v13, %v6690_v53  ;;  %vm6739_vm9 = vweird.f32 %v18596_v19  ;;  %vm18655_vm13 = vcmp.eq.f32.partialorder %v6667_v16, 8.507059e+37  ;;  %v6714_v21 = vand.u32 2147483648, %v18560_v35 }
 0x5ad   :  { %v6749_v22 = vmul.f32 %v18600_v44, %v18573_v61  ;;  %v6721_v3 = vmul.f32 %v18589_v63, %v6720_v37  ;;  %v6666_v47 = vsel %vm18645_vm14, %v18576_v24, %v6662_v52  ;;  %vm6754_vm11 = vweird.f32 %v18600_v44  ;;  %vm18685_vm14 = vmor %vm6693_vm1, %vm6694_vm3 }
 0x5ae   :  { %v6692_v14 = vadd.f32 %v18585_v13, %v6691_v57  ;;  %v6729_v41 = vand.u32 2147483648, %v18562_v20  ;;  %v6712_v40 = vand.u32 2147483647, %v18560_v35  ;;  %v6742_v53 = vand.u32 2147483647, %v18565_v2  ;;  %vm18731_vm3 = vmor %vm6738_vm10, %vm6739_vm9 }
 0x5af   :  { %v10557_v7 = vpop.f32.mrf.mxu0  ;;  %v10570_v10 = vpop.f32.mrf.mxu1  ;;  %v6750_v34 = vsub.f32 1.0, %v6749_v22  ;;  %v6722_v29 = vadd.f32 %v18589_v63, %v6721_v3  ;;  %vm6698_vm1 = vcmp.eq.f32.partialorder %v6697_v60, 8.507059e+37  ;;  %v6715_v22 = vor.u32 1.1754944e-38, %v6714_v21  ;;  %vm18741_vm6 = vmor %vm6753_vm2, %vm6754_vm11 }
 0x5b0   :  { %v10571_v51 = vadd.f32 %v10570_v10, %v10557_v7  ;;  %v6655_v7 = vor.u32 1.1754944e-38, %v6654_v4  ;;  %v6706_v10 = vmul.f32 %v18587_v32, %v6705_v39  ;;  %v6696_v38 = vsel %vm18685_vm14, %v18585_v13, %v6692_v14 }
 0x5b1   :  { %v6751_v8 = vmul.f32 %v18600_v44, %v6750_v34  ;;  %v6726_v4 = vsel %vm18712_vm0, %v18589_v63, %v6722_v29  ;;  %v6757_v39 = vand.u32 2147483647, %v18573_v61  ;;  %v6730_v23 = vor.u32 1.1754944e-38, %v6729_v41 }
 0x5b2   :  { %15960 = vst [vmem:[%s18807_s12 + $0x1d0] sm:$0xff] %v10571_v51  ;;  %v6735_v51 = vsub.f32 1.0, %v6734_v25  ;;  %v6656_v15 = vsel %vm6653_vm7, %v6655_v7, %v6651_v17  ;;  %vm18673_vm7 = vcmp.eq.f32.partialorder %v6682_v5, 8.507059e+37  ;;  %v6671_v25 = vsel %vm18655_vm13, %v6670_v18, %v6666_v47 }
 0x5b3   :  { %v6752_v35 = vadd.f32 %v18600_v44, %v6751_v8  ;;  %vm6713_vm4 = vcmp.eq.f32.partialorder %v6712_v40, 8.507059e+37  ;;  %vm6743_vm8 = vcmp.eq.f32.partialorder %v6742_v53, 8.507059e+37  ;;  %vm6758_vm10 = vcmp.eq.f32.partialorder %v6757_v39, 8.507059e+37 }
 0x5b4   :  { %v6736_v42 = vmul.f32 %v18596_v19, %v6735_v51 }
 0x5b5   :  { %v6756_v57 = vsel %vm18741_vm6, %v18600_v44, %v6752_v35 }
 0x5b6   :  { %v6737_v30 = vadd.f32 %v18596_v19, %v6736_v42 }
 0x5b7   :  { %v10559_v43 = vpop.f32.mrf.mxu0  ;;  %v10572_v28 = vpop.f32.mrf.mxu1 }
 0x5b8   :  { %v10583_v54 = vpop.f32.mrf.mxu2  ;;  %v10596_v26 = vpop.f32.mrf.mxu3  ;;  %v6699_v43 = vand.u32 2147483648, %v18555_v27  ;;  %v6707_v28 = vadd.f32 %v18587_v32, %v6706_v10  ;;  %v6727_v27 = vand.u32 2147483647, %v18562_v20  ;;  %v6759_v20 = vand.u32 2147483648, %v18573_v61 }
 0x5b9   :  { %v10597_v45 = vadd.f32 %v10596_v26, %v10583_v54  ;;  %v6677_v26 = vadd.f32 %v18580_v62, %v6676_v9  ;;  %v6741_v16 = vsel %vm18731_vm3, %v18596_v19, %v6737_v30 }
 0x5ba   :  { %v6700_v12 = vor.u32 1.1754944e-38, %v6699_v43  ;;  %v6711_v0 = vsel %vm18699_vm12, %v18587_v32, %v6707_v28  ;;  %v6744_v32 = vand.u32 2147483648, %v18565_v2  ;;  %vm6728_vm5 = vcmp.eq.f32.partialorder %v6727_v27, 8.507059e+37 }
 0x5bb   :  { %15961 = vst [vmem:[%s18807_s12 + $0x1d8] sm:$0xff] %v10597_v45  ;;  %v6681_v46 = vsel %vm18669_vm15, %v18580_v62, %v6677_v26  ;;  %v6716_v52 = vsel %vm6713_vm4, %v6715_v22, %v6711_v0  ;;  %v6731_v2 = vsel %vm6728_vm5, %v6730_v23, %v6726_v4  ;;  %v6760_v51 = vor.u32 1.1754944e-38, %v6759_v20 }
 0x5bc   :  { %v6701_v17 = vsel %vm6698_vm1, %v6700_v12, %v6696_v38  ;;  %v6745_v10 = vor.u32 1.1754944e-38, %v6744_v32 }
 0x5bd   :  { %v6761_v3 = vsel %vm6758_vm10, %v6760_v51, %v6756_v57 }
 0x5c0   :  { %v10585_v50 = vpop.f32.mrf.mxu2  ;;  %v10598_v48 = vpop.f32.mrf.mxu3 }
 0x5c1   :  { %v6685_v48 = vor.u32 1.1754944e-38, %v6684_v55  ;;  %v6746_v55 = vsel %vm6743_vm8, %v6745_v10, %v6741_v16 }
 0x5c3   :  { %v6686_v63 = vsel %vm18673_vm7, %v6685_v48, %v6681_v46 }
 0x5d6   :  { %v6766_v7 = vpop.permute.xlu0 %6765 }
 0x5d7   :  { %v6768_v61 = vadd.f32 %v6766_v7, %v6656_v15  ;;  %v6769_v34 = vadd.f32 %v6766_v7, %v6671_v25  ;;  %v6770_v58 = vadd.f32 %v6766_v7, %v6686_v63  ;;  %v6771_v5 = vadd.f32 %v6766_v7, %v6701_v17 }
 0x5d8   :  { %v6772_v54 = vadd.f32 %v6766_v7, %v6716_v52  ;;  %v6773_v26 = vadd.f32 %v6766_v7, %v6731_v2  ;;  %v6774_v47 = vadd.f32 %v6766_v7, %v6746_v55  ;;  %v6775_v14 = vadd.f32 %v6766_v7, %v6761_v3 }
 0x5d9   :  { %v6776_v19 = vmul.f32 %v6768_v61, %v17926_v1  ;;  %v6777_v45 = vmul.f32 %v6769_v34, %v17928_v36  ;;  %v6778_v44 = vmul.f32 %v6770_v58, %v17956_v6  ;;  %v6779_v43 = vmul.f32 %v6771_v5, %v17966_v59 }
 0x5da   :  { %v6780_v28 = vmul.f32 %v6772_v54, %v17971_v31  ;;  %v6781_v15 = vmul.f32 %v6773_v26, %v17976_v56  ;;  %v6782_v1 = vmul.f32 %v6774_v47, %v17979_v49  ;;  %v6783_v36 = vmul.f32 %v6775_v14, %v17982_v11 }
 0x5db   :  { %13878 = vst [vmem:[%s18806_s11 + $0x40] sm:$0xff] %v6776_v19 }
 0x5dc   :  { %13879 = vst [vmem:[%s18806_s11 + $0x48] sm:$0xff] %v6777_v45 }
 0x5dd   :  { %13880 = vst [vmem:[%s18806_s11 + $0x50] sm:$0xff] %v6778_v44 }
 0x5de   :  { %13881 = vst [vmem:[%s18806_s11 + $0x58] sm:$0xff] %v6779_v43 }
 0x5df   :  { %13882 = vst [vmem:[%s18806_s11 + $0x60] sm:$0xff] %v6780_v28 }
 0x5e0   :  { %13883 = vst [vmem:[%s18806_s11 + $0x68] sm:$0xff] %v6781_v15 }
 0x5e1   :  { %13884 = vst [vmem:[%s18806_s11 + $0x70] sm:$0xff] %v6782_v1 }
 0x5e2   :  { %13885 = vst [vmem:[%s18806_s11 + $0x78] sm:$0xff] %v6783_v36 }
 0x5e4   :  { %v10622_v6 = vpop.f32.mrf.mxu1 }
 0x5e7   :  { %v10609_v59 = vpop.f32.mrf.mxu0 }
 0x5e8   :  { %v10623_v31 = vadd.f32 %v10622_v6, %v10609_v59 }
 0x5ea   :  { %15962 = vst [vmem:[%s18807_s12 + $0x1e0] sm:$0xff] %v10623_v31 }
 0x5eb   :  { %v10635_v56 = vpop.f32.mrf.mxu2 }
 0x5ec   :  { %v10648_v49 = vpop.f32.mrf.mxu3  ;;  %v10624_v42 = vpop.f32.mrf.mxu1 }
 0x5ed   :  { %v10649_v11 = vadd.f32 %v10648_v49, %v10635_v56 }
 0x5ef   :  { %15963 = vst [vmem:[%s18807_s12 + $0x1e8] sm:$0xff] %v10649_v11  ;;  %v10611_v8 = vpop.f32.mrf.mxu0 }
 0x5f3   :  { %v10637_v18 = vpop.f32.mrf.mxu2 }
 0x5f4   :  { %v10650_v24 = vpop.f32.mrf.mxu3 }
 0x604   :  { %v10674_v50 = vpop.f32.mrf.mxu1 }
 0x607   :  { %v10661_v48 = vpop.f32.mrf.mxu0 }
 0x608   :  { %v10675_v29 = vadd.f32 %v10674_v50, %v10661_v48 }
 0x60a   :  { %15964 = vst [vmem:[%s18807_s12 + $0x1f0] sm:$0xff] %v10675_v29 }
 0x60b   :  { %v10687_v46 = vpop.f32.mrf.mxu2 }
 0x60c   :  { %v10700_v33 = vpop.f32.mrf.mxu3  ;;  %v10676_v21 = vpop.f32.mrf.mxu1 }
 0x60d   :  { %v10701_v60 = vadd.f32 %v10700_v33, %v10687_v46 }
 0x60f   :  { %15965 = vst [vmem:[%s18807_s12 + $0x1f8] sm:$0xff] %v10701_v60  ;;  %v10663_v41 = vpop.f32.mrf.mxu0 }
 0x613   :  { %v10689_v38 = vpop.f32.mrf.mxu2 }
 0x614   :  { %v10702_v12 = vpop.f32.mrf.mxu3 }
 0x615   :  { %10745 = vsyncpa [#allocation4], 1 }
 0x616   :  { %10746 = vsyncpa [#allocation6], 1 }
 0x617   :  { %10747 = vsyncpa [#allocation9], 1 }

</bundles_post_ra>
